<compile_context>
chip_gen: v6e
topology: v6e:2x2x1
jax: 0.10.0
libtpu: 0.0.40
codegen_flags: <defaults>
</compile_context>

<pallas_src>
import functools

import jax
import jax.numpy as jnp
from jax import lax
from jax.experimental import pallas as pl
from jax.experimental.pallas import tpu as pltpu


def _conv3d_bn_relu_kernel(x_ref, w_ref, b_ref, o_ref, *, kt, k, wp, d_out, l_out):
    """One grid step = one sample n.
         x_ref : (Cin, Dp, l_in)        padded input slab, spatial flattened (row width wp)
         w_ref : (Cout, kt*k*k*Cin)     BN-scale-folded weights (kd, ki, kj major; ci fastest)
         b_ref : (Cout, 1)              BN bias
         o_ref : (Cout, d_out, l_out)   dense stride-1 output rows, lane-padded to 128-multiple
    """
    w = w_ref[...]                                   # resident for the whole step
    b = b_ref[...]
    for do in range(d_out):
        # In-VMEM im2col for this output depth: one shifted lane-slice per (kd, ki, kj) tap,
        # stacked so rows match the wrapper's (kt, k, k, Cin) weight ordering.
        pieces = [
            x_ref[:, do + kd, pl.ds(ki * wp + kj, l_out)]           # (Cin, l_out)
            for kd in range(kt) for ki in range(k) for kj in range(k)
        ]
        rhs = jnp.concatenate(pieces, axis=0)                        # (kt*k*k*Cin, l_out)
        y = jnp.dot(w, rhs, preferred_element_type=jnp.float32) + b  # single MXU dot, K=kt*k*k*Cin
        o_ref[:, do, :] = jnp.maximum(y, 0.0).astype(o_ref.dtype)    # fused BN bias + ReLU


def conv3d_kx_bn_relu(x, weight, bn_gamma, bn_beta, bn_mean, bn_var,
                      *, stride=1, eps=1e-5):
    """x: (N, Cin, D, H, W) f32.  weight: (Cout, Cin, kt, k, k).  Returns (N, Cout, D, Ho, Wo)."""
    N, Cin, D, H, W = x.shape
    Cout, Cin_w, kt, kh, kw = weight.shape
    assert Cin_w == Cin, "groups != 1 not supported"  # TODO(synk): grouped conv not implemented
    assert kh == kw
    k = kh
    assert kt % 2 == 1 and k % 2 == 1, "'same' padding in this module assumes odd kernels"
    pd, ps = (kt - 1) // 2, (k - 1) // 2
    s = stride

    Dp, Hp, Wp = D + 2 * pd, H + 2 * ps, W + 2 * ps
    # Dense stride-1 rows of width Wp; garbage columns W..Wp-1 (row-wrap) are dropped after.
    l_out = H * Wp
    l_out_pad = ((l_out + 127) // 128) * 128          # lane-dense, 128-aligned output stores
    max_off = (k - 1) * (Wp + 1)                      # largest shifted-slice start offset
    need = max_off + l_out_pad                        # lanes the last tap may read
    Hp2 = max(Hp, -(-need // Wp))                     # extend height pad so slices stay in-bounds
    l_in = Hp2 * Wp

    # ---- single pad pass over x; NO transpose (input stays channel-major) ----
    x_pad = jnp.pad(x, ((0, 0), (0, 0), (pd, pd), (ps, Hp2 - H - ps), (ps, ps)))
    x_flat = x_pad.reshape(N, Cin, Dp, l_in)          # contiguous reshape: free

    # ---- fold BN (eval) scale into weights; one (Cout, kt*k*k*Cin) LHS tile ----
    scale = bn_gamma / jnp.sqrt(bn_var + eps)
    w_fold = weight * scale[:, None, None, None, None]
    w2 = jnp.transpose(w_fold, (0, 2, 3, 4, 1)).reshape(Cout, kt * k * k * Cin)
    w2 = w2.astype(jnp.float32)
    bias = (bn_beta - bn_mean * scale).reshape(Cout, 1).astype(jnp.float32)

    flops = 2 * N * D * l_out_pad * kt * k * k * Cin * Cout
    bytes_accessed = 4 * (N * Cin * Dp * l_in               # input read once
                          + Cout * kt * k * k * Cin + Cout  # weights + bias (resident)
                          + N * Cout * D * l_out_pad)       # output write

    out_flat = pl.pallas_call(
        functools.partial(_conv3d_bn_relu_kernel,
                          kt=kt, k=k, wp=Wp, d_out=D, l_out=l_out_pad),
        out_shape=jax.ShapeDtypeStruct((N, Cout, D, l_out_pad), jnp.float32),
        grid_spec=pltpu.PrefetchScalarGridSpec(
            num_scalar_prefetch=0,
            grid=(N,),                                               # one step per sample
            in_specs=[
                pl.BlockSpec((None, Cin, Dp, l_in), lambda n: (n, 0, 0, 0)),
                pl.BlockSpec((Cout, kt * k * k * Cin), lambda n: (0, 0)),   # VMEM-resident
                pl.BlockSpec((Cout, 1), lambda n: (0, 0)),                  # VMEM-resident
            ],
            out_specs=pl.BlockSpec((None, Cout, D, l_out_pad),
                                   lambda n: (n, 0, 0, 0)),
        ),
        compiler_params=pltpu.CompilerParams(
            dimension_semantics=("parallel",),       # shards samples across v7x's 2 TCs
            vmem_limit_bytes=32 * 1024 * 1024,       # per-step usage is <1 MiB; safe everywhere
        ),
        cost_estimate=pl.CostEstimate(flops=flops, transcendentals=0,
                                      bytes_accessed=bytes_accessed),
    )(x_flat, w2, bias)

    # Drop lane padding + garbage (row-wrap) columns; layout is already channel-major.
    out = out_flat[:, :, :, :l_out].reshape(N, Cout, D, H, Wp)[..., :W]
    if s > 1:
        # TODO(synk): stride>1 computes the dense stride-1 output then subsamples in XLA;
        # storing only strided rows/cols from the kernel would cut output HBM bytes ~s^2.
        out = out[:, :, :, ::s, ::s]
    return out


if __name__ == "__main__":
    # structure_info = {'class': 'Conv3DKXBNRELU', 'in': 4, 'out': 8, 'k': 3, 'kt': 3, 's': 1}
    N, Cin, D, H, W = 2, 4, 8, 16, 16
    Cout, kt, k, stride = 8, 3, 3, 1

    key = jax.random.PRNGKey(0)
    kx, kw_, kg, kb, km, kv = jax.random.split(key, 6)
    x = jax.random.normal(kx, (N, Cin, D, H, W), dtype=jnp.float32)
    weight = 0.1 * jax.random.normal(kw_, (Cout, Cin, kt, k, k), dtype=jnp.float32)
    bn_gamma = 1.0 + 0.1 * jax.random.normal(kg, (Cout,), dtype=jnp.float32)
    bn_beta = 0.1 * jax.random.normal(kb, (Cout,), dtype=jnp.float32)
    bn_mean = 0.1 * jax.random.normal(km, (Cout,), dtype=jnp.float32)
    bn_var = jnp.abs(jax.random.normal(kv, (Cout,), dtype=jnp.float32)) + 0.5

    out = conv3d_kx_bn_relu(x, weight, bn_gamma, bn_beta, bn_mean, bn_var, stride=stride)
    out = jax.block_until_ready(out)

    # reference: lax conv (NCDHW, OIDHW) + eval BN + ReLU
    ref_conv = lax.conv_general_dilated(
        x, weight, window_strides=(1, stride, stride),
        padding=[((kt - 1) // 2,) * 2, ((k - 1) // 2,) * 2, ((k - 1) // 2,) * 2],
        dimension_numbers=("NCDHW", "OIDHW", "NCDHW"))
    scale = bn_gamma / jnp.sqrt(bn_var + 1e-5)
    shift = bn_beta - bn_mean * scale
    ref = jnp.maximum(ref_conv * scale[None, :, None, None, None]
                      + shift[None, :, None, None, None], 0.0)

    Ho = (H - 1) // stride + 1
    Wo = (W - 1) // stride + 1
    assert out.shape == (N, Cout, D, Ho, Wo), out.shape
    assert jnp.allclose(out, ref, rtol=1e-4, atol=1e-4), float(jnp.max(jnp.abs(out - ref)))
    print("KERNEL_OK")
</pallas_src>

<mosaic_0001>
module attributes {stable_mosaic.version = 11 : i64} {
  func.func @_conv3d_bn_relu_kernel(%arg0: i32, %arg1: memref<1x4x10x432xf32, #tpu.memory_space<vmem>>, %arg2: memref<8x108xf32, #tpu.memory_space<vmem>>, %arg3: memref<8x1xf32, #tpu.memory_space<vmem>>, %arg4: memref<1x8x8x384xf32, #tpu.memory_space<vmem>>) attributes {dimension_semantics = [#tpu.dimension_semantics<parallel>], iteration_bounds = array<i64: 2>, scalar_prefetch = 0 : i64, scratch_operands = 0 : i64, tpu.core_type = #tpu.core_type<tc>, window_params = [{transform_indices = @transform_0, window_bounds = array<i64: 1, 4, 10, 432>}, {pipeline_mode = #tpu.pipeline_mode<synchronous>, transform_indices = @transform_1, window_bounds = array<i64: 8, 108>}, {pipeline_mode = #tpu.pipeline_mode<synchronous>, transform_indices = @transform_2, window_bounds = array<i64: 8, 1>}, {transform_indices = @transform_3, window_bounds = array<i64: 1, 8, 8, 384>}]} {
    %c0 = arith.constant 0 : index
    %c0_0 = arith.constant 0 : index
    %0 = vector.load %arg2[%c0, %c0_0] : memref<8x108xf32, #tpu.memory_space<vmem>>, vector<8x108xf32>
    %c0_1 = arith.constant 0 : index
    %c0_2 = arith.constant 0 : index
    %1 = vector.load %arg3[%c0_1, %c0_2] : memref<8x1xf32, #tpu.memory_space<vmem>>, vector<8x1xf32>
    %c0_3 = arith.constant 0 : index
    %c0_4 = arith.constant 0 : index
    %c0_5 = arith.constant 0 : index
    %c0_6 = arith.constant 0 : index
    %2 = vector.load %arg1[%c0_3, %c0_4, %c0_5, %c0_6] : memref<1x4x10x432xf32, #tpu.memory_space<vmem>>, vector<1x4x1x384xf32>
    %3 = vector.shape_cast %2 : vector<1x4x1x384xf32> to vector<4x384xf32>
    %c0_7 = arith.constant 0 : index
    %c0_8 = arith.constant 0 : index
    %c0_9 = arith.constant 0 : index
    %c1 = arith.constant 1 : index
    %4 = vector.load %arg1[%c0_7, %c0_8, %c0_9, %c1] : memref<1x4x10x432xf32, #tpu.memory_space<vmem>>, vector<1x4x1x384xf32>
    %5 = vector.shape_cast %4 : vector<1x4x1x384xf32> to vector<4x384xf32>
    %c0_10 = arith.constant 0 : index
    %c0_11 = arith.constant 0 : index
    %c0_12 = arith.constant 0 : index
    %c2 = arith.constant 2 : index
    %6 = vector.load %arg1[%c0_10, %c0_11, %c0_12, %c2] : memref<1x4x10x432xf32, #tpu.memory_space<vmem>>, vector<1x4x1x384xf32>
    %7 = vector.shape_cast %6 : vector<1x4x1x384xf32> to vector<4x384xf32>
    %c0_13 = arith.constant 0 : index
    %c0_14 = arith.constant 0 : index
    %c0_15 = arith.constant 0 : index
    %c18 = arith.constant 18 : index
    %8 = vector.load %arg1[%c0_13, %c0_14, %c0_15, %c18] : memref<1x4x10x432xf32, #tpu.memory_space<vmem>>, vector<1x4x1x384xf32>
    %9 = vector.shape_cast %8 : vector<1x4x1x384xf32> to vector<4x384xf32>
    %c0_16 = arith.constant 0 : index
    %c0_17 = arith.constant 0 : index
    %c0_18 = arith.constant 0 : index
    %c19 = arith.constant 19 : index
    %10 = vector.load %arg1[%c0_16, %c0_17, %c0_18, %c19] : memref<1x4x10x432xf32, #tpu.memory_space<vmem>>, vector<1x4x1x384xf32>
    %11 = vector.shape_cast %10 : vector<1x4x1x384xf32> to vector<4x384xf32>
    %c0_19 = arith.constant 0 : index
    %c0_20 = arith.constant 0 : index
    %c0_21 = arith.constant 0 : index
    %c20 = arith.constant 20 : index
    %12 = vector.load %arg1[%c0_19, %c0_20, %c0_21, %c20] : memref<1x4x10x432xf32, #tpu.memory_space<vmem>>, vector<1x4x1x384xf32>
    %13 = vector.shape_cast %12 : vector<1x4x1x384xf32> to vector<4x384xf32>
    %c0_22 = arith.constant 0 : index
    %c0_23 = arith.constant 0 : index
    %c0_24 = arith.constant 0 : index
    %c36 = arith.constant 36 : index
    %14 = vector.load %arg1[%c0_22, %c0_23, %c0_24, %c36] : memref<1x4x10x432xf32, #tpu.memory_space<vmem>>, vector<1x4x1x384xf32>
    %15 = vector.shape_cast %14 : vector<1x4x1x384xf32> to vector<4x384xf32>
    %c0_25 = arith.constant 0 : index
    %c0_26 = arith.constant 0 : index
    %c0_27 = arith.constant 0 : index
    %c37 = arith.constant 37 : index
    %16 = vector.load %arg1[%c0_25, %c0_26, %c0_27, %c37] : memref<1x4x10x432xf32, #tpu.memory_space<vmem>>, vector<1x4x1x384xf32>
    %17 = vector.shape_cast %16 : vector<1x4x1x384xf32> to vector<4x384xf32>
    %c0_28 = arith.constant 0 : index
    %c0_29 = arith.constant 0 : index
    %c0_30 = arith.constant 0 : index
    %c38 = arith.constant 38 : index
    %18 = vector.load %arg1[%c0_28, %c0_29, %c0_30, %c38] : memref<1x4x10x432xf32, #tpu.memory_space<vmem>>, vector<1x4x1x384xf32>
    %19 = vector.shape_cast %18 : vector<1x4x1x384xf32> to vector<4x384xf32>
    %c0_31 = arith.constant 0 : index
    %c0_32 = arith.constant 0 : index
    %c1_33 = arith.constant 1 : index
    %c0_34 = arith.constant 0 : index
    %20 = vector.load %arg1[%c0_31, %c0_32, %c1_33, %c0_34] : memref<1x4x10x432xf32, #tpu.memory_space<vmem>>, vector<1x4x1x384xf32>
    %21 = vector.shape_cast %20 : vector<1x4x1x384xf32> to vector<4x384xf32>
    %c0_35 = arith.constant 0 : index
    %c0_36 = arith.constant 0 : index
    %c1_37 = arith.constant 1 : index
    %c1_38 = arith.constant 1 : index
    %22 = vector.load %arg1[%c0_35, %c0_36, %c1_37, %c1_38] : memref<1x4x10x432xf32, #tpu.memory_space<vmem>>, vector<1x4x1x384xf32>
    %23 = vector.shape_cast %22 : vector<1x4x1x384xf32> to vector<4x384xf32>
    %c0_39 = arith.constant 0 : index
    %c0_40 = arith.constant 0 : index
    %c1_41 = arith.constant 1 : index
    %c2_42 = arith.constant 2 : index
    %24 = vector.load %arg1[%c0_39, %c0_40, %c1_41, %c2_42] : memref<1x4x10x432xf32, #tpu.memory_space<vmem>>, vector<1x4x1x384xf32>
    %25 = vector.shape_cast %24 : vector<1x4x1x384xf32> to vector<4x384xf32>
    %c0_43 = arith.constant 0 : index
    %c0_44 = arith.constant 0 : index
    %c1_45 = arith.constant 1 : index
    %c18_46 = arith.constant 18 : index
    %26 = vector.load %arg1[%c0_43, %c0_44, %c1_45, %c18_46] : memref<1x4x10x432xf32, #tpu.memory_space<vmem>>, vector<1x4x1x384xf32>
    %27 = vector.shape_cast %26 : vector<1x4x1x384xf32> to vector<4x384xf32>
    %c0_47 = arith.constant 0 : index
    %c0_48 = arith.constant 0 : index
    %c1_49 = arith.constant 1 : index
    %c19_50 = arith.constant 19 : index
    %28 = vector.load %arg1[%c0_47, %c0_48, %c1_49, %c19_50] : memref<1x4x10x432xf32, #tpu.memory_space<vmem>>, vector<1x4x1x384xf32>
    %29 = vector.shape_cast %28 : vector<1x4x1x384xf32> to vector<4x384xf32>
    %c0_51 = arith.constant 0 : index
    %c0_52 = arith.constant 0 : index
    %c1_53 = arith.constant 1 : index
    %c20_54 = arith.constant 20 : index
    %30 = vector.load %arg1[%c0_51, %c0_52, %c1_53, %c20_54] : memref<1x4x10x432xf32, #tpu.memory_space<vmem>>, vector<1x4x1x384xf32>
    %31 = vector.shape_cast %30 : vector<1x4x1x384xf32> to vector<4x384xf32>
    %c0_55 = arith.constant 0 : index
    %c0_56 = arith.constant 0 : index
    %c1_57 = arith.constant 1 : index
    %c36_58 = arith.constant 36 : index
    %32 = vector.load %arg1[%c0_55, %c0_56, %c1_57, %c36_58] : memref<1x4x10x432xf32, #tpu.memory_space<vmem>>, vector<1x4x1x384xf32>
    %33 = vector.shape_cast %32 : vector<1x4x1x384xf32> to vector<4x384xf32>
    %c0_59 = arith.constant 0 : index
    %c0_60 = arith.constant 0 : index
    %c1_61 = arith.constant 1 : index
    %c37_62 = arith.constant 37 : index
    %34 = vector.load %arg1[%c0_59, %c0_60, %c1_61, %c37_62] : memref<1x4x10x432xf32, #tpu.memory_space<vmem>>, vector<1x4x1x384xf32>
    %35 = vector.shape_cast %34 : vector<1x4x1x384xf32> to vector<4x384xf32>
    %c0_63 = arith.constant 0 : index
    %c0_64 = arith.constant 0 : index
    %c1_65 = arith.constant 1 : index
    %c38_66 = arith.constant 38 : index
    %36 = vector.load %arg1[%c0_63, %c0_64, %c1_65, %c38_66] : memref<1x4x10x432xf32, #tpu.memory_space<vmem>>, vector<1x4x1x384xf32>
    %37 = vector.shape_cast %36 : vector<1x4x1x384xf32> to vector<4x384xf32>
    %c0_67 = arith.constant 0 : index
    %c0_68 = arith.constant 0 : index
    %c2_69 = arith.constant 2 : index
    %c0_70 = arith.constant 0 : index
    %38 = vector.load %arg1[%c0_67, %c0_68, %c2_69, %c0_70] : memref<1x4x10x432xf32, #tpu.memory_space<vmem>>, vector<1x4x1x384xf32>
    %39 = vector.shape_cast %38 : vector<1x4x1x384xf32> to vector<4x384xf32>
    %c0_71 = arith.constant 0 : index
    %c0_72 = arith.constant 0 : index
    %c2_73 = arith.constant 2 : index
    %c1_74 = arith.constant 1 : index
    %40 = vector.load %arg1[%c0_71, %c0_72, %c2_73, %c1_74] : memref<1x4x10x432xf32, #tpu.memory_space<vmem>>, vector<1x4x1x384xf32>
    %41 = vector.shape_cast %40 : vector<1x4x1x384xf32> to vector<4x384xf32>
    %c0_75 = arith.constant 0 : index
    %c0_76 = arith.constant 0 : index
    %c2_77 = arith.constant 2 : index
    %c2_78 = arith.constant 2 : index
    %42 = vector.load %arg1[%c0_75, %c0_76, %c2_77, %c2_78] : memref<1x4x10x432xf32, #tpu.memory_space<vmem>>, vector<1x4x1x384xf32>
    %43 = vector.shape_cast %42 : vector<1x4x1x384xf32> to vector<4x384xf32>
    %c0_79 = arith.constant 0 : index
    %c0_80 = arith.constant 0 : index
    %c2_81 = arith.constant 2 : index
    %c18_82 = arith.constant 18 : index
    %44 = vector.load %arg1[%c0_79, %c0_80, %c2_81, %c18_82] : memref<1x4x10x432xf32, #tpu.memory_space<vmem>>, vector<1x4x1x384xf32>
    %45 = vector.shape_cast %44 : vector<1x4x1x384xf32> to vector<4x384xf32>
    %c0_83 = arith.constant 0 : index
    %c0_84 = arith.constant 0 : index
    %c2_85 = arith.constant 2 : index
    %c19_86 = arith.constant 19 : index
    %46 = vector.load %arg1[%c0_83, %c0_84, %c2_85, %c19_86] : memref<1x4x10x432xf32, #tpu.memory_space<vmem>>, vector<1x4x1x384xf32>
    %47 = vector.shape_cast %46 : vector<1x4x1x384xf32> to vector<4x384xf32>
    %c0_87 = arith.constant 0 : index
    %c0_88 = arith.constant 0 : index
    %c2_89 = arith.constant 2 : index
    %c20_90 = arith.constant 20 : index
    %48 = vector.load %arg1[%c0_87, %c0_88, %c2_89, %c20_90] : memref<1x4x10x432xf32, #tpu.memory_space<vmem>>, vector<1x4x1x384xf32>
    %49 = vector.shape_cast %48 : vector<1x4x1x384xf32> to vector<4x384xf32>
    %c0_91 = arith.constant 0 : index
    %c0_92 = arith.constant 0 : index
    %c2_93 = arith.constant 2 : index
    %c36_94 = arith.constant 36 : index
    %50 = vector.load %arg1[%c0_91, %c0_92, %c2_93, %c36_94] : memref<1x4x10x432xf32, #tpu.memory_space<vmem>>, vector<1x4x1x384xf32>
    %51 = vector.shape_cast %50 : vector<1x4x1x384xf32> to vector<4x384xf32>
    %c0_95 = arith.constant 0 : index
    %c0_96 = arith.constant 0 : index
    %c2_97 = arith.constant 2 : index
    %c37_98 = arith.constant 37 : index
    %52 = vector.load %arg1[%c0_95, %c0_96, %c2_97, %c37_98] : memref<1x4x10x432xf32, #tpu.memory_space<vmem>>, vector<1x4x1x384xf32>
    %53 = vector.shape_cast %52 : vector<1x4x1x384xf32> to vector<4x384xf32>
    %c0_99 = arith.constant 0 : index
    %c0_100 = arith.constant 0 : index
    %c2_101 = arith.constant 2 : index
    %c38_102 = arith.constant 38 : index
    %54 = vector.load %arg1[%c0_99, %c0_100, %c2_101, %c38_102] : memref<1x4x10x432xf32, #tpu.memory_space<vmem>>, vector<1x4x1x384xf32>
    %55 = vector.shape_cast %54 : vector<1x4x1x384xf32> to vector<4x384xf32>
    %56 = tpu.concatenate %3, %5, %7, %9, %11, %13, %15, %17, %19, %21, %23, %25, %27, %29, %31, %33 in 0 : vector<4x384xf32>, vector<4x384xf32>, vector<4x384xf32>, vector<4x384xf32>, vector<4x384xf32>, vector<4x384xf32>, vector<4x384xf32>, vector<4x384xf32>, vector<4x384xf32>, vector<4x384xf32>, vector<4x384xf32>, vector<4x384xf32>, vector<4x384xf32>, vector<4x384xf32>, vector<4x384xf32>, vector<4x384xf32> -> vector<64x384xf32>
    %57 = tpu.concatenate %35, %37, %39, %41, %43, %45, %47, %49, %51, %53, %55 in 0 : vector<4x384xf32>, vector<4x384xf32>, vector<4x384xf32>, vector<4x384xf32>, vector<4x384xf32>, vector<4x384xf32>, vector<4x384xf32>, vector<4x384xf32>, vector<4x384xf32>, vector<4x384xf32>, vector<4x384xf32> -> vector<44x384xf32>
    %58 = tpu.concatenate %56, %57 in 0 : vector<64x384xf32>, vector<44x384xf32> -> vector<108x384xf32>
    %cst = arith.constant dense<0.000000e+00> : vector<8x384xf32>
    %59 = tpu.matmul %0, %58, %cst {dimension_numbers = #tpu.dot_dimension_numbers<[1], [0], [0], [1], [0, 0, 1, 1], [], []>} : vector<8x108xf32>, vector<108x384xf32>, vector<8x384xf32> -> vector<8x384xf32>
    %60 = vector.broadcast %1 : vector<8x1xf32> to vector<8x384xf32>
    %61 = arith.addf %59, %60 : vector<8x384xf32>
    %cst_103 = arith.constant 0.000000e+00 : f32
    %62 = vector.broadcast %cst_103 : f32 to vector<8x384xf32>
    %63 = arith.maximumf %61, %62 : vector<8x384xf32>
    %c0_104 = arith.constant 0 : index
    %c0_105 = arith.constant 0 : index
    %c0_106 = arith.constant 0 : index
    %c0_107 = arith.constant 0 : index
    %64 = vector.load %arg4[%c0_104, %c0_105, %c0_106, %c0_107] : memref<1x8x8x384xf32, #tpu.memory_space<vmem>>, vector<1x8x1x384xf32>
    %65 = vector.shape_cast %64 : vector<1x8x1x384xf32> to vector<8x384xf32>
    %66 = vector.shape_cast %63 : vector<8x384xf32> to vector<1x8x1x384xf32>
    tpu.vector_store %arg4[%c0_104, %c0_105, %c0_106, %c0_107], %66 {strides = array<i32>} : memref<1x8x8x384xf32, #tpu.memory_space<vmem>>, vector<1x8x1x384xf32>,
    %c0_108 = arith.constant 0 : index
    %c0_109 = arith.constant 0 : index
    %c1_110 = arith.constant 1 : index
    %c0_111 = arith.constant 0 : index
    %67 = vector.load %arg1[%c0_108, %c0_109, %c1_110, %c0_111] : memref<1x4x10x432xf32, #tpu.memory_space<vmem>>, vector<1x4x1x384xf32>
    %68 = vector.shape_cast %67 : vector<1x4x1x384xf32> to vector<4x384xf32>
    %c0_112 = arith.constant 0 : index
    %c0_113 = arith.constant 0 : index
    %c1_114 = arith.constant 1 : index
    %c1_115 = arith.constant 1 : index
    %69 = vector.load %arg1[%c0_112, %c0_113, %c1_114, %c1_115] : memref<1x4x10x432xf32, #tpu.memory_space<vmem>>, vector<1x4x1x384xf32>
    %70 = vector.shape_cast %69 : vector<1x4x1x384xf32> to vector<4x384xf32>
    %c0_116 = arith.constant 0 : index
    %c0_117 = arith.constant 0 : index
    %c1_118 = arith.constant 1 : index
    %c2_119 = arith.constant 2 : index
    %71 = vector.load %arg1[%c0_116, %c0_117, %c1_118, %c2_119] : memref<1x4x10x432xf32, #tpu.memory_space<vmem>>, vector<1x4x1x384xf32>
    %72 = vector.shape_cast %71 : vector<1x4x1x384xf32> to vector<4x384xf32>
    %c0_120 = arith.constant 0 : index
    %c0_121 = arith.constant 0 : index
    %c1_122 = arith.constant 1 : index
    %c18_123 = arith.constant 18 : index
    %73 = vector.load %arg1[%c0_120, %c0_121, %c1_122, %c18_123] : memref<1x4x10x432xf32, #tpu.memory_space<vmem>>, vector<1x4x1x384xf32>
    %74 = vector.shape_cast %73 : vector<1x4x1x384xf32> to vector<4x384xf32>
    %c0_124 = arith.constant 0 : index
    %c0_125 = arith.constant 0 : index
    %c1_126 = arith.constant 1 : index
    %c19_127 = arith.constant 19 : index
    %75 = vector.load %arg1[%c0_124, %c0_125, %c1_126, %c19_127] : memref<1x4x10x432xf32, #tpu.memory_space<vmem>>, vector<1x4x1x384xf32>
    %76 = vector.shape_cast %75 : vector<1x4x1x384xf32> to vector<4x384xf32>
    %c0_128 = arith.constant 0 : index
    %c0_129 = arith.constant 0 : index
    %c1_130 = arith.constant 1 : index
    %c20_131 = arith.constant 20 : index
    %77 = vector.load %arg1[%c0_128, %c0_129, %c1_130, %c20_131] : memref<1x4x10x432xf32, #tpu.memory_space<vmem>>, vector<1x4x1x384xf32>
    %78 = vector.shape_cast %77 : vector<1x4x1x384xf32> to vector<4x384xf32>
    %c0_132 = arith.constant 0 : index
    %c0_133 = arith.constant 0 : index
    %c1_134 = arith.constant 1 : index
    %c36_135 = arith.constant 36 : index
    %79 = vector.load %arg1[%c0_132, %c0_133, %c1_134, %c36_135] : memref<1x4x10x432xf32, #tpu.memory_space<vmem>>, vector<1x4x1x384xf32>
    %80 = vector.shape_cast %79 : vector<1x4x1x384xf32> to vector<4x384xf32>
    %c0_136 = arith.constant 0 : index
    %c0_137 = arith.constant 0 : index
    %c1_138 = arith.constant 1 : index
    %c37_139 = arith.constant 37 : index
    %81 = vector.load %arg1[%c0_136, %c0_137, %c1_138, %c37_139] : memref<1x4x10x432xf32, #tpu.memory_space<vmem>>, vector<1x4x1x384xf32>
    %82 = vector.shape_cast %81 : vector<1x4x1x384xf32> to vector<4x384xf32>
    %c0_140 = arith.constant 0 : index
    %c0_141 = arith.constant 0 : index
    %c1_142 = arith.constant 1 : index
    %c38_143 = arith.constant 38 : index
    %83 = vector.load %arg1[%c0_140, %c0_141, %c1_142, %c38_143] : memref<1x4x10x432xf32, #tpu.memory_space<vmem>>, vector<1x4x1x384xf32>
    %84 = vector.shape_cast %83 : vector<1x4x1x384xf32> to vector<4x384xf32>
    %c0_144 = arith.constant 0 : index
    %c0_145 = arith.constant 0 : index
    %c2_146 = arith.constant 2 : index
    %c0_147 = arith.constant 0 : index
    %85 = vector.load %arg1[%c0_144, %c0_145, %c2_146, %c0_147] : memref<1x4x10x432xf32, #tpu.memory_space<vmem>>, vector<1x4x1x384xf32>
    %86 = vector.shape_cast %85 : vector<1x4x1x384xf32> to vector<4x384xf32>
    %c0_148 = arith.constant 0 : index
    %c0_149 = arith.constant 0 : index
    %c2_150 = arith.constant 2 : index
    %c1_151 = arith.constant 1 : index
    %87 = vector.load %arg1[%c0_148, %c0_149, %c2_150, %c1_151] : memref<1x4x10x432xf32, #tpu.memory_space<vmem>>, vector<1x4x1x384xf32>
    %88 = vector.shape_cast %87 : vector<1x4x1x384xf32> to vector<4x384xf32>
    %c0_152 = arith.constant 0 : index
    %c0_153 = arith.constant 0 : index
    %c2_154 = arith.constant 2 : index
    %c2_155 = arith.constant 2 : index
    %89 = vector.load %arg1[%c0_152, %c0_153, %c2_154, %c2_155] : memref<1x4x10x432xf32, #tpu.memory_space<vmem>>, vector<1x4x1x384xf32>
    %90 = vector.shape_cast %89 : vector<1x4x1x384xf32> to vector<4x384xf32>
    %c0_156 = arith.constant 0 : index
    %c0_157 = arith.constant 0 : index
    %c2_158 = arith.constant 2 : index
    %c18_159 = arith.constant 18 : index
    %91 = vector.load %arg1[%c0_156, %c0_157, %c2_158, %c18_159] : memref<1x4x10x432xf32, #tpu.memory_space<vmem>>, vector<1x4x1x384xf32>
    %92 = vector.shape_cast %91 : vector<1x4x1x384xf32> to vector<4x384xf32>
    %c0_160 = arith.constant 0 : index
    %c0_161 = arith.constant 0 : index
    %c2_162 = arith.constant 2 : index
    %c19_163 = arith.constant 19 : index
    %93 = vector.load %arg1[%c0_160, %c0_161, %c2_162, %c19_163] : memref<1x4x10x432xf32, #tpu.memory_space<vmem>>, vector<1x4x1x384xf32>
    %94 = vector.shape_cast %93 : vector<1x4x1x384xf32> to vector<4x384xf32>
    %c0_164 = arith.constant 0 : index
    %c0_165 = arith.constant 0 : index
    %c2_166 = arith.constant 2 : index
    %c20_167 = arith.constant 20 : index
    %95 = vector.load %arg1[%c0_164, %c0_165, %c2_166, %c20_167] : memref<1x4x10x432xf32, #tpu.memory_space<vmem>>, vector<1x4x1x384xf32>
    %96 = vector.shape_cast %95 : vector<1x4x1x384xf32> to vector<4x384xf32>
    %c0_168 = arith.constant 0 : index
    %c0_169 = arith.constant 0 : index
    %c2_170 = arith.constant 2 : index
    %c36_171 = arith.constant 36 : index
    %97 = vector.load %arg1[%c0_168, %c0_169, %c2_170, %c36_171] : memref<1x4x10x432xf32, #tpu.memory_space<vmem>>, vector<1x4x1x384xf32>
    %98 = vector.shape_cast %97 : vector<1x4x1x384xf32> to vector<4x384xf32>
    %c0_172 = arith.constant 0 : index
    %c0_173 = arith.constant 0 : index
    %c2_174 = arith.constant 2 : index
    %c37_175 = arith.constant 37 : index
    %99 = vector.load %arg1[%c0_172, %c0_173, %c2_174, %c37_175] : memref<1x4x10x432xf32, #tpu.memory_space<vmem>>, vector<1x4x1x384xf32>
    %100 = vector.shape_cast %99 : vector<1x4x1x384xf32> to vector<4x384xf32>
    %c0_176 = arith.constant 0 : index
    %c0_177 = arith.constant 0 : index
    %c2_178 = arith.constant 2 : index
    %c38_179 = arith.constant 38 : index
    %101 = vector.load %arg1[%c0_176, %c0_177, %c2_178, %c38_179] : memref<1x4x10x432xf32, #tpu.memory_space<vmem>>, vector<1x4x1x384xf32>
    %102 = vector.shape_cast %101 : vector<1x4x1x384xf32> to vector<4x384xf32>
    %c0_180 = arith.constant 0 : index
    %c0_181 = arith.constant 0 : index
    %c3 = arith.constant 3 : index
    %c0_182 = arith.constant 0 : index
    %103 = vector.load %arg1[%c0_180, %c0_181, %c3, %c0_182] : memref<1x4x10x432xf32, #tpu.memory_space<vmem>>, vector<1x4x1x384xf32>
    %104 = vector.shape_cast %103 : vector<1x4x1x384xf32> to vector<4x384xf32>
    %c0_183 = arith.constant 0 : index
    %c0_184 = arith.constant 0 : index
    %c3_185 = arith.constant 3 : index
    %c1_186 = arith.constant 1 : index
    %105 = vector.load %arg1[%c0_183, %c0_184, %c3_185, %c1_186] : memref<1x4x10x432xf32, #tpu.memory_space<vmem>>, vector<1x4x1x384xf32>
    %106 = vector.shape_cast %105 : vector<1x4x1x384xf32> to vector<4x384xf32>
    %c0_187 = arith.constant 0 : index
    %c0_188 = arith.constant 0 : index
    %c3_189 = arith.constant 3 : index
    %c2_190 = arith.constant 2 : index
    %107 = vector.load %arg1[%c0_187, %c0_188, %c3_189, %c2_190] : memref<1x4x10x432xf32, #tpu.memory_space<vmem>>, vector<1x4x1x384xf32>
    %108 = vector.shape_cast %107 : vector<1x4x1x384xf32> to vector<4x384xf32>
    %c0_191 = arith.constant 0 : index
    %c0_192 = arith.constant 0 : index
    %c3_193 = arith.constant 3 : index
    %c18_194 = arith.constant 18 : index
    %109 = vector.load %arg1[%c0_191, %c0_192, %c3_193, %c18_194] : memref<1x4x10x432xf32, #tpu.memory_space<vmem>>, vector<1x4x1x384xf32>
    %110 = vector.shape_cast %109 : vector<1x4x1x384xf32> to vector<4x384xf32>
    %c0_195 = arith.constant 0 : index
    %c0_196 = arith.constant 0 : index
    %c3_197 = arith.constant 3 : index
    %c19_198 = arith.constant 19 : index
    %111 = vector.load %arg1[%c0_195, %c0_196, %c3_197, %c19_198] : memref<1x4x10x432xf32, #tpu.memory_space<vmem>>, vector<1x4x1x384xf32>
    %112 = vector.shape_cast %111 : vector<1x4x1x384xf32> to vector<4x384xf32>
    %c0_199 = arith.constant 0 : index
    %c0_200 = arith.constant 0 : index
    %c3_201 = arith.constant 3 : index
    %c20_202 = arith.constant 20 : index
    %113 = vector.load %arg1[%c0_199, %c0_200, %c3_201, %c20_202] : memref<1x4x10x432xf32, #tpu.memory_space<vmem>>, vector<1x4x1x384xf32>
    %114 = vector.shape_cast %113 : vector<1x4x1x384xf32> to vector<4x384xf32>
    %c0_203 = arith.constant 0 : index
    %c0_204 = arith.constant 0 : index
    %c3_205 = arith.constant 3 : index
    %c36_206 = arith.constant 36 : index
    %115 = vector.load %arg1[%c0_203, %c0_204, %c3_205, %c36_206] : memref<1x4x10x432xf32, #tpu.memory_space<vmem>>, vector<1x4x1x384xf32>
    %116 = vector.shape_cast %115 : vector<1x4x1x384xf32> to vector<4x384xf32>
    %c0_207 = arith.constant 0 : index
    %c0_208 = arith.constant 0 : index
    %c3_209 = arith.constant 3 : index
    %c37_210 = arith.constant 37 : index
    %117 = vector.load %arg1[%c0_207, %c0_208, %c3_209, %c37_210] : memref<1x4x10x432xf32, #tpu.memory_space<vmem>>, vector<1x4x1x384xf32>
    %118 = vector.shape_cast %117 : vector<1x4x1x384xf32> to vector<4x384xf32>
    %c0_211 = arith.constant 0 : index
    %c0_212 = arith.constant 0 : index
    %c3_213 = arith.constant 3 : index
    %c38_214 = arith.constant 38 : index
    %119 = vector.load %arg1[%c0_211, %c0_212, %c3_213, %c38_214] : memref<1x4x10x432xf32, #tpu.memory_space<vmem>>, vector<1x4x1x384xf32>
    %120 = vector.shape_cast %119 : vector<1x4x1x384xf32> to vector<4x384xf32>
    %121 = tpu.concatenate %68, %70, %72, %74, %76, %78, %80, %82, %84, %86, %88, %90, %92, %94, %96, %98 in 0 : vector<4x384xf32>, vector<4x384xf32>, vector<4x384xf32>, vector<4x384xf32>, vector<4x384xf32>, vector<4x384xf32>, vector<4x384xf32>, vector<4x384xf32>, vector<4x384xf32>, vector<4x384xf32>, vector<4x384xf32>, vector<4x384xf32>, vector<4x384xf32>, vector<4x384xf32>, vector<4x384xf32>, vector<4x384xf32> -> vector<64x384xf32>
    %122 = tpu.concatenate %100, %102, %104, %106, %108, %110, %112, %114, %116, %118, %120 in 0 : vector<4x384xf32>, vector<4x384xf32>, vector<4x384xf32>, vector<4x384xf32>, vector<4x384xf32>, vector<4x384xf32>, vector<4x384xf32>, vector<4x384xf32>, vector<4x384xf32>, vector<4x384xf32>, vector<4x384xf32> -> vector<44x384xf32>
    %123 = tpu.concatenate %121, %122 in 0 : vector<64x384xf32>, vector<44x384xf32> -> vector<108x384xf32>
    %cst_215 = arith.constant dense<0.000000e+00> : vector<8x384xf32>
    %124 = tpu.matmul %0, %123, %cst_215 {dimension_numbers = #tpu.dot_dimension_numbers<[1], [0], [0], [1], [0, 0, 1, 1], [], []>} : vector<8x108xf32>, vector<108x384xf32>, vector<8x384xf32> -> vector<8x384xf32>
    %125 = vector.broadcast %1 : vector<8x1xf32> to vector<8x384xf32>
    %126 = arith.addf %124, %125 : vector<8x384xf32>
    %cst_216 = arith.constant 0.000000e+00 : f32
    %127 = vector.broadcast %cst_216 : f32 to vector<8x384xf32>
    %128 = arith.maximumf %126, %127 : vector<8x384xf32>
    %c0_217 = arith.constant 0 : index
    %c0_218 = arith.constant 0 : index
    %c1_219 = arith.constant 1 : index
    %c0_220 = arith.constant 0 : index
    %129 = vector.load %arg4[%c0_217, %c0_218, %c1_219, %c0_220] : memref<1x8x8x384xf32, #tpu.memory_space<vmem>>, vector<1x8x1x384xf32>
    %130 = vector.shape_cast %129 : vector<1x8x1x384xf32> to vector<8x384xf32>
    %131 = vector.shape_cast %128 : vector<8x384xf32> to vector<1x8x1x384xf32>
    tpu.vector_store %arg4[%c0_217, %c0_218, %c1_219, %c0_220], %131 {strides = array<i32>} : memref<1x8x8x384xf32, #tpu.memory_space<vmem>>, vector<1x8x1x384xf32>,
    %c0_221 = arith.constant 0 : index
    %c0_222 = arith.constant 0 : index
    %c2_223 = arith.constant 2 : index
    %c0_224 = arith.constant 0 : index
    %132 = vector.load %arg1[%c0_221, %c0_222, %c2_223, %c0_224] : memref<1x4x10x432xf32, #tpu.memory_space<vmem>>, vector<1x4x1x384xf32>
    %133 = vector.shape_cast %132 : vector<1x4x1x384xf32> to vector<4x384xf32>
    %c0_225 = arith.constant 0 : index
    %c0_226 = arith.constant 0 : index
    %c2_227 = arith.constant 2 : index
    %c1_228 = arith.constant 1 : index
    %134 = vector.load %arg1[%c0_225, %c0_226, %c2_227, %c1_228] : memref<1x4x10x432xf32, #tpu.memory_space<vmem>>, vector<1x4x1x384xf32>
    %135 = vector.shape_cast %134 : vector<1x4x1x384xf32> to vector<4x384xf32>
    %c0_229 = arith.constant 0 : index
    %c0_230 = arith.constant 0 : index
    %c2_231 = arith.constant 2 : index
    %c2_232 = arith.constant 2 : index
    %136 = vector.load %arg1[%c0_229, %c0_230, %c2_231, %c2_232] : memref<1x4x10x432xf32, #tpu.memory_space<vmem>>, vector<1x4x1x384xf32>
    %137 = vector.shape_cast %136 : vector<1x4x1x384xf32> to vector<4x384xf32>
    %c0_233 = arith.constant 0 : index
    %c0_234 = arith.constant 0 : index
    %c2_235 = arith.constant 2 : index
    %c18_236 = arith.constant 18 : index
    %138 = vector.load %arg1[%c0_233, %c0_234, %c2_235, %c18_236] : memref<1x4x10x432xf32, #tpu.memory_space<vmem>>, vector<1x4x1x384xf32>
    %139 = vector.shape_cast %138 : vector<1x4x1x384xf32> to vector<4x384xf32>
    %c0_237 = arith.constant 0 : index
    %c0_238 = arith.constant 0 : index
    %c2_239 = arith.constant 2 : index
    %c19_240 = arith.constant 19 : index
    %140 = vector.load %arg1[%c0_237, %c0_238, %c2_239, %c19_240] : memref<1x4x10x432xf32, #tpu.memory_space<vmem>>, vector<1x4x1x384xf32>
    %141 = vector.shape_cast %140 : vector<1x4x1x384xf32> to vector<4x384xf32>
    %c0_241 = arith.constant 0 : index
    %c0_242 = arith.constant 0 : index
    %c2_243 = arith.constant 2 : index
    %c20_244 = arith.constant 20 : index
    %142 = vector.load %arg1[%c0_241, %c0_242, %c2_243, %c20_244] : memref<1x4x10x432xf32, #tpu.memory_space<vmem>>, vector<1x4x1x384xf32>
    %143 = vector.shape_cast %142 : vector<1x4x1x384xf32> to vector<4x384xf32>
    %c0_245 = arith.constant 0 : index
    %c0_246 = arith.constant 0 : index
    %c2_247 = arith.constant 2 : index
    %c36_248 = arith.constant 36 : index
    %144 = vector.load %arg1[%c0_245, %c0_246, %c2_247, %c36_248] : memref<1x4x10x432xf32, #tpu.memory_space<vmem>>, vector<1x4x1x384xf32>
    %145 = vector.shape_cast %144 : vector<1x4x1x384xf32> to vector<4x384xf32>
    %c0_249 = arith.constant 0 : index
    %c0_250 = arith.constant 0 : index
    %c2_251 = arith.constant 2 : index
    %c37_252 = arith.constant 37 : index
    %146 = vector.load %arg1[%c0_249, %c0_250, %c2_251, %c37_252] : memref<1x4x10x432xf32, #tpu.memory_space<vmem>>, vector<1x4x1x384xf32>
    %147 = vector.shape_cast %146 : vector<1x4x1x384xf32> to vector<4x384xf32>
    %c0_253 = arith.constant 0 : index
    %c0_254 = arith.constant 0 : index
    %c2_255 = arith.constant 2 : index
    %c38_256 = arith.constant 38 : index
    %148 = vector.load %arg1[%c0_253, %c0_254, %c2_255, %c38_256] : memref<1x4x10x432xf32, #tpu.memory_space<vmem>>, vector<1x4x1x384xf32>
    %149 = vector.shape_cast %148 : vector<1x4x1x384xf32> to vector<4x384xf32>
    %c0_257 = arith.constant 0 : index
    %c0_258 = arith.constant 0 : index
    %c3_259 = arith.constant 3 : index
    %c0_260 = arith.constant 0 : index
    %150 = vector.load %arg1[%c0_257, %c0_258, %c3_259, %c0_260] : memref<1x4x10x432xf32, #tpu.memory_space<vmem>>, vector<1x4x1x384xf32>
    %151 = vector.shape_cast %150 : vector<1x4x1x384xf32> to vector<4x384xf32>
    %c0_261 = arith.constant 0 : index
    %c0_262 = arith.constant 0 : index
    %c3_263 = arith.constant 3 : index
    %c1_264 = arith.constant 1 : index
    %152 = vector.load %arg1[%c0_261, %c0_262, %c3_263, %c1_264] : memref<1x4x10x432xf32, #tpu.memory_space<vmem>>, vector<1x4x1x384xf32>
    %153 = vector.shape_cast %152 : vector<1x4x1x384xf32> to vector<4x384xf32>
    %c0_265 = arith.constant 0 : index
    %c0_266 = arith.constant 0 : index
    %c3_267 = arith.constant 3 : index
    %c2_268 = arith.constant 2 : index
    %154 = vector.load %arg1[%c0_265, %c0_266, %c3_267, %c2_268] : memref<1x4x10x432xf32, #tpu.memory_space<vmem>>, vector<1x4x1x384xf32>
    %155 = vector.shape_cast %154 : vector<1x4x1x384xf32> to vector<4x384xf32>
    %c0_269 = arith.constant 0 : index
    %c0_270 = arith.constant 0 : index
    %c3_271 = arith.constant 3 : index
    %c18_272 = arith.constant 18 : index
    %156 = vector.load %arg1[%c0_269, %c0_270, %c3_271, %c18_272] : memref<1x4x10x432xf32, #tpu.memory_space<vmem>>, vector<1x4x1x384xf32>
    %157 = vector.shape_cast %156 : vector<1x4x1x384xf32> to vector<4x384xf32>
    %c0_273 = arith.constant 0 : index
    %c0_274 = arith.constant 0 : index
    %c3_275 = arith.constant 3 : index
    %c19_276 = arith.constant 19 : index
    %158 = vector.load %arg1[%c0_273, %c0_274, %c3_275, %c19_276] : memref<1x4x10x432xf32, #tpu.memory_space<vmem>>, vector<1x4x1x384xf32>
    %159 = vector.shape_cast %158 : vector<1x4x1x384xf32> to vector<4x384xf32>
    %c0_277 = arith.constant 0 : index
    %c0_278 = arith.constant 0 : index
    %c3_279 = arith.constant 3 : index
    %c20_280 = arith.constant 20 : index
    %160 = vector.load %arg1[%c0_277, %c0_278, %c3_279, %c20_280] : memref<1x4x10x432xf32, #tpu.memory_space<vmem>>, vector<1x4x1x384xf32>
    %161 = vector.shape_cast %160 : vector<1x4x1x384xf32> to vector<4x384xf32>
    %c0_281 = arith.constant 0 : index
    %c0_282 = arith.constant 0 : index
    %c3_283 = arith.constant 3 : index
    %c36_284 = arith.constant 36 : index
    %162 = vector.load %arg1[%c0_281, %c0_282, %c3_283, %c36_284] : memref<1x4x10x432xf32, #tpu.memory_space<vmem>>, vector<1x4x1x384xf32>
    %163 = vector.shape_cast %162 : vector<1x4x1x384xf32> to vector<4x384xf32>
    %c0_285 = arith.constant 0 : index
    %c0_286 = arith.constant 0 : index
    %c3_287 = arith.constant 3 : index
    %c37_288 = arith.constant 37 : index
    %164 = vector.load %arg1[%c0_285, %c0_286, %c3_287, %c37_288] : memref<1x4x10x432xf32, #tpu.memory_space<vmem>>, vector<1x4x1x384xf32>
    %165 = vector.shape_cast %164 : vector<1x4x1x384xf32> to vector<4x384xf32>
    %c0_289 = arith.constant 0 : index
    %c0_290 = arith.constant 0 : index
    %c3_291 = arith.constant 3 : index
    %c38_292 = arith.constant 38 : index
    %166 = vector.load %arg1[%c0_289, %c0_290, %c3_291, %c38_292] : memref<1x4x10x432xf32, #tpu.memory_space<vmem>>, vector<1x4x1x384xf32>
    %167 = vector.shape_cast %166 : vector<1x4x1x384xf32> to vector<4x384xf32>
    %c0_293 = arith.constant 0 : index
    %c0_294 = arith.constant 0 : index
    %c4 = arith.constant 4 : index
    %c0_295 = arith.constant 0 : index
    %168 = vector.load %arg1[%c0_293, %c0_294, %c4, %c0_295] : memref<1x4x10x432xf32, #tpu.memory_space<vmem>>, vector<1x4x1x384xf32>
    %169 = vector.shape_cast %168 : vector<1x4x1x384xf32> to vector<4x384xf32>
    %c0_296 = arith.constant 0 : index
    %c0_297 = arith.constant 0 : index
    %c4_298 = arith.constant 4 : index
    %c1_299 = arith.constant 1 : index
    %170 = vector.load %arg1[%c0_296, %c0_297, %c4_298, %c1_299] : memref<1x4x10x432xf32, #tpu.memory_space<vmem>>, vector<1x4x1x384xf32>
    %171 = vector.shape_cast %170 : vector<1x4x1x384xf32> to vector<4x384xf32>
    %c0_300 = arith.constant 0 : index
    %c0_301 = arith.constant 0 : index
    %c4_302 = arith.constant 4 : index
    %c2_303 = arith.constant 2 : index
    %172 = vector.load %arg1[%c0_300, %c0_301, %c4_302, %c2_303] : memref<1x4x10x432xf32, #tpu.memory_space<vmem>>, vector<1x4x1x384xf32>
    %173 = vector.shape_cast %172 : vector<1x4x1x384xf32> to vector<4x384xf32>
    %c0_304 = arith.constant 0 : index
    %c0_305 = arith.constant 0 : index
    %c4_306 = arith.constant 4 : index
    %c18_307 = arith.constant 18 : index
    %174 = vector.load %arg1[%c0_304, %c0_305, %c4_306, %c18_307] : memref<1x4x10x432xf32, #tpu.memory_space<vmem>>, vector<1x4x1x384xf32>
    %175 = vector.shape_cast %174 : vector<1x4x1x384xf32> to vector<4x384xf32>
    %c0_308 = arith.constant 0 : index
    %c0_309 = arith.constant 0 : index
    %c4_310 = arith.constant 4 : index
    %c19_311 = arith.constant 19 : index
    %176 = vector.load %arg1[%c0_308, %c0_309, %c4_310, %c19_311] : memref<1x4x10x432xf32, #tpu.memory_space<vmem>>, vector<1x4x1x384xf32>
    %177 = vector.shape_cast %176 : vector<1x4x1x384xf32> to vector<4x384xf32>
    %c0_312 = arith.constant 0 : index
    %c0_313 = arith.constant 0 : index
    %c4_314 = arith.constant 4 : index
    %c20_315 = arith.constant 20 : index
    %178 = vector.load %arg1[%c0_312, %c0_313, %c4_314, %c20_315] : memref<1x4x10x432xf32, #tpu.memory_space<vmem>>, vector<1x4x1x384xf32>
    %179 = vector.shape_cast %178 : vector<1x4x1x384xf32> to vector<4x384xf32>
    %c0_316 = arith.constant 0 : index
    %c0_317 = arith.constant 0 : index
    %c4_318 = arith.constant 4 : index
    %c36_319 = arith.constant 36 : index
    %180 = vector.load %arg1[%c0_316, %c0_317, %c4_318, %c36_319] : memref<1x4x10x432xf32, #tpu.memory_space<vmem>>, vector<1x4x1x384xf32>
    %181 = vector.shape_cast %180 : vector<1x4x1x384xf32> to vector<4x384xf32>
    %c0_320 = arith.constant 0 : index
    %c0_321 = arith.constant 0 : index
    %c4_322 = arith.constant 4 : index
    %c37_323 = arith.constant 37 : index
    %182 = vector.load %arg1[%c0_320, %c0_321, %c4_322, %c37_323] : memref<1x4x10x432xf32, #tpu.memory_space<vmem>>, vector<1x4x1x384xf32>
    %183 = vector.shape_cast %182 : vector<1x4x1x384xf32> to vector<4x384xf32>
    %c0_324 = arith.constant 0 : index
    %c0_325 = arith.constant 0 : index
    %c4_326 = arith.constant 4 : index
    %c38_327 = arith.constant 38 : index
    %184 = vector.load %arg1[%c0_324, %c0_325, %c4_326, %c38_327] : memref<1x4x10x432xf32, #tpu.memory_space<vmem>>, vector<1x4x1x384xf32>
    %185 = vector.shape_cast %184 : vector<1x4x1x384xf32> to vector<4x384xf32>
    %186 = tpu.concatenate %133, %135, %137, %139, %141, %143, %145, %147, %149, %151, %153, %155, %157, %159, %161, %163 in 0 : vector<4x384xf32>, vector<4x384xf32>, vector<4x384xf32>, vector<4x384xf32>, vector<4x384xf32>, vector<4x384xf32>, vector<4x384xf32>, vector<4x384xf32>, vector<4x384xf32>, vector<4x384xf32>, vector<4x384xf32>, vector<4x384xf32>, vector<4x384xf32>, vector<4x384xf32>, vector<4x384xf32>, vector<4x384xf32> -> vector<64x384xf32>
    %187 = tpu.concatenate %165, %167, %169, %171, %173, %175, %177, %179, %181, %183, %185 in 0 : vector<4x384xf32>, vector<4x384xf32>, vector<4x384xf32>, vector<4x384xf32>, vector<4x384xf32>, vector<4x384xf32>, vector<4x384xf32>, vector<4x384xf32>, vector<4x384xf32>, vector<4x384xf32>, vector<4x384xf32> -> vector<44x384xf32>
    %188 = tpu.concatenate %186, %187 in 0 : vector<64x384xf32>, vector<44x384xf32> -> vector<108x384xf32>
    %cst_328 = arith.constant dense<0.000000e+00> : vector<8x384xf32>
    %189 = tpu.matmul %0, %188, %cst_328 {dimension_numbers = #tpu.dot_dimension_numbers<[1], [0], [0], [1], [0, 0, 1, 1], [], []>} : vector<8x108xf32>, vector<108x384xf32>, vector<8x384xf32> -> vector<8x384xf32>
    %190 = vector.broadcast %1 : vector<8x1xf32> to vector<8x384xf32>
    %191 = arith.addf %189, %190 : vector<8x384xf32>
    %cst_329 = arith.constant 0.000000e+00 : f32
    %192 = vector.broadcast %cst_329 : f32 to vector<8x384xf32>
    %193 = arith.maximumf %191, %192 : vector<8x384xf32>
    %c0_330 = arith.constant 0 : index
    %c0_331 = arith.constant 0 : index
    %c2_332 = arith.constant 2 : index
    %c0_333 = arith.constant 0 : index
    %194 = vector.load %arg4[%c0_330, %c0_331, %c2_332, %c0_333] : memref<1x8x8x384xf32, #tpu.memory_space<vmem>>, vector<1x8x1x384xf32>
    %195 = vector.shape_cast %194 : vector<1x8x1x384xf32> to vector<8x384xf32>
    %196 = vector.shape_cast %193 : vector<8x384xf32> to vector<1x8x1x384xf32>
    tpu.vector_store %arg4[%c0_330, %c0_331, %c2_332, %c0_333], %196 {strides = array<i32>} : memref<1x8x8x384xf32, #tpu.memory_space<vmem>>, vector<1x8x1x384xf32>,
    %c0_334 = arith.constant 0 : index
    %c0_335 = arith.constant 0 : index
    %c3_336 = arith.constant 3 : index
    %c0_337 = arith.constant 0 : index
    %197 = vector.load %arg1[%c0_334, %c0_335, %c3_336, %c0_337] : memref<1x4x10x432xf32, #tpu.memory_space<vmem>>, vector<1x4x1x384xf32>
    %198 = vector.shape_cast %197 : vector<1x4x1x384xf32> to vector<4x384xf32>
    %c0_338 = arith.constant 0 : index
    %c0_339 = arith.constant 0 : index
    %c3_340 = arith.constant 3 : index
    %c1_341 = arith.constant 1 : index
    %199 = vector.load %arg1[%c0_338, %c0_339, %c3_340, %c1_341] : memref<1x4x10x432xf32, #tpu.memory_space<vmem>>, vector<1x4x1x384xf32>
    %200 = vector.shape_cast %199 : vector<1x4x1x384xf32> to vector<4x384xf32>
    %c0_342 = arith.constant 0 : index
    %c0_343 = arith.constant 0 : index
    %c3_344 = arith.constant 3 : index
    %c2_345 = arith.constant 2 : index
    %201 = vector.load %arg1[%c0_342, %c0_343, %c3_344, %c2_345] : memref<1x4x10x432xf32, #tpu.memory_space<vmem>>, vector<1x4x1x384xf32>
    %202 = vector.shape_cast %201 : vector<1x4x1x384xf32> to vector<4x384xf32>
    %c0_346 = arith.constant 0 : index
    %c0_347 = arith.constant 0 : index
    %c3_348 = arith.constant 3 : index
    %c18_349 = arith.constant 18 : index
    %203 = vector.load %arg1[%c0_346, %c0_347, %c3_348, %c18_349] : memref<1x4x10x432xf32, #tpu.memory_space<vmem>>, vector<1x4x1x384xf32>
    %204 = vector.shape_cast %203 : vector<1x4x1x384xf32> to vector<4x384xf32>
    %c0_350 = arith.constant 0 : index
    %c0_351 = arith.constant 0 : index
    %c3_352 = arith.constant 3 : index
    %c19_353 = arith.constant 19 : index
    %205 = vector.load %arg1[%c0_350, %c0_351, %c3_352, %c19_353] : memref<1x4x10x432xf32, #tpu.memory_space<vmem>>, vector<1x4x1x384xf32>
    %206 = vector.shape_cast %205 : vector<1x4x1x384xf32> to vector<4x384xf32>
    %c0_354 = arith.constant 0 : index
    %c0_355 = arith.constant 0 : index
    %c3_356 = arith.constant 3 : index
    %c20_357 = arith.constant 20 : index
    %207 = vector.load %arg1[%c0_354, %c0_355, %c3_356, %c20_357] : memref<1x4x10x432xf32, #tpu.memory_space<vmem>>, vector<1x4x1x384xf32>
    %208 = vector.shape_cast %207 : vector<1x4x1x384xf32> to vector<4x384xf32>
    %c0_358 = arith.constant 0 : index
    %c0_359 = arith.constant 0 : index
    %c3_360 = arith.constant 3 : index
    %c36_361 = arith.constant 36 : index
    %209 = vector.load %arg1[%c0_358, %c0_359, %c3_360, %c36_361] : memref<1x4x10x432xf32, #tpu.memory_space<vmem>>, vector<1x4x1x384xf32>
    %210 = vector.shape_cast %209 : vector<1x4x1x384xf32> to vector<4x384xf32>
    %c0_362 = arith.constant 0 : index
    %c0_363 = arith.constant 0 : index
    %c3_364 = arith.constant 3 : index
    %c37_365 = arith.constant 37 : index
    %211 = vector.load %arg1[%c0_362, %c0_363, %c3_364, %c37_365] : memref<1x4x10x432xf32, #tpu.memory_space<vmem>>, vector<1x4x1x384xf32>
    %212 = vector.shape_cast %211 : vector<1x4x1x384xf32> to vector<4x384xf32>
    %c0_366 = arith.constant 0 : index
    %c0_367 = arith.constant 0 : index
    %c3_368 = arith.constant 3 : index
    %c38_369 = arith.constant 38 : index
    %213 = vector.load %arg1[%c0_366, %c0_367, %c3_368, %c38_369] : memref<1x4x10x432xf32, #tpu.memory_space<vmem>>, vector<1x4x1x384xf32>
    %214 = vector.shape_cast %213 : vector<1x4x1x384xf32> to vector<4x384xf32>
    %c0_370 = arith.constant 0 : index
    %c0_371 = arith.constant 0 : index
    %c4_372 = arith.constant 4 : index
    %c0_373 = arith.constant 0 : index
    %215 = vector.load %arg1[%c0_370, %c0_371, %c4_372, %c0_373] : memref<1x4x10x432xf32, #tpu.memory_space<vmem>>, vector<1x4x1x384xf32>
    %216 = vector.shape_cast %215 : vector<1x4x1x384xf32> to vector<4x384xf32>
    %c0_374 = arith.constant 0 : index
    %c0_375 = arith.constant 0 : index
    %c4_376 = arith.constant 4 : index
    %c1_377 = arith.constant 1 : index
    %217 = vector.load %arg1[%c0_374, %c0_375, %c4_376, %c1_377] : memref<1x4x10x432xf32, #tpu.memory_space<vmem>>, vector<1x4x1x384xf32>
    %218 = vector.shape_cast %217 : vector<1x4x1x384xf32> to vector<4x384xf32>
    %c0_378 = arith.constant 0 : index
    %c0_379 = arith.constant 0 : index
    %c4_380 = arith.constant 4 : index
    %c2_381 = arith.constant 2 : index
    %219 = vector.load %arg1[%c0_378, %c0_379, %c4_380, %c2_381] : memref<1x4x10x432xf32, #tpu.memory_space<vmem>>, vector<1x4x1x384xf32>
    %220 = vector.shape_cast %219 : vector<1x4x1x384xf32> to vector<4x384xf32>
    %c0_382 = arith.constant 0 : index
    %c0_383 = arith.constant 0 : index
    %c4_384 = arith.constant 4 : index
    %c18_385 = arith.constant 18 : index
    %221 = vector.load %arg1[%c0_382, %c0_383, %c4_384, %c18_385] : memref<1x4x10x432xf32, #tpu.memory_space<vmem>>, vector<1x4x1x384xf32>
    %222 = vector.shape_cast %221 : vector<1x4x1x384xf32> to vector<4x384xf32>
    %c0_386 = arith.constant 0 : index
    %c0_387 = arith.constant 0 : index
    %c4_388 = arith.constant 4 : index
    %c19_389 = arith.constant 19 : index
    %223 = vector.load %arg1[%c0_386, %c0_387, %c4_388, %c19_389] : memref<1x4x10x432xf32, #tpu.memory_space<vmem>>, vector<1x4x1x384xf32>
    %224 = vector.shape_cast %223 : vector<1x4x1x384xf32> to vector<4x384xf32>
    %c0_390 = arith.constant 0 : index
    %c0_391 = arith.constant 0 : index
    %c4_392 = arith.constant 4 : index
    %c20_393 = arith.constant 20 : index
    %225 = vector.load %arg1[%c0_390, %c0_391, %c4_392, %c20_393] : memref<1x4x10x432xf32, #tpu.memory_space<vmem>>, vector<1x4x1x384xf32>
    %226 = vector.shape_cast %225 : vector<1x4x1x384xf32> to vector<4x384xf32>
    %c0_394 = arith.constant 0 : index
    %c0_395 = arith.constant 0 : index
    %c4_396 = arith.constant 4 : index
    %c36_397 = arith.constant 36 : index
    %227 = vector.load %arg1[%c0_394, %c0_395, %c4_396, %c36_397] : memref<1x4x10x432xf32, #tpu.memory_space<vmem>>, vector<1x4x1x384xf32>
    %228 = vector.shape_cast %227 : vector<1x4x1x384xf32> to vector<4x384xf32>
    %c0_398 = arith.constant 0 : index
    %c0_399 = arith.constant 0 : index
    %c4_400 = arith.constant 4 : index
    %c37_401 = arith.constant 37 : index
    %229 = vector.load %arg1[%c0_398, %c0_399, %c4_400, %c37_401] : memref<1x4x10x432xf32, #tpu.memory_space<vmem>>, vector<1x4x1x384xf32>
    %230 = vector.shape_cast %229 : vector<1x4x1x384xf32> to vector<4x384xf32>
    %c0_402 = arith.constant 0 : index
    %c0_403 = arith.constant 0 : index
    %c4_404 = arith.constant 4 : index
    %c38_405 = arith.constant 38 : index
    %231 = vector.load %arg1[%c0_402, %c0_403, %c4_404, %c38_405] : memref<1x4x10x432xf32, #tpu.memory_space<vmem>>, vector<1x4x1x384xf32>
    %232 = vector.shape_cast %231 : vector<1x4x1x384xf32> to vector<4x384xf32>
    %c0_406 = arith.constant 0 : index
    %c0_407 = arith.constant 0 : index
    %c5 = arith.constant 5 : index
    %c0_408 = arith.constant 0 : index
    %233 = vector.load %arg1[%c0_406, %c0_407, %c5, %c0_408] : memref<1x4x10x432xf32, #tpu.memory_space<vmem>>, vector<1x4x1x384xf32>
    %234 = vector.shape_cast %233 : vector<1x4x1x384xf32> to vector<4x384xf32>
    %c0_409 = arith.constant 0 : index
    %c0_410 = arith.constant 0 : index
    %c5_411 = arith.constant 5 : index
    %c1_412 = arith.constant 1 : index
    %235 = vector.load %arg1[%c0_409, %c0_410, %c5_411, %c1_412] : memref<1x4x10x432xf32, #tpu.memory_space<vmem>>, vector<1x4x1x384xf32>
    %236 = vector.shape_cast %235 : vector<1x4x1x384xf32> to vector<4x384xf32>
    %c0_413 = arith.constant 0 : index
    %c0_414 = arith.constant 0 : index
    %c5_415 = arith.constant 5 : index
    %c2_416 = arith.constant 2 : index
    %237 = vector.load %arg1[%c0_413, %c0_414, %c5_415, %c2_416] : memref<1x4x10x432xf32, #tpu.memory_space<vmem>>, vector<1x4x1x384xf32>
    %238 = vector.shape_cast %237 : vector<1x4x1x384xf32> to vector<4x384xf32>
    %c0_417 = arith.constant 0 : index
    %c0_418 = arith.constant 0 : index
    %c5_419 = arith.constant 5 : index
    %c18_420 = arith.constant 18 : index
    %239 = vector.load %arg1[%c0_417, %c0_418, %c5_419, %c18_420] : memref<1x4x10x432xf32, #tpu.memory_space<vmem>>, vector<1x4x1x384xf32>
    %240 = vector.shape_cast %239 : vector<1x4x1x384xf32> to vector<4x384xf32>
    %c0_421 = arith.constant 0 : index
    %c0_422 = arith.constant 0 : index
    %c5_423 = arith.constant 5 : index
    %c19_424 = arith.constant 19 : index
    %241 = vector.load %arg1[%c0_421, %c0_422, %c5_423, %c19_424] : memref<1x4x10x432xf32, #tpu.memory_space<vmem>>, vector<1x4x1x384xf32>
    %242 = vector.shape_cast %241 : vector<1x4x1x384xf32> to vector<4x384xf32>
    %c0_425 = arith.constant 0 : index
    %c0_426 = arith.constant 0 : index
    %c5_427 = arith.constant 5 : index
    %c20_428 = arith.constant 20 : index
    %243 = vector.load %arg1[%c0_425, %c0_426, %c5_427, %c20_428] : memref<1x4x10x432xf32, #tpu.memory_space<vmem>>, vector<1x4x1x384xf32>
    %244 = vector.shape_cast %243 : vector<1x4x1x384xf32> to vector<4x384xf32>
    %c0_429 = arith.constant 0 : index
    %c0_430 = arith.constant 0 : index
    %c5_431 = arith.constant 5 : index
    %c36_432 = arith.constant 36 : index
    %245 = vector.load %arg1[%c0_429, %c0_430, %c5_431, %c36_432] : memref<1x4x10x432xf32, #tpu.memory_space<vmem>>, vector<1x4x1x384xf32>
    %246 = vector.shape_cast %245 : vector<1x4x1x384xf32> to vector<4x384xf32>
    %c0_433 = arith.constant 0 : index
    %c0_434 = arith.constant 0 : index
    %c5_435 = arith.constant 5 : index
    %c37_436 = arith.constant 37 : index
    %247 = vector.load %arg1[%c0_433, %c0_434, %c5_435, %c37_436] : memref<1x4x10x432xf32, #tpu.memory_space<vmem>>, vector<1x4x1x384xf32>
    %248 = vector.shape_cast %247 : vector<1x4x1x384xf32> to vector<4x384xf32>
    %c0_437 = arith.constant 0 : index
    %c0_438 = arith.constant 0 : index
    %c5_439 = arith.constant 5 : index
    %c38_440 = arith.constant 38 : index
    %249 = vector.load %arg1[%c0_437, %c0_438, %c5_439, %c38_440] : memref<1x4x10x432xf32, #tpu.memory_space<vmem>>, vector<1x4x1x384xf32>
    %250 = vector.shape_cast %249 : vector<1x4x1x384xf32> to vector<4x384xf32>
    %251 = tpu.concatenate %198, %200, %202, %204, %206, %208, %210, %212, %214, %216, %218, %220, %222, %224, %226, %228 in 0 : vector<4x384xf32>, vector<4x384xf32>, vector<4x384xf32>, vector<4x384xf32>, vector<4x384xf32>, vector<4x384xf32>, vector<4x384xf32>, vector<4x384xf32>, vector<4x384xf32>, vector<4x384xf32>, vector<4x384xf32>, vector<4x384xf32>, vector<4x384xf32>, vector<4x384xf32>, vector<4x384xf32>, vector<4x384xf32> -> vector<64x384xf32>
    %252 = tpu.concatenate %230, %232, %234, %236, %238, %240, %242, %244, %246, %248, %250 in 0 : vector<4x384xf32>, vector<4x384xf32>, vector<4x384xf32>, vector<4x384xf32>, vector<4x384xf32>, vector<4x384xf32>, vector<4x384xf32>, vector<4x384xf32>, vector<4x384xf32>, vector<4x384xf32>, vector<4x384xf32> -> vector<44x384xf32>
    %253 = tpu.concatenate %251, %252 in 0 : vector<64x384xf32>, vector<44x384xf32> -> vector<108x384xf32>
    %cst_441 = arith.constant dense<0.000000e+00> : vector<8x384xf32>
    %254 = tpu.matmul %0, %253, %cst_441 {dimension_numbers = #tpu.dot_dimension_numbers<[1], [0], [0], [1], [0, 0, 1, 1], [], []>} : vector<8x108xf32>, vector<108x384xf32>, vector<8x384xf32> -> vector<8x384xf32>
    %255 = vector.broadcast %1 : vector<8x1xf32> to vector<8x384xf32>
    %256 = arith.addf %254, %255 : vector<8x384xf32>
    %cst_442 = arith.constant 0.000000e+00 : f32
    %257 = vector.broadcast %cst_442 : f32 to vector<8x384xf32>
    %258 = arith.maximumf %256, %257 : vector<8x384xf32>
    %c0_443 = arith.constant 0 : index
    %c0_444 = arith.constant 0 : index
    %c3_445 = arith.constant 3 : index
    %c0_446 = arith.constant 0 : index
    %259 = vector.load %arg4[%c0_443, %c0_444, %c3_445, %c0_446] : memref<1x8x8x384xf32, #tpu.memory_space<vmem>>, vector<1x8x1x384xf32>
    %260 = vector.shape_cast %259 : vector<1x8x1x384xf32> to vector<8x384xf32>
    %261 = vector.shape_cast %258 : vector<8x384xf32> to vector<1x8x1x384xf32>
    tpu.vector_store %arg4[%c0_443, %c0_444, %c3_445, %c0_446], %261 {strides = array<i32>} : memref<1x8x8x384xf32, #tpu.memory_space<vmem>>, vector<1x8x1x384xf32>,
    %c0_447 = arith.constant 0 : index
    %c0_448 = arith.constant 0 : index
    %c4_449 = arith.constant 4 : index
    %c0_450 = arith.constant 0 : index
    %262 = vector.load %arg1[%c0_447, %c0_448, %c4_449, %c0_450] : memref<1x4x10x432xf32, #tpu.memory_space<vmem>>, vector<1x4x1x384xf32>
    %263 = vector.shape_cast %262 : vector<1x4x1x384xf32> to vector<4x384xf32>
    %c0_451 = arith.constant 0 : index
    %c0_452 = arith.constant 0 : index
    %c4_453 = arith.constant 4 : index
    %c1_454 = arith.constant 1 : index
    %264 = vector.load %arg1[%c0_451, %c0_452, %c4_453, %c1_454] : memref<1x4x10x432xf32, #tpu.memory_space<vmem>>, vector<1x4x1x384xf32>
    %265 = vector.shape_cast %264 : vector<1x4x1x384xf32> to vector<4x384xf32>
    %c0_455 = arith.constant 0 : index
    %c0_456 = arith.constant 0 : index
    %c4_457 = arith.constant 4 : index
    %c2_458 = arith.constant 2 : index
    %266 = vector.load %arg1[%c0_455, %c0_456, %c4_457, %c2_458] : memref<1x4x10x432xf32, #tpu.memory_space<vmem>>, vector<1x4x1x384xf32>
    %267 = vector.shape_cast %266 : vector<1x4x1x384xf32> to vector<4x384xf32>
    %c0_459 = arith.constant 0 : index
    %c0_460 = arith.constant 0 : index
    %c4_461 = arith.constant 4 : index
    %c18_462 = arith.constant 18 : index
    %268 = vector.load %arg1[%c0_459, %c0_460, %c4_461, %c18_462] : memref<1x4x10x432xf32, #tpu.memory_space<vmem>>, vector<1x4x1x384xf32>
    %269 = vector.shape_cast %268 : vector<1x4x1x384xf32> to vector<4x384xf32>
    %c0_463 = arith.constant 0 : index
    %c0_464 = arith.constant 0 : index
    %c4_465 = arith.constant 4 : index
    %c19_466 = arith.constant 19 : index
    %270 = vector.load %arg1[%c0_463, %c0_464, %c4_465, %c19_466] : memref<1x4x10x432xf32, #tpu.memory_space<vmem>>, vector<1x4x1x384xf32>
    %271 = vector.shape_cast %270 : vector<1x4x1x384xf32> to vector<4x384xf32>
    %c0_467 = arith.constant 0 : index
    %c0_468 = arith.constant 0 : index
    %c4_469 = arith.constant 4 : index
    %c20_470 = arith.constant 20 : index
    %272 = vector.load %arg1[%c0_467, %c0_468, %c4_469, %c20_470] : memref<1x4x10x432xf32, #tpu.memory_space<vmem>>, vector<1x4x1x384xf32>
    %273 = vector.shape_cast %272 : vector<1x4x1x384xf32> to vector<4x384xf32>
    %c0_471 = arith.constant 0 : index
    %c0_472 = arith.constant 0 : index
    %c4_473 = arith.constant 4 : index
    %c36_474 = arith.constant 36 : index
    %274 = vector.load %arg1[%c0_471, %c0_472, %c4_473, %c36_474] : memref<1x4x10x432xf32, #tpu.memory_space<vmem>>, vector<1x4x1x384xf32>
    %275 = vector.shape_cast %274 : vector<1x4x1x384xf32> to vector<4x384xf32>
    %c0_475 = arith.constant 0 : index
    %c0_476 = arith.constant 0 : index
    %c4_477 = arith.constant 4 : index
    %c37_478 = arith.constant 37 : index
    %276 = vector.load %arg1[%c0_475, %c0_476, %c4_477, %c37_478] : memref<1x4x10x432xf32, #tpu.memory_space<vmem>>, vector<1x4x1x384xf32>
    %277 = vector.shape_cast %276 : vector<1x4x1x384xf32> to vector<4x384xf32>
    %c0_479 = arith.constant 0 : index
    %c0_480 = arith.constant 0 : index
    %c4_481 = arith.constant 4 : index
    %c38_482 = arith.constant 38 : index
    %278 = vector.load %arg1[%c0_479, %c0_480, %c4_481, %c38_482] : memref<1x4x10x432xf32, #tpu.memory_space<vmem>>, vector<1x4x1x384xf32>
    %279 = vector.shape_cast %278 : vector<1x4x1x384xf32> to vector<4x384xf32>
    %c0_483 = arith.constant 0 : index
    %c0_484 = arith.constant 0 : index
    %c5_485 = arith.constant 5 : index
    %c0_486 = arith.constant 0 : index
    %280 = vector.load %arg1[%c0_483, %c0_484, %c5_485, %c0_486] : memref<1x4x10x432xf32, #tpu.memory_space<vmem>>, vector<1x4x1x384xf32>
    %281 = vector.shape_cast %280 : vector<1x4x1x384xf32> to vector<4x384xf32>
    %c0_487 = arith.constant 0 : index
    %c0_488 = arith.constant 0 : index
    %c5_489 = arith.constant 5 : index
    %c1_490 = arith.constant 1 : index
    %282 = vector.load %arg1[%c0_487, %c0_488, %c5_489, %c1_490] : memref<1x4x10x432xf32, #tpu.memory_space<vmem>>, vector<1x4x1x384xf32>
    %283 = vector.shape_cast %282 : vector<1x4x1x384xf32> to vector<4x384xf32>
    %c0_491 = arith.constant 0 : index
    %c0_492 = arith.constant 0 : index
    %c5_493 = arith.constant 5 : index
    %c2_494 = arith.constant 2 : index
    %284 = vector.load %arg1[%c0_491, %c0_492, %c5_493, %c2_494] : memref<1x4x10x432xf32, #tpu.memory_space<vmem>>, vector<1x4x1x384xf32>
    %285 = vector.shape_cast %284 : vector<1x4x1x384xf32> to vector<4x384xf32>
    %c0_495 = arith.constant 0 : index
    %c0_496 = arith.constant 0 : index
    %c5_497 = arith.constant 5 : index
    %c18_498 = arith.constant 18 : index
    %286 = vector.load %arg1[%c0_495, %c0_496, %c5_497, %c18_498] : memref<1x4x10x432xf32, #tpu.memory_space<vmem>>, vector<1x4x1x384xf32>
    %287 = vector.shape_cast %286 : vector<1x4x1x384xf32> to vector<4x384xf32>
    %c0_499 = arith.constant 0 : index
    %c0_500 = arith.constant 0 : index
    %c5_501 = arith.constant 5 : index
    %c19_502 = arith.constant 19 : index
    %288 = vector.load %arg1[%c0_499, %c0_500, %c5_501, %c19_502] : memref<1x4x10x432xf32, #tpu.memory_space<vmem>>, vector<1x4x1x384xf32>
    %289 = vector.shape_cast %288 : vector<1x4x1x384xf32> to vector<4x384xf32>
    %c0_503 = arith.constant 0 : index
    %c0_504 = arith.constant 0 : index
    %c5_505 = arith.constant 5 : index
    %c20_506 = arith.constant 20 : index
    %290 = vector.load %arg1[%c0_503, %c0_504, %c5_505, %c20_506] : memref<1x4x10x432xf32, #tpu.memory_space<vmem>>, vector<1x4x1x384xf32>
    %291 = vector.shape_cast %290 : vector<1x4x1x384xf32> to vector<4x384xf32>
    %c0_507 = arith.constant 0 : index
    %c0_508 = arith.constant 0 : index
    %c5_509 = arith.constant 5 : index
    %c36_510 = arith.constant 36 : index
    %292 = vector.load %arg1[%c0_507, %c0_508, %c5_509, %c36_510] : memref<1x4x10x432xf32, #tpu.memory_space<vmem>>, vector<1x4x1x384xf32>
    %293 = vector.shape_cast %292 : vector<1x4x1x384xf32> to vector<4x384xf32>
    %c0_511 = arith.constant 0 : index
    %c0_512 = arith.constant 0 : index
    %c5_513 = arith.constant 5 : index
    %c37_514 = arith.constant 37 : index
    %294 = vector.load %arg1[%c0_511, %c0_512, %c5_513, %c37_514] : memref<1x4x10x432xf32, #tpu.memory_space<vmem>>, vector<1x4x1x384xf32>
    %295 = vector.shape_cast %294 : vector<1x4x1x384xf32> to vector<4x384xf32>
    %c0_515 = arith.constant 0 : index
    %c0_516 = arith.constant 0 : index
    %c5_517 = arith.constant 5 : index
    %c38_518 = arith.constant 38 : index
    %296 = vector.load %arg1[%c0_515, %c0_516, %c5_517, %c38_518] : memref<1x4x10x432xf32, #tpu.memory_space<vmem>>, vector<1x4x1x384xf32>
    %297 = vector.shape_cast %296 : vector<1x4x1x384xf32> to vector<4x384xf32>
    %c0_519 = arith.constant 0 : index
    %c0_520 = arith.constant 0 : index
    %c6 = arith.constant 6 : index
    %c0_521 = arith.constant 0 : index
    %298 = vector.load %arg1[%c0_519, %c0_520, %c6, %c0_521] : memref<1x4x10x432xf32, #tpu.memory_space<vmem>>, vector<1x4x1x384xf32>
    %299 = vector.shape_cast %298 : vector<1x4x1x384xf32> to vector<4x384xf32>
    %c0_522 = arith.constant 0 : index
    %c0_523 = arith.constant 0 : index
    %c6_524 = arith.constant 6 : index
    %c1_525 = arith.constant 1 : index
    %300 = vector.load %arg1[%c0_522, %c0_523, %c6_524, %c1_525] : memref<1x4x10x432xf32, #tpu.memory_space<vmem>>, vector<1x4x1x384xf32>
    %301 = vector.shape_cast %300 : vector<1x4x1x384xf32> to vector<4x384xf32>
    %c0_526 = arith.constant 0 : index
    %c0_527 = arith.constant 0 : index
    %c6_528 = arith.constant 6 : index
    %c2_529 = arith.constant 2 : index
    %302 = vector.load %arg1[%c0_526, %c0_527, %c6_528, %c2_529] : memref<1x4x10x432xf32, #tpu.memory_space<vmem>>, vector<1x4x1x384xf32>
    %303 = vector.shape_cast %302 : vector<1x4x1x384xf32> to vector<4x384xf32>
    %c0_530 = arith.constant 0 : index
    %c0_531 = arith.constant 0 : index
    %c6_532 = arith.constant 6 : index
    %c18_533 = arith.constant 18 : index
    %304 = vector.load %arg1[%c0_530, %c0_531, %c6_532, %c18_533] : memref<1x4x10x432xf32, #tpu.memory_space<vmem>>, vector<1x4x1x384xf32>
    %305 = vector.shape_cast %304 : vector<1x4x1x384xf32> to vector<4x384xf32>
    %c0_534 = arith.constant 0 : index
    %c0_535 = arith.constant 0 : index
    %c6_536 = arith.constant 6 : index
    %c19_537 = arith.constant 19 : index
    %306 = vector.load %arg1[%c0_534, %c0_535, %c6_536, %c19_537] : memref<1x4x10x432xf32, #tpu.memory_space<vmem>>, vector<1x4x1x384xf32>
    %307 = vector.shape_cast %306 : vector<1x4x1x384xf32> to vector<4x384xf32>
    %c0_538 = arith.constant 0 : index
    %c0_539 = arith.constant 0 : index
    %c6_540 = arith.constant 6 : index
    %c20_541 = arith.constant 20 : index
    %308 = vector.load %arg1[%c0_538, %c0_539, %c6_540, %c20_541] : memref<1x4x10x432xf32, #tpu.memory_space<vmem>>, vector<1x4x1x384xf32>
    %309 = vector.shape_cast %308 : vector<1x4x1x384xf32> to vector<4x384xf32>
    %c0_542 = arith.constant 0 : index
    %c0_543 = arith.constant 0 : index
    %c6_544 = arith.constant 6 : index
    %c36_545 = arith.constant 36 : index
    %310 = vector.load %arg1[%c0_542, %c0_543, %c6_544, %c36_545] : memref<1x4x10x432xf32, #tpu.memory_space<vmem>>, vector<1x4x1x384xf32>
    %311 = vector.shape_cast %310 : vector<1x4x1x384xf32> to vector<4x384xf32>
    %c0_546 = arith.constant 0 : index
    %c0_547 = arith.constant 0 : index
    %c6_548 = arith.constant 6 : index
    %c37_549 = arith.constant 37 : index
    %312 = vector.load %arg1[%c0_546, %c0_547, %c6_548, %c37_549] : memref<1x4x10x432xf32, #tpu.memory_space<vmem>>, vector<1x4x1x384xf32>
    %313 = vector.shape_cast %312 : vector<1x4x1x384xf32> to vector<4x384xf32>
    %c0_550 = arith.constant 0 : index
    %c0_551 = arith.constant 0 : index
    %c6_552 = arith.constant 6 : index
    %c38_553 = arith.constant 38 : index
    %314 = vector.load %arg1[%c0_550, %c0_551, %c6_552, %c38_553] : memref<1x4x10x432xf32, #tpu.memory_space<vmem>>, vector<1x4x1x384xf32>
    %315 = vector.shape_cast %314 : vector<1x4x1x384xf32> to vector<4x384xf32>
    %316 = tpu.concatenate %263, %265, %267, %269, %271, %273, %275, %277, %279, %281, %283, %285, %287, %289, %291, %293 in 0 : vector<4x384xf32>, vector<4x384xf32>, vector<4x384xf32>, vector<4x384xf32>, vector<4x384xf32>, vector<4x384xf32>, vector<4x384xf32>, vector<4x384xf32>, vector<4x384xf32>, vector<4x384xf32>, vector<4x384xf32>, vector<4x384xf32>, vector<4x384xf32>, vector<4x384xf32>, vector<4x384xf32>, vector<4x384xf32> -> vector<64x384xf32>
    %317 = tpu.concatenate %295, %297, %299, %301, %303, %305, %307, %309, %311, %313, %315 in 0 : vector<4x384xf32>, vector<4x384xf32>, vector<4x384xf32>, vector<4x384xf32>, vector<4x384xf32>, vector<4x384xf32>, vector<4x384xf32>, vector<4x384xf32>, vector<4x384xf32>, vector<4x384xf32>, vector<4x384xf32> -> vector<44x384xf32>
    %318 = tpu.concatenate %316, %317 in 0 : vector<64x384xf32>, vector<44x384xf32> -> vector<108x384xf32>
    %cst_554 = arith.constant dense<0.000000e+00> : vector<8x384xf32>
    %319 = tpu.matmul %0, %318, %cst_554 {dimension_numbers = #tpu.dot_dimension_numbers<[1], [0], [0], [1], [0, 0, 1, 1], [], []>} : vector<8x108xf32>, vector<108x384xf32>, vector<8x384xf32> -> vector<8x384xf32>
    %320 = vector.broadcast %1 : vector<8x1xf32> to vector<8x384xf32>
    %321 = arith.addf %319, %320 : vector<8x384xf32>
    %cst_555 = arith.constant 0.000000e+00 : f32
    %322 = vector.broadcast %cst_555 : f32 to vector<8x384xf32>
    %323 = arith.maximumf %321, %322 : vector<8x384xf32>
    %c0_556 = arith.constant 0 : index
    %c0_557 = arith.constant 0 : index
    %c4_558 = arith.constant 4 : index
    %c0_559 = arith.constant 0 : index
    %324 = vector.load %arg4[%c0_556, %c0_557, %c4_558, %c0_559] : memref<1x8x8x384xf32, #tpu.memory_space<vmem>>, vector<1x8x1x384xf32>
    %325 = vector.shape_cast %324 : vector<1x8x1x384xf32> to vector<8x384xf32>
    %326 = vector.shape_cast %323 : vector<8x384xf32> to vector<1x8x1x384xf32>
    tpu.vector_store %arg4[%c0_556, %c0_557, %c4_558, %c0_559], %326 {strides = array<i32>} : memref<1x8x8x384xf32, #tpu.memory_space<vmem>>, vector<1x8x1x384xf32>,
    %c0_560 = arith.constant 0 : index
    %c0_561 = arith.constant 0 : index
    %c5_562 = arith.constant 5 : index
    %c0_563 = arith.constant 0 : index
    %327 = vector.load %arg1[%c0_560, %c0_561, %c5_562, %c0_563] : memref<1x4x10x432xf32, #tpu.memory_space<vmem>>, vector<1x4x1x384xf32>
    %328 = vector.shape_cast %327 : vector<1x4x1x384xf32> to vector<4x384xf32>
    %c0_564 = arith.constant 0 : index
    %c0_565 = arith.constant 0 : index
    %c5_566 = arith.constant 5 : index
    %c1_567 = arith.constant 1 : index
    %329 = vector.load %arg1[%c0_564, %c0_565, %c5_566, %c1_567] : memref<1x4x10x432xf32, #tpu.memory_space<vmem>>, vector<1x4x1x384xf32>
    %330 = vector.shape_cast %329 : vector<1x4x1x384xf32> to vector<4x384xf32>
    %c0_568 = arith.constant 0 : index
    %c0_569 = arith.constant 0 : index
    %c5_570 = arith.constant 5 : index
    %c2_571 = arith.constant 2 : index
    %331 = vector.load %arg1[%c0_568, %c0_569, %c5_570, %c2_571] : memref<1x4x10x432xf32, #tpu.memory_space<vmem>>, vector<1x4x1x384xf32>
    %332 = vector.shape_cast %331 : vector<1x4x1x384xf32> to vector<4x384xf32>
    %c0_572 = arith.constant 0 : index
    %c0_573 = arith.constant 0 : index
    %c5_574 = arith.constant 5 : index
    %c18_575 = arith.constant 18 : index
    %333 = vector.load %arg1[%c0_572, %c0_573, %c5_574, %c18_575] : memref<1x4x10x432xf32, #tpu.memory_space<vmem>>, vector<1x4x1x384xf32>
    %334 = vector.shape_cast %333 : vector<1x4x1x384xf32> to vector<4x384xf32>
    %c0_576 = arith.constant 0 : index
    %c0_577 = arith.constant 0 : index
    %c5_578 = arith.constant 5 : index
    %c19_579 = arith.constant 19 : index
    %335 = vector.load %arg1[%c0_576, %c0_577, %c5_578, %c19_579] : memref<1x4x10x432xf32, #tpu.memory_space<vmem>>, vector<1x4x1x384xf32>
    %336 = vector.shape_cast %335 : vector<1x4x1x384xf32> to vector<4x384xf32>
    %c0_580 = arith.constant 0 : index
    %c0_581 = arith.constant 0 : index
    %c5_582 = arith.constant 5 : index
    %c20_583 = arith.constant 20 : index
    %337 = vector.load %arg1[%c0_580, %c0_581, %c5_582, %c20_583] : memref<1x4x10x432xf32, #tpu.memory_space<vmem>>, vector<1x4x1x384xf32>
    %338 = vector.shape_cast %337 : vector<1x4x1x384xf32> to vector<4x384xf32>
    %c0_584 = arith.constant 0 : index
    %c0_585 = arith.constant 0 : index
    %c5_586 = arith.constant 5 : index
    %c36_587 = arith.constant 36 : index
    %339 = vector.load %arg1[%c0_584, %c0_585, %c5_586, %c36_587] : memref<1x4x10x432xf32, #tpu.memory_space<vmem>>, vector<1x4x1x384xf32>
    %340 = vector.shape_cast %339 : vector<1x4x1x384xf32> to vector<4x384xf32>
    %c0_588 = arith.constant 0 : index
    %c0_589 = arith.constant 0 : index
    %c5_590 = arith.constant 5 : index
    %c37_591 = arith.constant 37 : index
    %341 = vector.load %arg1[%c0_588, %c0_589, %c5_590, %c37_591] : memref<1x4x10x432xf32, #tpu.memory_space<vmem>>, vector<1x4x1x384xf32>
    %342 = vector.shape_cast %341 : vector<1x4x1x384xf32> to vector<4x384xf32>
    %c0_592 = arith.constant 0 : index
    %c0_593 = arith.constant 0 : index
    %c5_594 = arith.constant 5 : index
    %c38_595 = arith.constant 38 : index
    %343 = vector.load %arg1[%c0_592, %c0_593, %c5_594, %c38_595] : memref<1x4x10x432xf32, #tpu.memory_space<vmem>>, vector<1x4x1x384xf32>
    %344 = vector.shape_cast %343 : vector<1x4x1x384xf32> to vector<4x384xf32>
    %c0_596 = arith.constant 0 : index
    %c0_597 = arith.constant 0 : index
    %c6_598 = arith.constant 6 : index
    %c0_599 = arith.constant 0 : index
    %345 = vector.load %arg1[%c0_596, %c0_597, %c6_598, %c0_599] : memref<1x4x10x432xf32, #tpu.memory_space<vmem>>, vector<1x4x1x384xf32>
    %346 = vector.shape_cast %345 : vector<1x4x1x384xf32> to vector<4x384xf32>
    %c0_600 = arith.constant 0 : index
    %c0_601 = arith.constant 0 : index
    %c6_602 = arith.constant 6 : index
    %c1_603 = arith.constant 1 : index
    %347 = vector.load %arg1[%c0_600, %c0_601, %c6_602, %c1_603] : memref<1x4x10x432xf32, #tpu.memory_space<vmem>>, vector<1x4x1x384xf32>
    %348 = vector.shape_cast %347 : vector<1x4x1x384xf32> to vector<4x384xf32>
    %c0_604 = arith.constant 0 : index
    %c0_605 = arith.constant 0 : index
    %c6_606 = arith.constant 6 : index
    %c2_607 = arith.constant 2 : index
    %349 = vector.load %arg1[%c0_604, %c0_605, %c6_606, %c2_607] : memref<1x4x10x432xf32, #tpu.memory_space<vmem>>, vector<1x4x1x384xf32>
    %350 = vector.shape_cast %349 : vector<1x4x1x384xf32> to vector<4x384xf32>
    %c0_608 = arith.constant 0 : index
    %c0_609 = arith.constant 0 : index
    %c6_610 = arith.constant 6 : index
    %c18_611 = arith.constant 18 : index
    %351 = vector.load %arg1[%c0_608, %c0_609, %c6_610, %c18_611] : memref<1x4x10x432xf32, #tpu.memory_space<vmem>>, vector<1x4x1x384xf32>
    %352 = vector.shape_cast %351 : vector<1x4x1x384xf32> to vector<4x384xf32>
    %c0_612 = arith.constant 0 : index
    %c0_613 = arith.constant 0 : index
    %c6_614 = arith.constant 6 : index
    %c19_615 = arith.constant 19 : index
    %353 = vector.load %arg1[%c0_612, %c0_613, %c6_614, %c19_615] : memref<1x4x10x432xf32, #tpu.memory_space<vmem>>, vector<1x4x1x384xf32>
    %354 = vector.shape_cast %353 : vector<1x4x1x384xf32> to vector<4x384xf32>
    %c0_616 = arith.constant 0 : index
    %c0_617 = arith.constant 0 : index
    %c6_618 = arith.constant 6 : index
    %c20_619 = arith.constant 20 : index
    %355 = vector.load %arg1[%c0_616, %c0_617, %c6_618, %c20_619] : memref<1x4x10x432xf32, #tpu.memory_space<vmem>>, vector<1x4x1x384xf32>
    %356 = vector.shape_cast %355 : vector<1x4x1x384xf32> to vector<4x384xf32>
    %c0_620 = arith.constant 0 : index
    %c0_621 = arith.constant 0 : index
    %c6_622 = arith.constant 6 : index
    %c36_623 = arith.constant 36 : index
    %357 = vector.load %arg1[%c0_620, %c0_621, %c6_622, %c36_623] : memref<1x4x10x432xf32, #tpu.memory_space<vmem>>, vector<1x4x1x384xf32>
    %358 = vector.shape_cast %357 : vector<1x4x1x384xf32> to vector<4x384xf32>
    %c0_624 = arith.constant 0 : index
    %c0_625 = arith.constant 0 : index
    %c6_626 = arith.constant 6 : index
    %c37_627 = arith.constant 37 : index
    %359 = vector.load %arg1[%c0_624, %c0_625, %c6_626, %c37_627] : memref<1x4x10x432xf32, #tpu.memory_space<vmem>>, vector<1x4x1x384xf32>
    %360 = vector.shape_cast %359 : vector<1x4x1x384xf32> to vector<4x384xf32>
    %c0_628 = arith.constant 0 : index
    %c0_629 = arith.constant 0 : index
    %c6_630 = arith.constant 6 : index
    %c38_631 = arith.constant 38 : index
    %361 = vector.load %arg1[%c0_628, %c0_629, %c6_630, %c38_631] : memref<1x4x10x432xf32, #tpu.memory_space<vmem>>, vector<1x4x1x384xf32>
    %362 = vector.shape_cast %361 : vector<1x4x1x384xf32> to vector<4x384xf32>
    %c0_632 = arith.constant 0 : index
    %c0_633 = arith.constant 0 : index
    %c7 = arith.constant 7 : index
    %c0_634 = arith.constant 0 : index
    %363 = vector.load %arg1[%c0_632, %c0_633, %c7, %c0_634] : memref<1x4x10x432xf32, #tpu.memory_space<vmem>>, vector<1x4x1x384xf32>
    %364 = vector.shape_cast %363 : vector<1x4x1x384xf32> to vector<4x384xf32>
    %c0_635 = arith.constant 0 : index
    %c0_636 = arith.constant 0 : index
    %c7_637 = arith.constant 7 : index
    %c1_638 = arith.constant 1 : index
    %365 = vector.load %arg1[%c0_635, %c0_636, %c7_637, %c1_638] : memref<1x4x10x432xf32, #tpu.memory_space<vmem>>, vector<1x4x1x384xf32>
    %366 = vector.shape_cast %365 : vector<1x4x1x384xf32> to vector<4x384xf32>
    %c0_639 = arith.constant 0 : index
    %c0_640 = arith.constant 0 : index
    %c7_641 = arith.constant 7 : index
    %c2_642 = arith.constant 2 : index
    %367 = vector.load %arg1[%c0_639, %c0_640, %c7_641, %c2_642] : memref<1x4x10x432xf32, #tpu.memory_space<vmem>>, vector<1x4x1x384xf32>
    %368 = vector.shape_cast %367 : vector<1x4x1x384xf32> to vector<4x384xf32>
    %c0_643 = arith.constant 0 : index
    %c0_644 = arith.constant 0 : index
    %c7_645 = arith.constant 7 : index
    %c18_646 = arith.constant 18 : index
    %369 = vector.load %arg1[%c0_643, %c0_644, %c7_645, %c18_646] : memref<1x4x10x432xf32, #tpu.memory_space<vmem>>, vector<1x4x1x384xf32>
    %370 = vector.shape_cast %369 : vector<1x4x1x384xf32> to vector<4x384xf32>
    %c0_647 = arith.constant 0 : index
    %c0_648 = arith.constant 0 : index
    %c7_649 = arith.constant 7 : index
    %c19_650 = arith.constant 19 : index
    %371 = vector.load %arg1[%c0_647, %c0_648, %c7_649, %c19_650] : memref<1x4x10x432xf32, #tpu.memory_space<vmem>>, vector<1x4x1x384xf32>
    %372 = vector.shape_cast %371 : vector<1x4x1x384xf32> to vector<4x384xf32>
    %c0_651 = arith.constant 0 : index
    %c0_652 = arith.constant 0 : index
    %c7_653 = arith.constant 7 : index
    %c20_654 = arith.constant 20 : index
    %373 = vector.load %arg1[%c0_651, %c0_652, %c7_653, %c20_654] : memref<1x4x10x432xf32, #tpu.memory_space<vmem>>, vector<1x4x1x384xf32>
    %374 = vector.shape_cast %373 : vector<1x4x1x384xf32> to vector<4x384xf32>
    %c0_655 = arith.constant 0 : index
    %c0_656 = arith.constant 0 : index
    %c7_657 = arith.constant 7 : index
    %c36_658 = arith.constant 36 : index
    %375 = vector.load %arg1[%c0_655, %c0_656, %c7_657, %c36_658] : memref<1x4x10x432xf32, #tpu.memory_space<vmem>>, vector<1x4x1x384xf32>
    %376 = vector.shape_cast %375 : vector<1x4x1x384xf32> to vector<4x384xf32>
    %c0_659 = arith.constant 0 : index
    %c0_660 = arith.constant 0 : index
    %c7_661 = arith.constant 7 : index
    %c37_662 = arith.constant 37 : index
    %377 = vector.load %arg1[%c0_659, %c0_660, %c7_661, %c37_662] : memref<1x4x10x432xf32, #tpu.memory_space<vmem>>, vector<1x4x1x384xf32>
    %378 = vector.shape_cast %377 : vector<1x4x1x384xf32> to vector<4x384xf32>
    %c0_663 = arith.constant 0 : index
    %c0_664 = arith.constant 0 : index
    %c7_665 = arith.constant 7 : index
    %c38_666 = arith.constant 38 : index
    %379 = vector.load %arg1[%c0_663, %c0_664, %c7_665, %c38_666] : memref<1x4x10x432xf32, #tpu.memory_space<vmem>>, vector<1x4x1x384xf32>
    %380 = vector.shape_cast %379 : vector<1x4x1x384xf32> to vector<4x384xf32>
    %381 = tpu.concatenate %328, %330, %332, %334, %336, %338, %340, %342, %344, %346, %348, %350, %352, %354, %356, %358 in 0 : vector<4x384xf32>, vector<4x384xf32>, vector<4x384xf32>, vector<4x384xf32>, vector<4x384xf32>, vector<4x384xf32>, vector<4x384xf32>, vector<4x384xf32>, vector<4x384xf32>, vector<4x384xf32>, vector<4x384xf32>, vector<4x384xf32>, vector<4x384xf32>, vector<4x384xf32>, vector<4x384xf32>, vector<4x384xf32> -> vector<64x384xf32>
    %382 = tpu.concatenate %360, %362, %364, %366, %368, %370, %372, %374, %376, %378, %380 in 0 : vector<4x384xf32>, vector<4x384xf32>, vector<4x384xf32>, vector<4x384xf32>, vector<4x384xf32>, vector<4x384xf32>, vector<4x384xf32>, vector<4x384xf32>, vector<4x384xf32>, vector<4x384xf32>, vector<4x384xf32> -> vector<44x384xf32>
    %383 = tpu.concatenate %381, %382 in 0 : vector<64x384xf32>, vector<44x384xf32> -> vector<108x384xf32>
    %cst_667 = arith.constant dense<0.000000e+00> : vector<8x384xf32>
    %384 = tpu.matmul %0, %383, %cst_667 {dimension_numbers = #tpu.dot_dimension_numbers<[1], [0], [0], [1], [0, 0, 1, 1], [], []>} : vector<8x108xf32>, vector<108x384xf32>, vector<8x384xf32> -> vector<8x384xf32>
    %385 = vector.broadcast %1 : vector<8x1xf32> to vector<8x384xf32>
    %386 = arith.addf %384, %385 : vector<8x384xf32>
    %cst_668 = arith.constant 0.000000e+00 : f32
    %387 = vector.broadcast %cst_668 : f32 to vector<8x384xf32>
    %388 = arith.maximumf %386, %387 : vector<8x384xf32>
    %c0_669 = arith.constant 0 : index
    %c0_670 = arith.constant 0 : index
    %c5_671 = arith.constant 5 : index
    %c0_672 = arith.constant 0 : index
    %389 = vector.load %arg4[%c0_669, %c0_670, %c5_671, %c0_672] : memref<1x8x8x384xf32, #tpu.memory_space<vmem>>, vector<1x8x1x384xf32>
    %390 = vector.shape_cast %389 : vector<1x8x1x384xf32> to vector<8x384xf32>
    %391 = vector.shape_cast %388 : vector<8x384xf32> to vector<1x8x1x384xf32>
    tpu.vector_store %arg4[%c0_669, %c0_670, %c5_671, %c0_672], %391 {strides = array<i32>} : memref<1x8x8x384xf32, #tpu.memory_space<vmem>>, vector<1x8x1x384xf32>,
    %c0_673 = arith.constant 0 : index
    %c0_674 = arith.constant 0 : index
    %c6_675 = arith.constant 6 : index
    %c0_676 = arith.constant 0 : index
    %392 = vector.load %arg1[%c0_673, %c0_674, %c6_675, %c0_676] : memref<1x4x10x432xf32, #tpu.memory_space<vmem>>, vector<1x4x1x384xf32>
    %393 = vector.shape_cast %392 : vector<1x4x1x384xf32> to vector<4x384xf32>
    %c0_677 = arith.constant 0 : index
    %c0_678 = arith.constant 0 : index
    %c6_679 = arith.constant 6 : index
    %c1_680 = arith.constant 1 : index
    %394 = vector.load %arg1[%c0_677, %c0_678, %c6_679, %c1_680] : memref<1x4x10x432xf32, #tpu.memory_space<vmem>>, vector<1x4x1x384xf32>
    %395 = vector.shape_cast %394 : vector<1x4x1x384xf32> to vector<4x384xf32>
    %c0_681 = arith.constant 0 : index
    %c0_682 = arith.constant 0 : index
    %c6_683 = arith.constant 6 : index
    %c2_684 = arith.constant 2 : index
    %396 = vector.load %arg1[%c0_681, %c0_682, %c6_683, %c2_684] : memref<1x4x10x432xf32, #tpu.memory_space<vmem>>, vector<1x4x1x384xf32>
    %397 = vector.shape_cast %396 : vector<1x4x1x384xf32> to vector<4x384xf32>
    %c0_685 = arith.constant 0 : index
    %c0_686 = arith.constant 0 : index
    %c6_687 = arith.constant 6 : index
    %c18_688 = arith.constant 18 : index
    %398 = vector.load %arg1[%c0_685, %c0_686, %c6_687, %c18_688] : memref<1x4x10x432xf32, #tpu.memory_space<vmem>>, vector<1x4x1x384xf32>
    %399 = vector.shape_cast %398 : vector<1x4x1x384xf32> to vector<4x384xf32>
    %c0_689 = arith.constant 0 : index
    %c0_690 = arith.constant 0 : index
    %c6_691 = arith.constant 6 : index
    %c19_692 = arith.constant 19 : index
    %400 = vector.load %arg1[%c0_689, %c0_690, %c6_691, %c19_692] : memref<1x4x10x432xf32, #tpu.memory_space<vmem>>, vector<1x4x1x384xf32>
    %401 = vector.shape_cast %400 : vector<1x4x1x384xf32> to vector<4x384xf32>
    %c0_693 = arith.constant 0 : index
    %c0_694 = arith.constant 0 : index
    %c6_695 = arith.constant 6 : index
    %c20_696 = arith.constant 20 : index
    %402 = vector.load %arg1[%c0_693, %c0_694, %c6_695, %c20_696] : memref<1x4x10x432xf32, #tpu.memory_space<vmem>>, vector<1x4x1x384xf32>
    %403 = vector.shape_cast %402 : vector<1x4x1x384xf32> to vector<4x384xf32>
    %c0_697 = arith.constant 0 : index
    %c0_698 = arith.constant 0 : index
    %c6_699 = arith.constant 6 : index
    %c36_700 = arith.constant 36 : index
    %404 = vector.load %arg1[%c0_697, %c0_698, %c6_699, %c36_700] : memref<1x4x10x432xf32, #tpu.memory_space<vmem>>, vector<1x4x1x384xf32>
    %405 = vector.shape_cast %404 : vector<1x4x1x384xf32> to vector<4x384xf32>
    %c0_701 = arith.constant 0 : index
    %c0_702 = arith.constant 0 : index
    %c6_703 = arith.constant 6 : index
    %c37_704 = arith.constant 37 : index
    %406 = vector.load %arg1[%c0_701, %c0_702, %c6_703, %c37_704] : memref<1x4x10x432xf32, #tpu.memory_space<vmem>>, vector<1x4x1x384xf32>
    %407 = vector.shape_cast %406 : vector<1x4x1x384xf32> to vector<4x384xf32>
    %c0_705 = arith.constant 0 : index
    %c0_706 = arith.constant 0 : index
    %c6_707 = arith.constant 6 : index
    %c38_708 = arith.constant 38 : index
    %408 = vector.load %arg1[%c0_705, %c0_706, %c6_707, %c38_708] : memref<1x4x10x432xf32, #tpu.memory_space<vmem>>, vector<1x4x1x384xf32>
    %409 = vector.shape_cast %408 : vector<1x4x1x384xf32> to vector<4x384xf32>
    %c0_709 = arith.constant 0 : index
    %c0_710 = arith.constant 0 : index
    %c7_711 = arith.constant 7 : index
    %c0_712 = arith.constant 0 : index
    %410 = vector.load %arg1[%c0_709, %c0_710, %c7_711, %c0_712] : memref<1x4x10x432xf32, #tpu.memory_space<vmem>>, vector<1x4x1x384xf32>
    %411 = vector.shape_cast %410 : vector<1x4x1x384xf32> to vector<4x384xf32>
    %c0_713 = arith.constant 0 : index
    %c0_714 = arith.constant 0 : index
    %c7_715 = arith.constant 7 : index
    %c1_716 = arith.constant 1 : index
    %412 = vector.load %arg1[%c0_713, %c0_714, %c7_715, %c1_716] : memref<1x4x10x432xf32, #tpu.memory_space<vmem>>, vector<1x4x1x384xf32>
    %413 = vector.shape_cast %412 : vector<1x4x1x384xf32> to vector<4x384xf32>
    %c0_717 = arith.constant 0 : index
    %c0_718 = arith.constant 0 : index
    %c7_719 = arith.constant 7 : index
    %c2_720 = arith.constant 2 : index
    %414 = vector.load %arg1[%c0_717, %c0_718, %c7_719, %c2_720] : memref<1x4x10x432xf32, #tpu.memory_space<vmem>>, vector<1x4x1x384xf32>
    %415 = vector.shape_cast %414 : vector<1x4x1x384xf32> to vector<4x384xf32>
    %c0_721 = arith.constant 0 : index
    %c0_722 = arith.constant 0 : index
    %c7_723 = arith.constant 7 : index
    %c18_724 = arith.constant 18 : index
    %416 = vector.load %arg1[%c0_721, %c0_722, %c7_723, %c18_724] : memref<1x4x10x432xf32, #tpu.memory_space<vmem>>, vector<1x4x1x384xf32>
    %417 = vector.shape_cast %416 : vector<1x4x1x384xf32> to vector<4x384xf32>
    %c0_725 = arith.constant 0 : index
    %c0_726 = arith.constant 0 : index
    %c7_727 = arith.constant 7 : index
    %c19_728 = arith.constant 19 : index
    %418 = vector.load %arg1[%c0_725, %c0_726, %c7_727, %c19_728] : memref<1x4x10x432xf32, #tpu.memory_space<vmem>>, vector<1x4x1x384xf32>
    %419 = vector.shape_cast %418 : vector<1x4x1x384xf32> to vector<4x384xf32>
    %c0_729 = arith.constant 0 : index
    %c0_730 = arith.constant 0 : index
    %c7_731 = arith.constant 7 : index
    %c20_732 = arith.constant 20 : index
    %420 = vector.load %arg1[%c0_729, %c0_730, %c7_731, %c20_732] : memref<1x4x10x432xf32, #tpu.memory_space<vmem>>, vector<1x4x1x384xf32>
    %421 = vector.shape_cast %420 : vector<1x4x1x384xf32> to vector<4x384xf32>
    %c0_733 = arith.constant 0 : index
    %c0_734 = arith.constant 0 : index
    %c7_735 = arith.constant 7 : index
    %c36_736 = arith.constant 36 : index
    %422 = vector.load %arg1[%c0_733, %c0_734, %c7_735, %c36_736] : memref<1x4x10x432xf32, #tpu.memory_space<vmem>>, vector<1x4x1x384xf32>
    %423 = vector.shape_cast %422 : vector<1x4x1x384xf32> to vector<4x384xf32>
    %c0_737 = arith.constant 0 : index
    %c0_738 = arith.constant 0 : index
    %c7_739 = arith.constant 7 : index
    %c37_740 = arith.constant 37 : index
    %424 = vector.load %arg1[%c0_737, %c0_738, %c7_739, %c37_740] : memref<1x4x10x432xf32, #tpu.memory_space<vmem>>, vector<1x4x1x384xf32>
    %425 = vector.shape_cast %424 : vector<1x4x1x384xf32> to vector<4x384xf32>
    %c0_741 = arith.constant 0 : index
    %c0_742 = arith.constant 0 : index
    %c7_743 = arith.constant 7 : index
    %c38_744 = arith.constant 38 : index
    %426 = vector.load %arg1[%c0_741, %c0_742, %c7_743, %c38_744] : memref<1x4x10x432xf32, #tpu.memory_space<vmem>>, vector<1x4x1x384xf32>
    %427 = vector.shape_cast %426 : vector<1x4x1x384xf32> to vector<4x384xf32>
    %c0_745 = arith.constant 0 : index
    %c0_746 = arith.constant 0 : index
    %c8 = arith.constant 8 : index
    %c0_747 = arith.constant 0 : index
    %428 = vector.load %arg1[%c0_745, %c0_746, %c8, %c0_747] : memref<1x4x10x432xf32, #tpu.memory_space<vmem>>, vector<1x4x1x384xf32>
    %429 = vector.shape_cast %428 : vector<1x4x1x384xf32> to vector<4x384xf32>
    %c0_748 = arith.constant 0 : index
    %c0_749 = arith.constant 0 : index
    %c8_750 = arith.constant 8 : index
    %c1_751 = arith.constant 1 : index
    %430 = vector.load %arg1[%c0_748, %c0_749, %c8_750, %c1_751] : memref<1x4x10x432xf32, #tpu.memory_space<vmem>>, vector<1x4x1x384xf32>
    %431 = vector.shape_cast %430 : vector<1x4x1x384xf32> to vector<4x384xf32>
    %c0_752 = arith.constant 0 : index
    %c0_753 = arith.constant 0 : index
    %c8_754 = arith.constant 8 : index
    %c2_755 = arith.constant 2 : index
    %432 = vector.load %arg1[%c0_752, %c0_753, %c8_754, %c2_755] : memref<1x4x10x432xf32, #tpu.memory_space<vmem>>, vector<1x4x1x384xf32>
    %433 = vector.shape_cast %432 : vector<1x4x1x384xf32> to vector<4x384xf32>
    %c0_756 = arith.constant 0 : index
    %c0_757 = arith.constant 0 : index
    %c8_758 = arith.constant 8 : index
    %c18_759 = arith.constant 18 : index
    %434 = vector.load %arg1[%c0_756, %c0_757, %c8_758, %c18_759] : memref<1x4x10x432xf32, #tpu.memory_space<vmem>>, vector<1x4x1x384xf32>
    %435 = vector.shape_cast %434 : vector<1x4x1x384xf32> to vector<4x384xf32>
    %c0_760 = arith.constant 0 : index
    %c0_761 = arith.constant 0 : index
    %c8_762 = arith.constant 8 : index
    %c19_763 = arith.constant 19 : index
    %436 = vector.load %arg1[%c0_760, %c0_761, %c8_762, %c19_763] : memref<1x4x10x432xf32, #tpu.memory_space<vmem>>, vector<1x4x1x384xf32>
    %437 = vector.shape_cast %436 : vector<1x4x1x384xf32> to vector<4x384xf32>
    %c0_764 = arith.constant 0 : index
    %c0_765 = arith.constant 0 : index
    %c8_766 = arith.constant 8 : index
    %c20_767 = arith.constant 20 : index
    %438 = vector.load %arg1[%c0_764, %c0_765, %c8_766, %c20_767] : memref<1x4x10x432xf32, #tpu.memory_space<vmem>>, vector<1x4x1x384xf32>
    %439 = vector.shape_cast %438 : vector<1x4x1x384xf32> to vector<4x384xf32>
    %c0_768 = arith.constant 0 : index
    %c0_769 = arith.constant 0 : index
    %c8_770 = arith.constant 8 : index
    %c36_771 = arith.constant 36 : index
    %440 = vector.load %arg1[%c0_768, %c0_769, %c8_770, %c36_771] : memref<1x4x10x432xf32, #tpu.memory_space<vmem>>, vector<1x4x1x384xf32>
    %441 = vector.shape_cast %440 : vector<1x4x1x384xf32> to vector<4x384xf32>
    %c0_772 = arith.constant 0 : index
    %c0_773 = arith.constant 0 : index
    %c8_774 = arith.constant 8 : index
    %c37_775 = arith.constant 37 : index
    %442 = vector.load %arg1[%c0_772, %c0_773, %c8_774, %c37_775] : memref<1x4x10x432xf32, #tpu.memory_space<vmem>>, vector<1x4x1x384xf32>
    %443 = vector.shape_cast %442 : vector<1x4x1x384xf32> to vector<4x384xf32>
    %c0_776 = arith.constant 0 : index
    %c0_777 = arith.constant 0 : index
    %c8_778 = arith.constant 8 : index
    %c38_779 = arith.constant 38 : index
    %444 = vector.load %arg1[%c0_776, %c0_777, %c8_778, %c38_779] : memref<1x4x10x432xf32, #tpu.memory_space<vmem>>, vector<1x4x1x384xf32>
    %445 = vector.shape_cast %444 : vector<1x4x1x384xf32> to vector<4x384xf32>
    %446 = tpu.concatenate %393, %395, %397, %399, %401, %403, %405, %407, %409, %411, %413, %415, %417, %419, %421, %423 in 0 : vector<4x384xf32>, vector<4x384xf32>, vector<4x384xf32>, vector<4x384xf32>, vector<4x384xf32>, vector<4x384xf32>, vector<4x384xf32>, vector<4x384xf32>, vector<4x384xf32>, vector<4x384xf32>, vector<4x384xf32>, vector<4x384xf32>, vector<4x384xf32>, vector<4x384xf32>, vector<4x384xf32>, vector<4x384xf32> -> vector<64x384xf32>
    %447 = tpu.concatenate %425, %427, %429, %431, %433, %435, %437, %439, %441, %443, %445 in 0 : vector<4x384xf32>, vector<4x384xf32>, vector<4x384xf32>, vector<4x384xf32>, vector<4x384xf32>, vector<4x384xf32>, vector<4x384xf32>, vector<4x384xf32>, vector<4x384xf32>, vector<4x384xf32>, vector<4x384xf32> -> vector<44x384xf32>
    %448 = tpu.concatenate %446, %447 in 0 : vector<64x384xf32>, vector<44x384xf32> -> vector<108x384xf32>
    %cst_780 = arith.constant dense<0.000000e+00> : vector<8x384xf32>
    %449 = tpu.matmul %0, %448, %cst_780 {dimension_numbers = #tpu.dot_dimension_numbers<[1], [0], [0], [1], [0, 0, 1, 1], [], []>} : vector<8x108xf32>, vector<108x384xf32>, vector<8x384xf32> -> vector<8x384xf32>
    %450 = vector.broadcast %1 : vector<8x1xf32> to vector<8x384xf32>
    %451 = arith.addf %449, %450 : vector<8x384xf32>
    %cst_781 = arith.constant 0.000000e+00 : f32
    %452 = vector.broadcast %cst_781 : f32 to vector<8x384xf32>
    %453 = arith.maximumf %451, %452 : vector<8x384xf32>
    %c0_782 = arith.constant 0 : index
    %c0_783 = arith.constant 0 : index
    %c6_784 = arith.constant 6 : index
    %c0_785 = arith.constant 0 : index
    %454 = vector.load %arg4[%c0_782, %c0_783, %c6_784, %c0_785] : memref<1x8x8x384xf32, #tpu.memory_space<vmem>>, vector<1x8x1x384xf32>
    %455 = vector.shape_cast %454 : vector<1x8x1x384xf32> to vector<8x384xf32>
    %456 = vector.shape_cast %453 : vector<8x384xf32> to vector<1x8x1x384xf32>
    tpu.vector_store %arg4[%c0_782, %c0_783, %c6_784, %c0_785], %456 {strides = array<i32>} : memref<1x8x8x384xf32, #tpu.memory_space<vmem>>, vector<1x8x1x384xf32>,
    %c0_786 = arith.constant 0 : index
    %c0_787 = arith.constant 0 : index
    %c7_788 = arith.constant 7 : index
    %c0_789 = arith.constant 0 : index
    %457 = vector.load %arg1[%c0_786, %c0_787, %c7_788, %c0_789] : memref<1x4x10x432xf32, #tpu.memory_space<vmem>>, vector<1x4x1x384xf32>
    %458 = vector.shape_cast %457 : vector<1x4x1x384xf32> to vector<4x384xf32>
    %c0_790 = arith.constant 0 : index
    %c0_791 = arith.constant 0 : index
    %c7_792 = arith.constant 7 : index
    %c1_793 = arith.constant 1 : index
    %459 = vector.load %arg1[%c0_790, %c0_791, %c7_792, %c1_793] : memref<1x4x10x432xf32, #tpu.memory_space<vmem>>, vector<1x4x1x384xf32>
    %460 = vector.shape_cast %459 : vector<1x4x1x384xf32> to vector<4x384xf32>
    %c0_794 = arith.constant 0 : index
    %c0_795 = arith.constant 0 : index
    %c7_796 = arith.constant 7 : index
    %c2_797 = arith.constant 2 : index
    %461 = vector.load %arg1[%c0_794, %c0_795, %c7_796, %c2_797] : memref<1x4x10x432xf32, #tpu.memory_space<vmem>>, vector<1x4x1x384xf32>
    %462 = vector.shape_cast %461 : vector<1x4x1x384xf32> to vector<4x384xf32>
    %c0_798 = arith.constant 0 : index
    %c0_799 = arith.constant 0 : index
    %c7_800 = arith.constant 7 : index
    %c18_801 = arith.constant 18 : index
    %463 = vector.load %arg1[%c0_798, %c0_799, %c7_800, %c18_801] : memref<1x4x10x432xf32, #tpu.memory_space<vmem>>, vector<1x4x1x384xf32>
    %464 = vector.shape_cast %463 : vector<1x4x1x384xf32> to vector<4x384xf32>
    %c0_802 = arith.constant 0 : index
    %c0_803 = arith.constant 0 : index
    %c7_804 = arith.constant 7 : index
    %c19_805 = arith.constant 19 : index
    %465 = vector.load %arg1[%c0_802, %c0_803, %c7_804, %c19_805] : memref<1x4x10x432xf32, #tpu.memory_space<vmem>>, vector<1x4x1x384xf32>
    %466 = vector.shape_cast %465 : vector<1x4x1x384xf32> to vector<4x384xf32>
    %c0_806 = arith.constant 0 : index
    %c0_807 = arith.constant 0 : index
    %c7_808 = arith.constant 7 : index
    %c20_809 = arith.constant 20 : index
    %467 = vector.load %arg1[%c0_806, %c0_807, %c7_808, %c20_809] : memref<1x4x10x432xf32, #tpu.memory_space<vmem>>, vector<1x4x1x384xf32>
    %468 = vector.shape_cast %467 : vector<1x4x1x384xf32> to vector<4x384xf32>
    %c0_810 = arith.constant 0 : index
    %c0_811 = arith.constant 0 : index
    %c7_812 = arith.constant 7 : index
    %c36_813 = arith.constant 36 : index
    %469 = vector.load %arg1[%c0_810, %c0_811, %c7_812, %c36_813] : memref<1x4x10x432xf32, #tpu.memory_space<vmem>>, vector<1x4x1x384xf32>
    %470 = vector.shape_cast %469 : vector<1x4x1x384xf32> to vector<4x384xf32>
    %c0_814 = arith.constant 0 : index
    %c0_815 = arith.constant 0 : index
    %c7_816 = arith.constant 7 : index
    %c37_817 = arith.constant 37 : index
    %471 = vector.load %arg1[%c0_814, %c0_815, %c7_816, %c37_817] : memref<1x4x10x432xf32, #tpu.memory_space<vmem>>, vector<1x4x1x384xf32>
    %472 = vector.shape_cast %471 : vector<1x4x1x384xf32> to vector<4x384xf32>
    %c0_818 = arith.constant 0 : index
    %c0_819 = arith.constant 0 : index
    %c7_820 = arith.constant 7 : index
    %c38_821 = arith.constant 38 : index
    %473 = vector.load %arg1[%c0_818, %c0_819, %c7_820, %c38_821] : memref<1x4x10x432xf32, #tpu.memory_space<vmem>>, vector<1x4x1x384xf32>
    %474 = vector.shape_cast %473 : vector<1x4x1x384xf32> to vector<4x384xf32>
    %c0_822 = arith.constant 0 : index
    %c0_823 = arith.constant 0 : index
    %c8_824 = arith.constant 8 : index
    %c0_825 = arith.constant 0 : index
    %475 = vector.load %arg1[%c0_822, %c0_823, %c8_824, %c0_825] : memref<1x4x10x432xf32, #tpu.memory_space<vmem>>, vector<1x4x1x384xf32>
    %476 = vector.shape_cast %475 : vector<1x4x1x384xf32> to vector<4x384xf32>
    %c0_826 = arith.constant 0 : index
    %c0_827 = arith.constant 0 : index
    %c8_828 = arith.constant 8 : index
    %c1_829 = arith.constant 1 : index
    %477 = vector.load %arg1[%c0_826, %c0_827, %c8_828, %c1_829] : memref<1x4x10x432xf32, #tpu.memory_space<vmem>>, vector<1x4x1x384xf32>
    %478 = vector.shape_cast %477 : vector<1x4x1x384xf32> to vector<4x384xf32>
    %c0_830 = arith.constant 0 : index
    %c0_831 = arith.constant 0 : index
    %c8_832 = arith.constant 8 : index
    %c2_833 = arith.constant 2 : index
    %479 = vector.load %arg1[%c0_830, %c0_831, %c8_832, %c2_833] : memref<1x4x10x432xf32, #tpu.memory_space<vmem>>, vector<1x4x1x384xf32>
    %480 = vector.shape_cast %479 : vector<1x4x1x384xf32> to vector<4x384xf32>
    %c0_834 = arith.constant 0 : index
    %c0_835 = arith.constant 0 : index
    %c8_836 = arith.constant 8 : index
    %c18_837 = arith.constant 18 : index
    %481 = vector.load %arg1[%c0_834, %c0_835, %c8_836, %c18_837] : memref<1x4x10x432xf32, #tpu.memory_space<vmem>>, vector<1x4x1x384xf32>
    %482 = vector.shape_cast %481 : vector<1x4x1x384xf32> to vector<4x384xf32>
    %c0_838 = arith.constant 0 : index
    %c0_839 = arith.constant 0 : index
    %c8_840 = arith.constant 8 : index
    %c19_841 = arith.constant 19 : index
    %483 = vector.load %arg1[%c0_838, %c0_839, %c8_840, %c19_841] : memref<1x4x10x432xf32, #tpu.memory_space<vmem>>, vector<1x4x1x384xf32>
    %484 = vector.shape_cast %483 : vector<1x4x1x384xf32> to vector<4x384xf32>
    %c0_842 = arith.constant 0 : index
    %c0_843 = arith.constant 0 : index
    %c8_844 = arith.constant 8 : index
    %c20_845 = arith.constant 20 : index
    %485 = vector.load %arg1[%c0_842, %c0_843, %c8_844, %c20_845] : memref<1x4x10x432xf32, #tpu.memory_space<vmem>>, vector<1x4x1x384xf32>
    %486 = vector.shape_cast %485 : vector<1x4x1x384xf32> to vector<4x384xf32>
    %c0_846 = arith.constant 0 : index
    %c0_847 = arith.constant 0 : index
    %c8_848 = arith.constant 8 : index
    %c36_849 = arith.constant 36 : index
    %487 = vector.load %arg1[%c0_846, %c0_847, %c8_848, %c36_849] : memref<1x4x10x432xf32, #tpu.memory_space<vmem>>, vector<1x4x1x384xf32>
    %488 = vector.shape_cast %487 : vector<1x4x1x384xf32> to vector<4x384xf32>
    %c0_850 = arith.constant 0 : index
    %c0_851 = arith.constant 0 : index
    %c8_852 = arith.constant 8 : index
    %c37_853 = arith.constant 37 : index
    %489 = vector.load %arg1[%c0_850, %c0_851, %c8_852, %c37_853] : memref<1x4x10x432xf32, #tpu.memory_space<vmem>>, vector<1x4x1x384xf32>
    %490 = vector.shape_cast %489 : vector<1x4x1x384xf32> to vector<4x384xf32>
    %c0_854 = arith.constant 0 : index
    %c0_855 = arith.constant 0 : index
    %c8_856 = arith.constant 8 : index
    %c38_857 = arith.constant 38 : index
    %491 = vector.load %arg1[%c0_854, %c0_855, %c8_856, %c38_857] : memref<1x4x10x432xf32, #tpu.memory_space<vmem>>, vector<1x4x1x384xf32>
    %492 = vector.shape_cast %491 : vector<1x4x1x384xf32> to vector<4x384xf32>
    %c0_858 = arith.constant 0 : index
    %c0_859 = arith.constant 0 : index
    %c9 = arith.constant 9 : index
    %c0_860 = arith.constant 0 : index
    %493 = vector.load %arg1[%c0_858, %c0_859, %c9, %c0_860] : memref<1x4x10x432xf32, #tpu.memory_space<vmem>>, vector<1x4x1x384xf32>
    %494 = vector.shape_cast %493 : vector<1x4x1x384xf32> to vector<4x384xf32>
    %c0_861 = arith.constant 0 : index
    %c0_862 = arith.constant 0 : index
    %c9_863 = arith.constant 9 : index
    %c1_864 = arith.constant 1 : index
    %495 = vector.load %arg1[%c0_861, %c0_862, %c9_863, %c1_864] : memref<1x4x10x432xf32, #tpu.memory_space<vmem>>, vector<1x4x1x384xf32>
    %496 = vector.shape_cast %495 : vector<1x4x1x384xf32> to vector<4x384xf32>
    %c0_865 = arith.constant 0 : index
    %c0_866 = arith.constant 0 : index
    %c9_867 = arith.constant 9 : index
    %c2_868 = arith.constant 2 : index
    %497 = vector.load %arg1[%c0_865, %c0_866, %c9_867, %c2_868] : memref<1x4x10x432xf32, #tpu.memory_space<vmem>>, vector<1x4x1x384xf32>
    %498 = vector.shape_cast %497 : vector<1x4x1x384xf32> to vector<4x384xf32>
    %c0_869 = arith.constant 0 : index
    %c0_870 = arith.constant 0 : index
    %c9_871 = arith.constant 9 : index
    %c18_872 = arith.constant 18 : index
    %499 = vector.load %arg1[%c0_869, %c0_870, %c9_871, %c18_872] : memref<1x4x10x432xf32, #tpu.memory_space<vmem>>, vector<1x4x1x384xf32>
    %500 = vector.shape_cast %499 : vector<1x4x1x384xf32> to vector<4x384xf32>
    %c0_873 = arith.constant 0 : index
    %c0_874 = arith.constant 0 : index
    %c9_875 = arith.constant 9 : index
    %c19_876 = arith.constant 19 : index
    %501 = vector.load %arg1[%c0_873, %c0_874, %c9_875, %c19_876] : memref<1x4x10x432xf32, #tpu.memory_space<vmem>>, vector<1x4x1x384xf32>
    %502 = vector.shape_cast %501 : vector<1x4x1x384xf32> to vector<4x384xf32>
    %c0_877 = arith.constant 0 : index
    %c0_878 = arith.constant 0 : index
    %c9_879 = arith.constant 9 : index
    %c20_880 = arith.constant 20 : index
    %503 = vector.load %arg1[%c0_877, %c0_878, %c9_879, %c20_880] : memref<1x4x10x432xf32, #tpu.memory_space<vmem>>, vector<1x4x1x384xf32>
    %504 = vector.shape_cast %503 : vector<1x4x1x384xf32> to vector<4x384xf32>
    %c0_881 = arith.constant 0 : index
    %c0_882 = arith.constant 0 : index
    %c9_883 = arith.constant 9 : index
    %c36_884 = arith.constant 36 : index
    %505 = vector.load %arg1[%c0_881, %c0_882, %c9_883, %c36_884] : memref<1x4x10x432xf32, #tpu.memory_space<vmem>>, vector<1x4x1x384xf32>
    %506 = vector.shape_cast %505 : vector<1x4x1x384xf32> to vector<4x384xf32>
    %c0_885 = arith.constant 0 : index
    %c0_886 = arith.constant 0 : index
    %c9_887 = arith.constant 9 : index
    %c37_888 = arith.constant 37 : index
    %507 = vector.load %arg1[%c0_885, %c0_886, %c9_887, %c37_888] : memref<1x4x10x432xf32, #tpu.memory_space<vmem>>, vector<1x4x1x384xf32>
    %508 = vector.shape_cast %507 : vector<1x4x1x384xf32> to vector<4x384xf32>
    %c0_889 = arith.constant 0 : index
    %c0_890 = arith.constant 0 : index
    %c9_891 = arith.constant 9 : index
    %c38_892 = arith.constant 38 : index
    %509 = vector.load %arg1[%c0_889, %c0_890, %c9_891, %c38_892] : memref<1x4x10x432xf32, #tpu.memory_space<vmem>>, vector<1x4x1x384xf32>
    %510 = vector.shape_cast %509 : vector<1x4x1x384xf32> to vector<4x384xf32>
    %511 = tpu.concatenate %458, %460, %462, %464, %466, %468, %470, %472, %474, %476, %478, %480, %482, %484, %486, %488 in 0 : vector<4x384xf32>, vector<4x384xf32>, vector<4x384xf32>, vector<4x384xf32>, vector<4x384xf32>, vector<4x384xf32>, vector<4x384xf32>, vector<4x384xf32>, vector<4x384xf32>, vector<4x384xf32>, vector<4x384xf32>, vector<4x384xf32>, vector<4x384xf32>, vector<4x384xf32>, vector<4x384xf32>, vector<4x384xf32> -> vector<64x384xf32>
    %512 = tpu.concatenate %490, %492, %494, %496, %498, %500, %502, %504, %506, %508, %510 in 0 : vector<4x384xf32>, vector<4x384xf32>, vector<4x384xf32>, vector<4x384xf32>, vector<4x384xf32>, vector<4x384xf32>, vector<4x384xf32>, vector<4x384xf32>, vector<4x384xf32>, vector<4x384xf32>, vector<4x384xf32> -> vector<44x384xf32>
    %513 = tpu.concatenate %511, %512 in 0 : vector<64x384xf32>, vector<44x384xf32> -> vector<108x384xf32>
    %cst_893 = arith.constant dense<0.000000e+00> : vector<8x384xf32>
    %514 = tpu.matmul %0, %513, %cst_893 {dimension_numbers = #tpu.dot_dimension_numbers<[1], [0], [0], [1], [0, 0, 1, 1], [], []>} : vector<8x108xf32>, vector<108x384xf32>, vector<8x384xf32> -> vector<8x384xf32>
    %515 = vector.broadcast %1 : vector<8x1xf32> to vector<8x384xf32>
    %516 = arith.addf %514, %515 : vector<8x384xf32>
    %cst_894 = arith.constant 0.000000e+00 : f32
    %517 = vector.broadcast %cst_894 : f32 to vector<8x384xf32>
    %518 = arith.maximumf %516, %517 : vector<8x384xf32>
    %c0_895 = arith.constant 0 : index
    %c0_896 = arith.constant 0 : index
    %c7_897 = arith.constant 7 : index
    %c0_898 = arith.constant 0 : index
    %519 = vector.load %arg4[%c0_895, %c0_896, %c7_897, %c0_898] : memref<1x8x8x384xf32, #tpu.memory_space<vmem>>, vector<1x8x1x384xf32>
    %520 = vector.shape_cast %519 : vector<1x8x1x384xf32> to vector<8x384xf32>
    %521 = vector.shape_cast %518 : vector<8x384xf32> to vector<1x8x1x384xf32>
    tpu.vector_store %arg4[%c0_895, %c0_896, %c7_897, %c0_898], %521 {strides = array<i32>} : memref<1x8x8x384xf32, #tpu.memory_space<vmem>>, vector<1x8x1x384xf32>,
    return
  }
  func.func @transform_0(%arg0: i32) -> (i32, i32, i32, i32) {
    %c0_i32 = arith.constant 0 : i32
    %c0_i32_0 = arith.constant 0 : i32
    %c0_i32_1 = arith.constant 0 : i32
    %c0_i32_2 = arith.constant 0 : i32
    return %arg0, %c0_i32, %c0_i32_0, %c0_i32_1 : i32, i32, i32, i32
  }
  func.func @transform_1(%arg0: i32) -> (i32, i32) {
    %c0_i32 = arith.constant 0 : i32
    %c0_i32_0 = arith.constant 0 : i32
    %c0_i32_1 = arith.constant 0 : i32
    return %c0_i32, %c0_i32_0 : i32, i32
  }
  func.func @transform_2(%arg0: i32) -> (i32, i32) {
    %c0_i32 = arith.constant 0 : i32
    %c0_i32_0 = arith.constant 0 : i32
    %c0_i32_1 = arith.constant 0 : i32
    return %c0_i32, %c0_i32_0 : i32, i32
  }
  func.func @transform_3(%arg0: i32) -> (i32, i32, i32, i32) {
    %c0_i32 = arith.constant 0 : i32
    %c0_i32_0 = arith.constant 0 : i32
    %c0_i32_1 = arith.constant 0 : i32
    %c0_i32_2 = arith.constant 0 : i32
    return %arg0, %c0_i32, %c0_i32_0, %c0_i32_1 : i32, i32, i32, i32
  }
}

</mosaic_0001>

<bundles_post_ra>
// kernel: tpu_custom_call.1
= control target key start
LH: loop header
LB: loop body
LE: loop exit
PB: predicated region body
PF: predicated region fallthrough
CT: control target
= control target key end

     0   :  { %8 = vsyncpa [#allocation3], 0  ;;  %s15052_s0 = inlined_call_operand.vmem [shape: f32[2,4,10,432], index: 0, kind: input, shape index: {}]   ;;  %s15053_s1 = inlined_call_operand.vmem [shape: f32[8,108], index: 1, kind: input, shape index: {}]   ;;  %s15054_s2 = inlined_call_operand.vmem [shape: f32[8,1], index: 2, kind: input, shape index: {}]   ;;  %s15055_s3 = inlined_call_operand.hbm [shape: f32[2,8,8,384], index: 3, kind: output, shape index: {}]  }
   0x1   :  { %10 = vsyncpa [#allocation3 + $0x1], 0  ;;  %s9038_s12 = smov 0   ;;  %s9040_s13 = smov 0  }
   0x2   :  { %s9042_s14 = smov 0   ;;  %s9044_s15 = smov 0  }
   0x3 LB: > { %s9059_s16 = sadd.s32 4294967295, %s8994_s15   ;;  %s8193_s17 = sadd.s32 4294967294, %s8994_s15   ;;  %s8994_s15 = sphi %s9044_s15, %s15895_s15   ;;  %s8990_s14 = sphi %s9042_s14, %s15894_s14   ;;  %s8986_s13 = sphi %s9040_s13, %s15893_s13   ;;  %s8982_s12 = sphi %s9038_s12, %s15892_s12  }
   0x4   : > { %s9063_s18 = sadd.s32 1, %s8994_s15   ;;  %s91_s19 = sadd.s32 1, %s8990_s14 }
   0x5   : > { %s88_s20 = ssub.s32 %s8994_s15, %s9063_s18  ;;  %p101_p0 = scmp.ne.s32.totalorder %s8990_s14, %s8986_s13 }
   0x6   : > { %p89_p1 = scmp.eq.s32.totalorder %s88_s20, 0  ;;  %p102_p2 = scmp.eq.s32.totalorder %s9059_s16, 1 }
   0x7   : > { %p107_p3 = scmp.ne.s32.totalorder %s8986_s13, %s8982_s12  ;;  %p108_p4 = scmp.eq.s32.totalorder %s8193_s17, 1 }
   0x8   : > { %s9074_s21 = scalar_select %p89_p1, %s8990_s14, %s91_s19  }
   0x9   : > { %p9076_p5 = por %p102_p2, %p101_p0  ;;  %p9080_p6 = por %p108_p4, %p107_p3 }
   0xa   : > { %p8196_p7 = scmp.ge.s32.totalorder %s8994_s15, 1  ;;  %p140_p8 = scmp.lt.s32.totalorder %s8994_s15, 3 }
   0xc   : > { %p141_p9 = pnand %p8196_p7, %p140_p8 }
   0xe   : > { %144 = sbr.rel (%p141_p9) target bundleno = 2648 (0xa58), region = 32 }
  0x13   : > { %p164_p10 = scmp.lt.s32.totalorder %s9059_s16, 1  ;;  %v15056_v0 = vlaneseq  ;;  %v8996_v1 = vmov 1966171168   ;;  %s15202_s29 = smov 126   ;;  %vm292_vm0 = vcmask 1039360   ;;  %vm571_vm1 = vcmask 1043456  }
  0x14   : > { %v213_v2 = vunpack.c.l.s4 %v8996_v1  ;;  %s8998_s30 = smov 127   ;;  %s8999_s4 = smov 110   ;;  %vm15113_vm2 = vcmask 302080   ;;  %vm15110_vm3 = vcmask 293888   ;;  %vm15111_vm4 = vcmask 285696  }
  0x15   : > { %s165_s24 = scalar_select %p164_p10, %s9059_s16, 1  ;;  %v216_v3 = vshrl.u32 %v15056_v0, 7  ;;  %vm15083_vm5 = vcmask 154624   ;;  %vm15085_vm6 = vcmask 146432   ;;  %vm15084_vm7 = vcmask 138240  }
  0x16   : > { %v214_v4 = vunpack.c.0.s8 %v213_v2  ;;  %s9000_s5 = smov 109   ;;  %s9001_s6 = smov 108   ;;  %vm15075_vm8 = vcmask 7168   ;;  %vm15136_vm9 = vmmov 0   ;;  %vm309_vm10 = vcmask 1031168  }
  0x17   : > { %s8495_s25 = sshll.u32 %s165_s24, 8  ;;  %s9002_s7 = smov 92   ;;  %vm324_vm11 = vcmask 900096   ;;  %vm354_vm12 = vcmask 883712   ;;  %vm384_vm13 = vcmask 744448   ;;  %vm15161_vm14 = vcmask 736256  }
  0x18   : > { %s9092_s28 = scalar_lea.vmem %s15052_s0, %s8495_s25  ;;  %v9094_v5 = vsub.s32 %v214_v4, %v216_v3  ;;  %s9003_s8 = smov 91   ;;  %vm339_vm15 = vcmask 891904  }
  0x19   : > { %v178_v6 = vld [vmem:[%s9092_s28] ss:$8 sm:$0xf]  ;;  %v8209_v22 = vld [vmem:[%s9092_s28 + $0x1] ss:$8 sm:$0xf] }
  0x1a   : > { %v8202_v7 = vld [vmem:[%s9092_s28 + $0x40] ss:$8 sm:$0xf]  ;;  %v8210_v23 = vld [vmem:[%s9092_s28 + $0x41] ss:$8 sm:$0xf] }
  0x1b   : > { %v8203_v8 = vld [vmem:[%s9092_s28 + $0x80] ss:$8 sm:$0xf]  ;;  %v250_v10 = vcombine.low %v178_v6, %v8202_v7  ;;  %v8211_v24 = vld [vmem:[%s9092_s28 + $0x81] ss:$8 sm:$0xf]  ;;  %v451_v26 = vcombine.low %v8209_v22, %v8210_v23 }
  0x1c   : > { %v8204_v9 = vld [vmem:[%s9092_s28 + $0xc0] ss:$8 sm:$0xf]  ;;  %v8212_v25 = vld [vmem:[%s9092_s28 + $0xc1] ss:$8 sm:$0xf] }
  0x1d   : > { %v251_v11 = vcombine.low %v8203_v8, %v8204_v9  ;;  %v258_v12 = vrot.slane %v250_v10, %v9094_v5  ;;  %v452_v27 = vcombine.low %v8211_v24, %v8212_v25  ;;  %v459_v28 = vrot.slane %v451_v26, %v9094_v5  ;;  %s15178_s9 = smov 90   ;;  %v8213_v38 = vld [vmem:[%s9092_s28 + $0x2] ss:$8 sm:$0x7]  ;;  %s15154_s10 = smov 37  }
  0x1e   : > { %v8214_v39 = vld [vmem:[%s9092_s28 + $0x42] ss:$8 sm:$0x7]  ;;  %s15129_s11 = smov 36   ;;  %s15103_s17 = smov 35  }
  0x1f   : > { %v265_v13 = vrot.slane %v251_v11, %v9094_v5  ;;  %v466_v29 = vrot.slane %v452_v27, %v9094_v5  ;;  %v8215_v40 = vld [vmem:[%s9092_s28 + $0x82] ss:$8 sm:$0x7]  ;;  %v613_v46 = vcombine.low %v8213_v38, %v8214_v39  ;;  %s9008_s19 = smov 19   ;;  %s9009_s20 = smov 18  }
  0x20   : > { %v8216_v41 = vld [vmem:[%s9092_s28 + $0xc2] ss:$8 sm:$0x7]  ;;  %s9010_s24 = smov 17   ;;  %s9011_s25 = smov 1  }
  0x21   : > { %v266_v14 = vcombine.low %v258_v12, %v265_v13  ;;  %v267_v15 = vcombine.high %v258_v12, %v265_v13  ;;  %v468_v30 = vcombine.high %v459_v28, %v466_v29  ;;  %v467_v31 = vcombine.low %v459_v28, %v466_v29  ;;  %v8217_v42 = vld [vmem:[%s9092_s28 + $0x2] ss:$8 sm:$0xf]  ;;  %s15086_s26 = sand.u32 1, %s8986_s13  }
  0x22   : > { %v8218_v43 = vld [vmem:[%s9092_s28 + $0x42] ss:$8 sm:$0xf]  ;;  %v614_v47 = vcombine.low %v8215_v40, %v8216_v41  ;;  %v621_v50 = vrot.slane %v613_v46, %v9094_v5  ;;  %s8864_s27 = smul.u32 192, %s15086_s26 }
  0x23   : > { %v274_v16 = vrot.slane %v266_v14, %v9094_v5  ;;  %v281_v17 = vrot.slane %v267_v15, %v9094_v5  ;;  %v9143_v32 = vrot.slane %v468_v30, %v9094_v5  ;;  %v9146_v33 = vrot.slane %v467_v31, %v9094_v5  ;;  %v8219_v44 = vld [vmem:[%s9092_s28 + $0x82] ss:$8 sm:$0xf] }
  0x24   : > { %v8220_v45 = vld [vmem:[%s9092_s28 + $0xc2] ss:$8 sm:$0xf]  ;;  %v663_v48 = vcombine.low %v8217_v42, %v8218_v43  ;;  %v628_v51 = vrot.slane %v614_v47, %v9094_v5  ;;  %s10311_s26 = scalar_lea.vmem [#allocation2], %s8864_s27 }
  0x25   : > { %301 = vrot.lane.b32.xlu0 %v274_v16, %s15202_s29  ;;  %288 = vrot.lane.b32.xlu1 %v274_v16, %s8998_s30  ;;  %v282_v18 = vcombine.low %v274_v16, %v274_v16  ;;  %v283_v19 = vcombine.low %v281_v17, %v281_v17  ;;  %v300_v20 = vcombine.high %v281_v17, %v281_v17 }
  0x26   : > { %v299_v21 = vcombine.high %v274_v16, %v274_v16  ;;  %v9154_v34 = vcombine.high %v9143_v32, %v9143_v32  ;;  %v9158_v35 = vcombine.high %v9146_v33, %v9146_v33  ;;  %v500_v36 = vcombine.low %v9143_v32, %v9143_v32 }
  0x27   : > { %v499_v37 = vcombine.low %v9146_v33, %v9146_v33  ;;  %v664_v49 = vcombine.low %v8219_v44, %v8220_v45  ;;  %v671_v52 = vrot.slane %v663_v48, %v9094_v5  ;;  %v630_v54 = vcombine.high %v621_v50, %v628_v51 }
  0x28   : > { %v629_v55 = vcombine.low %v621_v50, %v628_v51 }
  0x29   : > { %290 = vrot.lane.b32.xlu1 %v281_v17, %s8998_s30  ;;  %284 = vrot.lane.b32.xlu0 %v282_v18, %s8998_s30  ;;  %v678_v53 = vrot.slane %v664_v49, %v9094_v5  ;;  %v644_v57 = vrot.slane %v630_v54, %v9094_v5 }
  0x2a   : > { %v637_v58 = vrot.slane %v629_v55, %v9094_v5 }
  0x2b   : > { %v679_v56 = vcombine.low %v671_v52, %v678_v53  ;;  %v680_v60 = vcombine.high %v671_v52, %v678_v53 }
  0x2c   : > { %v645_v1 = vcombine.high %v637_v58, %v637_v58 }
  0x2d   : > { %303 = vrot.lane.b32.xlu1 %v281_v17, %s15202_s29  ;;  %286 = vrot.lane.b32.xlu0 %v283_v19, %s8998_s30  ;;  %v9219_v59 = vrot.slane %v679_v56, %v9094_v5  ;;  %v9232_v2 = vrot.slane %v680_v60, %v9094_v5 }
  0x2f   : > { %v9229_v63 = vcombine.low %v9219_v59, %v9219_v59  ;;  %v9243_v6 = vcombine.low %v9232_v2, %v9232_v2  ;;  %v713_v11 = vcombine.high %v9219_v59, %v9219_v59  ;;  %v714_v14 = vcombine.high %v9232_v2, %v9232_v2 }
  0x31   : > { %307 = vrot.lane.b32.xlu1 %v300_v20, %s15202_s29  ;;  %305 = vrot.lane.b32.xlu0 %v299_v21, %s15202_s29 }
  0x35   : > { %318 = vrot.lane.b32.xlu1 %v283_v19, %s8999_s4  ;;  %316 = vrot.lane.b32.xlu0 %v282_v18, %s8999_s4 }
  0x39   : > { %322 = vrot.lane.b32.xlu1 %v281_v17, %s8999_s4  ;;  %320 = vrot.lane.b32.xlu0 %v274_v16, %s8999_s4 }
  0x3d   : > { %333 = vrot.lane.b32.xlu1 %v281_v17, %s9000_s5  ;;  %331 = vrot.lane.b32.xlu0 %v274_v16, %s9000_s5 }
  0x41   : > { %337 = vrot.lane.b32.xlu1 %v300_v20, %s9000_s5  ;;  %335 = vrot.lane.b32.xlu0 %v299_v21, %s9000_s5 }
  0x45   : > { %348 = vrot.lane.b32.xlu1 %v283_v19, %s9001_s6  ;;  %346 = vrot.lane.b32.xlu0 %v282_v18, %s9001_s6 }
  0x49   : > { %352 = vrot.lane.b32.xlu1 %v281_v17, %s9001_s6  ;;  %350 = vrot.lane.b32.xlu0 %v274_v16, %s9001_s6 }
  0x4d   : > { %363 = vrot.lane.b32.xlu1 %v281_v17, %s9002_s7  ;;  %361 = vrot.lane.b32.xlu0 %v274_v16, %s9002_s7 }
  0x51   : > { %367 = vrot.lane.b32.xlu1 %v300_v20, %s9002_s7  ;;  %365 = vrot.lane.b32.xlu0 %v299_v21, %s9002_s7 }
  0x55   : > { %378 = vrot.lane.b32.xlu1 %v283_v19, %s9003_s8  ;;  %376 = vrot.lane.b32.xlu0 %v282_v18, %s9003_s8 }
  0x59   : > { %382 = vrot.lane.b32.xlu1 %v281_v17, %s9003_s8  ;;  %380 = vrot.lane.b32.xlu0 %v274_v16, %s9003_s8 }
  0x5d   : > { %393 = vrot.lane.b32.xlu1 %v281_v17, %s15178_s9  ;;  %391 = vrot.lane.b32.xlu0 %v274_v16, %s15178_s9 }
  0x61   : > { %397 = vrot.lane.b32.xlu1 %v300_v20, %s15178_s9  ;;  %395 = vrot.lane.b32.xlu0 %v299_v21, %s15178_s9 }
  0x65   : > { %487 = vrot.lane.b32.xlu1 %v9143_v32, %s8998_s30  ;;  %485 = vrot.lane.b32.xlu0 %v9146_v33, %s8998_s30 }
  0x69   : > { %491 = vrot.lane.b32.xlu1 %v9154_v34, %s8998_s30  ;;  %489 = vrot.lane.b32.xlu0 %v9158_v35, %s8998_s30 }
  0x6d   : > { %503 = vrot.lane.b32.xlu1 %v500_v36, %s15202_s29  ;;  %501 = vrot.lane.b32.xlu0 %v499_v37, %s15202_s29 }
  0x71   : > { %507 = vrot.lane.b32.xlu1 %v9143_v32, %s15202_s29  ;;  %505 = vrot.lane.b32.xlu0 %v9146_v33, %s15202_s29 }
  0x75   : > { %517 = vrot.lane.b32.xlu1 %v9143_v32, %s8999_s4  ;;  %515 = vrot.lane.b32.xlu0 %v9146_v33, %s8999_s4 }
  0x79   : > { %521 = vrot.lane.b32.xlu1 %v9154_v34, %s8999_s4  ;;  %519 = vrot.lane.b32.xlu0 %v9158_v35, %s8999_s4 }
  0x7d   : > { %531 = vrot.lane.b32.xlu1 %v500_v36, %s9000_s5  ;;  %529 = vrot.lane.b32.xlu0 %v499_v37, %s9000_s5 }
  0x81   : > { %535 = vrot.lane.b32.xlu1 %v9143_v32, %s9000_s5  ;;  %533 = vrot.lane.b32.xlu0 %v9146_v33, %s9000_s5 }
  0x85   : > { %545 = vrot.lane.b32.xlu1 %v9143_v32, %s9001_s6  ;;  %543 = vrot.lane.b32.xlu0 %v9146_v33, %s9001_s6 }
  0x89   : > { %549 = vrot.lane.b32.xlu1 %v9154_v34, %s9001_s6  ;;  %547 = vrot.lane.b32.xlu0 %v9158_v35, %s9001_s6 }
  0x8d   : > { %559 = vrot.lane.b32.xlu1 %v500_v36, %s9002_s7  ;;  %557 = vrot.lane.b32.xlu0 %v499_v37, %s9002_s7 }
  0x91   : > { %563 = vrot.lane.b32.xlu1 %v9143_v32, %s9002_s7  ;;  %561 = vrot.lane.b32.xlu0 %v9146_v33, %s9002_s7 }
  0x95   : > { %602 = vrot.lane.b32.xlu1 %v500_v36, %s8998_s30  ;;  %600 = vrot.lane.b32.xlu0 %v499_v37, %s8998_s30  ;;  %v9012_v37 = vmov 0  }
  0x96   : > { %8926 = vset.pattern.permute.xlu1 %v9012_v37  ;;  %8927 = vset.pattern.permute.xlu0 %v9012_v37 }
  0x97   : > { %v9221_v61 = vpop.permute.xlu0 %301  ;;  %v9223_v62 = vpop.permute.xlu1 %288 }
  0x98   : > { %15210 = vst [vmem:[#allocation5_spill] sm:$0xff] %v9221_v61  ;;  %15211 = vst [vmem:[#allocation6_spill] sm:$0xff] %v9223_v62 }
  0x99   : > { %648 = vrot.lane.b32.xlu1 %v644_v57, %s15154_s10  ;;  %646 = vrot.lane.b32.xlu0 %v637_v58, %s15154_s10 }
  0x9b   : > { %v9234_v3 = vpop.permute.xlu1 %290  ;;  %v9236_v4 = vpop.permute.xlu0 %284 }
  0x9c   : > { %15212 = vst [vmem:[#allocation7_spill] sm:$0xff] %v9234_v3  ;;  %15213 = vst [vmem:[#allocation8_spill] sm:$0xff] %v9236_v4 }
  0x9d   : > { %697 = vrot.lane.b32.xlu1 %v9229_v63, %s15129_s11  ;;  %650 = vrot.lane.b32.xlu0 %v645_v1, %s15154_s10 }
  0x9f   : > { %v9245_v7 = vpop.permute.xlu1 %303  ;;  %v9247_v8 = vpop.permute.xlu0 %286 }
  0xa0   : > { %15214 = vst [vmem:[#allocation9_spill] sm:$0xff] %v9245_v7  ;;  %15215 = vst [vmem:[#allocation10_spill] sm:$0xff] %v9247_v8 }
  0xa1   : > { %701 = vrot.lane.b32.xlu1 %v9219_v59, %s15129_s11  ;;  %699 = vrot.lane.b32.xlu0 %v9243_v6, %s15129_s11 }
  0xa3   : > { %v9253_v9 = vpop.permute.xlu1 %307  ;;  %v9255_v10 = vpop.permute.xlu0 %305 }
  0xa4   : > { %15216 = vst [vmem:[#allocation11_spill] sm:$0xff] %v9253_v9  ;;  %15217 = vst [vmem:[#allocation12_spill] sm:$0xff] %v9255_v10 }
  0xa5   : > { %715 = vrot.lane.b32.xlu1 %v9219_v59, %s15103_s17  ;;  %703 = vrot.lane.b32.xlu0 %v9232_v2, %s15129_s11 }
  0xa7   : > { %v9263_v12 = vpop.permute.xlu1 %318  ;;  %v9265_v13 = vpop.permute.xlu0 %316 }
  0xa8   : > { %15218 = vst [vmem:[#allocation13_spill] sm:$0xff] %v9265_v13 }
  0xa9   : > { %719 = vrot.lane.b32.xlu1 %v713_v11, %s15103_s17  ;;  %717 = vrot.lane.b32.xlu0 %v9232_v2, %s15103_s17 }
  0xab   : > { %v9272_v15 = vpop.permute.xlu1 %322  ;;  %v9274_v16 = vpop.permute.xlu0 %320 }
  0xac   : > { %15219 = vst [vmem:[#allocation14_spill] sm:$0xff] %v9272_v15 }
  0xad   : > { %731 = vrot.lane.b32.xlu1 %v9229_v63, %s9008_s19  ;;  %721 = vrot.lane.b32.xlu0 %v714_v14, %s15103_s17 }
  0xaf   : > { %v9279_v17 = vpop.permute.xlu1 %333  ;;  %v9281_v18 = vpop.permute.xlu0 %331 }
  0xb0   : > { %15220 = vst [vmem:[#allocation15_spill] sm:$0xff] %v9279_v17  ;;  %15221 = vst [vmem:[#allocation16_spill] sm:$0xff] %v9281_v18 }
  0xb1   : > { %735 = vrot.lane.b32.xlu1 %v9219_v59, %s9008_s19  ;;  %733 = vrot.lane.b32.xlu0 %v9243_v6, %s9008_s19 }
  0xb3   : > { %v9287_v19 = vpop.permute.xlu1 %337  ;;  %v9289_v20 = vpop.permute.xlu0 %335 }
  0xb4   : > { %15222 = vst [vmem:[#allocation17_spill] sm:$0xff] %v9287_v19  ;;  %15223 = vst [vmem:[#allocation18_spill] sm:$0xff] %v9289_v20 }
  0xb5   : > { %747 = vrot.lane.b32.xlu1 %v9219_v59, %s9009_s20  ;;  %737 = vrot.lane.b32.xlu0 %v9232_v2, %s9008_s19 }
  0xb7   : > { %v9295_v21 = vpop.permute.xlu1 %348  ;;  %v9297_v22 = vpop.permute.xlu0 %346 }
  0xb8   : > { %15224 = vst [vmem:[#allocation19_spill] sm:$0xff] %v9297_v22 }
  0xb9   : > { %751 = vrot.lane.b32.xlu1 %v713_v11, %s9009_s20  ;;  %749 = vrot.lane.b32.xlu0 %v9232_v2, %s9009_s20 }
  0xbb   : > { %v9302_v23 = vpop.permute.xlu1 %352  ;;  %v9304_v24 = vpop.permute.xlu0 %350 }
  0xbc   : > { %15225 = vst [vmem:[#allocation20_spill] sm:$0xff] %v9302_v23 }
  0xbd   : > { %763 = vrot.lane.b32.xlu1 %v9229_v63, %s9010_s24  ;;  %753 = vrot.lane.b32.xlu0 %v714_v14, %s9009_s20 }
  0xbf   : > { %v9309_v25 = vpop.permute.xlu1 %363  ;;  %v9311_v26 = vpop.permute.xlu0 %361 }
  0xc0   : > { %15226 = vst [vmem:[#allocation21_spill] sm:$0xff] %v9309_v25  ;;  %15227 = vst [vmem:[#allocation22_spill] sm:$0xff] %v9311_v26  ;;  %v8200_v25 = vld [vmem:[%s9092_s28 + $0x80] ss:$8 sm:$0x7] }
  0xc1   : > { %767 = vrot.lane.b32.xlu1 %v9219_v59, %s9010_s24  ;;  %765 = vrot.lane.b32.xlu0 %v9243_v6, %s9010_s24 }
  0xc3   : > { %v9317_v27 = vpop.permute.xlu1 %367  ;;  %v9319_v28 = vpop.permute.xlu0 %365 }
  0xc4   : > { %15228 = vst [vmem:[#allocation23_spill] sm:$0xff] %v9317_v27  ;;  %15229 = vst [vmem:[#allocation24_spill] sm:$0xff] %v9319_v28  ;;  %v8201_v28 = vld [vmem:[%s9092_s28 + $0xc0] ss:$8 sm:$0x7] }
  0xc5   : > { %779 = vrot.lane.b32.xlu1 %v9219_v59, %s9011_s25  ;;  %769 = vrot.lane.b32.xlu0 %v9232_v2, %s9010_s24 }
  0xc7   : > { %v9325_v29 = vpop.permute.xlu1 %378  ;;  %v9327_v30 = vpop.permute.xlu0 %376 }
  0xc8   : > { %15230 = vst [vmem:[#allocation25_spill] sm:$0xff] %v9325_v29  ;;  %15231 = vst [vmem:[#allocation26_spill] sm:$0xff] %v9327_v30  ;;  %v8208_v30 = vld [vmem:[%s9092_s28 + $0xc1] ss:$8 sm:$0x7] }
  0xc9   : > { %783 = vrot.lane.b32.xlu1 %v713_v11, %s9011_s25  ;;  %781 = vrot.lane.b32.xlu0 %v9232_v2, %s9011_s25 }
  0xcb   : > { %v9332_v31 = vpop.permute.xlu1 %382  ;;  %v9334_v36 = vpop.permute.xlu0 %380 }
  0xcc   : > { %15232 = vst [vmem:[#allocation27_spill] sm:$0xff] %v9332_v31  ;;  %15233 = vst [vmem:[#allocation28_spill] sm:$0xff] %v9334_v36  ;;  %v8239_v31 = vld [vmem:[%s9092_s28 + $0x81] ss:$8 sm:$0xf] }
  0xcd   : > { %799 = vrot.lane.b32.xlu1 %v9219_v59, %s8998_s30  ;;  %785 = vrot.lane.b32.xlu0 %v714_v14, %s9011_s25 }
  0xcf   : > { %v9339_v38 = vpop.permute.xlu1 %393  ;;  %v9341_v39 = vpop.permute.xlu0 %391 }
  0xd0   : > { %15234 = vst [vmem:[#allocation29_spill] sm:$0xff] %v9341_v39  ;;  %v8199_v39 = vld [vmem:[%s9092_s28 + $0x40] ss:$8 sm:$0x7] }
  0xd1   : > { %803 = vrot.lane.b32.xlu1 %v713_v11, %s8998_s30  ;;  %801 = vrot.lane.b32.xlu0 %v9232_v2, %s8998_s30 }
  0xd3   : > { %v9346_v40 = vpop.permute.xlu1 %397  ;;  %v9348_v41 = vpop.permute.xlu0 %395 }
  0xd4   : > { %15235 = vst [vmem:[#allocation30_spill] sm:$0xff] %v9346_v40  ;;  %v171_v40 = vld [vmem:[%s9092_s28] ss:$8 sm:$0x7] }
  0xd5   : > { %805 = vrot.lane.b32.xlu0 %v714_v14, %s8998_s30 }
  0xd7   : > { %v9351_v42 = vpop.permute.xlu1 %487  ;;  %v486_v43 = vpop.permute.xlu0 %485 }
  0xd8   : > { %v9405_v18 = vsel %vm292_vm0, %v486_v43, %v9351_v42 }
  0xd9   : > { %15241 = vst [vmem:[#allocation36_spill] sm:$0xff] %v9405_v18 }
  0xdb   : > { %v9353_v44 = vpop.permute.xlu1 %491  ;;  %v9355_v45 = vpop.permute.xlu0 %489 }
  0xdc   : > { %15236 = vst [vmem:[#allocation31_spill] sm:$0xff] %v9353_v44 }
  0xdf   : > { %v9357_v46 = vpop.permute.xlu1 %503  ;;  %v9359_v47 = vpop.permute.xlu0 %501 }
  0xe3   : > { %v9361_v48 = vpop.permute.xlu1 %507  ;;  %v9363_v49 = vpop.permute.xlu0 %505 }
  0xe7   : > { %v9365_v50 = vpop.permute.xlu1 %517  ;;  %v9367_v51 = vpop.permute.xlu0 %515 }
  0xeb   : > { %v9369_v52 = vpop.permute.xlu1 %521  ;;  %v9371_v53 = vpop.permute.xlu0 %519 }
  0xef   : > { %v9373_v54 = vpop.permute.xlu1 %531  ;;  %v9375_v55 = vpop.permute.xlu0 %529 }
  0xf0   : > { %15237 = vst [vmem:[#allocation32_spill] sm:$0xff] %v9375_v55 }
  0xf3   : > { %v9377_v56 = vpop.permute.xlu1 %535  ;;  %v9379_v57 = vpop.permute.xlu0 %533 }
  0xf4   : > { %15238 = vst [vmem:[#allocation33_spill] sm:$0xff] %v9377_v56  ;;  %v210_v56 = vcombine.low %v171_v40, %v8199_v39 }
  0xf7   : > { %v9381_v58 = vpop.permute.xlu1 %545  ;;  %v9383_v60 = vpop.permute.xlu0 %543 }
  0xf8   : > { %15239 = vst [vmem:[#allocation34_spill] sm:$0xff] %v9383_v60  ;;  %v211_v60 = vcombine.low %v8200_v25, %v8201_v28 }
  0xfb   : > { %v9385_v1 = vpop.permute.xlu1 %549  ;;  %v9387_v11 = vpop.permute.xlu0 %547 }
  0xfc   : > { %15240 = vst [vmem:[#allocation35_spill] sm:$0xff] %v9385_v1 }
  0xff   : > { %v9389_v14 = vpop.permute.xlu1 %559  ;;  %v9391_v37 = vpop.permute.xlu0 %557 }
 0x103   : > { %v9393_v0 = vpop.permute.xlu1 %563  ;;  %v9395_v9 = vpop.permute.xlu0 %561 }
 0x107   : > { %v603_v3 = vpop.permute.xlu1 %602  ;;  %v601_v4 = vpop.permute.xlu0 %600 }
 0x108   : > { %v605_v61 = vsel %vm292_vm0, %v603_v3, %v486_v43  ;;  %v604_v15 = vsel %vm292_vm0, %v601_v4, %v603_v3  ;;  %v813_v3 = vsel %vm571_vm1, %v9154_v34, %v9351_v42 }
 0x109   : > { %v811_v19 = vsel %vm571_vm1, %v9143_v32, %v605_v61  ;;  %v810_v13 = vsel %vm571_vm1, %v9146_v33, %v604_v15  ;;  %v812_v32 = vsel %vm571_vm1, %v9158_v35, %v9405_v18 }
 0x10a   : > { %852 = vrot.lane.b32.xlu0 %v811_v19, %s9003_s8  ;;  %850 = vrot.lane.b32.xlu1 %v810_v13, %s9003_s8 }
 0x10b   : > { %v649_v27 = vpop.permute.xlu1 %648  ;;  %v647_v23 = vpop.permute.xlu0 %646 }
 0x10c   : > { %v653_v34 = vsel %vm15113_vm2, %v647_v23, %v649_v27 }
 0x10e   : > { %856 = vrot.lane.b32.xlu0 %v813_v3, %s9003_s8  ;;  %854 = vrot.lane.b32.xlu1 %v812_v32, %s9003_s8 }
 0x10f   : > { %v698_v33 = vpop.permute.xlu1 %697  ;;  %v651_v61 = vpop.permute.xlu0 %650 }
 0x110   : > { %v814_v4 = vsel %vm571_vm1, %v647_v23, %v698_v33  ;;  %v654_v19 = vsel %vm15113_vm2, %v649_v27, %v651_v61 }
 0x112   : > { %858 = vrot.lane.b32.xlu1 %v814_v4, %s9003_s8 }
 0x113   : > { %v702_v13 = vpop.permute.xlu1 %701  ;;  %v700_v15 = vpop.permute.xlu0 %699 }
 0x114   : > { %v706_v35 = vsel %vm15110_vm3, %v698_v33, %v700_v15  ;;  %v707_v43 = vsel %vm15110_vm3, %v700_v15, %v702_v13 }
 0x115   : > { %v816_v3 = vsel %vm571_vm1, %v654_v19, %v707_v43  ;;  %v815_v32 = vsel %vm571_vm1, %v653_v34, %v706_v35 }
 0x116   : > { %862 = vrot.lane.b32.xlu1 %v816_v3, %s9003_s8  ;;  %860 = vrot.lane.b32.xlu0 %v815_v32, %s9003_s8 }
 0x117   : > { %v716_v26 = vpop.permute.xlu1 %715  ;;  %v704_v4 = vpop.permute.xlu0 %703 }
 0x118   : > { %v708_v22 = vsel %vm15110_vm3, %v702_v13, %v704_v4 }
 0x119   : > { %v817_v23 = vsel %vm571_vm1, %v651_v61, %v708_v22 }
 0x11a   : > { %864 = vrot.lane.b32.xlu0 %v817_v23, %s9003_s8 }
 0x11b   : > { %v720_v27 = vpop.permute.xlu1 %719  ;;  %v718_v33 = vpop.permute.xlu0 %717 }
 0x11c   : > { %v724_v43 = vsel %vm15111_vm4, %v716_v26, %v718_v33  ;;  %v725_v13 = vsel %vm15111_vm4, %v718_v33, %v720_v27 }
 0x11f   : > { %v732_v17 = vpop.permute.xlu1 %731  ;;  %v722_v15 = vpop.permute.xlu0 %721 }
 0x120   : > { %v818_v19 = vsel %vm571_vm1, %v716_v26, %v732_v17 }
 0x121   : > { %866 = vrot.lane.b32.xlu1 %v818_v19, %s9003_s8  ;;  %v726_v19 = vsel %vm15111_vm4, %v720_v27, %v722_v15 }
 0x123   : > { %v736_v34 = vpop.permute.xlu1 %735  ;;  %v734_v35 = vpop.permute.xlu0 %733 }
 0x124   : > { %v740_v22 = vsel %vm15083_vm5, %v732_v17, %v734_v35  ;;  %v741_v61 = vsel %vm15083_vm5, %v734_v35, %v736_v34 }
 0x125   : > { %v820_v3 = vsel %vm571_vm1, %v725_v13, %v741_v61  ;;  %v819_v32 = vsel %vm571_vm1, %v724_v43, %v740_v22 }
 0x126   : > { %870 = vrot.lane.b32.xlu1 %v820_v3, %s9003_s8  ;;  %868 = vrot.lane.b32.xlu0 %v819_v32, %s9003_s8 }
 0x127   : > { %v748_v4 = vpop.permute.xlu1 %747  ;;  %v738_v23 = vpop.permute.xlu0 %737 }
 0x128   : > { %v742_v26 = vsel %vm15083_vm5, %v736_v34, %v738_v23 }
 0x129   : > { %v821_v33 = vsel %vm571_vm1, %v726_v19, %v742_v26  ;;  %v8237_v19 = vld [vmem:[%s9092_s28 + $0x1] ss:$8 sm:$0xf] }
 0x12a   : > { %872 = vrot.lane.b32.xlu0 %v821_v33, %s9003_s8  ;;  %v8238_v26 = vld [vmem:[%s9092_s28 + $0x41] ss:$8 sm:$0xf] }
 0x12b   : > { %v752_v17 = vpop.permute.xlu1 %751  ;;  %v750_v35 = vpop.permute.xlu0 %749 }
 0x12c   : > { %v756_v34 = vsel %vm15085_vm6, %v748_v4, %v750_v35  ;;  %v757_v22 = vsel %vm15085_vm6, %v750_v35, %v752_v17 }
 0x12f   : > { %v764_v20 = vpop.permute.xlu1 %763  ;;  %v754_v13 = vpop.permute.xlu0 %753 }
 0x130   : > { %v822_v43 = vsel %vm571_vm1, %v748_v4, %v764_v20  ;;  %v8240_v4 = vld [vmem:[%s9092_s28 + $0xc1] ss:$8 sm:$0xf]  ;;  %v758_v35 = vsel %vm15085_vm6, %v752_v17, %v754_v13 }
 0x131   : > { %874 = vrot.lane.b32.xlu1 %v822_v43, %s9003_s8 }
 0x133   : > { %v768_v27 = vpop.permute.xlu1 %767  ;;  %v766_v15 = vpop.permute.xlu0 %765 }
 0x134   : > { %v772_v61 = vsel %vm15084_vm7, %v764_v20, %v766_v15  ;;  %v773_v3 = vsel %vm15084_vm7, %v766_v15, %v768_v27 }
 0x135   : > { %v824_v32 = vsel %vm571_vm1, %v757_v22, %v773_v3  ;;  %v823_v23 = vsel %vm571_vm1, %v756_v34, %v772_v61  ;;  %v1266_v34 = vcombine.low %v8237_v19, %v8238_v26  ;;  %v1267_v61 = vcombine.low %v8239_v31, %v8240_v4 }
 0x136   : > { %878 = vrot.lane.b32.xlu1 %v824_v32, %s9003_s8  ;;  %876 = vrot.lane.b32.xlu0 %v823_v23, %s9003_s8 }
 0x137   : > { %v780_v33 = vpop.permute.xlu1 %779  ;;  %v770_v43 = vpop.permute.xlu0 %769  ;;  %v1274_v31 = vrot.slane %v1266_v34, %v9094_v5  ;;  %v1281_v19 = vrot.slane %v1267_v61, %v9094_v5 }
 0x138   : > { %v774_v20 = vsel %vm15084_vm7, %v768_v27, %v770_v43  ;;  %v826_v15 = vsel %vm571_vm1, %v780_v33, %v9229_v63  ;;  %v15059_v27 = vmov 0.0  }
 0x139   : > { %v825_v22 = vsel %vm571_vm1, %v758_v35, %v774_v20  ;;  %8616 = vmatprep.subr.mxu1 %v15059_v27  ;;  %1009 = vmatprep.mubr.f32.mxu0 %v15059_v27  ;;  %v1282_v43 = vcombine.low %v1274_v31, %v1281_v19 }
 0x13a   : > { %882 = vrot.lane.b32.xlu1 %v826_v15, %s9003_s8  ;;  %880 = vrot.lane.b32.xlu0 %v825_v22, %s9003_s8  ;;  %v1283_v22 = vcombine.high %v1274_v31, %v1281_v19  ;;  %v8245_v31 = vld [vmem:[%s9092_s28 + $0x2] ss:$8 sm:$0xf] }
 0x13b   : > { %v784_v3 = vpop.permute.xlu1 %783  ;;  %v782_v32 = vpop.permute.xlu0 %781  ;;  %v1290_v34 = vrot.slane %v1282_v43, %v9094_v5  ;;  %8644 = vmatprep.mubr.msk.f32.mxu1 %vm15136_vm9, %v15059_v27  ;;  %v8246_v19 = vld [vmem:[%s9092_s28 + $0x42] ss:$8 sm:$0xf]  ;;  %v8207_v27 = vld [vmem:[%s9092_s28 + $0x81] ss:$8 sm:$0x7] }
 0x13c   : > { %v788_v23 = vsel %vm15075_vm8, %v780_v33, %v782_v32  ;;  %v789_v17 = vsel %vm15075_vm8, %v782_v32, %v784_v3  ;;  %v170_v32 = vld [vmem:[%s15054_s2] sm:$0xff]  ;;  %v411_v36 = vcombine.low %v8207_v27, %v8208_v30  ;;  %v218_v27 = vrot.slane %v210_v56, %v9094_v5 }
 0x13d   : > { %v828_v13 = vsel %vm571_vm1, %v789_v17, %v9219_v59  ;;  %v827_v63 = vsel %vm571_vm1, %v788_v23, %v9243_v6  ;;  %v1298_v23 = vcombine.low %v1290_v34, %v1290_v34 }
 0x13e   : > { %886 = vrot.lane.b32.xlu1 %v828_v13, %s9003_s8  ;;  %884 = vrot.lane.b32.xlu0 %v827_v63, %s9003_s8  ;;  %v1314_v13 = vcombine.high %v1290_v34, %v1290_v34 }
 0x13f   : > { %v800_v26 = vpop.permute.xlu1 %799  ;;  %v786_v33 = vpop.permute.xlu0 %785 }
 0x140   : > { %v790_v59 = vsel %vm15075_vm8, %v784_v3, %v786_v33  ;;  %v8248_v33 = vld [vmem:[%s9092_s28 + $0xc2] ss:$8 sm:$0xf]  ;;  %vm369_vm8 = vcmask 752640  }
 0x141   : > { %v829_v6 = vsel %vm571_vm1, %v790_v59, %v9232_v2  ;;  %v1297_v2 = vrot.slane %v1283_v22, %v9094_v5  ;;  %v1459_v59 = vcombine.low %v8245_v31, %v8246_v19 }
 0x142   : > { %888 = vrot.lane.b32.xlu0 %v829_v6, %s9003_s8 }
 0x143   : > { %v804_v4 = vpop.permute.xlu1 %803  ;;  %v802_v35 = vpop.permute.xlu0 %801  ;;  %v1299_v17 = vcombine.low %v1297_v2, %v1297_v2  ;;  %v1315_v63 = vcombine.high %v1297_v2, %v1297_v2  ;;  %v1467_v43 = vrot.slane %v1459_v59, %v9094_v5 }
 0x144   : > { %v807_v20 = vsel %vm292_vm0, %v800_v26, %v802_v35  ;;  %v808_v15 = vsel %vm292_vm0, %v802_v35, %v804_v4  ;;  %v8247_v26 = vld [vmem:[%s9092_s28 + $0x82] ss:$8 sm:$0xf] }
 0x145   : > { %890 = vrot.lane.b32.xlu1 %v807_v20, %s9003_s8  ;;  %v1460_v6 = vcombine.low %v8247_v26, %v8248_v33 }
 0x146   : > { %892 = vrot.lane.b32.xlu0 %v808_v15, %s9003_s8 }
 0x147   : > { %v806_v61 = vpop.permute.xlu0 %805 }
 0x148   : > { %v809_v3 = vsel %vm292_vm0, %v804_v4, %v806_v61  ;;  %v1474_v4 = vrot.slane %v1460_v6, %v9094_v5 }
 0x149   : > { %894 = vrot.lane.b32.xlu1 %v809_v3, %s9003_s8 }
 0x14a   : > { %896 = vrot.lane.b32.xlu0 %v806_v61, %s9003_s8  ;;  %v1475_v20 = vcombine.low %v1467_v43, %v1474_v4  ;;  %v1476_v22 = vcombine.high %v1467_v43, %v1474_v4 }
 0x14c   : > { %v9539_v3 = vrot.slane %v1475_v20, %v9094_v5  ;;  %v8205_v20 = vld [vmem:[%s9092_s28 + $0x1] ss:$8 sm:$0x7] }
 0x14d   : > { %933 = vperm.xlu1 %8926, %v170_v32   ;;  %v9543_v32 = vrot.slane %v1476_v22, %v9094_v5  ;;  %v8206_v22 = vld [vmem:[%s9092_s28 + $0x41] ss:$8 sm:$0x7] }
 0x14e   : > { %1300 = vrot.lane.b32.xlu0 %v1298_v23, %s8998_s30  ;;  %15244 = vst [vmem:[#allocation39_spill] sm:$0xff] %v9539_v3  ;;  %v410_v29 = vcombine.low %v8205_v20, %v8206_v22  ;;  %v225_v20 = vrot.slane %v211_v60, %v9094_v5  ;;  %v8250_v22 = vld [vmem:[%s9092_s28 + $0x43] ss:$8 sm:$0x7] }
 0x14f   : > { %v9575_v19 = vcombine.low %v9543_v32, %v9543_v32 }
 0x150   : > { %v227_v39 = vcombine.high %v218_v27, %v225_v20  ;;  %v226_v40 = vcombine.low %v218_v27, %v225_v20  ;;  %v8251_v27 = vld [vmem:[%s9092_s28 + $0x83] ss:$8 sm:$0x7] }
 0x151   : > { %1302 = vrot.lane.b32.xlu1 %v1299_v17, %s8998_s30  ;;  %v8252_v20 = vld [vmem:[%s9092_s28 + $0xc3] ss:$8 sm:$0x7] }
 0x152   : > { %1304 = vrot.lane.b32.xlu0 %v1290_v34, %s8998_s30 }
 0x155   : > { %1306 = vrot.lane.b32.xlu1 %v1297_v2, %s8998_s30 }
 0x156   : > { %1316 = vrot.lane.b32.xlu0 %v1290_v34, %s15202_s29 }
 0x159   : > { %1318 = vrot.lane.b32.xlu1 %v1297_v2, %s15202_s29 }
 0x15a   : > { %1320 = vrot.lane.b32.xlu0 %v1314_v13, %s15202_s29 }
 0x15d   : > { %1322 = vrot.lane.b32.xlu1 %v1315_v63, %s15202_s29 }
 0x15e   : > { %1330 = vrot.lane.b32.xlu0 %v1298_v23, %s8999_s4 }
 0x161   : > { %1332 = vrot.lane.b32.xlu1 %v1299_v17, %s8999_s4 }
 0x162   : > { %1334 = vrot.lane.b32.xlu0 %v1290_v34, %s8999_s4 }
 0x165   : > { %1336 = vrot.lane.b32.xlu1 %v1297_v2, %s8999_s4 }
 0x166   : > { %1344 = vrot.lane.b32.xlu0 %v1290_v34, %s9000_s5 }
 0x169   : > { %1346 = vrot.lane.b32.xlu1 %v1297_v2, %s9000_s5 }
 0x16a   : > { %1348 = vrot.lane.b32.xlu0 %v1314_v13, %s9000_s5 }
 0x16d   : > { %1350 = vrot.lane.b32.xlu1 %v1315_v63, %s9000_s5 }
 0x16e   : > { %1358 = vrot.lane.b32.xlu0 %v1298_v23, %s9001_s6 }
 0x171   : > { %1360 = vrot.lane.b32.xlu1 %v1299_v17, %s9001_s6 }
 0x172   : > { %1362 = vrot.lane.b32.xlu0 %v1290_v34, %s9001_s6 }
 0x175   : > { %1364 = vrot.lane.b32.xlu1 %v1297_v2, %s9001_s6 }
 0x176   : > { %1372 = vrot.lane.b32.xlu0 %v1290_v34, %s9002_s7 }
 0x179   : > { %1374 = vrot.lane.b32.xlu1 %v1297_v2, %s9002_s7 }
 0x17a   : > { %1376 = vrot.lane.b32.xlu0 %v1314_v13, %s9002_s7 }
 0x17c   : > { %v9528_v35 = vpop.permute.xlu1 %850  ;;  %v9535_v61 = vpop.permute.xlu0 %852 }
 0x17d   : > { %1378 = vrot.lane.b32.xlu1 %v1315_v63, %s9002_s7  ;;  %15242 = vst [vmem:[#allocation37_spill] sm:$0xff] %v9528_v35  ;;  %15243 = vst [vmem:[#allocation38_spill] sm:$0xff] %v9535_v61  ;;  %v425_v35 = vrot.slane %v411_v36, %v9094_v5 }
 0x17e   : > { %1386 = vrot.lane.b32.xlu0 %v1298_v23, %s9003_s8 }
 0x180   : > { %v9532_v15 = vpop.permute.xlu1 %854  ;;  %v9553_v23 = vpop.permute.xlu0 %856 }
 0x181   : > { %1388 = vrot.lane.b32.xlu1 %v1299_v17, %s9003_s8  ;;  %15246 = vst [vmem:[#allocation41_spill] sm:$0xff] %v9553_v23  ;;  %v9559_v17 = vcombine.high %v9543_v32, %v9543_v32  ;;  %v418_v23 = vrot.slane %v410_v29, %v9094_v5 }
 0x182   : > { %1390 = vrot.lane.b32.xlu0 %v1290_v34, %s9003_s8 }
 0x183   : > { %15247 = vst [vmem:[#allocation42_spill] sm:$0xff] %v9559_v17  ;;  %v427_v25 = vcombine.high %v418_v23, %v425_v35  ;;  %v426_v28 = vcombine.low %v418_v23, %v425_v35  ;;  %v8249_v23 = vld [vmem:[%s9092_s28 + $0x3] ss:$8 sm:$0x7] }
 0x184   : > { %v1620_v61 = vcombine.low %v8249_v23, %v8250_v22  ;;  %v9702_v23 = vsel %vm309_vm10, %v9359_v47, %v9357_v46  ;;  %v9707_v22 = vsel %vm309_vm10, %v9357_v46, %v9363_v49  ;;  %v9720_v47 = vsel %vm324_vm11, %v9367_v51, %v9365_v50 }
 0x185   : > { %1392 = vrot.lane.b32.xlu1 %v1297_v2, %s9003_s8  ;;  %v9644_v56 = vrot.slane %v427_v25, %v9094_v5  ;;  %v9647_v60 = vrot.slane %v426_v28, %v9094_v5  ;;  %v9659_v25 = vrot.slane %v226_v40, %v9094_v5  ;;  %v9675_v40 = vsel %vm309_vm10, %v9245_v7, %v9255_v10  ;;  %v8253_v7 = vld [vmem:[%s9092_s28 + $0x3] ss:$8 sm:$0xf] }
 0x186   : > { %1400 = vrot.lane.b32.xlu0 %v1290_v34, %s15178_s9  ;;  %v9549_v34 = vcombine.high %v9539_v3, %v9539_v3  ;;  %15251 = vst [vmem:[#allocation46_spill] sm:$0xff] %v9675_v40  ;;  %v9687_v28 = vsel %vm354_vm12, %v9295_v21, %v9304_v24  ;;  %v9697_v10 = vsel %vm292_vm0, %v9351_v42, %v9355_v45 }
 0x187   : > { %15249 = vst [vmem:[#allocation44_spill] sm:$0xff] %v9659_v25  ;;  %v9712_v25 = vsel %vm309_vm10, %v9363_v49, %v9361_v48  ;;  %v8255_v48 = vld [vmem:[%s9092_s28 + $0x83] ss:$8 sm:$0xf]  ;;  %v9732_v40 = vsel %vm324_vm11, %v9365_v50, %v9371_v53  ;;  %v9739_v51 = vrot.slane %v1620_v61, %v9094_v5 }
 0x188   : > { %15245 = vst [vmem:[#allocation40_spill] sm:$0xff] %v9549_v34  ;;  %v8256_v49 = vld [vmem:[%s9092_s28 + $0xc3] ss:$8 sm:$0xf] }
 0x189   : > { %1402 = vrot.lane.b32.xlu1 %v1297_v2, %s15178_s9  ;;  %v9551_v2 = vpop.permute.xlu1 %858 }
 0x18a   : > { %1404 = vrot.lane.b32.xlu0 %v1314_v13, %s15178_s9  ;;  %v9565_v13 = vcombine.low %v9539_v3, %v9539_v3 }
 0x18d   : > { %1406 = vrot.lane.b32.xlu1 %v1315_v63, %s15178_s9  ;;  %v9567_v63 = vpop.permute.xlu0 %860  ;;  %v9569_v31 = vpop.permute.xlu1 %862 }
 0x18e   : > { %1493 = vrot.lane.b32.xlu0 %v9539_v3, %s8998_s30 }
 0x191   : > { %1495 = vrot.lane.b32.xlu1 %v9543_v32, %s8998_s30  ;;  %v9583_v33 = vpop.permute.xlu0 %864 }
 0x192   : > { %1497 = vrot.lane.b32.xlu0 %v9549_v34, %s8998_s30 }
 0x193   : > { %v9579_v26 = vpop.permute.xlu1 %866 }
 0x195   : > { %1499 = vrot.lane.b32.xlu1 %v9559_v17, %s8998_s30 }
 0x196   : > { %1509 = vrot.lane.b32.xlu0 %v9565_v13, %s15202_s29 }
 0x198   : > { %v9589_v59 = vpop.permute.xlu0 %868  ;;  %v9593_v6 = vpop.permute.xlu1 %870 }
 0x199   : > { %1511 = vrot.lane.b32.xlu1 %v9575_v19, %s15202_s29 }
 0x19a   : > { %1513 = vrot.lane.b32.xlu0 %v9539_v3, %s15202_s29 }
 0x19c   : > { %v9601_v4 = vpop.permute.xlu0 %872 }
 0x19d   : > { %1515 = vrot.lane.b32.xlu1 %v9543_v32, %s15202_s29 }
 0x19e   : > { %1523 = vrot.lane.b32.xlu0 %v9539_v3, %s8999_s4 }
 0x1a1   : > { %1525 = vrot.lane.b32.xlu1 %v9543_v32, %s8999_s4 }
 0x1a2   : > { %1527 = vrot.lane.b32.xlu0 %v9549_v34, %s8999_s4 }
 0x1a3   : > { %v9599_v43 = vpop.permute.xlu1 %874 }
 0x1a5   : > { %1529 = vrot.lane.b32.xlu1 %v9559_v17, %s8999_s4 }
 0x1a6   : > { %1537 = vrot.lane.b32.xlu0 %v9565_v13, %s9000_s5 }
 0x1a8   : > { %v9611_v18 = vpop.permute.xlu1 %878  ;;  %v9613_v44 = vpop.permute.xlu0 %876 }
 0x1a9   : > { %1539 = vrot.lane.b32.xlu1 %v9575_v19, %s9000_s5 }
 0x1aa   : > { %1541 = vrot.lane.b32.xlu0 %v9539_v3, %s9000_s5 }
 0x1ac   : > { %v9623_v1 = vpop.permute.xlu0 %880  ;;  %v9625_v55 = vpop.permute.xlu1 %882 }
 0x1ad   : > { %1543 = vrot.lane.b32.xlu1 %v9543_v32, %s9000_s5 }
 0x1ae   : > { %1551 = vrot.lane.b32.xlu0 %v9539_v3, %s9001_s6 }
 0x1b0   : > { %v9633_v30 = vpop.permute.xlu0 %884  ;;  %v887_v29 = vpop.permute.xlu1 %886 }
 0x1b1   : > { %1553 = vrot.lane.b32.xlu1 %v9543_v32, %s9001_s6 }
 0x1b2   : > { %1555 = vrot.lane.b32.xlu0 %v9549_v34, %s9001_s6 }
 0x1b4   : > { %v889_v36 = vpop.permute.xlu0 %888 }
 0x1b5   : > { %1557 = vrot.lane.b32.xlu1 %v9559_v17, %s9001_s6  ;;  %v9656_v17 = vrot.slane %v227_v39, %v9094_v5  ;;  %v9670_v39 = vsel %vm292_vm0, %v9247_v8, %v9223_v62  ;;  %v912_v50 = vsel %vm384_vm13, %v887_v29, %v889_v36 }
 0x1b6   : > { %1565 = vrot.lane.b32.xlu0 %v9565_v13, %s9002_s7  ;;  %15250 = vst [vmem:[#allocation45_spill] sm:$0xff] %v9670_v39  ;;  %v9692_v39 = vsel %vm15161_vm14, %v9339_v38, %v9348_v41 }
 0x1b7   : > { %v891_v35 = vpop.permute.xlu1 %890  ;;  %15248 = vst [vmem:[#allocation43_spill] sm:$0xff] %v9656_v17  ;;  %v9680_v17 = vsel %vm324_vm11, %v9263_v12, %v9274_v16 }
 0x1b8   : > { %v893_v34 = vpop.permute.xlu0 %892 }
 0x1b9   : > { %1567 = vrot.lane.b32.xlu1 %v9575_v19, %s9002_s7  ;;  %v913_v46 = vsel %vm384_vm13, %v891_v35, %v893_v34 }
 0x1ba   : > { %1569 = vrot.lane.b32.xlu0 %v9539_v3, %s9002_s7  ;;  %v1621_v3 = vcombine.low %v8251_v27, %v8252_v20  ;;  %v8254_v27 = vld [vmem:[%s9092_s28 + $0x43] ss:$8 sm:$0xf] }
 0x1bb   : > { %v895_v62 = vpop.permute.xlu1 %894 }
 0x1bc   : > { %v897_v42 = vpop.permute.xlu0 %896  ;;  %v914_v8 = vsel %vm384_vm13, %v893_v34, %v895_v62  ;;  %v910_v34 = vsel %vm384_vm13, %v9625_v55, %v9633_v30  ;;  %v9747_v35 = vrot.slane %v1621_v3, %v9094_v5  ;;  %v9757_v55 = vsel %vm324_vm11, %v9371_v53, %v9369_v52 }
 0x1bd   : > { %8221 = vmatprep.subr.msk.mxu0 %vm571_vm1, %v914_v8  ;;  %v915_v20 = vsel %vm384_vm13, %v895_v62, %v897_v42  ;;  %1571 = vrot.lane.b32.xlu1 %v9543_v32, %s9002_s7  ;;  %v911_v8 = vsel %vm384_vm13, %v9633_v30, %v887_v29  ;;  %v15252_v62 = vmov 0.0   ;;  %v908_v42 = vsel %vm384_vm13, %v9613_v44, %v9611_v18 }
 0x1be   : > { %8222 = vmatpush1.msk.msra.mxu0 %vm571_vm1, %v913_v46  ;;  %8617 = vmatpush3.msk.msra.mxu1 %vm571_vm1, %v915_v20  ;;  %v1669_v46 = vcombine.low %v8253_v7, %v8254_v27  ;;  %v1670_v20 = vcombine.low %v8255_v48, %v8256_v49  ;;  %v907_v3 = vsel %vm384_vm13, %v9599_v43, %v9613_v44 }
 0x1bf   : > { %951 = vmatprep.subr.mxu0 %v911_v8  ;;  %8618 = vmatprep.subr.mxu1 %v15252_v62  ;;  %v909_v30 = vsel %vm384_vm13, %v9611_v18, %v9623_v1  ;;  %v538_v7 = vsel %vm339_vm15, %v9373_v54, %v9379_v57  ;;  %v552_v52 = vsel %vm354_vm12, %v9381_v58, %v9387_v11 }
 0x1c0   : > { %952 = vmatpush1.msra.mxu0 %v910_v34  ;;  %8619 = vmatpush3.msra.mxu1 %v912_v50  ;;  %v9752_v61 = vpop.permute.xlu0 %1300  ;;  %v905_v53 = vsel %vm384_vm13, %v9589_v59, %v9593_v6  ;;  %v904_v18 = vsel %vm384_vm13, %v9579_v26, %v9589_v59  ;;  %v906_v44 = vsel %vm384_vm13, %v9593_v6, %v9601_v4  ;;  %v15259_v50 = vld [vmem:[#allocation32_spill] sm:$0xff] }
 0x1c1   : > { %953 = vmatprep.subr.mxu0 %v908_v42  ;;  %8620 = vmatprep.subr.mxu1 %v15252_v62  ;;  %v1636_v1 = vcombine.low %v9739_v51, %v9747_v35  ;;  %v902_v43 = vsel %vm384_vm13, %v9567_v63, %v9569_v31  ;;  %v1677_v36 = vrot.slane %v1669_v46, %v9094_v5 }
 0x1c2   : > { %954 = vmatpush1.msra.mxu0 %v907_v3  ;;  %8621 = vmatpush3.msra.mxu1 %v909_v30  ;;  %v1684_v26 = vrot.slane %v1670_v20, %v9094_v5  ;;  %v565_v59 = vsel %vm369_vm8, %v9391_v37, %v9389_v14  ;;  %v566_v6 = vsel %vm369_vm8, %v9389_v14, %v9395_v9  ;;  %v15254_v14 = vld [vmem:[#allocation38_spill] sm:$0xff]  ;;  %v15261_v20 = vld [vmem:[#allocation33_spill] sm:$0xff]  ;;  %v15262_v3 = vld [vmem:[#allocation35_spill] sm:$0xff] }
 0x1c3   : > { %955 = vmatprep.subr.mxu0 %v905_v53  ;;  %8622 = vmatprep.subr.mxu1 %v15252_v62  ;;  %v901_v4 = vsel %vm384_vm13, %v9551_v2, %v9567_v63  ;;  %v567_v27 = vsel %vm369_vm8, %v9395_v9, %v9393_v0  ;;  %v903_v37 = vsel %vm384_vm13, %v9569_v31, %v9583_v33  ;;  %v15255_v2 = vld [vmem:[#allocation37_spill] sm:$0xff] }
 0x1c4   : > { %956 = vmatpush1.msra.mxu0 %v904_v18  ;;  %8623 = vmatpush3.msra.mxu1 %v906_v44  ;;  %v9787_v29 = vpop.permute.xlu0 %1304  ;;  %v899_v48 = vsel %vm384_vm13, %v15254_v14, %v9532_v15  ;;  %v898_v63 = vsel %vm384_vm13, %v15255_v2, %v15254_v14  ;;  %v1644_v0 = vrot.slane %v1636_v1, %v9094_v5  ;;  %v15257_v31 = vld [vmem:[#allocation41_spill] sm:$0xff]  ;;  %v15271_v14 = vld [vmem:[#allocation36_spill] sm:$0xff] }
 0x1c5   : > { %15253 = vst [vmem:[#allocation47_spill] sm:$0xff] %v9787_v29  ;;  %957 = vmatprep.subr.mxu0 %v902_v43  ;;  %8624 = vmatprep.subr.mxu1 %v15252_v62  ;;  %v1637_v9 = vcombine.high %v9739_v51, %v9747_v35  ;;  %v900_v33 = vsel %vm384_vm13, %v9532_v15, %v15257_v31  ;;  %v15260_v51 = vld [vmem:[#allocation34_spill] sm:$0xff]  ;;  %v15265_v43 = vld [vmem:[#allocation21_spill] sm:$0xff]  ;;  %v15276_v31 = vld [vmem:[#allocation27_spill] sm:$0xff] }
 0x1c6   : > { %1607 = vrot.lane.b32.xlu0 %v9565_v13, %s8998_s30  ;;  %958 = vmatpush1.msra.mxu0 %v901_v4  ;;  %v594_v49 = vsel %vm571_vm1, %v552_v52, %v566_v6  ;;  %v1685_v34 = vcombine.low %v1677_v36, %v1684_v26  ;;  %v537_v42 = vsel %vm339_vm15, %v15259_v50, %v9373_v54  ;;  %v15268_v4 = vld [vmem:[#allocation29_spill] sm:$0xff]  ;;  %v15277_v50 = vld [vmem:[#allocation18_spill] sm:$0xff] }
 0x1c7   : > { %8625 = vmatpush3.msra.mxu1 %v903_v37  ;;  %959 = vmatprep.subr.mxu0 %v899_v48  ;;  %v551_v35 = vsel %vm354_vm12, %v15260_v51, %v9381_v58  ;;  %v1686_v46 = vcombine.high %v1677_v36, %v1684_v26  ;;  %v539_v15 = vsel %vm339_vm15, %v9379_v57, %v15261_v20  ;;  %v15266_v26 = vld [vmem:[#allocation28_spill] sm:$0xff]  ;;  %v15280_v20 = vld [vmem:[#allocation22_spill] sm:$0xff] }
 0x1c8   : > { %8626 = vmatprep.subr.mxu1 %v15252_v62  ;;  %v9819_v13 = vpop.permute.xlu1 %933  ;;  %960 = vmatpush1.msra.mxu0 %v898_v63  ;;  %v9825_v8 = vpop.permute.xlu0 %1316  ;;  %v553_v30 = vsel %vm354_vm12, %v9387_v11, %v15262_v3  ;;  %v593_v54 = vsel %vm571_vm1, %v551_v35, %v565_v59  ;;  %v591_v52 = vsel %vm571_vm1, %v9732_v40, %v538_v7  ;;  %v15267_v59 = vld [vmem:[#allocation25_spill] sm:$0xff]  ;;  %v15279_v35 = vld [vmem:[#allocation19_spill] sm:$0xff]  ;;  %v15281_v3 = vld [vmem:[#allocation20_spill] sm:$0xff] }
 0x1c9   : > { %15256 = vst [vmem:[#allocation38_spill] sm:$0xff] %v9819_v13  ;;  %15258 = vst [vmem:[#allocation37_spill] sm:$0xff] %v9825_v8  ;;  %8627 = vmatpush3.msra.mxu1 %v900_v33  ;;  %961 = vmatprep.subr.mxu0 %v594_v49  ;;  %v595_v58 = vsel %vm571_vm1, %v553_v30, %v567_v27  ;;  %v1651_v57 = vrot.slane %v1637_v9, %v9094_v5  ;;  %v15282_v30 = vld [vmem:[#allocation23_spill] sm:$0xff] }
 0x1ca   : > { %8628 = vmatprep.subr.mxu1 %v15252_v62  ;;  %1609 = vrot.lane.b32.xlu1 %v9575_v19, %s8998_s30  ;;  %v590_v53 = vsel %vm571_vm1, %v9720_v47, %v537_v42  ;;  %v1652_v19 = vcombine.high %v1644_v0, %v1644_v0  ;;  %v9853_v18 = vrot.slane %v1685_v34, %v9094_v5  ;;  %v15264_v47 = vld [vmem:[#allocation24_spill] sm:$0xff]  ;;  %v15278_v42 = vld [vmem:[#allocation15_spill] sm:$0xff] }
 0x1cb   : > { %1653 = vrot.lane.b32.xlu0 %v1644_v0, %s15154_s10  ;;  %962 = vmatpush1.msra.mxu0 %v593_v54  ;;  %v592_v40 = vsel %vm571_vm1, %v9757_v55, %v539_v15  ;;  %v588_v7 = vsel %vm571_vm1, %v9697_v10, %v9707_v22  ;;  %v9864_v1 = vrot.slane %v1686_v46, %v9094_v5  ;;  %v15269_v55 = vld [vmem:[#allocation30_spill] sm:$0xff]  ;;  %v15270_v22 = vld [vmem:[#allocation31_spill] sm:$0xff] }
 0x1cc   : > { %8629 = vmatpush3.msra.mxu1 %v595_v58  ;;  %963 = vmatprep.subr.mxu0 %v591_v52  ;;  %v9848_v11 = vpop.permute.xlu1 %1302  ;;  %v9855_v44 = vpop.permute.xlu0 %1320  ;;  %v371_v36 = vsel %vm369_vm8, %v15265_v43, %v15264_v47  ;;  %v386_v6 = vsel %vm384_vm13, %v15267_v59, %v15266_v26  ;;  %v400_v27 = vsel %vm15161_vm14, %v15268_v4, %v9339_v38  ;;  %v15290_v4 = vld [vmem:[#allocation9_spill] sm:$0xff] }
 0x1cd   : > { %15263 = vst [vmem:[#allocation41_spill] sm:$0xff] %v9855_v44  ;;  %8630 = vmatprep.subr.mxu1 %v15252_v62  ;;  %964 = vmatpush1.msra.mxu0 %v590_v53  ;;  %v402_v10 = vsel %vm15161_vm14, %v9348_v41, %v15269_v55  ;;  %v495_v37 = vsel %vm292_vm0, %v9355_v45, %v15270_v22  ;;  %v15293_v22 = vld [vmem:[#allocation8_spill] sm:$0xff]  ;;  %v15332_v44 = vld [vmem:[#allocation39_spill] sm:$0xff] }
 0x1ce   : > { %8631 = vmatpush3.msra.mxu1 %v592_v40  ;;  %965 = vmatprep.subr.mxu0 %v588_v7  ;;  %v587_v48 = vsel %vm571_vm1, %v15271_v14, %v9702_v23  ;;  %v589_v38 = vsel %vm571_vm1, %v495_v37, %v9712_v25  ;;  %v15272_v41 = vcombine.low %v9644_v56, %v9644_v56  ;;  %v15274_v23 = vld [vmem:[#allocation26_spill] sm:$0xff]  ;;  %v15286_v40 = vld [vmem:[#allocation13_spill] sm:$0xff]  ;;  %v15295_v14 = vld [vmem:[#allocation44_spill] sm:$0xff] }
 0x1cf   : > { %8632 = vmatprep.subr.mxu1 %v15252_v62  ;;  %1655 = vrot.lane.b32.xlu1 %v1651_v57, %s15154_s10  ;;  %v9898_v63 = vcombine.low %v9853_v18, %v9853_v18  ;;  %v385_v9 = vsel %vm384_vm13, %v15274_v23, %v15267_v59  ;;  %v15275_v56 = vcombine.low %v9647_v60, %v9647_v60  ;;  %v15285_v57 = vld [vmem:[#allocation16_spill] sm:$0xff]  ;;  %v15299_v23 = vld [vmem:[#allocation11_spill] sm:$0xff] }
 0x1d0   : > { %1657 = vrot.lane.b32.xlu0 %v1652_v19, %s15154_s10  ;;  %966 = vmatpush1.msra.mxu0 %v587_v48  ;;  %v585_v45 = vsel %vm571_vm1, %v9692_v39, %v15272_v41  ;;  %v9894_v2 = vpop.permute.xlu1 %1306  ;;  %v9900_v0 = vpop.permute.xlu0 %1330  ;;  %v9911_v39 = vcombine.low %v9864_v1, %v9864_v1  ;;  %v387_v33 = vsel %vm384_vm13, %v15266_v26, %v15276_v31  ;;  %v15288_v26 = vld [vmem:[#allocation14_spill] sm:$0xff]  ;;  %v15297_v41 = vld [vmem:[#allocation7_spill] sm:$0xff] }
 0x1d1   : > { %15273 = vst [vmem:[#allocation32_spill] sm:$0xff] %v9894_v2  ;;  %8633 = vmatpush3.msra.mxu1 %v589_v38  ;;  %967 = vmatprep.subr.mxu0 %v585_v45  ;;  %v584_v25 = vsel %vm571_vm1, %v400_v27, %v15275_v56  ;;  %v586_v49 = vsel %vm571_vm1, %v402_v10, %v9647_v60  ;;  %v15291_v27 = vld [vmem:[#allocation5_spill] sm:$0xff]  ;;  %v15292_v10 = vld [vmem:[#allocation10_spill] sm:$0xff] }
 0x1d2   : > { %8634 = vmatprep.subr.mxu1 %v15252_v62  ;;  %968 = vmatpush1.msra.mxu0 %v584_v25  ;;  %v582_v34 = vsel %vm571_vm1, %v371_v36, %v386_v6  ;;  %v341_v51 = vsel %vm339_vm15, %v15278_v42, %v15277_v50  ;;  %v355_v46 = vsel %vm354_vm12, %v15279_v35, %v9295_v21  ;;  %v15289_v6 = vld [vmem:[#allocation46_spill] sm:$0xff] }
 0x1d3   : > { %v370_v15 = vsel %vm369_vm8, %v15280_v20, %v15265_v43  ;;  %8635 = vmatpush3.msra.mxu1 %v586_v49  ;;  %969 = vmatprep.subr.mxu0 %v582_v34  ;;  %v357_v60 = vsel %vm354_vm12, %v9304_v24, %v15281_v3  ;;  %v372_v54 = vsel %vm369_vm8, %v15264_v47, %v15282_v30  ;;  %v15287_v47 = vld [vmem:[#allocation17_spill] sm:$0xff]  ;;  %v15298_v45 = vld [vmem:[#allocation6_spill] sm:$0xff]  ;;  %v15302_v49 = vld [vmem:[#allocation43_spill] sm:$0xff] }
 0x1d4   : > { %8636 = vmatprep.subr.mxu1 %v15252_v62  ;;  %1703 = vrot.lane.b32.xlu1 %v9898_v63, %s15129_s11  ;;  %v581_v21 = vsel %vm571_vm1, %v370_v15, %v385_v9  ;;  %v9939_v58 = vpop.permute.xlu1 %1318  ;;  %v9941_v52 = vpop.permute.xlu0 %1334  ;;  %v340_v53 = vsel %vm339_vm15, %v15285_v57, %v15278_v42  ;;  %v583_v24 = vsel %vm571_vm1, %v372_v54, %v387_v33  ;;  %v15300_v9 = vld [vmem:[#allocation12_spill] sm:$0xff]  ;;  %v15301_v33 = vld [vmem:[#allocation45_spill] sm:$0xff] }
 0x1d5   : > { %15283 = vst [vmem:[#allocation34_spill] sm:$0xff] %v9939_v58  ;;  %15284 = vst [vmem:[#allocation33_spill] sm:$0xff] %v9941_v52  ;;  %1705 = vrot.lane.b32.xlu0 %v9911_v39, %s15129_s11  ;;  %970 = vmatpush1.msra.mxu0 %v581_v21  ;;  %v579_v19 = vsel %vm571_vm1, %v341_v51, %v9687_v28  ;;  %v325_v7 = vsel %vm324_vm11, %v15286_v40, %v9263_v12  ;;  %v15335_v52 = vld [vmem:[#allocation40_spill] sm:$0xff] }
 0x1d6   : > { %v342_v43 = vsel %vm339_vm15, %v15277_v50, %v15287_v47  ;;  %8637 = vmatpush3.msra.mxu1 %v583_v24  ;;  %971 = vmatprep.subr.mxu0 %v579_v19  ;;  %v578_v36 = vsel %vm571_vm1, %v340_v53, %v355_v46  ;;  %v327_v59 = vsel %vm324_vm11, %v9274_v16, %v15288_v26  ;;  %v169_v50 = vld [vmem:[%s15053_s1] sm:$0xff] }
 0x1d7   : > { %8638 = vmatprep.subr.mxu1 %v15252_v62  ;;  %972 = vmatpush1.msra.mxu0 %v578_v36  ;;  %v580_v28 = vsel %vm571_vm1, %v342_v43, %v357_v60  ;;  %v576_v12 = vsel %vm571_vm1, %v15289_v6, %v9680_v17  ;;  %v310_v55 = vsel %vm309_vm10, %v15291_v27, %v15290_v4 }
 0x1d8   : > { %v293_v37 = vsel %vm292_vm0, %v15293_v22, %v15292_v10  ;;  %8639 = vmatpush3.msra.mxu1 %v580_v28  ;;  %973 = vmatprep.subr.mxu0 %v576_v12  ;;  %v9972_v16 = vpop.permute.xlu1 %1322  ;;  %v242_v48 = vcombine.high %v15295_v14, %v15295_v14  ;;  %v9976_v38 = vpop.permute.xlu0 %1344  ;;  %v295_v17 = vsel %vm292_vm0, %v15298_v45, %v15297_v41 }
 0x1d9   : > { %15294 = vst [vmem:[#allocation35_spill] sm:$0xff] %v9972_v16  ;;  %15296 = vst [vmem:[#allocation24_spill] sm:$0xff] %v9976_v38  ;;  %v312_v56 = vsel %vm309_vm10, %v15300_v9, %v15299_v23  ;;  %8640 = vmatprep.subr.mxu1 %v15252_v62  ;;  %1707 = vrot.lane.b32.xlu1 %v9853_v18, %s15129_s11  ;;  %v575_v25 = vsel %vm571_vm1, %v310_v55, %v325_v7 }
 0x1da   : > { %1709 = vrot.lane.b32.xlu0 %v9864_v1, %s15129_s11  ;;  %974 = vmatpush1.msra.mxu0 %v575_v25  ;;  %v577_v31 = vsel %vm571_vm1, %v312_v56, %v327_v59  ;;  %v573_v34 = vsel %vm571_vm1, %v15302_v49, %v15301_v33  ;;  %v572_v42 = vsel %vm571_vm1, %v15295_v14, %v293_v37 }
 0x1db   : > { %8641 = vmatpush3.msra.mxu1 %v577_v31  ;;  %975 = vmatprep.subr.mxu0 %v573_v34  ;;  %v574_v51 = vsel %vm571_vm1, %v242_v48, %v295_v17  ;;  %v1718_v20 = vcombine.high %v9853_v18, %v9853_v18  ;;  %v1719_v15 = vcombine.high %v9864_v1, %v9864_v1 }
 0x1dc   : > { %8642 = vmatprep.subr.mxu1 %v15252_v62  ;;  %976 = vmatpush1.msra.mxu0 %v572_v42  ;;  %v10001_v35 = vpop.permute.xlu1 %1332  ;;  %v10003_v46 = vpop.permute.xlu0 %1348 }
 0x1dd   : > { %8643 = vmatpush3.msra.mxu1 %v574_v51  ;;  %8223 = vmatmul.mubr.msk.f32.vlgmr.msra.gmra.mxu0 %vm354_vm12, %v169_v50 }
 0x1de   : > { %8645 = vmatmul.mubr.msk.f32.vlgmr.msra.gmra.mxu1 %vm354_vm12, %v169_v50  ;;  %1720 = vrot.lane.b32.xlu1 %v9853_v18, %s15103_s17 }
 0x1df   : > { %1722 = vrot.lane.b32.xlu0 %v9864_v1, %s15103_s17  ;;  %8647 = vmatprep.subr.mxu1 %v15252_v62 }
 0x1e0   : > { %v10016_v3 = vpop.permute.xlu1 %1336  ;;  %v10018_v60 = vpop.permute.xlu0 %1358  ;;  %2001 = vmatprep.mubr.f32.mxu0 %v15252_v62  ;;  %8675 = vmatprep.mubr.msk.f32.mxu1 %vm15136_vm9, %v15252_v62 }
 0x1e1   : > { %15303 = vst [vmem:[#allocation21_spill] sm:$0xff] %v10016_v3 }
 0x1e2   : > { %1724 = vrot.lane.b32.xlu1 %v1718_v20, %s15103_s17 }
 0x1e3   : > { %1726 = vrot.lane.b32.xlu0 %v1719_v15, %s15103_s17 }
 0x1e4   : > { %v10025_v30 = vpop.permute.xlu1 %1346  ;;  %v10027_v54 = vpop.permute.xlu0 %1362 }
 0x1e6   : > { %1735 = vrot.lane.b32.xlu1 %v9898_v63, %s9008_s19 }
 0x1e7   : > { %1737 = vrot.lane.b32.xlu0 %v9911_v39, %s9008_s19 }
 0x1e8   : > { %v10033_v21 = vpop.permute.xlu1 %1350  ;;  %v10035_v57 = vpop.permute.xlu0 %1372 }
 0x1e9   : > { %15304 = vst [vmem:[#allocation28_spill] sm:$0xff] %v10033_v21  ;;  %15305 = vst [vmem:[#allocation25_spill] sm:$0xff] %v10035_v57 }
 0x1ea   : > { %1739 = vrot.lane.b32.xlu1 %v9853_v18, %s9008_s19 }
 0x1eb   : > { %1741 = vrot.lane.b32.xlu0 %v9864_v1, %s9008_s19 }
 0x1ec   : > { %v10041_v53 = vpop.permute.xlu1 %1360  ;;  %v10043_v24 = vpop.permute.xlu0 %1376 }
 0x1ed   : > { %15306 = vst [vmem:[#allocation29_spill] sm:$0xff] %v10043_v24 }
 0x1ee   : > { %1750 = vrot.lane.b32.xlu1 %v9853_v18, %s9009_s20 }
 0x1ef   : > { %1752 = vrot.lane.b32.xlu0 %v9864_v1, %s9009_s20 }
 0x1f0   : > { %v10049_v19 = vpop.permute.xlu1 %1364  ;;  %v10051_v40 = vpop.permute.xlu0 %1386 }
 0x1f1   : > { %15307 = vst [vmem:[#allocation30_spill] sm:$0xff] %v10049_v19  ;;  %15308 = vst [vmem:[#allocation31_spill] sm:$0xff] %v10051_v40  ;;  %v8244_v40 = vld [vmem:[%s9092_s28 + $0xc2] ss:$8 sm:$0x7] }
 0x1f2   : > { %1754 = vrot.lane.b32.xlu1 %v1718_v20, %s9009_s20 }
 0x1f3   : > { %1756 = vrot.lane.b32.xlu0 %v1719_v15, %s9009_s20 }
 0x1f4   : > { %v10055_v7 = vpop.permute.xlu1 %1374  ;;  %v10057_v47 = vpop.permute.xlu0 %1390 }
 0x1f5   : > { %15309 = vst [vmem:[#allocation36_spill] sm:$0xff] %v10055_v7  ;;  %15310 = vst [vmem:[#allocation26_spill] sm:$0xff] %v10057_v47 }
 0x1f6   : > { %1765 = vrot.lane.b32.xlu1 %v9898_v63, %s9010_s24 }
 0x1f7   : > { %1767 = vrot.lane.b32.xlu0 %v9911_v39, %s9010_s24 }
 0x1f8   : > { %v10063_v43 = vpop.permute.xlu1 %1378  ;;  %v10065_v36 = vpop.permute.xlu0 %1400 }
 0x1f9   : > { %15311 = vst [vmem:[#allocation27_spill] sm:$0xff] %v10063_v43  ;;  %15312 = vst [vmem:[#allocation18_spill] sm:$0xff] %v10065_v36 }
 0x1fa   : > { %1769 = vrot.lane.b32.xlu1 %v9853_v18, %s9010_s24 }
 0x1fb   : > { %1771 = vrot.lane.b32.xlu0 %v9864_v1, %s9010_s24 }
 0x1fc   : > { %v10071_v26 = vpop.permute.xlu1 %1388  ;;  %v10073_v59 = vpop.permute.xlu0 %1404 }
 0x1fd   : > { %15313 = vst [vmem:[#allocation15_spill] sm:$0xff] %v10071_v26  ;;  %15314 = vst [vmem:[#allocation19_spill] sm:$0xff] %v10073_v59  ;;  %v8286_v26 = vld [vmem:[%s9092_s28 + $0x4] ss:$8 sm:$0x7] }
 0x1fe   : > { %1780 = vrot.lane.b32.xlu1 %v9853_v18, %s9011_s25  ;;  %v8233_v59 = vld [vmem:[%s9092_s28 + $0x1] ss:$8 sm:$0x7] }
 0x1ff   : > { %1782 = vrot.lane.b32.xlu0 %v9864_v1, %s9011_s25 }
 0x200   : > { %v10079_v28 = vpop.permute.xlu1 %1392  ;;  %v1494_v6 = vpop.permute.xlu0 %1493 }
 0x201   : > { %15315 = vst [vmem:[#allocation22_spill] sm:$0xff] %v10079_v28 }
 0x202   : > { %1784 = vrot.lane.b32.xlu1 %v1718_v20, %s9011_s25 }
 0x203   : > { %1786 = vrot.lane.b32.xlu0 %v1719_v15, %s9011_s25 }
 0x204   : > { %v10083_v12 = vpop.permute.xlu1 %1402  ;;  %v10085_v4 = vpop.permute.xlu0 %1497 }
 0x205   : > { %15316 = vst [vmem:[#allocation20_spill] sm:$0xff] %v10083_v12  ;;  %15317 = vst [vmem:[#allocation23_spill] sm:$0xff] %v10085_v4 }
 0x206   : > { %1799 = vrot.lane.b32.xlu1 %v9853_v18, %s8998_s30 }
 0x207   : > { %1801 = vrot.lane.b32.xlu0 %v9864_v1, %s8998_s30 }
 0x208   : > { %v10091_v27 = vpop.permute.xlu1 %1406  ;;  %v10093_v55 = vpop.permute.xlu0 %1509 }
 0x209   : > { %15318 = vst [vmem:[#allocation16_spill] sm:$0xff] %v10091_v27 }
 0x20a   : > { %1803 = vrot.lane.b32.xlu1 %v1718_v20, %s8998_s30 }
 0x20b   : > { %1805 = vrot.lane.b32.xlu0 %v1719_v15, %s8998_s30 }
 0x20c   : > { %v10097_v10 = vpop.permute.xlu1 %1495  ;;  %v10099_v22 = vpop.permute.xlu0 %1513 }
 0x20d   : > { %15319 = vst [vmem:[#allocation13_spill] sm:$0xff] %v10097_v10  ;;  %15320 = vst [vmem:[#allocation17_spill] sm:$0xff] %v10099_v22  ;;  %v10149_v43 = vsel %vm292_vm0, %v1494_v6, %v10097_v10  ;;  %v8235_v22 = vld [vmem:[%s9092_s28 + $0x81] ss:$8 sm:$0x7] }
 0x20e   : > { %15333 = vst [vmem:[#allocation45_spill] sm:$0xff] %v10149_v43 }
 0x210   : > { %v10101_v37 = vpop.permute.xlu1 %1499  ;;  %v10103_v14 = vpop.permute.xlu0 %1523 }
 0x211   : > { %15321 = vst [vmem:[#allocation14_spill] sm:$0xff] %v10101_v37  ;;  %15322 = vst [vmem:[#allocation46_spill] sm:$0xff] %v10103_v14 }
 0x214   : > { %v10105_v48 = vpop.permute.xlu1 %1511  ;;  %v10107_v41 = vpop.permute.xlu0 %1527 }
 0x218   : > { %v10109_v45 = vpop.permute.xlu1 %1515  ;;  %v10111_v17 = vpop.permute.xlu0 %1537 }
 0x219   : > { %15323 = vst [vmem:[#allocation9_spill] sm:$0xff] %v10109_v45  ;;  %15324 = vst [vmem:[#allocation5_spill] sm:$0xff] %v10111_v17  ;;  %v8288_v45 = vld [vmem:[%s9092_s28 + $0x84] ss:$8 sm:$0x7] }
 0x21c   : > { %v10113_v23 = vpop.permute.xlu1 %1525  ;;  %v10115_v9 = vpop.permute.xlu0 %1541 }
 0x220   : > { %v10117_v56 = vpop.permute.xlu1 %1529  ;;  %v10119_v25 = vpop.permute.xlu0 %1551 }
 0x221   : > { %15325 = vst [vmem:[#allocation10_spill] sm:$0xff] %v10117_v56  ;;  %15326 = vst [vmem:[#allocation8_spill] sm:$0xff] %v10119_v25  ;;  %v8289_v56 = vld [vmem:[%s9092_s28 + $0xc4] ss:$8 sm:$0x7] }
 0x222   : > { %v2610_v14 = vcombine.low %v8288_v45, %v8289_v56  ;;  %v8291_v25 = vld [vmem:[%s9092_s28 + $0x44] ss:$8 sm:$0xf] }
 0x224   : > { %v10121_v31 = vpop.permute.xlu1 %1539  ;;  %v10123_v33 = vpop.permute.xlu0 %1555 }
 0x225   : > { %15327 = vst [vmem:[#allocation44_spill] sm:$0xff] %v10123_v33 }
 0x228   : > { %v10125_v49 = vpop.permute.xlu1 %1543  ;;  %v10129_v50 = vpop.permute.xlu0 %1565 }
 0x229   : > { %15328 = vst [vmem:[#allocation7_spill] sm:$0xff] %v10125_v49 }
 0x22c   : > { %v10127_v34 = vpop.permute.xlu1 %1553  ;;  %v10133_v51 = vpop.permute.xlu0 %1569 }
 0x22d   : > { %15329 = vst [vmem:[#allocation6_spill] sm:$0xff] %v10127_v34  ;;  %v8293_v34 = vld [vmem:[%s9092_s28 + $0xc4] ss:$8 sm:$0xf] }
 0x230   : > { %v10131_v42 = vpop.permute.xlu1 %1557 }
 0x231   : > { %15330 = vst [vmem:[#allocation11_spill] sm:$0xff] %v10131_v42  ;;  %v8234_v42 = vld [vmem:[%s9092_s28 + $0x41] ss:$8 sm:$0x7] }
 0x234   : > { %v10135_v20 = vpop.permute.xlu1 %1567 }
 0x238   : > { %v10137_v15 = vpop.permute.xlu1 %1571  ;;  %v1608_v16 = vpop.permute.xlu0 %1607 }
 0x239   : > { %15331 = vst [vmem:[#allocation12_spill] sm:$0xff] %v10137_v15  ;;  %v8290_v15 = vld [vmem:[%s9092_s28 + $0x4] ss:$8 sm:$0xf] }
 0x23a   : > { %v2658_v56 = vcombine.low %v8290_v15, %v8291_v25 }
 0x23c   : > { %v1610_v2 = vpop.permute.xlu1 %1609 }
 0x23d   : > { %v1611_v3 = vsel %vm292_vm0, %v1608_v16, %v1610_v2  ;;  %v1612_v21 = vsel %vm292_vm0, %v1610_v2, %v1494_v6  ;;  %v1654_v8 = vpop.permute.xlu0 %1653  ;;  %v15334_v16 = vld [vmem:[#allocation42_spill] sm:$0xff] }
 0x23e   : > { %v1811_v58 = vsel %vm571_vm1, %v9543_v32, %v1612_v21  ;;  %v1810_v29 = vsel %vm571_vm1, %v15332_v44, %v1611_v3  ;;  %v1813_v2 = vsel %vm571_vm1, %v15334_v16, %v10097_v10  ;;  %v1812_v32 = vsel %vm571_vm1, %v15335_v52, %v10149_v43  ;;  %v8287_v43 = vld [vmem:[%s9092_s28 + $0x44] ss:$8 sm:$0x7] }
 0x23f   : > { %1852 = vrot.lane.b32.xlu0 %v1811_v58, %s9003_s8  ;;  %1850 = vrot.lane.b32.xlu1 %v1810_v29, %s9003_s8  ;;  %v2609_v49 = vcombine.low %v8286_v26, %v8287_v43  ;;  %v2624_v26 = vrot.slane %v2610_v14, %v9094_v5 }
 0x241   : > { %v1656_v19 = vpop.permute.xlu1 %1655  ;;  %v2617_v43 = vrot.slane %v2609_v49, %v9094_v5  ;;  %v2666_v49 = vrot.slane %v2658_v56, %v9094_v5 }
 0x242   : > { %v1658_v38 = vpop.permute.xlu0 %1657  ;;  %v1659_v3 = vsel %vm15113_vm2, %v1654_v8, %v1656_v19 }
 0x243   : > { %1856 = vrot.lane.b32.xlu0 %v1813_v2, %s9003_s8  ;;  %1854 = vrot.lane.b32.xlu1 %v1812_v32, %s9003_s8  ;;  %v1660_v52 = vsel %vm15113_vm2, %v1656_v19, %v1658_v38 }
 0x246   : > { %v1704_v44 = vpop.permute.xlu1 %1703 }
 0x247   : > { %v1706_v29 = vpop.permute.xlu0 %1705  ;;  %v1814_v58 = vsel %vm571_vm1, %v1654_v8, %v1704_v44 }
 0x248   : > { %v1711_v21 = vsel %vm15110_vm3, %v1704_v44, %v1706_v29  ;;  %1858 = vrot.lane.b32.xlu1 %v1814_v58, %s9003_s8 }
 0x249   : > { %v1815_v6 = vsel %vm571_vm1, %v1659_v3, %v1711_v21 }
 0x24a   : > { %1860 = vrot.lane.b32.xlu0 %v1815_v6, %s9003_s8 }
 0x24b   : > { %v1708_v16 = vpop.permute.xlu1 %1707 }
 0x24c   : > { %v1712_v2 = vsel %vm15110_vm3, %v1706_v29, %v1708_v16  ;;  %v1710_v32 = vpop.permute.xlu0 %1709 }
 0x24d   : > { %v1713_v28 = vsel %vm15110_vm3, %v1708_v16, %v1710_v32  ;;  %v1816_v24 = vsel %vm571_vm1, %v1660_v52, %v1712_v2 }
 0x24e   : > { %1862 = vrot.lane.b32.xlu1 %v1816_v24, %s9003_s8  ;;  %v1817_v8 = vsel %vm571_vm1, %v1658_v38, %v1713_v28 }
 0x24f   : > { %1864 = vrot.lane.b32.xlu0 %v1817_v8, %s9003_s8 }
 0x250   : > { %v1721_v44 = vpop.permute.xlu1 %1720 }
 0x251   : > { %v1723_v58 = vpop.permute.xlu0 %1722 }
 0x252   : > { %v1728_v29 = vsel %vm15111_vm4, %v1721_v44, %v1723_v58 }
 0x254   : > { %v1725_v3 = vpop.permute.xlu1 %1724 }
 0x255   : > { %v1727_v21 = vpop.permute.xlu0 %1726  ;;  %v1729_v28 = vsel %vm15111_vm4, %v1723_v58, %v1725_v3 }
 0x256   : > { %v1730_v32 = vsel %vm15111_vm4, %v1725_v3, %v1727_v21 }
 0x258   : > { %v1736_v6 = vpop.permute.xlu1 %1735 }
 0x259   : > { %v1738_v57 = vpop.permute.xlu0 %1737  ;;  %v1818_v19 = vsel %vm571_vm1, %v1721_v44, %v1736_v6 }
 0x25a   : > { %v1743_v16 = vsel %vm15083_vm5, %v1736_v6, %v1738_v57  ;;  %1866 = vrot.lane.b32.xlu1 %v1818_v19, %s9003_s8 }
 0x25b   : > { %v1819_v24 = vsel %vm571_vm1, %v1728_v29, %v1743_v16 }
 0x25c   : > { %1868 = vrot.lane.b32.xlu0 %v1819_v24, %s9003_s8  ;;  %v1740_v38 = vpop.permute.xlu1 %1739 }
 0x25d   : > { %v1744_v52 = vsel %vm15083_vm5, %v1738_v57, %v1740_v38  ;;  %v1742_v2 = vpop.permute.xlu0 %1741 }
 0x25e   : > { %v1745_v8 = vsel %vm15083_vm5, %v1740_v38, %v1742_v2  ;;  %v1820_v44 = vsel %vm571_vm1, %v1729_v28, %v1744_v52  ;;  %v8274_v52 = vld [vmem:[%s9092_s28 + $0x2] ss:$8 sm:$0xf]  ;;  %vm15336_vm5 = vcmask 7168  }
 0x25f   : > { %1870 = vrot.lane.b32.xlu1 %v1820_v44, %s9003_s8  ;;  %v1821_v6 = vsel %vm571_vm1, %v1730_v32, %v1745_v8  ;;  %v8275_v2 = vld [vmem:[%s9092_s28 + $0x42] ss:$8 sm:$0xf] }
 0x260   : > { %1872 = vrot.lane.b32.xlu0 %v1821_v6, %s9003_s8  ;;  %v1751_v19 = vpop.permute.xlu1 %1750  ;;  %v8276_v8 = vld [vmem:[%s9092_s28 + $0x82] ss:$8 sm:$0xf] }
 0x261   : > { %v1753_v58 = vpop.permute.xlu0 %1752  ;;  %v8277_v44 = vld [vmem:[%s9092_s28 + $0xc2] ss:$8 sm:$0xf] }
 0x262   : > { %v1758_v24 = vsel %vm15085_vm6, %v1751_v19, %v1753_v58 }
 0x264   : > { %v1755_v57 = vpop.permute.xlu1 %1754 }
 0x265   : > { %v1757_v29 = vpop.permute.xlu0 %1756  ;;  %v1759_v6 = vsel %vm15085_vm6, %v1753_v58, %v1755_v57 }
 0x268   : > { %v1766_v16 = vpop.permute.xlu1 %1765 }
 0x269   : > { %v1768_v3 = vpop.permute.xlu0 %1767  ;;  %v1822_v21 = vsel %vm571_vm1, %v1751_v19, %v1766_v16  ;;  %v1760_v19 = vsel %vm15085_vm6, %v1755_v57, %v1757_v29  ;;  %vm15338_vm6 = vmmov %vm15336_vm5 }
 0x26a   : > { %v1773_v38 = vsel %vm15084_vm7, %v1766_v16, %v1768_v3  ;;  %1874 = vrot.lane.b32.xlu1 %v1822_v21, %s9003_s8 }
 0x26b   : > { %v1823_v28 = vsel %vm571_vm1, %v1758_v24, %v1773_v38  ;;  %v2255_v38 = vcombine.low %v8274_v52, %v8275_v2 }
 0x26c   : > { %1876 = vrot.lane.b32.xlu0 %v1823_v28, %s9003_s8  ;;  %v1770_v32 = vpop.permute.xlu1 %1769  ;;  %v2256_v28 = vcombine.low %v8276_v8, %v8277_v44 }
 0x26d   : > { %v1774_v7 = vsel %vm15084_vm7, %v1768_v3, %v1770_v32  ;;  %v1772_v37 = vpop.permute.xlu0 %1771 }
 0x26e   : > { %v1775_v16 = vsel %vm15084_vm7, %v1770_v32, %v1772_v37  ;;  %v1824_v21 = vsel %vm571_vm1, %v1759_v6, %v1774_v7  ;;  %v2263_v37 = vrot.slane %v2255_v38, %v9094_v5  ;;  %v2270_v57 = vrot.slane %v2256_v28, %v9094_v5  ;;  %vm15337_vm7 = vmmov %vm15336_vm5 }
 0x26f   : > { %1878 = vrot.lane.b32.xlu1 %v1824_v21, %s9003_s8  ;;  %v1825_v24 = vsel %vm571_vm1, %v1760_v19, %v1775_v16 }
 0x270   : > { %1880 = vrot.lane.b32.xlu0 %v1825_v24, %s9003_s8  ;;  %v1781_v27 = vpop.permute.xlu1 %1780  ;;  %v2272_v19 = vcombine.high %v2263_v37, %v2270_v57 }
 0x271   : > { %v1783_v47 = vpop.permute.xlu0 %1782  ;;  %v1826_v58 = vsel %vm571_vm1, %v1781_v27, %v9898_v63 }
 0x272   : > { %v1788_v3 = vsel %vm15336_vm5, %v1781_v27, %v1783_v47  ;;  %v2271_v27 = vcombine.low %v2263_v37, %v2270_v57  ;;  %v10230_v24 = vrot.slane %v2272_v19, %v9094_v5 }
 0x273   : > { %1882 = vrot.lane.b32.xlu1 %v1826_v58, %s9003_s8  ;;  %v1827_v7 = vsel %vm571_vm1, %v1788_v3, %v9911_v39 }
 0x274   : > { %1884 = vrot.lane.b32.xlu0 %v1827_v7, %s9003_s8  ;;  %v1785_v29 = vpop.permute.xlu1 %1784  ;;  %v10240_v28 = vcombine.low %v10230_v24, %v10230_v24  ;;  %v10260_v3 = vcombine.high %v10230_v24, %v10230_v24 }
 0x275   : > { %v1789_v52 = vsel %vm15337_vm7, %v1783_v47, %v1785_v29  ;;  %v1787_v2 = vpop.permute.xlu0 %1786  ;;  %v10224_v47 = vrot.slane %v2271_v27, %v9094_v5 }
 0x276   : > { %v1790_v32 = vsel %vm15338_vm6, %v1785_v29, %v1787_v2  ;;  %v1828_v63 = vsel %vm571_vm1, %v1789_v52, %v9853_v18  ;;  %vm15429_vm6 = vcmask 154624  }
 0x277   : > { %1886 = vrot.lane.b32.xlu1 %v1828_v63, %s9003_s8  ;;  %v1829_v39 = vsel %vm571_vm1, %v1790_v32, %v9864_v1  ;;  %v10235_v38 = vcombine.low %v10224_v47, %v10224_v47  ;;  %v10254_v58 = vcombine.high %v10224_v47, %v10224_v47  ;;  %vm15430_vm7 = vmmov %vm15429_vm6 }
 0x278   : > { %1888 = vrot.lane.b32.xlu0 %v1829_v39, %s9003_s8  ;;  %v1800_v8 = vpop.permute.xlu1 %1799 }
 0x279   : > { %v1802_v44 = vpop.permute.xlu0 %1801 }
 0x27a   : > { %v1807_v6 = vsel %vm292_vm0, %v1800_v8, %v1802_v44 }
 0x27b   : > { %1890 = vrot.lane.b32.xlu1 %v1807_v6, %s9003_s8 }
 0x27c   : > { %v1804_v16 = vpop.permute.xlu1 %1803 }
 0x27d   : > { %v1806_v18 = vpop.permute.xlu0 %1805  ;;  %v1808_v21 = vsel %vm292_vm0, %v1802_v44, %v1804_v16 }
 0x27e   : > { %1892 = vrot.lane.b32.xlu0 %v1808_v21, %s9003_s8  ;;  %v1809_v1 = vsel %vm292_vm0, %v1804_v16, %v1806_v18 }
 0x27f   : > { %1894 = vrot.lane.b32.xlu1 %v1809_v1, %s9003_s8 }
 0x282   : > { %1896 = vrot.lane.b32.xlu0 %v1806_v18, %s9003_s8 }
 0x283   : > { %2289 = vrot.lane.b32.xlu1 %v10235_v38, %s8998_s30 }
 0x286   : > { %2291 = vrot.lane.b32.xlu0 %v10240_v28, %s8998_s30 }
 0x287   : > { %2293 = vrot.lane.b32.xlu1 %v10224_v47, %s8998_s30 }
 0x28a   : > { %2295 = vrot.lane.b32.xlu0 %v10230_v24, %s8998_s30 }
 0x28b   : > { %2305 = vrot.lane.b32.xlu1 %v10224_v47, %s15202_s29 }
 0x28e   : > { %2307 = vrot.lane.b32.xlu0 %v10230_v24, %s15202_s29 }
 0x28f   : > { %2309 = vrot.lane.b32.xlu1 %v10254_v58, %s15202_s29 }
 0x292   : > { %2311 = vrot.lane.b32.xlu0 %v10260_v3, %s15202_s29 }
 0x293   : > { %2319 = vrot.lane.b32.xlu1 %v10235_v38, %s8999_s4 }
 0x296   : > { %2321 = vrot.lane.b32.xlu0 %v10240_v28, %s8999_s4 }
 0x297   : > { %2323 = vrot.lane.b32.xlu1 %v10224_v47, %s8999_s4 }
 0x29a   : > { %2325 = vrot.lane.b32.xlu0 %v10230_v24, %s8999_s4 }
 0x29b   : > { %2333 = vrot.lane.b32.xlu1 %v10224_v47, %s9000_s5 }
 0x29d   : > { %v1011_v7 = vpop.f32.mrf.mxu0 }
 0x29e   : > { %v1012_v37 = vadd.f32 %v1011_v7, %v9819_v13  ;;  %v1082_v57 = vpop.f32.mrf.mxu1  ;;  %2335 = vrot.lane.b32.xlu0 %v10230_v24, %s9000_s5 }
 0x29f   : > { %v1083_v29 = vadd.f32 %v1082_v57, %v9819_v13  ;;  %2337 = vrot.lane.b32.xlu1 %v10254_v58, %s9000_s5  ;;  %v1013_v52 = vpop.f32.mrf.mxu0 }
 0x2a0   : > { %v1014_v2 = vadd.f32 %v1013_v52, %v9819_v13  ;;  %v8646_v32 = vpop.f32.mrf.mxu1  ;;  %v1086_v39 = vmax.f32 %v1012_v37, 0.0  ;;  %v15340_v52 = vmov 0  ;;  %v8243_v13 = vld [vmem:[%s9092_s28 + $0x82] ss:$8 sm:$0x7] }
 0x2a1   : > { %v1088_v63 = vmax.f32 %v1083_v29, 0.0  ;;  %v15339_v29 = vlaneseq  ;;  %v1419_v12 = vcombine.low %v8243_v13, %v8244_v40  ;;  %v1226_v40 = vcombine.low %v8233_v59, %v8234_v42 }
 0x2a2   : > { %v1087_v27 = vmax.f32 %v1014_v2, 0.0  ;;  %2339 = vrot.lane.b32.xlu0 %v10260_v3, %s9000_s5 }
 0x2a3   : > { %v1094_v8 = vcombine.high %v1088_v63, %v1088_v63  ;;  %2347 = vrot.lane.b32.xlu1 %v10235_v38, %s9001_s6  ;;  %v1115_v19 = vrot.slane %v1088_v63, %v9094_v5  ;;  %vm10299_vm5 = vcmp.lt.s32.totalorder %v15339_v29, 384  ;;  %v1433_v13 = vrot.slane %v1419_v12, %v9094_v5 }
 0x2a4   : > { %v1092_v44 = vcombine.low %v1086_v39, %v1087_v27  ;;  %v1093_v6 = vcombine.high %v1086_v39, %v1087_v27  ;;  %v15341_v52 = vsel %vm10299_vm5, 4294967295, %v15340_v52  ;;  %v2625_v12 = vcombine.low %v2617_v43, %v2624_v26 }
 0x2a5   : > { %v1122_v16 = vrot.slane %v1094_v8, %v9094_v5  ;;  %15342 = vst [vmem:[#allocation43_spill] sm:$0xff] %v15341_v52 }
 0x2a6   : > { %v1101_v18 = vrot.slane %v1092_v44, %v9094_v5  ;;  %v1108_v21 = vrot.slane %v1093_v6, %v9094_v5  ;;  %2349 = vrot.lane.b32.xlu0 %v10240_v28, %s9001_s6 }
 0x2a7   : > { %2351 = vrot.lane.b32.xlu1 %v10224_v47, %s9001_s6 }
 0x2a8   : > { %v1123_v1 = vcombine.low %v1101_v18, %v1115_v19  ;;  %v1124_v7 = vcombine.high %v1101_v18, %v1115_v19  ;;  %v1125_v37 = vcombine.low %v1108_v21, %v1122_v16  ;;  %v1126_v57 = vcombine.high %v1108_v21, %v1122_v16  ;;  %v8282_v19 = vld [vmem:[%s9092_s28 + $0x3] ss:$8 sm:$0xf] }
 0x2a9   : > { %v8283_v16 = vld [vmem:[%s9092_s28 + $0x43] ss:$8 sm:$0xf] }
 0x2aa   : > { %v1133_v2 = vrot.slane %v1123_v1, %v9094_v5  ;;  %v1140_v32 = vrot.slane %v1125_v37, %v9094_v5  ;;  %v1147_v63 = vrot.slane %v1124_v7, %v9094_v5  ;;  %v1154_v39 = vrot.slane %v1126_v57, %v9094_v5  ;;  %2353 = vrot.lane.b32.xlu0 %v10230_v24, %s9001_s6  ;;  %v8284_v18 = vld [vmem:[%s9092_s28 + $0x83] ss:$8 sm:$0xf] }
 0x2ab   : > { %2361 = vrot.lane.b32.xlu1 %v10224_v47, %s9002_s7  ;;  %v8285_v21 = vld [vmem:[%s9092_s28 + $0xc3] ss:$8 sm:$0xf]  ;;  %v2448_v1 = vcombine.low %v8282_v19, %v8283_v16 }
 0x2ac   : > { %v1155_v27 = vcombine.high %v1133_v2, %v1133_v2  ;;  %v1156_v8 = vcombine.high %v1140_v32, %v1140_v32  ;;  %v1157_v44 = vcombine.high %v1147_v63, %v1147_v63  ;;  %v1158_v6 = vcombine.high %v1154_v39, %v1154_v39  ;;  %1171 = vst.msk [vmem:[%s10311_s26] ss:$8 sm:$0x7] %vm10299_vm5, %v1133_v2 }
 0x2ad   : > { %8226 = vst.msk [vmem:[%s10311_s26 + $0x18] ss:$8 sm:$0x7] %vm10299_vm5, %v1147_v63  ;;  %8229 = vst.msk [vmem:[%s10311_s26 + $0x60] ss:$8 sm:$0x7] %vm10299_vm5, %v1140_v32  ;;  %v2449_v7 = vcombine.low %v8284_v18, %v8285_v21  ;;  %v2456_v37 = vrot.slane %v2448_v1, %v9094_v5 }
 0x2ae   : > { %8230 = vst.msk [vmem:[%s10311_s26 + $0x78] ss:$8 sm:$0x7] %vm10299_vm5, %v1154_v39  ;;  %8227 = vst.msk [vmem:[%s10311_s26 + $0x30] ss:$8 sm:$0x7] %vm10299_vm5, %v1155_v27  ;;  %2363 = vrot.lane.b32.xlu0 %v10230_v24, %s9002_s7 }
 0x2af   : > { %8228 = vst.msk [vmem:[%s10311_s26 + $0x48] ss:$8 sm:$0x7] %vm10299_vm5, %v1157_v44  ;;  %8231 = vst.msk [vmem:[%s10311_s26 + $0x90] ss:$8 sm:$0x7] %vm10299_vm5, %v1156_v8  ;;  %2365 = vrot.lane.b32.xlu1 %v10254_v58, %s9002_s7  ;;  %v2463_v57 = vrot.slane %v2449_v7, %v9094_v5 }
 0x2b0   : > { %8232 = vst.msk [vmem:[%s10311_s26 + $0xa8] ss:$8 sm:$0x7] %vm10299_vm5, %v1158_v6 }
 0x2b1   : > { %v2464_v29 = vcombine.low %v2456_v37, %v2463_v57  ;;  %v10361_v2 = vpop.permute.xlu0 %1852 }
 0x2b2   : > { %2367 = vrot.lane.b32.xlu0 %v10260_v3, %s9002_s7 }
 0x2b3   : > { %2375 = vrot.lane.b32.xlu1 %v10235_v38, %s9003_s8  ;;  %v10359_v38 = vpop.permute.xlu1 %1850  ;;  %v10368_v32 = vrot.slane %v2464_v29, %v9094_v5  ;;  %v8241_v29 = vld [vmem:[%s9092_s28 + $0x2] ss:$8 sm:$0x7] }
 0x2b5   : > { %15343 = vst [vmem:[#allocation39_spill] sm:$0xff] %v10368_v32  ;;  %v10383_v39 = vpop.permute.xlu0 %1856 }
 0x2b6   : > { %2377 = vrot.lane.b32.xlu0 %v10240_v28, %s9003_s8  ;;  %v2465_v28 = vcombine.high %v2456_v37, %v2463_v57  ;;  %15345 = vst [vmem:[#allocation40_spill] sm:$0xff] %v10383_v39  ;;  %v8236_v39 = vld [vmem:[%s9092_s28 + $0xc1] ss:$8 sm:$0x7] }
 0x2b7   : > { %2379 = vrot.lane.b32.xlu1 %v10224_v47, %s9003_s8  ;;  %v10370_v63 = vpop.permute.xlu1 %1854 }
 0x2ba   : > { %2381 = vrot.lane.b32.xlu0 %v10230_v24, %s9003_s8 }
 0x2bb   : > { %2389 = vrot.lane.b32.xlu1 %v10224_v47, %s15178_s9  ;;  %v10375_v47 = vrot.slane %v2465_v28, %v9094_v5  ;;  %v10397_v27 = vpop.permute.xlu1 %1858  ;;  %v8242_v28 = vld [vmem:[%s9092_s28 + $0x42] ss:$8 sm:$0x7] }
 0x2bc   : > { %v10399_v8 = vpop.permute.xlu0 %1860  ;;  %v1418_v4 = vcombine.low %v8241_v29, %v8242_v28  ;;  %v1227_v28 = vcombine.low %v8235_v22, %v8236_v39 }
 0x2bd   : > { %v10405_v44 = vcombine.low %v10375_v47, %v10375_v47 }
 0x2be   : > { %2391 = vrot.lane.b32.xlu0 %v10230_v24, %s15178_s9  ;;  %v10381_v24 = vcombine.high %v10368_v32, %v10368_v32  ;;  %v1426_v29 = vrot.slane %v1418_v4, %v9094_v5  ;;  %v1234_v4 = vrot.slane %v1226_v40, %v9094_v5  ;;  %v1241_v59 = vrot.slane %v1227_v28, %v9094_v5 }
 0x2bf   : > { %2393 = vrot.lane.b32.xlu1 %v10254_v58, %s15178_s9  ;;  %v10389_v58 = vcombine.high %v10375_v47, %v10375_v47 }
 0x2c0   : > { %15344 = vst [vmem:[#allocation42_spill] sm:$0xff] %v10381_v24  ;;  %v10409_v6 = vpop.permute.xlu1 %1862  ;;  %v1243_v39 = vcombine.high %v1234_v4, %v1241_v59 }
 0x2c1   : > { %15346 = vst [vmem:[#allocation48_spill] sm:$0xff] %v10389_v58  ;;  %v10415_v19 = vpop.permute.xlu0 %1864 }
 0x2c2   : > { %2395 = vrot.lane.b32.xlu0 %v10260_v3, %s15178_s9  ;;  %v10395_v3 = vcombine.low %v10368_v32, %v10368_v32  ;;  %15347 = vst [vmem:[#allocation49_spill] sm:$0xff] %v10415_v19  ;;  %v8292_v19 = vld [vmem:[%s9092_s28 + $0x84] ss:$8 sm:$0xf] }
 0x2c3   : > { %2482 = vrot.lane.b32.xlu1 %v10368_v32, %s8998_s30 }
 0x2c6   : > { %2484 = vrot.lane.b32.xlu0 %v10375_v47, %s8998_s30 }
 0x2c7   : > { %2486 = vrot.lane.b32.xlu1 %v10381_v24, %s8998_s30 }
 0x2ca   : > { %2488 = vrot.lane.b32.xlu0 %v10389_v58, %s8998_s30 }
 0x2cb   : > { %2498 = vrot.lane.b32.xlu1 %v10395_v3, %s15202_s29 }
 0x2cc   : > { %v10417_v16 = vpop.permute.xlu1 %1866 }
 0x2ce   : > { %2500 = vrot.lane.b32.xlu0 %v10405_v44, %s15202_s29  ;;  %v10423_v18 = vpop.permute.xlu0 %1868 }
 0x2cf   : > { %2502 = vrot.lane.b32.xlu1 %v10368_v32, %s15202_s29 }
 0x2d1   : > { %v10429_v21 = vpop.permute.xlu1 %1870 }
 0x2d2   : > { %2504 = vrot.lane.b32.xlu0 %v10375_v47, %s15202_s29  ;;  %v10431_v1 = vpop.permute.xlu0 %1872 }
 0x2d3   : > { %2512 = vrot.lane.b32.xlu1 %v10368_v32, %s8999_s4 }
 0x2d6   : > { %2514 = vrot.lane.b32.xlu0 %v10375_v47, %s8999_s4 }
 0x2d7   : > { %2516 = vrot.lane.b32.xlu1 %v10381_v24, %s8999_s4 }
 0x2da   : > { %2518 = vrot.lane.b32.xlu0 %v10389_v58, %s8999_s4 }
 0x2db   : > { %2526 = vrot.lane.b32.xlu1 %v10395_v3, %s9000_s5 }
 0x2dc   : > { %v10437_v7 = vpop.permute.xlu1 %1874 }
 0x2de   : > { %v10439_v37 = vpop.permute.xlu0 %1876  ;;  %2528 = vrot.lane.b32.xlu0 %v10405_v44, %s9000_s5 }
 0x2df   : > { %2530 = vrot.lane.b32.xlu1 %v10368_v32, %s9000_s5 }
 0x2e1   : > { %v10445_v57 = vpop.permute.xlu1 %1878 }
 0x2e2   : > { %v10449_v52 = vpop.permute.xlu0 %1880  ;;  %2532 = vrot.lane.b32.xlu0 %v10375_v47, %s9000_s5 }
 0x2e3   : > { %2540 = vrot.lane.b32.xlu1 %v10368_v32, %s9001_s6 }
 0x2e5   : > { %v1883_v36 = vpop.permute.xlu1 %1882 }
 0x2e6   : > { %v1885_v10 = vpop.permute.xlu0 %1884  ;;  %2542 = vrot.lane.b32.xlu0 %v10375_v47, %s9001_s6 }
 0x2e7   : > { %2544 = vrot.lane.b32.xlu1 %v10381_v24, %s9001_s6  ;;  %v2659_v24 = vcombine.low %v8292_v19, %v8293_v34  ;;  %v1434_v34 = vcombine.low %v1426_v29, %v1433_v13  ;;  %v1242_v19 = vcombine.low %v1234_v4, %v1241_v59 }
 0x2e9   : > { %v1887_v17 = vpop.permute.xlu1 %1886  ;;  %v2673_v14 = vrot.slane %v2659_v24, %v9094_v5  ;;  %v2633_v24 = vrot.slane %v2625_v12, %v9094_v5  ;;  %v10517_v59 = vrot.slane %v1242_v19, %v9094_v5 }
 0x2ea   : > { %2546 = vrot.lane.b32.xlu0 %v10389_v58, %s9001_s6  ;;  %v1889_v45 = vpop.permute.xlu0 %1888  ;;  %v1435_v58 = vcombine.high %v1426_v29, %v1433_v13  ;;  %v2626_v29 = vcombine.high %v2617_v43, %v2624_v26  ;;  %v1911_v28 = vsel %vm384_vm13, %v1885_v10, %v1887_v17  ;;  %v10514_v26 = vrot.slane %v1243_v39, %v9094_v5 }
 0x2eb   : > { %2554 = vrot.lane.b32.xlu1 %v10395_v3, %s9002_s7  ;;  %v2674_v56 = vcombine.low %v2666_v49, %v2673_v14  ;;  %v2675_v4 = vcombine.high %v2666_v49, %v2673_v14  ;;  %v1912_v12 = vsel %vm384_vm13, %v1887_v17, %v1889_v45  ;;  %v1907_v49 = vsel %vm384_vm13, %v10437_v7, %v10439_v37 }
 0x2ec   : > { %v10493_v15 = vrot.slane %v1435_v58, %v9094_v5  ;;  %v1905_v17 = vsel %vm384_vm13, %v10423_v18, %v10429_v21  ;;  %v10548_v7 = vsel %vm292_vm0, %v9752_v61, %v9848_v11  ;;  %v10562_v39 = vsel %vm339_vm15, %v10025_v30, %v10003_v46 }
 0x2ed   : > { %v1891_v33 = vpop.permute.xlu1 %1890  ;;  %v10533_v14 = vrot.slane %v2674_v56, %v9094_v5  ;;  %v10541_v45 = vrot.slane %v2675_v4, %v9094_v5  ;;  %v10567_v61 = vsel %vm354_vm12, %v10018_v60, %v10041_v53  ;;  %v1902_v60 = vsel %vm384_vm13, %v10399_v8, %v10409_v6 }
 0x2ee   : > { %2556 = vrot.lane.b32.xlu0 %v10405_v44, %s9002_s7  ;;  %v1451_v43 = vcombine.low %v10493_v15, %v10493_v15 }
 0x2ef   : > { %2558 = vrot.lane.b32.xlu1 %v10368_v32, %s9002_s7 }
 0x2f0   : > { %v1893_v22 = vpop.permute.xlu0 %1892 }
 0x2f1   : > { %v1895_v25 = vpop.permute.xlu1 %1894  ;;  %v1913_v40 = vsel %vm384_vm13, %v1891_v33, %v1893_v22  ;;  %v1910_v33 = vsel %vm384_vm13, %v1883_v36, %v1885_v10  ;;  %v1908_v36 = vsel %vm384_vm13, %v10439_v37, %v10445_v57  ;;  %v2640_v10 = vrot.slane %v2626_v29, %v9094_v5 }
 0x2f2   : > { %2560 = vrot.lane.b32.xlu0 %v10375_v47, %s9002_s7  ;;  %v1914_v42 = vsel %vm384_vm13, %v1893_v22, %v1895_v25  ;;  %v10553_v37 = vsel %vm324_vm11, %v9900_v0, %v10001_v35  ;;  %v1909_v0 = vsel %vm384_vm13, %v10445_v57, %v10449_v52  ;;  %v10586_v52 = vcombine.low %v10533_v14, %v10533_v14 }
 0x2f3   : > { %2596 = vrot.lane.b32.xlu1 %v10395_v3, %s8998_s30  ;;  %8257 = vmatprep.subr.msk.mxu0 %vm571_vm1, %v1914_v42  ;;  %v10507_v3 = vrot.slane %v1434_v34, %v9094_v5  ;;  %v1904_v42 = vsel %vm384_vm13, %v10417_v16, %v10423_v18  ;;  %v10576_v16 = vsel %vm354_vm12, %v10041_v53, %v10027_v54 }
 0x2f4   : > { %v1897_v13 = vpop.permute.xlu0 %1896  ;;  %8258 = vmatpush1.msk.msra.mxu0 %vm571_vm1, %v1913_v40  ;;  %v1906_v57 = vsel %vm384_vm13, %v10429_v21, %v10431_v1  ;;  %v1901_v53 = vsel %vm384_vm13, %v10397_v27, %v10399_v8  ;;  %v10599_v40 = vcombine.low %v10541_v45, %v10541_v45  ;;  %v1574_v21 = vsel %vm369_vm8, %v10135_v20, %v10133_v51 }
 0x2f5   : > { %v1915_v58 = vsel %vm384_vm13, %v1895_v25, %v1897_v13  ;;  %v10503_v32 = vpop.permute.xlu1 %2289  ;;  %1943 = vmatprep.subr.mxu0 %v1911_v28  ;;  %v1450_v34 = vcombine.low %v10507_v3, %v10507_v3  ;;  %v1899_v27 = vsel %vm384_vm13, %v10361_v2, %v10370_v63  ;;  %v1532_v8 = vsel %vm324_vm11, %v10113_v23, %v10107_v41  ;;  %v15351_v13 = vld [vmem:[#allocation44_spill] sm:$0xff]  ;;  %v15352_v28 = vld [vmem:[#allocation6_spill] sm:$0xff] }
 0x2f6   : > { %2598 = vrot.lane.b32.xlu0 %v10405_v44, %s8998_s30  ;;  %1944 = vmatpush1.msra.mxu0 %v1910_v33  ;;  %v2641_v44 = vcombine.high %v2633_v24, %v2633_v24  ;;  %v1573_v1 = vsel %vm369_vm8, %v10129_v50, %v10135_v20  ;;  %v1546_v29 = vsel %vm339_vm15, %v10121_v31, %v10115_v9  ;;  %v15355_v20 = vld [vmem:[#allocation5_spill] sm:$0xff] }
 0x2f7   : > { %8648 = vmatpush3.msk.msra.mxu1 %vm571_vm1, %v1915_v58  ;;  %2642 = vrot.lane.b32.xlu1 %v2633_v24, %s15154_s10  ;;  %v1517_v24 = vsel %vm309_vm10, %v10093_v55, %v10105_v48  ;;  %v1898_v55 = vsel %vm384_vm13, %v10359_v38, %v10361_v2  ;;  %v1560_v56 = vsel %vm354_vm12, %v15352_v28, %v15351_v13  ;;  %v15353_v58 = vld [vmem:[#allocation49_spill] sm:$0xff]  ;;  %v15356_v2 = vld [vmem:[#allocation8_spill] sm:$0xff] }
 0x2f8   : > { %1945 = vmatprep.subr.mxu0 %v1908_v36  ;;  %8649 = vmatprep.subr.mxu1 %v15252_v62  ;;  %v10527_v22 = vpop.permute.xlu0 %2291  ;;  %v1903_v33 = vsel %vm384_vm13, %v10409_v6, %v15353_v58  ;;  %v1545_v38 = vsel %vm339_vm15, %v15355_v20, %v10121_v31  ;;  %v1559_v4 = vsel %vm354_vm12, %v15356_v2, %v15352_v28  ;;  %v15371_v2 = vld [vmem:[#allocation9_spill] sm:$0xff] }
 0x2f9   : > { %1946 = vmatpush1.msra.mxu0 %v1907_v49  ;;  %8650 = vmatpush3.msra.mxu1 %v1912_v12  ;;  %v10535_v25 = vpop.permute.xlu1 %2293  ;;  %v1601_v6 = vsel %vm571_vm1, %v1560_v56, %v1574_v21  ;;  %v15359_v12 = vld [vmem:[#allocation40_spill] sm:$0xff]  ;;  %v1600_v49 = vsel %vm571_vm1, %v1559_v4, %v1573_v1  ;;  %v15369_v56 = vld [vmem:[#allocation18_spill] sm:$0xff] }
 0x2fa   : > { %15348 = vst [vmem:[#allocation50_spill] sm:$0xff] %v10535_v25  ;;  %1947 = vmatprep.subr.mxu0 %v1905_v17  ;;  %8651 = vmatprep.subr.mxu1 %v15252_v62  ;;  %v1900_v31 = vsel %vm384_vm13, %v10370_v63, %v15359_v12  ;;  %v15360_v17 = vld [vmem:[#allocation17_spill] sm:$0xff]  ;;  %v15366_v1 = vld [vmem:[#allocation20_spill] sm:$0xff]  ;;  %v15373_v12 = vld [vmem:[#allocation15_spill] sm:$0xff] }
 0x2fb   : > { %2644 = vrot.lane.b32.xlu0 %v2640_v10, %s15154_s10  ;;  %1948 = vmatpush1.msra.mxu0 %v1904_v42  ;;  %v15358_v10 = vld [vmem:[#allocation12_spill] sm:$0xff]  ;;  %v1518_v42 = vsel %vm309_vm10, %v10105_v48, %v15360_v17  ;;  %v1408_v58 = vsel %vm15161_vm14, %v15369_v56, %v15366_v1  ;;  %v1519_v4 = vsel %vm309_vm10, %v15360_v17, %v15371_v2 }
 0x2fc   : > { %8652 = vmatpush3.msra.mxu1 %v1909_v0  ;;  %2646 = vrot.lane.b32.xlu1 %v2641_v44, %s15154_s10  ;;  %v10582_v18 = vpop.permute.xlu0 %2295  ;;  %v1575_v44 = vsel %vm369_vm8, %v10133_v51, %v15358_v10  ;;  %v15361_v0 = vld [vmem:[#allocation46_spill] sm:$0xff]  ;;  %v1598_v51 = vsel %vm571_vm1, %v1532_v8, %v1546_v29  ;;  %v15367_v8 = vld [vmem:[#allocation23_spill] sm:$0xff]  ;;  %v15368_v29 = vld [vmem:[#allocation13_spill] sm:$0xff]  ;;  %v1591_v15 = vsel %vm571_vm1, %v1408_v58, %v1450_v34 }
 0x2fd   : > { %15349 = vst [vmem:[#allocation51_spill] sm:$0xff] %v10582_v18  ;;  %1949 = vmatprep.subr.mxu0 %v1902_v60  ;;  %8653 = vmatprep.subr.mxu1 %v15252_v62  ;;  %v10595_v19 = vpop.permute.xlu1 %2305  ;;  %v1531_v60 = vsel %vm324_vm11, %v15361_v0, %v10113_v23  ;;  %v15365_v23 = vld [vmem:[#allocation19_spill] sm:$0xff]  ;;  %v1502_v28 = vsel %vm292_vm0, %v15368_v29, %v15367_v8  ;;  %v15382_v29 = vld [vmem:[#allocation22_spill] sm:$0xff] }
 0x2fe   : > { %15350 = vst [vmem:[#allocation52_spill] sm:$0xff] %v10595_v19  ;;  %1950 = vmatpush1.msra.mxu0 %v1901_v53  ;;  %8654 = vmatpush3.msra.mxu1 %v1906_v57  ;;  %v15362_v57 = vld [vmem:[#allocation7_spill] sm:$0xff]  ;;  %v1597_v48 = vsel %vm571_vm1, %v1531_v60, %v1545_v38  ;;  %v1595_v38 = vsel %vm571_vm1, %v1502_v28, %v1518_v42 }
 0x2ff   : > { %1951 = vmatprep.subr.mxu0 %v1899_v27  ;;  %8655 = vmatprep.subr.mxu1 %v15252_v62  ;;  %v1547_v63 = vsel %vm339_vm15, %v10115_v9, %v15362_v57  ;;  %v15363_v53 = vld [vmem:[#allocation11_spill] sm:$0xff]  ;;  %v10746_v56 = vcombine.high %v10541_v45, %v10541_v45 }
 0x300   : > { %2692 = vrot.lane.b32.xlu0 %v10586_v52, %s15129_s11  ;;  %1952 = vmatpush1.msra.mxu0 %v1898_v55  ;;  %v10631_v50 = vpop.permute.xlu0 %2307  ;;  %v1561_v21 = vsel %vm354_vm12, %v15351_v13, %v15363_v53  ;;  %v1409_v55 = vsel %vm15161_vm14, %v15366_v1, %v15365_v23  ;;  %v15380_v53 = vld [vmem:[#allocation25_spill] sm:$0xff] }
 0x301   : > { %15354 = vst [vmem:[#allocation44_spill] sm:$0xff] %v10631_v50  ;;  %8656 = vmatpush3.msra.mxu1 %v1903_v33  ;;  %2694 = vrot.lane.b32.xlu1 %v10599_v40, %s15129_s11  ;;  %v10642_v36 = vpop.permute.xlu1 %2309  ;;  %v1602_v9 = vsel %vm571_vm1, %v1561_v21, %v1575_v44  ;;  %v15370_v33 = vld [vmem:[#allocation10_spill] sm:$0xff]  ;;  %v1592_v17 = vsel %vm571_vm1, %v1409_v55, %v1451_v43  ;;  %v15379_v43 = vld [vmem:[#allocation36_spill] sm:$0xff]  ;;  %v15425_v50 = vld [vmem:[#allocation39_spill] sm:$0xff] }
 0x302   : > { %15357 = vst [vmem:[#allocation6_spill] sm:$0xff] %v10642_v36  ;;  %1953 = vmatprep.subr.mxu0 %v1601_v6  ;;  %8657 = vmatprep.subr.mxu1 %v15252_v62  ;;  %v1533_v20 = vsel %vm324_vm11, %v10107_v41, %v15370_v33  ;;  %v15372_v6 = vld [vmem:[#allocation45_spill] sm:$0xff]  ;;  %v15374_v41 = vld [vmem:[#allocation31_spill] sm:$0xff]  ;;  %v1380_v21 = vsel %vm369_vm8, %v15380_v53, %v15379_v43 }
 0x303   : > { %1954 = vmatpush1.msra.mxu0 %v1600_v49  ;;  %8658 = vmatpush3.msra.mxu1 %v1900_v31  ;;  %v1594_v10 = vsel %vm571_vm1, %v15372_v6, %v1517_v24  ;;  %v1599_v44 = vsel %vm571_vm1, %v1533_v20, %v1547_v63  ;;  %v1394_v31 = vsel %vm384_vm13, %v15374_v41, %v15373_v12  ;;  %v15375_v49 = vld [vmem:[#allocation26_spill] sm:$0xff]  ;;  %v15376_v24 = vld [vmem:[#allocation16_spill] sm:$0xff]  ;;  %v15384_v33 = vld [vmem:[#allocation33_spill] sm:$0xff] }
 0x304   : > { %1955 = vmatprep.subr.mxu0 %v1598_v51  ;;  %8659 = vmatprep.subr.mxu1 %v15252_v62  ;;  %v10667_v27 = vpop.permute.xlu0 %2311  ;;  %v1395_v42 = vsel %vm384_vm13, %v15373_v12, %v15375_v49  ;;  %v1410_v60 = vsel %vm15161_vm14, %v15365_v23, %v15376_v24  ;;  %v15377_v51 = vld [vmem:[#allocation14_spill] sm:$0xff]  ;;  %v1588_v55 = vsel %vm571_vm1, %v1380_v21, %v1394_v31  ;;  %v15389_v12 = vld [vmem:[#allocation47_spill] sm:$0xff]  ;;  %v15395_v21 = vld [vmem:[#allocation32_spill] sm:$0xff] }
 0x305   : > { %15364 = vst [vmem:[#allocation49_spill] sm:$0xff] %v10667_v27  ;;  %2696 = vrot.lane.b32.xlu0 %v10533_v14, %s15129_s11  ;;  %1956 = vmatpush1.msra.mxu0 %v1597_v48  ;;  %v10678_v13 = vpop.permute.xlu1 %2319  ;;  %v1503_v57 = vsel %vm292_vm0, %v15367_v8, %v15377_v51  ;;  %v15381_v48 = vld [vmem:[#allocation29_spill] sm:$0xff]  ;;  %v10736_v8 = vcombine.high %v10533_v14, %v10533_v14  ;;  %v15387_v6 = vld [vmem:[#allocation30_spill] sm:$0xff] }
 0x306   : > { %8660 = vmatpush3.msra.mxu1 %v1602_v9  ;;  %2698 = vrot.lane.b32.xlu1 %v10541_v45, %s15129_s11  ;;  %v1381_v23 = vsel %vm369_vm8, %v15379_v43, %v15381_v48  ;;  %v1596_v1 = vsel %vm571_vm1, %v1503_v57, %v1519_v4  ;;  %v1396_v28 = vsel %vm384_vm13, %v15375_v49, %v15382_v29  ;;  %v15391_v41 = vld [vmem:[#allocation34_spill] sm:$0xff]  ;;  %v15392_v49 = vld [vmem:[#allocation37_spill] sm:$0xff] }
 0x307   : > { %1957 = vmatprep.subr.mxu0 %v1595_v38  ;;  %8661 = vmatprep.subr.mxu1 %v15252_v62  ;;  %v1589_v34 = vsel %vm571_vm1, %v1381_v23, %v1395_v42  ;;  %v1593_v9 = vsel %vm571_vm1, %v1410_v60, %v10507_v3  ;;  %v1339_v20 = vsel %vm324_vm11, %v10001_v35, %v15384_v33  ;;  %v15385_v38 = vld [vmem:[#allocation24_spill] sm:$0xff]  ;;  %v15394_v60 = vld [vmem:[#allocation21_spill] sm:$0xff]  ;;  %v15396_v23 = vld [vmem:[#allocation35_spill] sm:$0xff] }
 0x308   : > { %1958 = vmatpush1.msra.mxu0 %v1594_v10  ;;  %8662 = vmatpush3.msra.mxu1 %v1599_v44  ;;  %v10706_v0 = vpop.permute.xlu0 %2321  ;;  %v1352_v2 = vsel %vm339_vm15, %v15385_v38, %v10025_v30  ;;  %v1586_v3 = vsel %vm571_vm1, %v10562_v39, %v10576_v16  ;;  %v1368_v10 = vsel %vm354_vm12, %v10027_v54, %v15387_v6  ;;  %v15388_v44 = vld [vmem:[#allocation27_spill] sm:$0xff]  ;;  %v15390_v16 = vld [vmem:[#allocation41_spill] sm:$0xff] }
 0x309   : > { %1959 = vmatprep.subr.mxu0 %v1592_v17  ;;  %8663 = vmatprep.subr.mxu1 %v15252_v62  ;;  %v10719_v63 = vpop.permute.xlu1 %2323  ;;  %v1382_v35 = vsel %vm369_vm8, %v15381_v48, %v15388_v44  ;;  %v1585_v30 = vsel %vm571_vm1, %v1352_v2, %v10567_v61  ;;  %v1309_v39 = vsel %vm292_vm0, %v9848_v11, %v15389_v12  ;;  %v15393_v17 = vld [vmem:[#allocation28_spill] sm:$0xff]  ;;  %v8928_v29 = vld [vmem:[%s15053_s1] sm:$0xff] }
 0x30a   : > { %15378 = vst [vmem:[#allocation5_spill] sm:$0xff] %v10719_v63  ;;  %2709 = vrot.lane.b32.xlu0 %v10533_v14, %s15103_s17  ;;  %1960 = vmatpush1.msra.mxu0 %v1591_v15  ;;  %v1325_v31 = vsel %vm309_vm10, %v15391_v41, %v15390_v16  ;;  %v1590_v54 = vsel %vm571_vm1, %v1382_v35, %v1396_v28 }
 0x30b   : > { %8664 = vmatpush3.msra.mxu1 %v1596_v1  ;;  %2711 = vrot.lane.b32.xlu1 %v10541_v45, %s15103_s17  ;;  %v1324_v42 = vsel %vm309_vm10, %v15392_v49, %v15391_v41  ;;  %v1354_v61 = vsel %vm339_vm15, %v10003_v46, %v15393_v17  ;;  %v1583_v11 = vsel %vm571_vm1, %v1325_v31, %v1339_v20 }
 0x30c   : > { %1961 = vmatprep.subr.mxu0 %v1589_v34  ;;  %8665 = vmatprep.subr.mxu1 %v15252_v62  ;;  %v10748_v58 = vpop.permute.xlu0 %2325  ;;  %v1340_v51 = vsel %vm324_vm11, %v15384_v33, %v15394_v60  ;;  %v1582_v57 = vsel %vm571_vm1, %v1324_v42, %v10553_v37  ;;  %v1587_v46 = vsel %vm571_vm1, %v1354_v61, %v1368_v10 }
 0x30d   : > { %15383 = vst [vmem:[#allocation8_spill] sm:$0xff] %v10748_v58  ;;  %1962 = vmatpush1.msra.mxu0 %v1588_v55  ;;  %8666 = vmatpush3.msra.mxu1 %v1593_v9  ;;  %v10759_v4 = vpop.permute.xlu1 %2333  ;;  %v1580_v43 = vsel %vm571_vm1, %v10514_v26, %v1309_v39  ;;  %v1258_v53 = vcombine.high %v10517_v59, %v10517_v59 }
 0x30e   : > { %15386 = vst [vmem:[#allocation12_spill] sm:$0xff] %v10759_v4  ;;  %1963 = vmatprep.subr.mxu0 %v1586_v3  ;;  %8667 = vmatprep.subr.mxu1 %v15252_v62  ;;  %v1310_v48 = vsel %vm292_vm0, %v15389_v12, %v15395_v21  ;;  %v1326_v37 = vsel %vm309_vm10, %v15390_v16, %v15396_v23  ;;  %v15428_v4 = vld [vmem:[#allocation42_spill] sm:$0xff] }
 0x30f   : > { %2713 = vrot.lane.b32.xlu0 %v10736_v8, %s15103_s17  ;;  %1964 = vmatpush1.msra.mxu0 %v1585_v30  ;;  %v1579_v1 = vsel %vm571_vm1, %v10517_v59, %v10548_v7  ;;  %v1584_v26 = vsel %vm571_vm1, %v1326_v37, %v1340_v51  ;;  %v1581_v59 = vsel %vm571_vm1, %v1258_v53, %v1310_v48 }
 0x310   : > { %8668 = vmatpush3.msra.mxu1 %v1590_v54  ;;  %2715 = vrot.lane.b32.xlu1 %v10746_v56, %s15103_s17  ;;  %v10788_v24 = vpop.permute.xlu0 %2335  ;;  %s15482_s17 = smov 35  }
 0x311   : > { %1965 = vmatprep.subr.mxu0 %v1583_v11  ;;  %8669 = vmatprep.subr.mxu1 %v15252_v62  ;;  %v10797_v15 = vpop.permute.xlu1 %2337 }
 0x312   : > { %1966 = vmatpush1.msra.mxu0 %v1582_v57  ;;  %8670 = vmatpush3.msra.mxu1 %v1587_v46 }
 0x313   : > { %1967 = vmatprep.subr.mxu0 %v1580_v43  ;;  %8671 = vmatprep.subr.mxu1 %v15252_v62 }
 0x314   : > { %2724 = vrot.lane.b32.xlu0 %v10586_v52, %s9008_s19  ;;  %1968 = vmatpush1.msra.mxu0 %v1579_v1  ;;  %v10816_v34 = vpop.permute.xlu0 %2339 }
 0x315   : > { %15397 = vst [vmem:[#allocation40_spill] sm:$0xff] %v10816_v34  ;;  %8672 = vmatpush3.msra.mxu1 %v1584_v26  ;;  %2726 = vrot.lane.b32.xlu1 %v10599_v40, %s9008_s19  ;;  %v10820_v55 = vpop.permute.xlu1 %2347 }
 0x316   : > { %8259 = vmatmul.mubr.msk.f32.vlgmr.msra.gmra.mxu0 %vm354_vm12, %v8928_v29  ;;  %8673 = vmatprep.subr.mxu1 %v15252_v62 }
 0x317   : > { %8674 = vmatpush3.msra.mxu1 %v1581_v59  ;;  %2990 = vmatprep.mubr.f32.mxu0 %v15252_v62 }
 0x318   : > { %8676 = vmatmul.mubr.msk.f32.vlgmr.msra.gmra.mxu1 %vm354_vm12, %v8928_v29  ;;  %2728 = vrot.lane.b32.xlu0 %v10533_v14, %s9008_s19  ;;  %v10832_v7 = vpop.permute.xlu0 %2349 }
 0x319   : > { %2730 = vrot.lane.b32.xlu1 %v10541_v45, %s9008_s19  ;;  %v10836_v28 = vpop.permute.xlu1 %2351  ;;  %8678 = vmatprep.subr.mxu1 %v15252_v62 }
 0x31a   : > { %8706 = vmatprep.mubr.msk.f32.mxu1 %vm15136_vm9, %v15252_v62 }
 0x31c   : > { %2739 = vrot.lane.b32.xlu0 %v10533_v14, %s9009_s20  ;;  %v10843_v9 = vpop.permute.xlu0 %2353 }
 0x31d   : > { %15398 = vst [vmem:[#allocation17_spill] sm:$0xff] %v10843_v9  ;;  %2741 = vrot.lane.b32.xlu1 %v10541_v45, %s9009_s20  ;;  %v10847_v33 = vpop.permute.xlu1 %2361 }
 0x31e   : > { %15399 = vst [vmem:[#allocation46_spill] sm:$0xff] %v10847_v33 }
 0x320   : > { %2743 = vrot.lane.b32.xlu0 %v10736_v8, %s9009_s20  ;;  %v10851_v20 = vpop.permute.xlu0 %2363 }
 0x321   : > { %15400 = vst [vmem:[#allocation7_spill] sm:$0xff] %v10851_v20  ;;  %2745 = vrot.lane.b32.xlu1 %v10746_v56, %s9009_s20  ;;  %v10855_v38 = vpop.permute.xlu1 %2365 }
 0x322   : > { %15401 = vst [vmem:[#allocation11_spill] sm:$0xff] %v10855_v38 }
 0x324   : > { %2754 = vrot.lane.b32.xlu0 %v10586_v52, %s9010_s24  ;;  %v10859_v2 = vpop.permute.xlu0 %2367 }
 0x325   : > { %15402 = vst [vmem:[#allocation19_spill] sm:$0xff] %v10859_v2  ;;  %2756 = vrot.lane.b32.xlu1 %v10599_v40, %s9010_s24  ;;  %v10863_v3 = vpop.permute.xlu1 %2375 }
 0x326   : > { %15403 = vst [vmem:[#allocation20_spill] sm:$0xff] %v10863_v3  ;;  %v8281_v3 = vld [vmem:[%s9092_s28 + $0xc3] ss:$8 sm:$0x7] }
 0x328   : > { %2758 = vrot.lane.b32.xlu0 %v10533_v14, %s9010_s24  ;;  %v10867_v6 = vpop.permute.xlu0 %2377 }
 0x329   : > { %15404 = vst [vmem:[#allocation23_spill] sm:$0xff] %v10867_v6  ;;  %2760 = vrot.lane.b32.xlu1 %v10541_v45, %s9010_s24  ;;  %v10871_v10 = vpop.permute.xlu1 %2379  ;;  %v8323_v6 = vld [vmem:[%s9092_s28 + $0x5] ss:$8 sm:$0x7] }
 0x32a   : > { %15405 = vst [vmem:[#allocation13_spill] sm:$0xff] %v10871_v10  ;;  %v8280_v10 = vld [vmem:[%s9092_s28 + $0x83] ss:$8 sm:$0x7] }
 0x32c   : > { %2769 = vrot.lane.b32.xlu0 %v10533_v14, %s9011_s25  ;;  %v10875_v44 = vpop.permute.xlu0 %2381 }
 0x32d   : > { %15406 = vst [vmem:[#allocation18_spill] sm:$0xff] %v10875_v44  ;;  %2771 = vrot.lane.b32.xlu1 %v10541_v45, %s9011_s25  ;;  %v10879_v35 = vpop.permute.xlu1 %2389 }
 0x32e   : > { %15407 = vst [vmem:[#allocation10_spill] sm:$0xff] %v10879_v35 }
 0x330   : > { %2773 = vrot.lane.b32.xlu0 %v10736_v8, %s9011_s25  ;;  %v10883_v30 = vpop.permute.xlu0 %2391 }
 0x331   : > { %15408 = vst [vmem:[#allocation9_spill] sm:$0xff] %v10883_v30  ;;  %2775 = vrot.lane.b32.xlu1 %v10746_v56, %s9011_s25  ;;  %v10887_v12 = vpop.permute.xlu1 %2393  ;;  %v2408_v30 = vcombine.low %v8280_v10, %v8281_v3 }
 0x332   : > { %15409 = vst [vmem:[#allocation45_spill] sm:$0xff] %v10887_v12  ;;  %v8270_v12 = vld [vmem:[%s9092_s28 + $0x2] ss:$8 sm:$0x7] }
 0x333   : > { %v2422_v3 = vrot.slane %v2408_v30, %v9094_v5 }
 0x334   : > { %2788 = vrot.lane.b32.xlu0 %v10533_v14, %s8998_s30  ;;  %v10891_v39 = vpop.permute.xlu0 %2395 }
 0x335   : > { %15410 = vst [vmem:[#allocation15_spill] sm:$0xff] %v10891_v39  ;;  %2790 = vrot.lane.b32.xlu1 %v10541_v45, %s8998_s30  ;;  %v2483_v16 = vpop.permute.xlu1 %2482 }
 0x338   : > { %2792 = vrot.lane.b32.xlu0 %v10736_v8, %s8998_s30  ;;  %v10897_v41 = vpop.permute.xlu0 %2484 }
 0x339   : > { %15411 = vst [vmem:[#allocation31_spill] sm:$0xff] %v10897_v41  ;;  %2794 = vrot.lane.b32.xlu1 %v10746_v56, %s8998_s30  ;;  %v10901_v31 = vpop.permute.xlu1 %2486  ;;  %v10955_v25 = vsel %vm292_vm0, %v2483_v16, %v10897_v41 }
 0x33a   : > { %15412 = vst [vmem:[#allocation26_spill] sm:$0xff] %v10901_v31  ;;  %15426 = vst [vmem:[#allocation34_spill] sm:$0xff] %v10955_v25 }
 0x33c   : > { %v10903_v54 = vpop.permute.xlu0 %2488 }
 0x33d   : > { %15413 = vst [vmem:[#allocation16_spill] sm:$0xff] %v10903_v54  ;;  %v10905_v49 = vpop.permute.xlu1 %2498 }
 0x340   : > { %v10907_v42 = vpop.permute.xlu0 %2500 }
 0x341   : > { %v10909_v17 = vpop.permute.xlu1 %2502 }
 0x342   : > { %15414 = vst [vmem:[#allocation14_spill] sm:$0xff] %v10909_v17  ;;  %v8272_v17 = vld [vmem:[%s9092_s28 + $0x82] ss:$8 sm:$0x7] }
 0x344   : > { %v10911_v61 = vpop.permute.xlu0 %2504 }
 0x345   : > { %15415 = vst [vmem:[#allocation36_spill] sm:$0xff] %v10911_v61  ;;  %v10913_v11 = vpop.permute.xlu1 %2512  ;;  %v8325_v61 = vld [vmem:[%s9092_s28 + $0x85] ss:$8 sm:$0x7] }
 0x346   : > { %15416 = vst [vmem:[#allocation25_spill] sm:$0xff] %v10913_v11 }
 0x348   : > { %v10915_v8 = vpop.permute.xlu0 %2514 }
 0x349   : > { %v10917_v60 = vpop.permute.xlu1 %2516 }
 0x34c   : > { %v10919_v51 = vpop.permute.xlu0 %2518 }
 0x34d   : > { %15417 = vst [vmem:[#allocation29_spill] sm:$0xff] %v10919_v51  ;;  %v10921_v56 = vpop.permute.xlu1 %2526  ;;  %v8326_v51 = vld [vmem:[%s9092_s28 + $0xc5] ss:$8 sm:$0x7] }
 0x34e   : > { %15418 = vst [vmem:[#allocation22_spill] sm:$0xff] %v10921_v56  ;;  %v3599_v11 = vcombine.low %v8325_v61, %v8326_v51 }
 0x350   : > { %v10923_v57 = vpop.permute.xlu0 %2528 }
 0x351   : > { %v10925_v46 = vpop.permute.xlu1 %2530 }
 0x354   : > { %v10927_v43 = vpop.permute.xlu0 %2532 }
 0x355   : > { %15419 = vst [vmem:[#allocation33_spill] sm:$0xff] %v10927_v43  ;;  %v10929_v53 = vpop.permute.xlu1 %2540 }
 0x356   : > { %15420 = vst [vmem:[#allocation24_spill] sm:$0xff] %v10929_v53  ;;  %v8328_v53 = vld [vmem:[%s9092_s28 + $0x45] ss:$8 sm:$0xf] }
 0x358   : > { %v10931_v21 = vpop.permute.xlu0 %2542 }
 0x359   : > { %15421 = vst [vmem:[#allocation30_spill] sm:$0xff] %v10931_v21  ;;  %v10933_v48 = vpop.permute.xlu1 %2544  ;;  %v8330_v21 = vld [vmem:[%s9092_s28 + $0xc5] ss:$8 sm:$0xf] }
 0x35a   : > { %15422 = vst [vmem:[#allocation27_spill] sm:$0xff] %v10933_v48 }
 0x35c   : > { %v10935_v23 = vpop.permute.xlu0 %2546 }
 0x35d   : > { %15423 = vst [vmem:[#allocation47_spill] sm:$0xff] %v10935_v23  ;;  %v10937_v37 = vpop.permute.xlu1 %2554  ;;  %v8271_v23 = vld [vmem:[%s9092_s28 + $0x42] ss:$8 sm:$0x7] }
 0x35e   : > { %v2215_v10 = vcombine.low %v8270_v12, %v8271_v23 }
 0x360   : > { %v10939_v1 = vpop.permute.xlu0 %2556 }
 0x361   : > { %v10941_v26 = vpop.permute.xlu1 %2558 }
 0x364   : > { %v10943_v29 = vpop.permute.xlu0 %2560 }
 0x365   : > { %15424 = vst [vmem:[#allocation41_spill] sm:$0xff] %v10943_v29  ;;  %v2597_v59 = vpop.permute.xlu1 %2596  ;;  %v8327_v29 = vld [vmem:[%s9092_s28 + $0x5] ss:$8 sm:$0xf] }
 0x366   : > { %v3647_v51 = vcombine.low %v8327_v29, %v8328_v53 }
 0x368   : > { %v2599_v27 = vpop.permute.xlu0 %2598 }
 0x369   : > { %v2600_v18 = vsel %vm292_vm0, %v2597_v59, %v2599_v27  ;;  %v2601_v58 = vsel %vm292_vm0, %v2599_v27, %v2483_v16  ;;  %v2643_v34 = vpop.permute.xlu1 %2642  ;;  %v15427_v59 = vld [vmem:[#allocation48_spill] sm:$0xff] }
 0x36a   : > { %v2800_v19 = vsel %vm571_vm1, %v10375_v47, %v2601_v58  ;;  %v2799_v36 = vsel %vm571_vm1, %v15425_v50, %v2600_v18  ;;  %v2802_v27 = vsel %vm571_vm1, %v15427_v59, %v10897_v41  ;;  %v2801_v47 = vsel %vm571_vm1, %v15428_v4, %v10955_v25  ;;  %v8324_v25 = vld [vmem:[%s9092_s28 + $0x45] ss:$8 sm:$0x7] }
 0x36b   : > { %2841 = vrot.lane.b32.xlu1 %v2800_v19, %s9003_s8  ;;  %2839 = vrot.lane.b32.xlu0 %v2799_v36, %s9003_s8  ;;  %v3598_v43 = vcombine.low %v8323_v6, %v8324_v25  ;;  %v3613_v6 = vrot.slane %v3599_v11, %v9094_v5 }
 0x36d   : > { %v2645_v2 = vpop.permute.xlu0 %2644  ;;  %v3606_v25 = vrot.slane %v3598_v43, %v9094_v5  ;;  %v3655_v43 = vrot.slane %v3647_v51, %v9094_v5 }
 0x36e   : > { %v2647_v9 = vpop.permute.xlu1 %2646  ;;  %v2648_v36 = vsel %vm15113_vm2, %v2643_v34, %v2645_v2 }
 0x36f   : > { %2845 = vrot.lane.b32.xlu1 %v2802_v27, %s9003_s8  ;;  %2843 = vrot.lane.b32.xlu0 %v2801_v47, %s9003_s8  ;;  %v2649_v4 = vsel %vm15113_vm2, %v2645_v2, %v2647_v9  ;;  %v3614_v12 = vcombine.low %v3606_v25, %v3613_v6 }
 0x372   : > { %v2693_v18 = vpop.permute.xlu0 %2692 }
 0x373   : > { %v2695_v19 = vpop.permute.xlu1 %2694  ;;  %v2803_v50 = vsel %vm571_vm1, %v2643_v34, %v2693_v18 }
 0x374   : > { %v2700_v58 = vsel %vm15110_vm3, %v2693_v18, %v2695_v19  ;;  %2847 = vrot.lane.b32.xlu0 %v2803_v50, %s9003_s8 }
 0x375   : > { %v2804_v16 = vsel %vm571_vm1, %v2648_v36, %v2700_v58 }
 0x376   : > { %2849 = vrot.lane.b32.xlu1 %v2804_v16, %s9003_s8 }
 0x377   : > { %v2697_v59 = vpop.permute.xlu0 %2696 }
 0x378   : > { %v2701_v27 = vsel %vm15110_vm3, %v2695_v19, %v2697_v59  ;;  %v2699_v47 = vpop.permute.xlu1 %2698 }
 0x379   : > { %v2702_v63 = vsel %vm15110_vm3, %v2697_v59, %v2699_v47  ;;  %v2805_v44 = vsel %vm571_vm1, %v2649_v4, %v2701_v27  ;;  %vm15431_vm3 = vmmov %vm15429_vm6 }
 0x37a   : > { %2851 = vrot.lane.b32.xlu0 %v2805_v44, %s9003_s8  ;;  %v2806_v34 = vsel %vm571_vm1, %v2647_v9, %v2702_v63 }
 0x37b   : > { %2853 = vrot.lane.b32.xlu1 %v2806_v34, %s9003_s8 }
 0x37c   : > { %v2710_v18 = vpop.permute.xlu0 %2709 }
 0x37d   : > { %v2712_v50 = vpop.permute.xlu1 %2711 }
 0x37e   : > { %v2717_v19 = vsel %vm15111_vm4, %v2710_v18, %v2712_v50 }
 0x381   : > { %v2714_v36 = vpop.permute.xlu0 %2713 }
 0x382   : > { %v2716_v58 = vpop.permute.xlu1 %2715  ;;  %v2718_v9 = vsel %vm15111_vm4, %v2712_v50, %v2714_v36 }
 0x383   : > { %v2719_v47 = vsel %vm15111_vm4, %v2714_v36, %v2716_v58 }
 0x386   : > { %v2725_v16 = vpop.permute.xlu0 %2724 }
 0x387   : > { %v2727_v38 = vpop.permute.xlu1 %2726  ;;  %v2807_v2 = vsel %vm571_vm1, %v2710_v18, %v2725_v16 }
 0x388   : > { %v2732_v59 = vsel %vm15429_vm6, %v2725_v16, %v2727_v38  ;;  %2855 = vrot.lane.b32.xlu0 %v2807_v2, %s9003_s8  ;;  %vm15433_vm6 = vcmask 138240  }
 0x389   : > { %v2808_v44 = vsel %vm571_vm1, %v2717_v19, %v2732_v59  ;;  %vm15435_vm4 = vmmov %vm15433_vm6 }
 0x38a   : > { %2857 = vrot.lane.b32.xlu1 %v2808_v44, %s9003_s8  ;;  %v2729_v63 = vpop.permute.xlu0 %2728 }
 0x38b   : > { %v2733_v4 = vsel %vm15430_vm7, %v2727_v38, %v2729_v63  ;;  %v2731_v27 = vpop.permute.xlu1 %2730 }
 0x38c   : > { %v2734_v34 = vsel %vm15431_vm3, %v2729_v63, %v2731_v27  ;;  %v2809_v18 = vsel %vm571_vm1, %v2718_v9, %v2733_v4  ;;  %vm15432_vm3 = vcmask 146432   ;;  %v8311_v4 = vld [vmem:[%s9092_s28 + $0x3] ss:$8 sm:$0xf] }
 0x38d   : > { %2859 = vrot.lane.b32.xlu0 %v2809_v18, %s9003_s8  ;;  %v2810_v16 = vsel %vm571_vm1, %v2719_v47, %v2734_v34  ;;  %v8312_v27 = vld [vmem:[%s9092_s28 + $0x43] ss:$8 sm:$0xf]  ;;  %vm15434_vm7 = vmmov %vm15432_vm3 }
 0x38e   : > { %2861 = vrot.lane.b32.xlu1 %v2810_v16, %s9003_s8  ;;  %v2740_v2 = vpop.permute.xlu0 %2739  ;;  %v8313_v34 = vld [vmem:[%s9092_s28 + $0x83] ss:$8 sm:$0xf]  ;;  %vm15436_vm2 = vmmov %vm15432_vm3 }
 0x38f   : > { %v2742_v50 = vpop.permute.xlu1 %2741  ;;  %v8314_v18 = vld [vmem:[%s9092_s28 + $0xc3] ss:$8 sm:$0xf] }
 0x390   : > { %v2747_v44 = vsel %vm15432_vm3, %v2740_v2, %v2742_v50  ;;  %vm15437_vm3 = vmmov %vm15435_vm4 }
 0x392   : > { %v2744_v38 = vpop.permute.xlu0 %2743 }
 0x393   : > { %v2746_v19 = vpop.permute.xlu1 %2745  ;;  %v2748_v16 = vsel %vm15434_vm7, %v2742_v50, %v2744_v38  ;;  %vm15530_vm7 = vcmask 302080  }
 0x396   : > { %v2755_v59 = vpop.permute.xlu0 %2754 }
 0x397   : > { %v2757_v36 = vpop.permute.xlu1 %2756  ;;  %v2811_v58 = vsel %vm571_vm1, %v2740_v2, %v2755_v59  ;;  %v2749_v2 = vsel %vm15436_vm2, %v2744_v38, %v2746_v19 }
 0x398   : > { %v2762_v63 = vsel %vm15433_vm6, %v2755_v59, %v2757_v36  ;;  %2863 = vrot.lane.b32.xlu0 %v2811_v58, %s9003_s8 }
 0x399   : > { %v2812_v9 = vsel %vm571_vm1, %v2747_v44, %v2762_v63  ;;  %v3244_v63 = vcombine.low %v8311_v4, %v8312_v27 }
 0x39a   : > { %2865 = vrot.lane.b32.xlu1 %v2812_v9, %s9003_s8  ;;  %v2759_v47 = vpop.permute.xlu0 %2758  ;;  %v3245_v9 = vcombine.low %v8313_v34, %v8314_v18 }
 0x39b   : > { %v2763_v33 = vsel %vm15435_vm4, %v2757_v36, %v2759_v47  ;;  %v2761_v20 = vpop.permute.xlu1 %2760  ;;  %vm15438_vm4 = vcmask 7168  }
 0x39c   : > { %v2764_v59 = vsel %vm15437_vm3, %v2759_v47, %v2761_v20  ;;  %v2813_v58 = vsel %vm571_vm1, %v2748_v16, %v2763_v33  ;;  %v3252_v20 = vrot.slane %v3244_v63, %v9094_v5  ;;  %v3259_v38 = vrot.slane %v3245_v9, %v9094_v5  ;;  %vm15439_vm2 = vmmov %vm15438_vm4 }
 0x39d   : > { %2867 = vrot.lane.b32.xlu0 %v2813_v58, %s9003_s8  ;;  %v2814_v44 = vsel %vm571_vm1, %v2749_v2, %v2764_v59  ;;  %vm15440_vm6 = vmmov %vm15439_vm2  ;;  %vm15531_vm3 = vcmask 293888  }
 0x39e   : > { %2869 = vrot.lane.b32.xlu1 %v2814_v44, %s9003_s8  ;;  %v2770_v54 = vpop.permute.xlu0 %2769  ;;  %v3261_v2 = vcombine.high %v3252_v20, %v3259_v38 }
 0x39f   : > { %v2772_v39 = vpop.permute.xlu1 %2771  ;;  %v2815_v50 = vsel %vm571_vm1, %v2770_v54, %v10586_v52 }
 0x3a0   : > { %v2777_v36 = vsel %vm15438_vm4, %v2770_v54, %v2772_v39  ;;  %v3260_v54 = vcombine.low %v3252_v20, %v3259_v38  ;;  %v11036_v44 = vrot.slane %v3261_v2, %v9094_v5  ;;  %v15441_v20 = vld [vmem:[#allocation38_spill] sm:$0xff]  ;;  %vm15532_vm4 = vmmov %vm15530_vm7 }
 0x3a1   : > { %2871 = vrot.lane.b32.xlu0 %v2815_v50, %s9003_s8  ;;  %v2816_v33 = vsel %vm571_vm1, %v2777_v36, %v10599_v40 }
 0x3a2   : > { %2873 = vrot.lane.b32.xlu1 %v2816_v33, %s9003_s8  ;;  %v2774_v19 = vpop.permute.xlu0 %2773  ;;  %v3277_v9 = vcombine.low %v11036_v44, %v11036_v44  ;;  %v11060_v36 = vcombine.high %v11036_v44, %v11036_v44 }
 0x3a3   : > { %v2778_v4 = vsel %vm15439_vm2, %v2772_v39, %v2774_v19  ;;  %v2776_v27 = vpop.permute.xlu1 %2775  ;;  %v11030_v39 = vrot.slane %v3260_v54, %v9094_v5  ;;  %vm15533_vm2 = vmmov %vm15531_vm3 }
 0x3a4   : > { %v2779_v47 = vsel %vm15440_vm6, %v2774_v19, %v2776_v27  ;;  %v2817_v52 = vsel %vm571_vm1, %v2778_v4, %v10533_v14  ;;  %vm15534_vm6 = vmmov %vm15533_vm2 }
 0x3a5   : > { %2875 = vrot.lane.b32.xlu0 %v2817_v52, %s9003_s8  ;;  %v2818_v40 = vsel %vm571_vm1, %v2779_v47, %v10541_v45  ;;  %v3276_v63 = vcombine.low %v11030_v39, %v11030_v39  ;;  %v11054_v50 = vcombine.high %v11030_v39, %v11030_v39 }
 0x3a6   : > { %2877 = vrot.lane.b32.xlu1 %v2818_v40, %s9003_s8  ;;  %v2789_v34 = vpop.permute.xlu0 %2788 }
 0x3a7   : > { %v2791_v18 = vpop.permute.xlu1 %2790 }
 0x3a8   : > { %v2796_v16 = vsel %vm292_vm0, %v2789_v34, %v2791_v18 }
 0x3a9   : > { %2879 = vrot.lane.b32.xlu0 %v2796_v16, %s9003_s8  ;;  %v8320_v16 = vld [vmem:[%s9092_s28 + $0x44] ss:$8 sm:$0xf] }
 0x3aa   : > { %v2793_v59 = vpop.permute.xlu0 %2792 }
 0x3ab   : > { %v2795_v14 = vpop.permute.xlu1 %2794  ;;  %v2797_v58 = vsel %vm292_vm0, %v2791_v18, %v2793_v59  ;;  %v8319_v18 = vld [vmem:[%s9092_s28 + $0x4] ss:$8 sm:$0xf] }
 0x3ac   : > { %2881 = vrot.lane.b32.xlu1 %v2797_v58, %s9003_s8  ;;  %v2798_v45 = vsel %vm292_vm0, %v2793_v59, %v2795_v14  ;;  %v8321_v58 = vld [vmem:[%s9092_s28 + $0x84] ss:$8 sm:$0xf] }
 0x3ad   : > { %2883 = vrot.lane.b32.xlu0 %v2798_v45, %s9003_s8  ;;  %v8322_v45 = vld [vmem:[%s9092_s28 + $0xc4] ss:$8 sm:$0xf] }
 0x3b0   : > { %2885 = vrot.lane.b32.xlu1 %v2795_v14, %s9003_s8 }
 0x3b1   : > { %3278 = vrot.lane.b32.xlu0 %v3276_v63, %s8998_s30 }
 0x3b4   : > { %3280 = vrot.lane.b32.xlu1 %v3277_v9, %s8998_s30 }
 0x3b5   : > { %3282 = vrot.lane.b32.xlu0 %v11030_v39, %s8998_s30 }
 0x3b8   : > { %3284 = vrot.lane.b32.xlu1 %v11036_v44, %s8998_s30 }
 0x3b9   : > { %3294 = vrot.lane.b32.xlu0 %v11030_v39, %s15202_s29 }
 0x3bc   : > { %3296 = vrot.lane.b32.xlu1 %v11036_v44, %s15202_s29 }
 0x3bd   : > { %3298 = vrot.lane.b32.xlu0 %v11054_v50, %s15202_s29 }
 0x3c0   : > { %3300 = vrot.lane.b32.xlu1 %v11060_v36, %s15202_s29 }
 0x3c1   : > { %3308 = vrot.lane.b32.xlu0 %v3276_v63, %s8999_s4 }
 0x3c4   : > { %3310 = vrot.lane.b32.xlu1 %v3277_v9, %s8999_s4 }
 0x3c5   : > { %3312 = vrot.lane.b32.xlu0 %v11030_v39, %s8999_s4 }
 0x3c8   : > { %3314 = vrot.lane.b32.xlu1 %v11036_v44, %s8999_s4 }
 0x3c9   : > { %3322 = vrot.lane.b32.xlu0 %v11030_v39, %s9000_s5 }
 0x3cc   : > { %3324 = vrot.lane.b32.xlu1 %v11036_v44, %s9000_s5 }
 0x3cd   : > { %3326 = vrot.lane.b32.xlu0 %v11054_v50, %s9000_s5 }
 0x3d0   : > { %3328 = vrot.lane.b32.xlu1 %v11060_v36, %s9000_s5 }
 0x3d1   : > { %3336 = vrot.lane.b32.xlu0 %v3276_v63, %s9001_s6 }
 0x3d4   : > { %3338 = vrot.lane.b32.xlu1 %v3277_v9, %s9001_s6 }
 0x3d5   : > { %3340 = vrot.lane.b32.xlu0 %v11030_v39, %s9001_s6 }
 0x3d6   : > { %v2003_v33 = vpop.f32.mrf.mxu0 }
 0x3d7   : > { %v2004_v38 = vadd.f32 %v2003_v33, %v15441_v20 }
 0x3d8   : > { %v2005_v19 = vpop.f32.mrf.mxu0  ;;  %v2074_v4 = vpop.f32.mrf.mxu1  ;;  %3342 = vrot.lane.b32.xlu1 %v11036_v44, %s9001_s6 }
 0x3d9   : > { %v2006_v27 = vadd.f32 %v2005_v19, %v15441_v20  ;;  %v2075_v47 = vadd.f32 %v2074_v4, %v15441_v20  ;;  %3350 = vrot.lane.b32.xlu0 %v11030_v39, %s9002_s7  ;;  %v2078_v40 = vmax.f32 %v2004_v38, 0.0 }
 0x3da   : > { %v8677_v52 = vpop.f32.mrf.mxu1 }
 0x3db   : > { %v2079_v54 = vmax.f32 %v2006_v27, 0.0  ;;  %v2080_v34 = vmax.f32 %v2075_v47, 0.0  ;;  %v3437_v27 = vcombine.low %v8319_v18, %v8320_v16  ;;  %v3438_v47 = vcombine.low %v8321_v58, %v8322_v45 }
 0x3dc   : > { %3352 = vrot.lane.b32.xlu1 %v11036_v44, %s9002_s7 }
 0x3dd   : > { %v2084_v2 = vcombine.low %v2078_v40, %v2079_v54  ;;  %v2085_v59 = vcombine.high %v2078_v40, %v2079_v54  ;;  %v2086_v14 = vcombine.high %v2080_v34, %v2080_v34  ;;  %3354 = vrot.lane.b32.xlu0 %v11054_v50, %s9002_s7  ;;  %v2107_v38 = vrot.slane %v2080_v34, %v9094_v5 }
 0x3de   : > { %v3445_v16 = vrot.slane %v3437_v27, %v9094_v5 }
 0x3df   : > { %v2093_v33 = vrot.slane %v2084_v2, %v9094_v5  ;;  %v2100_v19 = vrot.slane %v2085_v59, %v9094_v5  ;;  %v2114_v4 = vrot.slane %v2086_v14, %v9094_v5  ;;  %v3452_v14 = vrot.slane %v3438_v47, %v9094_v5 }
 0x3e0   : > { %3356 = vrot.lane.b32.xlu1 %v11060_v36, %s9002_s7 }
 0x3e1   : > { %v2115_v52 = vcombine.low %v2093_v33, %v2107_v38  ;;  %v2116_v40 = vcombine.high %v2093_v33, %v2107_v38  ;;  %v2117_v54 = vcombine.low %v2100_v19, %v2114_v4  ;;  %v2118_v20 = vcombine.high %v2100_v19, %v2114_v4  ;;  %3364 = vrot.lane.b32.xlu0 %v3276_v63, %s9003_s8  ;;  %v11145_v38 = vpop.permute.xlu1 %2841 }
 0x3e2   : > { %v3454_v4 = vcombine.high %v3445_v16, %v3452_v14 }
 0x3e3   : > { %v2125_v2 = vrot.slane %v2115_v52, %v9094_v5  ;;  %v2132_v34 = vrot.slane %v2117_v54, %v9094_v5  ;;  %v2139_v59 = vrot.slane %v2116_v40, %v9094_v5  ;;  %v2146_v18 = vrot.slane %v2118_v20, %v9094_v5  ;;  %v11143_v20 = vpop.permute.xlu0 %2839 }
 0x3e4   : > { %3366 = vrot.lane.b32.xlu1 %v3277_v9, %s9003_s8  ;;  %v3453_v9 = vcombine.low %v3445_v16, %v3452_v14 }
 0x3e5   : > { %v2147_v58 = vcombine.high %v2125_v2, %v2125_v2  ;;  %v2148_v63 = vcombine.high %v2132_v34, %v2132_v34  ;;  %v2149_v45 = vcombine.high %v2139_v59, %v2139_v59  ;;  %v2150_v33 = vcombine.high %v2146_v18, %v2146_v18  ;;  %8262 = vst.msk [vmem:[%s10311_s26 + $0x1] ss:$8 sm:$0x7] %vm10299_vm5, %v2125_v2  ;;  %v11167_v52 = vpop.permute.xlu1 %2845 }
 0x3e6   : > { %8263 = vst.msk [vmem:[%s10311_s26 + $0x19] ss:$8 sm:$0x7] %vm10299_vm5, %v2139_v59  ;;  %8266 = vst.msk [vmem:[%s10311_s26 + $0x61] ss:$8 sm:$0x7] %vm10299_vm5, %v2132_v34  ;;  %3368 = vrot.lane.b32.xlu0 %v11030_v39, %s9003_s8  ;;  %v11152_v27 = vrot.slane %v3453_v9, %v9094_v5 }
 0x3e7   : > { %8267 = vst.msk [vmem:[%s10311_s26 + $0x79] ss:$8 sm:$0x7] %vm10299_vm5, %v2146_v18  ;;  %8264 = vst.msk [vmem:[%s10311_s26 + $0x31] ss:$8 sm:$0x7] %vm10299_vm5, %v2147_v58  ;;  %v11154_v47 = vpop.permute.xlu0 %2843 }
 0x3e8   : > { %8265 = vst.msk [vmem:[%s10311_s26 + $0x49] ss:$8 sm:$0x7] %vm10299_vm5, %v2149_v45  ;;  %8268 = vst.msk [vmem:[%s10311_s26 + $0x91] ss:$8 sm:$0x7] %vm10299_vm5, %v2148_v63  ;;  %3370 = vrot.lane.b32.xlu1 %v11036_v44, %s9003_s8 }
 0x3e9   : > { %8269 = vst.msk [vmem:[%s10311_s26 + $0xa9] ss:$8 sm:$0x7] %vm10299_vm5, %v2150_v33  ;;  %15443 = vst [vmem:[#allocation37_spill] sm:$0xff] %v11152_v27  ;;  %v11183_v54 = vpop.permute.xlu1 %2849 }
 0x3ea   : > { %3378 = vrot.lane.b32.xlu0 %v11030_v39, %s15178_s9  ;;  %v11159_v39 = vrot.slane %v3454_v4, %v9094_v5  ;;  %15445 = vst [vmem:[#allocation21_spill] sm:$0xff] %v11167_v52  ;;  %v8278_v9 = vld [vmem:[%s9092_s28 + $0x3] ss:$8 sm:$0x7] }
 0x3eb   : > { %v11181_v40 = vpop.permute.xlu0 %2847  ;;  %v8279_v4 = vld [vmem:[%s9092_s28 + $0x43] ss:$8 sm:$0x7]  ;;  %v8273_v52 = vld [vmem:[%s9092_s28 + $0xc2] ss:$8 sm:$0x7] }
 0x3ec   : > { %3380 = vrot.lane.b32.xlu1 %v11036_v44, %s15178_s9  ;;  %v11165_v44 = vcombine.high %v11152_v27, %v11152_v27  ;;  %v11189_v2 = vcombine.low %v11159_v39, %v11159_v39  ;;  %v2407_v31 = vcombine.low %v8278_v9, %v8279_v4  ;;  %v2216_v4 = vcombine.low %v8272_v17, %v8273_v52 }
 0x3ed   : > { %v11199_v59 = vpop.permute.xlu1 %2853 }
 0x3ee   : > { %3382 = vrot.lane.b32.xlu0 %v11054_v50, %s15178_s9  ;;  %15444 = vst [vmem:[#allocation28_spill] sm:$0xff] %v11165_v44  ;;  %v11173_v50 = vcombine.high %v11159_v39, %v11159_v39  ;;  %15447 = vst [vmem:[#allocation35_spill] sm:$0xff] %v11199_v59  ;;  %v8329_v59 = vld [vmem:[%s9092_s28 + $0x85] ss:$8 sm:$0xf]  ;;  %v2415_v9 = vrot.slane %v2407_v31, %v9094_v5  ;;  %v2223_v31 = vrot.slane %v2215_v10, %v9094_v5 }
 0x3ef   : > { %v11193_v34 = vpop.permute.xlu0 %2851  ;;  %v2230_v30 = vrot.slane %v2216_v4, %v9094_v5 }
 0x3f0   : > { %3384 = vrot.lane.b32.xlu1 %v11060_v36, %s15178_s9  ;;  %15446 = vst [vmem:[#allocation32_spill] sm:$0xff] %v11173_v50  ;;  %v11179_v36 = vcombine.low %v11152_v27, %v11152_v27 }
 0x3f1   : > { %v2232_v52 = vcombine.high %v2223_v31, %v2230_v30 }
 0x3f2   : > { %3471 = vrot.lane.b32.xlu0 %v11152_v27, %s8998_s30 }
 0x3f4   : > { %3473 = vrot.lane.b32.xlu1 %v11159_v39, %s8998_s30 }
 0x3f6   : > { %3475 = vrot.lane.b32.xlu0 %v11165_v44, %s8998_s30 }
 0x3f8   : > { %3477 = vrot.lane.b32.xlu1 %v11173_v50, %s8998_s30 }
 0x3fa   : > { %3487 = vrot.lane.b32.xlu0 %v11179_v36, %s15202_s29  ;;  %v11201_v18 = vpop.permute.xlu0 %2855 }
 0x3fc   : > { %3489 = vrot.lane.b32.xlu1 %v11189_v2, %s15202_s29  ;;  %v11207_v16 = vpop.permute.xlu1 %2857 }
 0x3fe   : > { %3491 = vrot.lane.b32.xlu0 %v11152_v27, %s15202_s29 }
 0x3ff   : > { %v11213_v14 = vpop.permute.xlu0 %2859 }
 0x400   : > { %3493 = vrot.lane.b32.xlu1 %v11159_v39, %s15202_s29  ;;  %v11215_v58 = vpop.permute.xlu1 %2861 }
 0x402   : > { %3501 = vrot.lane.b32.xlu0 %v11152_v27, %s8999_s4 }
 0x404   : > { %3503 = vrot.lane.b32.xlu1 %v11159_v39, %s8999_s4 }
 0x406   : > { %3505 = vrot.lane.b32.xlu0 %v11165_v44, %s8999_s4 }
 0x408   : > { %3507 = vrot.lane.b32.xlu1 %v11173_v50, %s8999_s4 }
 0x40a   : > { %3515 = vrot.lane.b32.xlu0 %v11179_v36, %s9000_s5  ;;  %v11221_v63 = vpop.permute.xlu0 %2863 }
 0x40c   : > { %v11223_v45 = vpop.permute.xlu1 %2865  ;;  %3517 = vrot.lane.b32.xlu1 %v11189_v2, %s9000_s5 }
 0x40e   : > { %3519 = vrot.lane.b32.xlu0 %v11152_v27, %s9000_s5 }
 0x40f   : > { %v11229_v33 = vpop.permute.xlu0 %2867 }
 0x410   : > { %v11233_v19 = vpop.permute.xlu1 %2869  ;;  %3521 = vrot.lane.b32.xlu1 %v11159_v39, %s9000_s5 }
 0x412   : > { %3529 = vrot.lane.b32.xlu0 %v11152_v27, %s9001_s6 }
 0x413   : > { %v2872_v35 = vpop.permute.xlu0 %2871 }
 0x414   : > { %v2874_v41 = vpop.permute.xlu1 %2873  ;;  %3531 = vrot.lane.b32.xlu1 %v11159_v39, %s9001_s6 }
 0x416   : > { %3533 = vrot.lane.b32.xlu0 %v11165_v44, %s9001_s6  ;;  %v3648_v44 = vcombine.low %v8329_v59, %v8330_v21  ;;  %v2423_v21 = vcombine.low %v2415_v9, %v2422_v3  ;;  %v2231_v59 = vcombine.low %v2223_v31, %v2230_v30 }
 0x417   : > { %v2876_v56 = vpop.permute.xlu0 %2875 }
 0x418   : > { %3535 = vrot.lane.b32.xlu1 %v11173_v50, %s9001_s6  ;;  %v2878_v61 = vpop.permute.xlu1 %2877  ;;  %v2424_v50 = vcombine.high %v2415_v9, %v2422_v3  ;;  %v3662_v11 = vrot.slane %v3648_v44, %v9094_v5  ;;  %v3622_v44 = vrot.slane %v3614_v12, %v9094_v5  ;;  %v3615_v9 = vcombine.high %v3606_v25, %v3613_v6 }
 0x419   : > { %v2900_v4 = vsel %vm384_vm13, %v2874_v41, %v2876_v56  ;;  %v11298_v6 = vrot.slane %v2232_v52, %v9094_v5  ;;  %v11301_v30 = vrot.slane %v2231_v59, %v9094_v5  ;;  %v2901_v12 = vsel %vm384_vm13, %v2876_v56, %v2878_v61 }
 0x41a   : > { %3543 = vrot.lane.b32.xlu0 %v11179_v36, %s9002_s7  ;;  %v11277_v29 = vrot.slane %v2424_v50, %v9094_v5  ;;  %v3663_v51 = vcombine.low %v3655_v43, %v3662_v11  ;;  %v3664_v31 = vcombine.high %v3655_v43, %v3662_v11  ;;  %v2896_v43 = vsel %vm384_vm13, %v11221_v63, %v11223_v45 }
 0x41b   : > { %v2880_v48 = vpop.permute.xlu0 %2879  ;;  %v2894_v56 = vsel %vm384_vm13, %v11207_v16, %v11213_v14  ;;  %v11332_v63 = vsel %vm292_vm0, %v10503_v32, %v10527_v22  ;;  %v11346_v52 = vsel %vm339_vm15, %v10788_v24, %v10797_v15  ;;  %v11351_v32 = vsel %vm354_vm12, %v10820_v55, %v10832_v7 }
 0x41c   : > { %3545 = vrot.lane.b32.xlu1 %v11189_v2, %s9002_s7  ;;  %v2440_v25 = vcombine.low %v11277_v29, %v11277_v29  ;;  %v11317_v11 = vrot.slane %v3663_v51, %v9094_v5  ;;  %v11325_v61 = vrot.slane %v3664_v31, %v9094_v5  ;;  %v2891_v55 = vsel %vm384_vm13, %v11183_v54, %v11193_v34 }
 0x41e   : > { %3547 = vrot.lane.b32.xlu0 %v11152_v27, %s9002_s7  ;;  %v2882_v17 = vpop.permute.xlu1 %2881 }
 0x41f   : > { %v2884_v53 = vpop.permute.xlu0 %2883  ;;  %v2902_v10 = vsel %vm384_vm13, %v2880_v48, %v2882_v17  ;;  %v2899_v48 = vsel %vm384_vm13, %v2872_v35, %v2874_v41  ;;  %v2897_v35 = vsel %vm384_vm13, %v11223_v45, %v11229_v33  ;;  %v3629_v41 = vrot.slane %v3615_v9, %v9094_v5 }
 0x420   : > { %3549 = vrot.lane.b32.xlu1 %v11159_v39, %s9002_s7  ;;  %v2903_v23 = vsel %vm384_vm13, %v2882_v17, %v2884_v53  ;;  %v11337_v45 = vsel %vm324_vm11, %v10678_v13, %v10706_v0  ;;  %v2898_v13 = vsel %vm384_vm13, %v11229_v33, %v11233_v19  ;;  %v11370_v19 = vcombine.low %v11317_v11, %v11317_v11 }
 0x421   : > { %8294 = vmatprep.subr.msk.mxu0 %vm571_vm1, %v2903_v23  ;;  %v2893_v23 = vsel %vm384_vm13, %v11201_v18, %v11207_v16  ;;  %v11360_v18 = vsel %vm354_vm12, %v10832_v7, %v10836_v28  ;;  %v2895_v33 = vsel %vm384_vm13, %v11213_v14, %v11215_v58  ;;  %v2890_v7 = vsel %vm384_vm13, %v11181_v40, %v11183_v54 }
 0x422   : > { %3585 = vrot.lane.b32.xlu0 %v11179_v36, %s8998_s30  ;;  %v2886_v3 = vpop.permute.xlu1 %2885  ;;  %8295 = vmatpush1.msk.msra.mxu0 %vm571_vm1, %v2902_v10  ;;  %v11291_v36 = vrot.slane %v2423_v21, %v9094_v5  ;;  %v11383_v10 = vcombine.low %v11325_v61, %v11325_v61  ;;  %v2563_v14 = vsel %vm369_vm8, %v10939_v1, %v10941_v26 }
 0x423   : > { %v2904_v50 = vsel %vm384_vm13, %v2884_v53, %v2886_v3  ;;  %v11287_v27 = vpop.permute.xlu0 %3278  ;;  %2932 = vmatprep.subr.mxu0 %v2900_v4  ;;  %v2888_v40 = vsel %vm384_vm13, %v11145_v38, %v11154_v47  ;;  %v2521_v54 = vsel %vm324_vm11, %v10915_v8, %v10917_v60  ;;  %v2562_v58 = vsel %vm369_vm8, %v10937_v37, %v10939_v1  ;;  %v15451_v3 = vld [vmem:[#allocation27_spill] sm:$0xff]  ;;  %v15452_v4 = vld [vmem:[#allocation30_spill] sm:$0xff] }
 0x424   : > { %3587 = vrot.lane.b32.xlu1 %v11189_v2, %s8998_s30  ;;  %2933 = vmatpush1.msra.mxu0 %v2899_v48  ;;  %v3630_v2 = vcombine.high %v3622_v44, %v3622_v44  ;;  %v2439_v21 = vcombine.low %v11291_v36, %v11291_v36  ;;  %v2535_v9 = vsel %vm339_vm15, %v10923_v57, %v10925_v46  ;;  %v15455_v1 = vld [vmem:[#allocation22_spill] sm:$0xff] }
 0x425   : > { %8679 = vmatpush3.msk.msra.mxu1 %vm571_vm1, %v2904_v50  ;;  %2934 = vmatprep.subr.mxu0 %v2897_v35  ;;  %v2549_v51 = vsel %vm354_vm12, %v15452_v4, %v15451_v3  ;;  %v15453_v50 = vld [vmem:[#allocation35_spill] sm:$0xff] }
 0x426   : > { %3631 = vrot.lane.b32.xlu0 %v3622_v44, %s15154_s10  ;;  %8680 = vmatprep.subr.mxu1 %v15252_v62  ;;  %v11311_v17 = vpop.permute.xlu1 %3280  ;;  %v2506_v44 = vsel %vm309_vm10, %v10905_v49, %v10907_v42  ;;  %v2887_v49 = vsel %vm384_vm13, %v11143_v20, %v11145_v38  ;;  %v2892_v48 = vsel %vm384_vm13, %v11193_v34, %v15453_v50  ;;  %v15456_v38 = vld [vmem:[#allocation24_spill] sm:$0xff] }
 0x427   : > { %2935 = vmatpush1.msra.mxu0 %v2896_v43  ;;  %8681 = vmatpush3.msra.mxu1 %v2901_v12  ;;  %v11319_v53 = vpop.permute.xlu0 %3282  ;;  %v2534_v20 = vsel %vm339_vm15, %v15455_v1, %v10923_v57  ;;  %v2548_v31 = vsel %vm354_vm12, %v15456_v38, %v15452_v4  ;;  %v2590_v34 = vsel %vm571_vm1, %v2549_v51, %v2563_v14  ;;  %v15459_v12 = vld [vmem:[#allocation21_spill] sm:$0xff]  ;;  %v15463_v14 = vld [vmem:[#allocation47_spill] sm:$0xff]  ;;  %v15469_v51 = vld [vmem:[#allocation10_spill] sm:$0xff] }
 0x428   : > { %15448 = vst [vmem:[#allocation39_spill] sm:$0xff] %v11319_v53  ;;  %2936 = vmatprep.subr.mxu0 %v2894_v56  ;;  %8682 = vmatprep.subr.mxu1 %v15252_v62  ;;  %v2589_v57 = vsel %vm571_vm1, %v2548_v31, %v2562_v58  ;;  %v2889_v43 = vsel %vm384_vm13, %v11154_v47, %v15459_v12  ;;  %v15460_v56 = vld [vmem:[#allocation14_spill] sm:$0xff]  ;;  %v15466_v58 = vld [vmem:[#allocation9_spill] sm:$0xff]  ;;  %v15471_v38 = vld [vmem:[#allocation36_spill] sm:$0xff] }
 0x429   : > { %3633 = vrot.lane.b32.xlu1 %v3629_v41, %s15154_s10  ;;  %2937 = vmatpush1.msra.mxu0 %v2893_v23  ;;  %v15458_v41 = vld [vmem:[#allocation41_spill] sm:$0xff]  ;;  %v2507_v23 = vsel %vm309_vm10, %v10907_v42, %v15460_v56  ;;  %v2550_v47 = vsel %vm354_vm12, %v15451_v3, %v15463_v14  ;;  %v2397_v50 = vsel %vm15161_vm14, %v15469_v51, %v15466_v58  ;;  %v15480_v14 = vld [vmem:[#allocation46_spill] sm:$0xff] }
 0x42a   : > { %8683 = vmatpush3.msra.mxu1 %v2898_v13  ;;  %3635 = vrot.lane.b32.xlu0 %v3630_v2, %s15154_s10  ;;  %v11366_v16 = vpop.permute.xlu1 %3284  ;;  %v2564_v2 = vsel %vm369_vm8, %v10941_v26, %v15458_v41  ;;  %v15461_v13 = vld [vmem:[#allocation25_spill] sm:$0xff]  ;;  %v2587_v26 = vsel %vm571_vm1, %v2521_v54, %v2535_v9  ;;  %v15467_v54 = vld [vmem:[#allocation26_spill] sm:$0xff]  ;;  %v15468_v9 = vld [vmem:[#allocation31_spill] sm:$0xff]  ;;  %v2508_v31 = vsel %vm309_vm10, %v15460_v56, %v15471_v38 }
 0x42b   : > { %15449 = vst [vmem:[#allocation48_spill] sm:$0xff] %v11366_v16  ;;  %2938 = vmatprep.subr.mxu0 %v2891_v55  ;;  %8684 = vmatprep.subr.mxu1 %v15252_v62  ;;  %v11379_v59 = vpop.permute.xlu0 %3294  ;;  %v2520_v55 = vsel %vm324_vm11, %v15461_v13, %v10915_v8  ;;  %v15465_v8 = vld [vmem:[#allocation45_spill] sm:$0xff]  ;;  %v2491_v4 = vsel %vm292_vm0, %v15468_v9, %v15467_v54  ;;  %v15483_v9 = vld [vmem:[#allocation18_spill] sm:$0xff] }
 0x42c   : > { %15450 = vst [vmem:[#allocation42_spill] sm:$0xff] %v11379_v59  ;;  %2939 = vmatpush1.msra.mxu0 %v2890_v7  ;;  %8685 = vmatpush3.msra.mxu1 %v2895_v33  ;;  %v15462_v33 = vld [vmem:[#allocation33_spill] sm:$0xff]  ;;  %v2586_v42 = vsel %vm571_vm1, %v2520_v55, %v2534_v20  ;;  %v2584_v20 = vsel %vm571_vm1, %v2491_v4, %v2507_v23 }
 0x42d   : > { %2940 = vmatprep.subr.mxu0 %v2888_v40  ;;  %8686 = vmatprep.subr.mxu1 %v15252_v62  ;;  %v2536_v7 = vsel %vm339_vm15, %v10925_v46, %v15462_v33  ;;  %v2591_v46 = vsel %vm571_vm1, %v2550_v47, %v2564_v2  ;;  %v2580_v29 = vsel %vm571_vm1, %v2397_v50, %v2439_v21 }
 0x42e   : > { %3681 = vrot.lane.b32.xlu1 %v11370_v19, %s15129_s11  ;;  %2941 = vmatpush1.msra.mxu0 %v2887_v49  ;;  %v11415_v37 = vpop.permute.xlu1 %3296  ;;  %v2398_v49 = vsel %vm15161_vm14, %v15466_v58, %v15465_v8  ;;  %v11530_v51 = vcombine.high %v11325_v61, %v11325_v61 }
 0x42f   : > { %15454 = vst [vmem:[#allocation27_spill] sm:$0xff] %v11415_v37  ;;  %8687 = vmatpush3.msra.mxu1 %v2892_v48  ;;  %3683 = vrot.lane.b32.xlu0 %v11383_v10, %s15129_s11  ;;  %v11426_v35 = vpop.permute.xlu0 %3298  ;;  %v15470_v48 = vld [vmem:[#allocation29_spill] sm:$0xff]  ;;  %v2581_v56 = vsel %vm571_vm1, %v2398_v49, %v2440_v25  ;;  %v15479_v25 = vld [vmem:[#allocation7_spill] sm:$0xff] }
 0x430   : > { %15457 = vst [vmem:[#allocation30_spill] sm:$0xff] %v11426_v35  ;;  %2942 = vmatprep.subr.mxu0 %v2590_v34  ;;  %8688 = vmatprep.subr.mxu1 %v15252_v62  ;;  %v2522_v1 = vsel %vm324_vm11, %v10917_v60, %v15470_v48  ;;  %v15472_v34 = vld [vmem:[#allocation34_spill] sm:$0xff]  ;;  %v15474_v60 = vld [vmem:[#allocation20_spill] sm:$0xff]  ;;  %v2369_v47 = vsel %vm369_vm8, %v15480_v14, %v15479_v25  ;;  %v15485_v48 = vld [vmem:[#allocation5_spill] sm:$0xff] }
 0x431   : > { %2943 = vmatpush1.msra.mxu0 %v2589_v57  ;;  %8689 = vmatpush3.msra.mxu1 %v2889_v43  ;;  %v2583_v41 = vsel %vm571_vm1, %v15472_v34, %v2506_v44  ;;  %v2588_v2 = vsel %vm571_vm1, %v2522_v1, %v2536_v7  ;;  %v15473_v57 = vld [vmem:[#allocation23_spill] sm:$0xff]  ;;  %v15475_v43 = vld [vmem:[#allocation13_spill] sm:$0xff]  ;;  %v2328_v1 = vsel %vm324_vm11, %v10706_v0, %v15485_v48 }
 0x432   : > { %2944 = vmatprep.subr.mxu0 %v2587_v26  ;;  %8690 = vmatprep.subr.mxu1 %v15252_v62  ;;  %v11451_v40 = vpop.permute.xlu1 %3300  ;;  %v2383_v12 = vsel %vm384_vm13, %v15474_v60, %v15473_v57  ;;  %v2384_v23 = vsel %vm384_vm13, %v15473_v57, %v15475_v43  ;;  %v15476_v44 = vld [vmem:[#allocation15_spill] sm:$0xff]  ;;  %v15477_v26 = vld [vmem:[#allocation16_spill] sm:$0xff]  ;;  %v2385_v4 = vsel %vm384_vm13, %v15475_v43, %v15483_v9  ;;  %v15488_v34 = vld [vmem:[#allocation17_spill] sm:$0xff] }
 0x433   : > { %15464 = vst [vmem:[#allocation35_spill] sm:$0xff] %v11451_v40  ;;  %3685 = vrot.lane.b32.xlu1 %v11317_v11, %s15129_s11  ;;  %2945 = vmatpush1.msra.mxu0 %v2586_v42  ;;  %v11462_v3 = vpop.permute.xlu0 %3308  ;;  %v2399_v55 = vsel %vm15161_vm14, %v15465_v8, %v15476_v44  ;;  %v2492_v33 = vsel %vm292_vm0, %v15467_v54, %v15477_v26  ;;  %v15481_v42 = vld [vmem:[#allocation11_spill] sm:$0xff]  ;;  %v15490_v57 = vld [vmem:[#allocation50_spill] sm:$0xff]  ;;  %v15492_v60 = vld [vmem:[#allocation44_spill] sm:$0xff] }
 0x434   : > { %8691 = vmatpush3.msra.mxu1 %v2591_v46  ;;  %3687 = vrot.lane.b32.xlu0 %v11325_v61, %s15129_s11  ;;  %v2370_v8 = vsel %vm369_vm8, %v15479_v25, %v15481_v42  ;;  %v2585_v58 = vsel %vm571_vm1, %v2492_v33, %v2508_v31  ;;  %v2577_v49 = vsel %vm571_vm1, %v2369_v47, %v2383_v12  ;;  %v15493_v43 = vld [vmem:[#allocation52_spill] sm:$0xff]  ;;  %v15496_v47 = vld [vmem:[#allocation51_spill] sm:$0xff]  ;;  %v8929_v9 = vld [vmem:[%s15053_s1] sm:$0xff]  ;;  %s15563_s11 = smov 36  }
 0x435   : > { %2946 = vmatprep.subr.mxu0 %v2584_v20  ;;  %8692 = vmatprep.subr.mxu1 %v15252_v62  ;;  %v2578_v21 = vsel %vm571_vm1, %v2370_v8, %v2384_v23  ;;  %v11520_v54 = vcombine.high %v11317_v11, %v11317_v11  ;;  %v2582_v46 = vsel %vm571_vm1, %v2399_v55, %v11291_v36  ;;  %v15486_v20 = vld [vmem:[#allocation12_spill] sm:$0xff]  ;;  %v15497_v8 = vld [vmem:[#allocation49_spill] sm:$0xff] }
 0x436   : > { %2947 = vmatpush1.msra.mxu0 %v2583_v41  ;;  %8693 = vmatpush3.msra.mxu1 %v2588_v2  ;;  %v11490_v13 = vpop.permute.xlu1 %3310  ;;  %v2341_v38 = vsel %vm339_vm15, %v15486_v20, %v10788_v24  ;;  %v2575_v36 = vsel %vm571_vm1, %v11346_v52, %v11360_v18  ;;  %v2357_v41 = vsel %vm354_vm12, %v10836_v28, %v15488_v34  ;;  %v15489_v2 = vld [vmem:[#allocation19_spill] sm:$0xff]  ;;  %v15491_v18 = vld [vmem:[#allocation6_spill] sm:$0xff]  ;;  %v15495_v55 = vld [vmem:[#allocation8_spill] sm:$0xff] }
 0x437   : > { %2948 = vmatprep.subr.mxu0 %v2581_v56  ;;  %8694 = vmatprep.subr.mxu1 %v15252_v62  ;;  %v11503_v7 = vpop.permute.xlu0 %3312  ;;  %v2371_v0 = vsel %vm369_vm8, %v15481_v42, %v15489_v2  ;;  %v2574_v24 = vsel %vm571_vm1, %v2341_v38, %v11351_v32  ;;  %v2298_v52 = vsel %vm292_vm0, %v10527_v22, %v15490_v57  ;;  %v15494_v56 = vld [vmem:[#allocation40_spill] sm:$0xff]  ;;  %v15526_v37 = vld [vmem:[#allocation37_spill] sm:$0xff] }
 0x438   : > { %15478 = vst [vmem:[#allocation22_spill] sm:$0xff] %v11503_v7  ;;  %3698 = vrot.lane.b32.xlu1 %v11317_v11, %s15482_s17  ;;  %2949 = vmatpush1.msra.mxu0 %v2580_v29  ;;  %v2314_v12 = vsel %vm309_vm10, %v15492_v60, %v15491_v18  ;;  %v2579_v28 = vsel %vm571_vm1, %v2371_v0, %v2385_v4 }
 0x439   : > { %8695 = vmatpush3.msra.mxu1 %v2585_v58  ;;  %3700 = vrot.lane.b32.xlu0 %v11325_v61, %s15482_s17  ;;  %v2313_v23 = vsel %vm309_vm10, %v15493_v43, %v15492_v60  ;;  %v2343_v32 = vsel %vm339_vm15, %v10797_v15, %v15494_v56  ;;  %v2572_v22 = vsel %vm571_vm1, %v2314_v12, %v2328_v1 }
 0x43a   : > { %2950 = vmatprep.subr.mxu0 %v2578_v21  ;;  %8696 = vmatprep.subr.mxu1 %v15252_v62  ;;  %v11532_v50 = vpop.permute.xlu1 %3314  ;;  %v2329_v26 = vsel %vm324_vm11, %v15485_v48, %v15495_v55  ;;  %v2571_v33 = vsel %vm571_vm1, %v2313_v23, %v11337_v45  ;;  %v2576_v15 = vsel %vm571_vm1, %v2343_v32, %v2357_v41 }
 0x43b   : > { %15484 = vst [vmem:[#allocation24_spill] sm:$0xff] %v11532_v50  ;;  %2951 = vmatpush1.msra.mxu0 %v2577_v49  ;;  %8697 = vmatpush3.msra.mxu1 %v2582_v46  ;;  %v11543_v31 = vpop.permute.xlu0 %3322  ;;  %v2569_v25 = vsel %vm571_vm1, %v11298_v6, %v2298_v52  ;;  %v2247_v14 = vcombine.high %v11301_v30, %v11301_v30 }
 0x43c   : > { %15487 = vst [vmem:[#allocation41_spill] sm:$0xff] %v11543_v31  ;;  %2952 = vmatprep.subr.mxu0 %v2575_v36  ;;  %8698 = vmatprep.subr.mxu1 %v15252_v62  ;;  %v2299_v42 = vsel %vm292_vm0, %v15490_v57, %v15496_v47  ;;  %v2315_v45 = vsel %vm309_vm10, %v15491_v18, %v15497_v8  ;;  %v15529_v31 = vld [vmem:[#allocation28_spill] sm:$0xff] }
 0x43d   : > { %3702 = vrot.lane.b32.xlu1 %v11520_v54, %s15482_s17  ;;  %2953 = vmatpush1.msra.mxu0 %v2574_v24  ;;  %v2568_v58 = vsel %vm571_vm1, %v11301_v30, %v11332_v63  ;;  %v2573_v6 = vsel %vm571_vm1, %v2315_v45, %v2329_v26  ;;  %v2570_v30 = vsel %vm571_vm1, %v2247_v14, %v2299_v42 }
 0x43e   : > { %8699 = vmatpush3.msra.mxu1 %v2579_v28  ;;  %3704 = vrot.lane.b32.xlu0 %v11530_v51, %s15482_s17  ;;  %v11572_v44 = vpop.permute.xlu1 %3324 }
 0x43f   : > { %2954 = vmatprep.subr.mxu0 %v2572_v22  ;;  %8700 = vmatprep.subr.mxu1 %v15252_v62  ;;  %v11581_v29 = vpop.permute.xlu0 %3326 }
 0x440   : > { %2955 = vmatpush1.msra.mxu0 %v2571_v33  ;;  %8701 = vmatpush3.msra.mxu1 %v2576_v15 }
 0x441   : > { %2956 = vmatprep.subr.mxu0 %v2569_v25  ;;  %8702 = vmatprep.subr.mxu1 %v15252_v62 }
 0x442   : > { %3713 = vrot.lane.b32.xlu1 %v11370_v19, %s9008_s19  ;;  %2957 = vmatpush1.msra.mxu0 %v2568_v58  ;;  %v11600_v21 = vpop.permute.xlu1 %3328 }
 0x443   : > { %15498 = vst [vmem:[#allocation21_spill] sm:$0xff] %v11600_v21  ;;  %8703 = vmatpush3.msra.mxu1 %v2573_v6  ;;  %3715 = vrot.lane.b32.xlu0 %v11383_v10, %s9008_s19  ;;  %v11604_v49 = vpop.permute.xlu0 %3336 }
 0x444   : > { %8296 = vmatmul.mubr.msk.f32.vlgmr.msra.gmra.mxu0 %vm354_vm12, %v8929_v9  ;;  %8704 = vmatprep.subr.mxu1 %v15252_v62 }
 0x445   : > { %8705 = vmatpush3.msra.mxu1 %v2570_v30  ;;  %3979 = vmatprep.mubr.f32.mxu0 %v15252_v62 }
 0x446   : > { %8707 = vmatmul.mubr.msk.f32.vlgmr.msra.gmra.mxu1 %vm354_vm12, %v8929_v9  ;;  %3717 = vrot.lane.b32.xlu1 %v11317_v11, %s9008_s19  ;;  %v11616_v63 = vpop.permute.xlu1 %3338 }
 0x447   : > { %3719 = vrot.lane.b32.xlu0 %v11325_v61, %s9008_s19  ;;  %v11620_v4 = vpop.permute.xlu0 %3340  ;;  %8709 = vmatprep.subr.mxu1 %v15252_v62 }
 0x448   : > { %8737 = vmatprep.mubr.msk.f32.mxu1 %vm15136_vm9, %v15252_v62 }
 0x44a   : > { %3728 = vrot.lane.b32.xlu1 %v11317_v11, %s9009_s20  ;;  %v11627_v46 = vpop.permute.xlu1 %3342 }
 0x44b   : > { %15499 = vst [vmem:[#allocation14_spill] sm:$0xff] %v11627_v46  ;;  %3730 = vrot.lane.b32.xlu0 %v11325_v61, %s9009_s20  ;;  %v11631_v48 = vpop.permute.xlu0 %3350 }
 0x44c   : > { %15500 = vst [vmem:[#allocation25_spill] sm:$0xff] %v11631_v48 }
 0x44e   : > { %3732 = vrot.lane.b32.xlu1 %v11520_v54, %s9009_s20  ;;  %v11635_v1 = vpop.permute.xlu1 %3352 }
 0x44f   : > { %15501 = vst [vmem:[#allocation33_spill] sm:$0xff] %v11635_v1  ;;  %3734 = vrot.lane.b32.xlu0 %v11530_v51, %s9009_s20  ;;  %v11639_v20 = vpop.permute.xlu0 %3354 }
 0x450   : > { %15502 = vst [vmem:[#allocation47_spill] sm:$0xff] %v11639_v20 }
 0x452   : > { %3743 = vrot.lane.b32.xlu1 %v11370_v19, %s9010_s24  ;;  %v11643_v38 = vpop.permute.xlu1 %3356 }
 0x453   : > { %15503 = vst [vmem:[#allocation45_spill] sm:$0xff] %v11643_v38  ;;  %3745 = vrot.lane.b32.xlu0 %v11383_v10, %s9010_s24  ;;  %v11647_v36 = vpop.permute.xlu0 %3364 }
 0x454   : > { %15504 = vst [vmem:[#allocation9_spill] sm:$0xff] %v11647_v36  ;;  %v8318_v36 = vld [vmem:[%s9092_s28 + $0xc4] ss:$8 sm:$0x7] }
 0x456   : > { %3747 = vrot.lane.b32.xlu1 %v11317_v11, %s9010_s24  ;;  %v11651_v34 = vpop.permute.xlu1 %3366 }
 0x457   : > { %15505 = vst [vmem:[#allocation26_spill] sm:$0xff] %v11651_v34  ;;  %3749 = vrot.lane.b32.xlu0 %v11325_v61, %s9010_s24  ;;  %v8360_v34 = vld [vmem:[%s9092_s28 + $0x6] ss:$8 sm:$0x7] }
 0x458   : > { %v11655_v41 = vpop.permute.xlu0 %3368 }
 0x459   : > { %15506 = vst [vmem:[#allocation31_spill] sm:$0xff] %v11655_v41  ;;  %v8317_v41 = vld [vmem:[%s9092_s28 + $0x84] ss:$8 sm:$0x7] }
 0x45a   : > { %3758 = vrot.lane.b32.xlu1 %v11317_v11, %s9011_s25  ;;  %v11659_v2 = vpop.permute.xlu1 %3370 }
 0x45b   : > { %15507 = vst [vmem:[#allocation10_spill] sm:$0xff] %v11659_v2  ;;  %3760 = vrot.lane.b32.xlu0 %v11325_v61, %s9011_s25 }
 0x45c   : > { %v11663_v0 = vpop.permute.xlu0 %3378 }
 0x45d   : > { %15508 = vst [vmem:[#allocation29_spill] sm:$0xff] %v11663_v0 }
 0x45e   : > { %3762 = vrot.lane.b32.xlu1 %v11520_v54, %s9011_s25  ;;  %v11667_v24 = vpop.permute.xlu1 %3380 }
 0x45f   : > { %15509 = vst [vmem:[#allocation36_spill] sm:$0xff] %v11667_v24  ;;  %3764 = vrot.lane.b32.xlu0 %v11530_v51, %s9011_s25  ;;  %v3397_v24 = vcombine.low %v8317_v41, %v8318_v36 }
 0x460   : > { %v11671_v57 = vpop.permute.xlu0 %3382 }
 0x461   : > { %15510 = vst [vmem:[#allocation34_spill] sm:$0xff] %v11671_v57  ;;  %v8307_v57 = vld [vmem:[%s9092_s28 + $0x3] ss:$8 sm:$0x7]  ;;  %v3411_v36 = vrot.slane %v3397_v24, %v9094_v5 }
 0x462   : > { %3777 = vrot.lane.b32.xlu1 %v11317_v11, %s8998_s30  ;;  %v11675_v52 = vpop.permute.xlu1 %3384 }
 0x463   : > { %15511 = vst [vmem:[#allocation23_spill] sm:$0xff] %v11675_v52  ;;  %3779 = vrot.lane.b32.xlu0 %v11325_v61, %s8998_s30 }
 0x464   : > { %v3472_v18 = vpop.permute.xlu0 %3471 }
 0x466   : > { %3781 = vrot.lane.b32.xlu1 %v11520_v54, %s8998_s30  ;;  %v11681_v60 = vpop.permute.xlu1 %3473 }
 0x467   : > { %15512 = vst [vmem:[#allocation20_spill] sm:$0xff] %v11681_v60  ;;  %3783 = vrot.lane.b32.xlu0 %v11530_v51, %s8998_s30  ;;  %v11739_v53 = vsel %vm292_vm0, %v3472_v18, %v11681_v60 }
 0x468   : > { %v11685_v12 = vpop.permute.xlu0 %3475  ;;  %15527 = vst [vmem:[#allocation44_spill] sm:$0xff] %v11739_v53 }
 0x469   : > { %15513 = vst [vmem:[#allocation13_spill] sm:$0xff] %v11685_v12 }
 0x46a   : > { %v11687_v28 = vpop.permute.xlu1 %3477 }
 0x46b   : > { %15514 = vst [vmem:[#allocation15_spill] sm:$0xff] %v11687_v28 }
 0x46c   : > { %v11689_v43 = vpop.permute.xlu0 %3487 }
 0x46e   : > { %v11691_v23 = vpop.permute.xlu1 %3489 }
 0x470   : > { %v11693_v56 = vpop.permute.xlu0 %3491 }
 0x471   : > { %15515 = vst [vmem:[#allocation16_spill] sm:$0xff] %v11693_v56  ;;  %v8309_v56 = vld [vmem:[%s9092_s28 + $0x83] ss:$8 sm:$0x7] }
 0x472   : > { %v11695_v32 = vpop.permute.xlu1 %3493 }
 0x473   : > { %15516 = vst [vmem:[#allocation7_spill] sm:$0xff] %v11695_v32  ;;  %v8362_v32 = vld [vmem:[%s9092_s28 + $0x86] ss:$8 sm:$0x7] }
 0x474   : > { %v11697_v22 = vpop.permute.xlu0 %3501 }
 0x475   : > { %15517 = vst [vmem:[#allocation46_spill] sm:$0xff] %v11697_v22 }
 0x476   : > { %v11699_v54 = vpop.permute.xlu1 %3503 }
 0x478   : > { %v11701_v55 = vpop.permute.xlu0 %3505 }
 0x47a   : > { %v11703_v26 = vpop.permute.xlu1 %3507 }
 0x47b   : > { %15518 = vst [vmem:[#allocation11_spill] sm:$0xff] %v11703_v26  ;;  %v8363_v26 = vld [vmem:[%s9092_s28 + $0xc6] ss:$8 sm:$0x7] }
 0x47c   : > { %v11705_v51 = vpop.permute.xlu0 %3515  ;;  %v4588_v22 = vcombine.low %v8362_v32, %v8363_v26 }
 0x47d   : > { %15519 = vst [vmem:[#allocation18_spill] sm:$0xff] %v11705_v51 }
 0x47e   : > { %v11707_v33 = vpop.permute.xlu1 %3517 }
 0x480   : > { %v11709_v15 = vpop.permute.xlu0 %3519 }
 0x482   : > { %v11711_v25 = vpop.permute.xlu1 %3521 }
 0x483   : > { %15520 = vst [vmem:[#allocation5_spill] sm:$0xff] %v11711_v25 }
 0x484   : > { %v11713_v14 = vpop.permute.xlu0 %3529 }
 0x485   : > { %15521 = vst [vmem:[#allocation12_spill] sm:$0xff] %v11713_v14  ;;  %v8365_v14 = vld [vmem:[%s9092_s28 + $0x46] ss:$8 sm:$0xf] }
 0x486   : > { %v11715_v47 = vpop.permute.xlu1 %3531 }
 0x487   : > { %15522 = vst [vmem:[#allocation17_spill] sm:$0xff] %v11715_v47  ;;  %v8367_v47 = vld [vmem:[%s9092_s28 + $0xc6] ss:$8 sm:$0xf] }
 0x488   : > { %v11717_v42 = vpop.permute.xlu0 %3533 }
 0x489   : > { %15523 = vst [vmem:[#allocation19_spill] sm:$0xff] %v11717_v42 }
 0x48a   : > { %v11719_v8 = vpop.permute.xlu1 %3535 }
 0x48b   : > { %15524 = vst [vmem:[#allocation50_spill] sm:$0xff] %v11719_v8  ;;  %v8308_v8 = vld [vmem:[%s9092_s28 + $0x43] ss:$8 sm:$0x7] }
 0x48c   : > { %v11721_v45 = vpop.permute.xlu0 %3543  ;;  %v3204_v41 = vcombine.low %v8307_v57, %v8308_v8 }
 0x48e   : > { %v11723_v58 = vpop.permute.xlu1 %3545 }
 0x490   : > { %v11725_v6 = vpop.permute.xlu0 %3547 }
 0x492   : > { %v11727_v9 = vpop.permute.xlu1 %3549 }
 0x493   : > { %15525 = vst [vmem:[#allocation6_spill] sm:$0xff] %v11727_v9  ;;  %v8364_v9 = vld [vmem:[%s9092_s28 + $0x6] ss:$8 sm:$0xf] }
 0x494   : > { %v3586_v30 = vpop.permute.xlu0 %3585  ;;  %v4636_v26 = vcombine.low %v8364_v9, %v8365_v14 }
 0x496   : > { %v3588_v40 = vpop.permute.xlu1 %3587 }
 0x497   : > { %v3589_v16 = vsel %vm292_vm0, %v3586_v30, %v3588_v40  ;;  %v3590_v50 = vsel %vm292_vm0, %v3588_v40, %v3472_v18  ;;  %v15528_v30 = vld [vmem:[#allocation32_spill] sm:$0xff] }
 0x498   : > { %v3632_v21 = vpop.permute.xlu0 %3631  ;;  %v3789_v59 = vsel %vm571_vm1, %v11159_v39, %v3590_v50  ;;  %v3788_v35 = vsel %vm571_vm1, %v15526_v37, %v3589_v16  ;;  %v3791_v40 = vsel %vm571_vm1, %v15528_v30, %v11681_v60  ;;  %v3790_v39 = vsel %vm571_vm1, %v15529_v31, %v11739_v53  ;;  %v8361_v53 = vld [vmem:[%s9092_s28 + $0x46] ss:$8 sm:$0x7] }
 0x499   : > { %3830 = vrot.lane.b32.xlu0 %v3789_v59, %s9003_s8  ;;  %3828 = vrot.lane.b32.xlu1 %v3788_v35, %s9003_s8  ;;  %v4587_v25 = vcombine.low %v8360_v34, %v8361_v53  ;;  %v4602_v34 = vrot.slane %v4588_v22, %v9094_v5 }
 0x49b   : > { %v3634_v38 = vpop.permute.xlu1 %3633  ;;  %v4595_v53 = vrot.slane %v4587_v25, %v9094_v5  ;;  %v4644_v25 = vrot.slane %v4636_v26, %v9094_v5 }
 0x49c   : > { %v3636_v46 = vpop.permute.xlu0 %3635  ;;  %v3637_v35 = vsel %vm15530_vm7, %v3632_v21, %v3634_v38  ;;  %vm15535_vm7 = vcmask 285696  }
 0x49d   : > { %3834 = vrot.lane.b32.xlu0 %v3791_v40, %s9003_s8  ;;  %3832 = vrot.lane.b32.xlu1 %v3790_v39, %s9003_s8  ;;  %v3638_v31 = vsel %vm15532_vm4, %v3634_v38, %v3636_v46  ;;  %vm15537_vm4 = vmmov %vm15535_vm7  ;;  %v4603_v57 = vcombine.low %v4595_v53, %v4602_v34 }
 0x4a0   : > { %v3682_v16 = vpop.permute.xlu1 %3681 }
 0x4a1   : > { %v3684_v59 = vpop.permute.xlu0 %3683  ;;  %v3792_v37 = vsel %vm571_vm1, %v3632_v21, %v3682_v16 }
 0x4a2   : > { %v3689_v50 = vsel %vm15531_vm3, %v3682_v16, %v3684_v59  ;;  %3836 = vrot.lane.b32.xlu1 %v3792_v37, %s9003_s8  ;;  %vm15536_vm3 = vcmask 154624  }
 0x4a3   : > { %v3793_v18 = vsel %vm571_vm1, %v3637_v35, %v3689_v50 }
 0x4a4   : > { %3838 = vrot.lane.b32.xlu0 %v3793_v18, %s9003_s8 }
 0x4a5   : > { %v3686_v30 = vpop.permute.xlu1 %3685 }
 0x4a6   : > { %v3690_v40 = vsel %vm15533_vm2, %v3684_v59, %v3686_v30  ;;  %v3688_v39 = vpop.permute.xlu0 %3687  ;;  %vm15538_vm2 = vmmov %vm15536_vm3 }
 0x4a7   : > { %v3691_v7 = vsel %vm15534_vm6, %v3686_v30, %v3688_v39  ;;  %v3794_v2 = vsel %vm571_vm1, %v3638_v31, %v3690_v40  ;;  %vm15539_vm6 = vmmov %vm15537_vm4 }
 0x4a8   : > { %3840 = vrot.lane.b32.xlu1 %v3794_v2, %s9003_s8  ;;  %v3795_v21 = vsel %vm571_vm1, %v3636_v46, %v3691_v7  ;;  %vm15540_vm9 = vmmov %vm15538_vm2 }
 0x4a9   : > { %3842 = vrot.lane.b32.xlu0 %v3795_v21, %s9003_s8 }
 0x4aa   : > { %v3699_v16 = vpop.permute.xlu1 %3698 }
 0x4ab   : > { %v3701_v37 = vpop.permute.xlu0 %3700 }
 0x4ac   : > { %v3706_v59 = vsel %vm15535_vm7, %v3699_v16, %v3701_v37  ;;  %vm15542_vm7 = vcmask 138240  }
 0x4af   : > { %v3703_v35 = vpop.permute.xlu1 %3702 }
 0x4b0   : > { %v3705_v50 = vpop.permute.xlu0 %3704  ;;  %v3707_v7 = vsel %vm15537_vm4, %v3701_v37, %v3703_v35  ;;  %vm15544_vm4 = vmmov %vm15542_vm7 }
 0x4b1   : > { %v3708_v39 = vsel %vm15539_vm6, %v3703_v35, %v3705_v50  ;;  %vm15546_vm6 = vmmov %vm15544_vm4 }
 0x4b4   : > { %v3714_v18 = vpop.permute.xlu1 %3713 }
 0x4b5   : > { %v3716_v20 = vpop.permute.xlu0 %3715  ;;  %v3796_v38 = vsel %vm571_vm1, %v3699_v16, %v3714_v18 }
 0x4b6   : > { %v3721_v30 = vsel %vm15536_vm3, %v3714_v18, %v3716_v20  ;;  %3844 = vrot.lane.b32.xlu1 %v3796_v38, %s9003_s8 }
 0x4b7   : > { %v3797_v2 = vsel %vm571_vm1, %v3706_v59, %v3721_v30 }
 0x4b8   : > { %v3718_v31 = vpop.permute.xlu1 %3717  ;;  %3846 = vrot.lane.b32.xlu0 %v3797_v2, %s9003_s8 }
 0x4b9   : > { %v3722_v46 = vsel %vm15538_vm2, %v3716_v20, %v3718_v31  ;;  %v3720_v40 = vpop.permute.xlu0 %3719 }
 0x4ba   : > { %v3723_v21 = vsel %vm15540_vm9, %v3718_v31, %v3720_v40  ;;  %v3798_v16 = vsel %vm571_vm1, %v3707_v7, %v3722_v46  ;;  %vm15541_vm9 = vcmask 146432   ;;  %v8348_v46 = vld [vmem:[%s9092_s28 + $0x4] ss:$8 sm:$0xf] }
 0x4bb   : > { %3848 = vrot.lane.b32.xlu1 %v3798_v16, %s9003_s8  ;;  %v3799_v18 = vsel %vm571_vm1, %v3708_v39, %v3723_v21  ;;  %v8349_v40 = vld [vmem:[%s9092_s28 + $0x44] ss:$8 sm:$0xf]  ;;  %vm15543_vm3 = vmmov %vm15541_vm9 }
 0x4bc   : > { %v3729_v38 = vpop.permute.xlu1 %3728  ;;  %3850 = vrot.lane.b32.xlu0 %v3799_v18, %s9003_s8  ;;  %v8350_v21 = vld [vmem:[%s9092_s28 + $0x84] ss:$8 sm:$0xf]  ;;  %vm15545_vm2 = vmmov %vm15543_vm3 }
 0x4bd   : > { %v3731_v37 = vpop.permute.xlu0 %3730  ;;  %v8351_v16 = vld [vmem:[%s9092_s28 + $0xc4] ss:$8 sm:$0xf] }
 0x4be   : > { %v3736_v2 = vsel %vm15541_vm9, %v3729_v38, %v3731_v37  ;;  %v4234_v28 = vcombine.low %v8350_v21, %v8351_v16  ;;  %vm15547_vm9 = vcmask 7168  }
 0x4c0   : > { %v3733_v20 = vpop.permute.xlu1 %3732 }
 0x4c1   : > { %v3735_v59 = vpop.permute.xlu0 %3734  ;;  %v3737_v18 = vsel %vm15543_vm3, %v3731_v37, %v3733_v20 }
 0x4c4   : > { %v3744_v30 = vpop.permute.xlu1 %3743 }
 0x4c5   : > { %v3746_v35 = vpop.permute.xlu0 %3745  ;;  %v3800_v50 = vsel %vm571_vm1, %v3729_v38, %v3744_v30  ;;  %v3738_v38 = vsel %vm15545_vm2, %v3733_v20, %v3735_v59  ;;  %v4248_v20 = vrot.slane %v4234_v28, %v9094_v5  ;;  %vm15640_vm2 = vcmask 302080  }
 0x4c6   : > { %v3751_v31 = vsel %vm15542_vm7, %v3744_v30, %v3746_v35  ;;  %3852 = vrot.lane.b32.xlu1 %v3800_v50, %s9003_s8  ;;  %vm15548_vm7 = vmmov %vm15547_vm9 }
 0x4c7   : > { %v3801_v7 = vsel %vm571_vm1, %v3736_v2, %v3751_v31  ;;  %v4233_v31 = vcombine.low %v8348_v46, %v8349_v40  ;;  %vm15549_vm3 = vmmov %vm15548_vm7 }
 0x4c8   : > { %v3748_v39 = vpop.permute.xlu1 %3747  ;;  %3854 = vrot.lane.b32.xlu0 %v3801_v7, %s9003_s8 }
 0x4c9   : > { %v3752_v48 = vsel %vm15544_vm4, %v3746_v35, %v3748_v39  ;;  %v3750_v1 = vpop.permute.xlu0 %3749  ;;  %vm15608_vm4 = vmmov 0  }
 0x4ca   : > { %v3753_v30 = vsel %vm15546_vm6, %v3748_v39, %v3750_v1  ;;  %v3802_v50 = vsel %vm571_vm1, %v3737_v18, %v3752_v48  ;;  %v4241_v1 = vrot.slane %v4233_v31, %v9094_v5  ;;  %vm15641_vm6 = vcmask 293888  }
 0x4cb   : > { %3856 = vrot.lane.b32.xlu1 %v3802_v50, %s9003_s8  ;;  %v3803_v2 = vsel %vm571_vm1, %v3738_v38, %v3753_v30 }
 0x4cc   : > { %v3759_v7 = vpop.permute.xlu1 %3758  ;;  %3858 = vrot.lane.b32.xlu0 %v3803_v2, %s9003_s8  ;;  %v4249_v21 = vcombine.low %v4241_v1, %v4248_v20  ;;  %v4250_v38 = vcombine.high %v4241_v1, %v4248_v20  ;;  %v15550_v1 = vld [vmem:[#allocation38_spill] sm:$0xff] }
 0x4cd   : > { %v3761_v52 = vpop.permute.xlu0 %3760  ;;  %v3804_v37 = vsel %vm571_vm1, %v3759_v7, %v11370_v19 }
 0x4ce   : > { %v3766_v35 = vsel %vm15547_vm9, %v3759_v7, %v3761_v52  ;;  %v11820_v2 = vrot.slane %v4250_v38, %v9094_v5  ;;  %vm15642_vm9 = vmmov %vm15640_vm2 }
 0x4cf   : > { %3860 = vrot.lane.b32.xlu1 %v3804_v37, %s9003_s8  ;;  %v3805_v48 = vsel %vm571_vm1, %v3766_v35, %v11383_v10 }
 0x4d0   : > { %v3763_v59 = vpop.permute.xlu1 %3762  ;;  %3862 = vrot.lane.b32.xlu0 %v3805_v48, %s9003_s8  ;;  %v4266_v7 = vcombine.low %v11820_v2, %v11820_v2  ;;  %v11844_v35 = vcombine.high %v11820_v2, %v11820_v2 }
 0x4d1   : > { %v3767_v46 = vsel %vm15548_vm7, %v3761_v52, %v3763_v59  ;;  %v3765_v40 = vpop.permute.xlu0 %3764  ;;  %v11814_v52 = vrot.slane %v4249_v21, %v9094_v5  ;;  %vm15643_vm7 = vmmov %vm15641_vm6 }
 0x4d2   : > { %v3768_v39 = vsel %vm15549_vm3, %v3763_v59, %v3765_v40  ;;  %v3806_v19 = vsel %vm571_vm1, %v3767_v46, %v11317_v11  ;;  %vm15644_vm3 = vmmov %vm15641_vm6 }
 0x4d3   : > { %3864 = vrot.lane.b32.xlu1 %v3806_v19, %s9003_s8  ;;  %v3807_v10 = vsel %vm571_vm1, %v3768_v39, %v11325_v61  ;;  %v4265_v31 = vcombine.low %v11814_v52, %v11814_v52  ;;  %v11838_v37 = vcombine.high %v11814_v52, %v11814_v52 }
 0x4d4   : > { %v3778_v16 = vpop.permute.xlu1 %3777  ;;  %3866 = vrot.lane.b32.xlu0 %v3807_v10, %s9003_s8 }
 0x4d5   : > { %v3780_v28 = vpop.permute.xlu0 %3779 }
 0x4d6   : > { %v3785_v18 = vsel %vm292_vm0, %v3778_v16, %v3780_v28 }
 0x4d7   : > { %3868 = vrot.lane.b32.xlu1 %v3785_v18, %s9003_s8  ;;  %v8357_v18 = vld [vmem:[%s9092_s28 + $0x45] ss:$8 sm:$0xf] }
 0x4d8   : > { %v3782_v30 = vpop.permute.xlu1 %3781 }
 0x4d9   : > { %v3784_v11 = vpop.permute.xlu0 %3783  ;;  %v3786_v50 = vsel %vm292_vm0, %v3780_v28, %v3782_v30  ;;  %v8356_v28 = vld [vmem:[%s9092_s28 + $0x5] ss:$8 sm:$0xf] }
 0x4da   : > { %3870 = vrot.lane.b32.xlu0 %v3786_v50, %s9003_s8  ;;  %v3787_v61 = vsel %vm292_vm0, %v3782_v30, %v3784_v11  ;;  %v8358_v50 = vld [vmem:[%s9092_s28 + $0x85] ss:$8 sm:$0xf] }
 0x4db   : > { %3872 = vrot.lane.b32.xlu1 %v3787_v61, %s9003_s8  ;;  %v8359_v61 = vld [vmem:[%s9092_s28 + $0xc5] ss:$8 sm:$0xf] }
 0x4de   : > { %3874 = vrot.lane.b32.xlu0 %v3784_v11, %s9003_s8 }
 0x4df   : > { %4267 = vrot.lane.b32.xlu1 %v4265_v31, %s8998_s30 }
 0x4e2   : > { %4269 = vrot.lane.b32.xlu0 %v4266_v7, %s8998_s30 }
 0x4e3   : > { %4271 = vrot.lane.b32.xlu1 %v11814_v52, %s8998_s30 }
 0x4e6   : > { %4273 = vrot.lane.b32.xlu0 %v11820_v2, %s8998_s30 }
 0x4e7   : > { %4283 = vrot.lane.b32.xlu1 %v11814_v52, %s15202_s29 }
 0x4ea   : > { %4285 = vrot.lane.b32.xlu0 %v11820_v2, %s15202_s29 }
 0x4eb   : > { %4287 = vrot.lane.b32.xlu1 %v11838_v37, %s15202_s29 }
 0x4ee   : > { %4289 = vrot.lane.b32.xlu0 %v11844_v35, %s15202_s29 }
 0x4ef   : > { %4297 = vrot.lane.b32.xlu1 %v4265_v31, %s8999_s4 }
 0x4f2   : > { %4299 = vrot.lane.b32.xlu0 %v4266_v7, %s8999_s4 }
 0x4f3   : > { %4301 = vrot.lane.b32.xlu1 %v11814_v52, %s8999_s4 }
 0x4f6   : > { %4303 = vrot.lane.b32.xlu0 %v11820_v2, %s8999_s4 }
 0x4f7   : > { %4311 = vrot.lane.b32.xlu1 %v11814_v52, %s9000_s5 }
 0x4fa   : > { %4313 = vrot.lane.b32.xlu0 %v11820_v2, %s9000_s5 }
 0x4fb   : > { %4315 = vrot.lane.b32.xlu1 %v11838_v37, %s9000_s5 }
 0x4fe   : > { %4317 = vrot.lane.b32.xlu0 %v11844_v35, %s9000_s5 }
 0x4ff   : > { %4325 = vrot.lane.b32.xlu1 %v4265_v31, %s9001_s6 }
 0x502   : > { %4327 = vrot.lane.b32.xlu0 %v4266_v7, %s9001_s6 }
 0x503   : > { %4329 = vrot.lane.b32.xlu1 %v11814_v52, %s9001_s6 }
 0x504   : > { %v2992_v48 = vpop.f32.mrf.mxu0 }
 0x505   : > { %v2993_v20 = vadd.f32 %v2992_v48, %v15550_v1 }
 0x506   : > { %v2994_v59 = vpop.f32.mrf.mxu0  ;;  %v3063_v46 = vpop.f32.mrf.mxu1  ;;  %4331 = vrot.lane.b32.xlu0 %v11820_v2, %s9001_s6 }
 0x507   : > { %v2995_v40 = vadd.f32 %v2994_v59, %v15550_v1  ;;  %v3064_v39 = vadd.f32 %v3063_v46, %v15550_v1  ;;  %4339 = vrot.lane.b32.xlu1 %v11814_v52, %s9002_s7  ;;  %v3067_v10 = vmax.f32 %v2993_v20, 0.0 }
 0x508   : > { %v8708_v19 = vpop.f32.mrf.mxu1 }
 0x509   : > { %v3068_v21 = vmax.f32 %v2995_v40, 0.0  ;;  %v3069_v16 = vmax.f32 %v3064_v39, 0.0  ;;  %v4426_v40 = vcombine.low %v8356_v28, %v8357_v18  ;;  %v4427_v39 = vcombine.low %v8358_v50, %v8359_v61 }
 0x50a   : > { %4341 = vrot.lane.b32.xlu0 %v11820_v2, %s9002_s7 }
 0x50b   : > { %v3073_v38 = vcombine.low %v3067_v10, %v3068_v21  ;;  %v3074_v30 = vcombine.high %v3067_v10, %v3068_v21  ;;  %v3075_v11 = vcombine.high %v3069_v16, %v3069_v16  ;;  %4343 = vrot.lane.b32.xlu1 %v11838_v37, %s9002_s7  ;;  %v3096_v20 = vrot.slane %v3069_v16, %v9094_v5 }
 0x50c   : > { %v4434_v18 = vrot.slane %v4426_v40, %v9094_v5 }
 0x50d   : > { %v3082_v48 = vrot.slane %v3073_v38, %v9094_v5  ;;  %v3089_v59 = vrot.slane %v3074_v30, %v9094_v5  ;;  %v3103_v46 = vrot.slane %v3075_v11, %v9094_v5  ;;  %v4441_v11 = vrot.slane %v4427_v39, %v9094_v5 }
 0x50e   : > { %4345 = vrot.lane.b32.xlu0 %v11844_v35, %s9002_s7 }
 0x50f   : > { %v3104_v19 = vcombine.low %v3082_v48, %v3096_v20  ;;  %v3105_v10 = vcombine.high %v3082_v48, %v3096_v20  ;;  %v3106_v21 = vcombine.low %v3089_v59, %v3103_v46  ;;  %v3107_v1 = vcombine.high %v3089_v59, %v3103_v46  ;;  %4353 = vrot.lane.b32.xlu1 %v4265_v31, %s9003_s8  ;;  %v11929_v20 = vpop.permute.xlu0 %3830 }
 0x510   : > { %v4443_v46 = vcombine.high %v4434_v18, %v4441_v11 }
 0x511   : > { %v3114_v38 = vrot.slane %v3104_v19, %v9094_v5  ;;  %v3121_v16 = vrot.slane %v3106_v21, %v9094_v5  ;;  %v3128_v30 = vrot.slane %v3105_v10, %v9094_v5  ;;  %v3135_v28 = vrot.slane %v3107_v1, %v9094_v5  ;;  %v11927_v1 = vpop.permute.xlu1 %3828 }
 0x512   : > { %4355 = vrot.lane.b32.xlu0 %v4266_v7, %s9003_s8  ;;  %v4442_v7 = vcombine.low %v4434_v18, %v4441_v11 }
 0x513   : > { %v3136_v50 = vcombine.high %v3114_v38, %v3114_v38  ;;  %v3137_v31 = vcombine.high %v3121_v16, %v3121_v16  ;;  %v3138_v61 = vcombine.high %v3128_v30, %v3128_v30  ;;  %v3139_v48 = vcombine.high %v3135_v28, %v3135_v28  ;;  %8299 = vst.msk [vmem:[%s10311_s26 + $0x2] ss:$8 sm:$0x7] %vm10299_vm5, %v3114_v38  ;;  %v11951_v19 = vpop.permute.xlu0 %3834 }
 0x514   : > { %8300 = vst.msk [vmem:[%s10311_s26 + $0x1a] ss:$8 sm:$0x7] %vm10299_vm5, %v3128_v30  ;;  %8303 = vst.msk [vmem:[%s10311_s26 + $0x62] ss:$8 sm:$0x7] %vm10299_vm5, %v3121_v16  ;;  %4357 = vrot.lane.b32.xlu1 %v11814_v52, %s9003_s8  ;;  %v11936_v40 = vrot.slane %v4442_v7, %v9094_v5 }
 0x515   : > { %8304 = vst.msk [vmem:[%s10311_s26 + $0x7a] ss:$8 sm:$0x7] %vm10299_vm5, %v3135_v28  ;;  %8301 = vst.msk [vmem:[%s10311_s26 + $0x32] ss:$8 sm:$0x7] %vm10299_vm5, %v3136_v50  ;;  %v11938_v39 = vpop.permute.xlu1 %3832 }
 0x516   : > { %8302 = vst.msk [vmem:[%s10311_s26 + $0x4a] ss:$8 sm:$0x7] %vm10299_vm5, %v3138_v61  ;;  %8305 = vst.msk [vmem:[%s10311_s26 + $0x92] ss:$8 sm:$0x7] %vm10299_vm5, %v3137_v31  ;;  %4359 = vrot.lane.b32.xlu0 %v11820_v2, %s9003_s8 }
 0x517   : > { %8306 = vst.msk [vmem:[%s10311_s26 + $0xaa] ss:$8 sm:$0x7] %vm10299_vm5, %v3139_v48  ;;  %15552 = vst [vmem:[#allocation52_spill] sm:$0xff] %v11936_v40  ;;  %v11967_v21 = vpop.permute.xlu0 %3838 }
 0x518   : > { %4367 = vrot.lane.b32.xlu1 %v11814_v52, %s15178_s9  ;;  %v11943_v52 = vrot.slane %v4443_v46, %v9094_v5  ;;  %15554 = vst [vmem:[#allocation8_spill] sm:$0xff] %v11951_v19  ;;  %v8315_v7 = vld [vmem:[%s9092_s28 + $0x4] ss:$8 sm:$0x7] }
 0x519   : > { %v11965_v10 = vpop.permute.xlu1 %3836  ;;  %v8316_v46 = vld [vmem:[%s9092_s28 + $0x44] ss:$8 sm:$0x7]  ;;  %v8310_v19 = vld [vmem:[%s9092_s28 + $0xc3] ss:$8 sm:$0x7] }
 0x51a   : > { %4369 = vrot.lane.b32.xlu0 %v11820_v2, %s15178_s9  ;;  %v11949_v2 = vcombine.high %v11936_v40, %v11936_v40  ;;  %v11973_v38 = vcombine.low %v11943_v52, %v11943_v52  ;;  %v3396_v12 = vcombine.low %v8315_v7, %v8316_v46  ;;  %v3205_v46 = vcombine.low %v8309_v56, %v8310_v19 }
 0x51b   : > { %v11983_v30 = vpop.permute.xlu0 %3842 }
 0x51c   : > { %4371 = vrot.lane.b32.xlu1 %v11838_v37, %s15178_s9  ;;  %15553 = vst [vmem:[#allocation40_spill] sm:$0xff] %v11949_v2  ;;  %v11957_v37 = vcombine.high %v11943_v52, %v11943_v52  ;;  %15556 = vst [vmem:[#allocation49_spill] sm:$0xff] %v11983_v30  ;;  %v8366_v30 = vld [vmem:[%s9092_s28 + $0x86] ss:$8 sm:$0xf]  ;;  %v3404_v7 = vrot.slane %v3396_v12, %v9094_v5  ;;  %v3212_v12 = vrot.slane %v3204_v41, %v9094_v5 }
 0x51d   : > { %v11977_v16 = vpop.permute.xlu1 %3840  ;;  %v3219_v24 = vrot.slane %v3205_v46, %v9094_v5 }
 0x51e   : > { %4373 = vrot.lane.b32.xlu0 %v11844_v35, %s15178_s9  ;;  %15555 = vst [vmem:[#allocation51_spill] sm:$0xff] %v11957_v37  ;;  %v11963_v35 = vcombine.low %v11936_v40, %v11936_v40 }
 0x51f   : > { %v3221_v19 = vcombine.high %v3212_v12, %v3219_v24 }
 0x520   : > { %4460 = vrot.lane.b32.xlu1 %v11936_v40, %s8998_s30 }
 0x522   : > { %4462 = vrot.lane.b32.xlu0 %v11943_v52, %s8998_s30 }
 0x524   : > { %4464 = vrot.lane.b32.xlu1 %v11949_v2, %s8998_s30 }
 0x526   : > { %4466 = vrot.lane.b32.xlu0 %v11957_v37, %s8998_s30 }
 0x528   : > { %4476 = vrot.lane.b32.xlu1 %v11963_v35, %s15202_s29  ;;  %v11985_v28 = vpop.permute.xlu1 %3844 }
 0x52a   : > { %4478 = vrot.lane.b32.xlu0 %v11973_v38, %s15202_s29  ;;  %v11991_v18 = vpop.permute.xlu0 %3846 }
 0x52c   : > { %4480 = vrot.lane.b32.xlu1 %v11936_v40, %s15202_s29 }
 0x52d   : > { %v11997_v11 = vpop.permute.xlu1 %3848 }
 0x52e   : > { %4482 = vrot.lane.b32.xlu0 %v11943_v52, %s15202_s29  ;;  %v11999_v50 = vpop.permute.xlu0 %3850 }
 0x530   : > { %4490 = vrot.lane.b32.xlu1 %v11936_v40, %s8999_s4 }
 0x532   : > { %4492 = vrot.lane.b32.xlu0 %v11943_v52, %s8999_s4 }
 0x534   : > { %4494 = vrot.lane.b32.xlu1 %v11949_v2, %s8999_s4 }
 0x536   : > { %4496 = vrot.lane.b32.xlu0 %v11957_v37, %s8999_s4 }
 0x538   : > { %4504 = vrot.lane.b32.xlu1 %v11963_v35, %s9000_s5  ;;  %v12005_v31 = vpop.permute.xlu1 %3852 }
 0x53a   : > { %4506 = vrot.lane.b32.xlu0 %v11973_v38, %s9000_s5  ;;  %v12009_v61 = vpop.permute.xlu0 %3854 }
 0x53c   : > { %4508 = vrot.lane.b32.xlu1 %v11936_v40, %s9000_s5 }
 0x53d   : > { %v12013_v48 = vpop.permute.xlu1 %3856 }
 0x53e   : > { %4510 = vrot.lane.b32.xlu0 %v11943_v52, %s9000_s5  ;;  %v12019_v59 = vpop.permute.xlu0 %3858 }
 0x540   : > { %4518 = vrot.lane.b32.xlu1 %v11936_v40, %s9001_s6 }
 0x541   : > { %v3861_v0 = vpop.permute.xlu1 %3860 }
 0x542   : > { %4520 = vrot.lane.b32.xlu0 %v11943_v52, %s9001_s6  ;;  %v3863_v60 = vpop.permute.xlu0 %3862 }
 0x544   : > { %4522 = vrot.lane.b32.xlu1 %v11949_v2, %s9001_s6  ;;  %v4637_v2 = vcombine.low %v8366_v30, %v8367_v47  ;;  %v3412_v47 = vcombine.low %v3404_v7, %v3411_v36  ;;  %v3220_v30 = vcombine.low %v3212_v12, %v3219_v24 }
 0x545   : > { %v3865_v51 = vpop.permute.xlu1 %3864 }
 0x546   : > { %4524 = vrot.lane.b32.xlu0 %v11957_v37, %s9001_s6  ;;  %v3867_v32 = vpop.permute.xlu0 %3866  ;;  %v3413_v37 = vcombine.high %v3404_v7, %v3411_v36  ;;  %v4651_v22 = vrot.slane %v4637_v2, %v9094_v5  ;;  %v4611_v2 = vrot.slane %v4603_v57, %v9094_v5  ;;  %v4604_v7 = vcombine.high %v4595_v53, %v4602_v34 }
 0x547   : > { %v3889_v46 = vsel %vm384_vm13, %v3863_v60, %v3865_v51  ;;  %v12082_v34 = vrot.slane %v3221_v19, %v9094_v5  ;;  %v12085_v24 = vrot.slane %v3220_v30, %v9094_v5  ;;  %v3890_v57 = vsel %vm384_vm13, %v3865_v51, %v3867_v32 }
 0x548   : > { %4532 = vrot.lane.b32.xlu1 %v11963_v35, %s9002_s7  ;;  %v12061_v9 = vrot.slane %v3413_v37, %v9094_v5  ;;  %v4652_v26 = vcombine.low %v4644_v25, %v4651_v22  ;;  %v4653_v12 = vcombine.high %v4644_v25, %v4651_v22  ;;  %v3885_v25 = vsel %vm384_vm13, %v12005_v31, %v12009_v61 }
 0x549   : > { %v3869_v42 = vpop.permute.xlu1 %3868  ;;  %v3883_v51 = vsel %vm384_vm13, %v11991_v18, %v11997_v11  ;;  %v12116_v31 = vsel %vm292_vm0, %v11287_v27, %v11311_v17  ;;  %v12130_v19 = vsel %vm339_vm15, %v11572_v44, %v11581_v29  ;;  %v12135_v27 = vsel %vm354_vm12, %v11604_v49, %v11616_v63 }
 0x54a   : > { %4534 = vrot.lane.b32.xlu0 %v11973_v38, %s9002_s7  ;;  %v3429_v53 = vcombine.low %v12061_v9, %v12061_v9  ;;  %v12101_v22 = vrot.slane %v4652_v26, %v9094_v5  ;;  %v12109_v32 = vrot.slane %v4653_v12, %v9094_v5  ;;  %v3880_v49 = vsel %vm384_vm13, %v11967_v21, %v11977_v16 }
 0x54c   : > { %4536 = vrot.lane.b32.xlu1 %v11936_v40, %s9002_s7  ;;  %v3871_v56 = vpop.permute.xlu0 %3870 }
 0x54d   : > { %v3873_v14 = vpop.permute.xlu1 %3872  ;;  %v3891_v41 = vsel %vm384_vm13, %v3869_v42, %v3871_v56  ;;  %v3888_v42 = vsel %vm384_vm13, %v3861_v0, %v3863_v60  ;;  %v3886_v0 = vsel %vm384_vm13, %v12009_v61, %v12013_v48  ;;  %v4618_v60 = vrot.slane %v4604_v7, %v9094_v5 }
 0x54e   : > { %4538 = vrot.lane.b32.xlu0 %v11943_v52, %s9002_s7  ;;  %v3892_v8 = vsel %vm384_vm13, %v3871_v56, %v3873_v14  ;;  %v12121_v61 = vsel %vm324_vm11, %v11462_v3, %v11490_v13  ;;  %v3887_v3 = vsel %vm384_vm13, %v12013_v48, %v12019_v59  ;;  %v12154_v59 = vcombine.low %v12101_v22, %v12101_v22 }
 0x54f   : > { %8331 = vmatprep.subr.msk.mxu0 %vm571_vm1, %v3892_v8  ;;  %v3882_v8 = vsel %vm384_vm13, %v11985_v28, %v11991_v18  ;;  %v12144_v28 = vsel %vm354_vm12, %v11616_v63, %v11620_v4  ;;  %v3884_v48 = vsel %vm384_vm13, %v11997_v11, %v11999_v50  ;;  %v3879_v63 = vsel %vm384_vm13, %v11965_v10, %v11967_v21 }
 0x550   : > { %4574 = vrot.lane.b32.xlu1 %v11963_v35, %s8998_s30  ;;  %v3875_v36 = vpop.permute.xlu0 %3874  ;;  %8332 = vmatpush1.msk.msra.mxu0 %vm571_vm1, %v3891_v41  ;;  %v12075_v35 = vrot.slane %v3412_v47, %v9094_v5  ;;  %v12167_v41 = vcombine.low %v12109_v32, %v12109_v32  ;;  %v3552_v11 = vsel %vm369_vm8, %v11723_v58, %v11725_v6 }
 0x551   : > { %v3893_v37 = vsel %vm384_vm13, %v3873_v14, %v3875_v36  ;;  %v12071_v40 = vpop.permute.xlu1 %4267  ;;  %3921 = vmatprep.subr.mxu0 %v3889_v46  ;;  %v3877_v10 = vsel %vm384_vm13, %v11929_v20, %v11938_v39  ;;  %v3510_v21 = vsel %vm324_vm11, %v11699_v54, %v11701_v55  ;;  %v3551_v50 = vsel %vm369_vm8, %v11721_v45, %v11723_v58  ;;  %v15560_v36 = vld [vmem:[#allocation19_spill] sm:$0xff]  ;;  %v15561_v46 = vld [vmem:[#allocation17_spill] sm:$0xff]  ;;  %v15565_v58 = vld [vmem:[#allocation18_spill] sm:$0xff] }
 0x552   : > { %4576 = vrot.lane.b32.xlu0 %v11973_v38, %s8998_s30  ;;  %3922 = vmatpush1.msra.mxu0 %v3888_v42  ;;  %v4619_v38 = vcombine.high %v4611_v2, %v4611_v2  ;;  %v3428_v47 = vcombine.low %v12075_v35, %v12075_v35  ;;  %v3524_v7 = vsel %vm339_vm15, %v11707_v33, %v11709_v15 }
 0x553   : > { %8710 = vmatpush3.msk.msra.mxu1 %vm571_vm1, %v3893_v37  ;;  %3923 = vmatprep.subr.mxu0 %v3886_v0  ;;  %v3538_v26 = vsel %vm354_vm12, %v15561_v46, %v15560_v36  ;;  %v15562_v37 = vld [vmem:[#allocation49_spill] sm:$0xff] }
 0x554   : > { %4620 = vrot.lane.b32.xlu1 %v4611_v2, %s15154_s10  ;;  %8711 = vmatprep.subr.mxu1 %v15252_v62  ;;  %v12095_v56 = vpop.permute.xlu0 %4269  ;;  %v3495_v2 = vsel %vm309_vm10, %v11689_v43, %v11691_v23  ;;  %v3876_v43 = vsel %vm384_vm13, %v11927_v1, %v11929_v20  ;;  %v3881_v42 = vsel %vm384_vm13, %v11977_v16, %v15562_v37  ;;  %v15566_v20 = vld [vmem:[#allocation12_spill] sm:$0xff] }
 0x555   : > { %3924 = vmatpush1.msra.mxu0 %v3885_v25  ;;  %8712 = vmatpush3.msra.mxu1 %v3890_v57  ;;  %v12103_v14 = vpop.permute.xlu1 %4271  ;;  %v3523_v1 = vsel %vm339_vm15, %v15565_v58, %v11707_v33  ;;  %v3537_v12 = vsel %vm354_vm12, %v15566_v20, %v15561_v46  ;;  %v3579_v16 = vsel %vm571_vm1, %v3538_v26, %v3552_v11  ;;  %v15569_v57 = vld [vmem:[#allocation8_spill] sm:$0xff]  ;;  %v15579_v26 = vld [vmem:[#allocation29_spill] sm:$0xff]  ;;  %v15581_v20 = vld [vmem:[#allocation7_spill] sm:$0xff] }
 0x556   : > { %15557 = vst [vmem:[#allocation37_spill] sm:$0xff] %v12103_v14  ;;  %3925 = vmatprep.subr.mxu0 %v3883_v51  ;;  %8713 = vmatprep.subr.mxu1 %v15252_v62  ;;  %v3878_v33 = vsel %vm384_vm13, %v11938_v39, %v15569_v57  ;;  %v3578_v25 = vsel %vm571_vm1, %v3537_v12, %v3551_v50  ;;  %v15570_v51 = vld [vmem:[#allocation16_spill] sm:$0xff]  ;;  %v15583_v57 = vld [vmem:[#allocation26_spill] sm:$0xff] }
 0x557   : > { %4622 = vrot.lane.b32.xlu0 %v4618_v60, %s15154_s10  ;;  %3926 = vmatpush1.msra.mxu0 %v3882_v8  ;;  %v15568_v60 = vld [vmem:[#allocation6_spill] sm:$0xff]  ;;  %v3496_v8 = vsel %vm309_vm10, %v11691_v23, %v15570_v51  ;;  %v15576_v50 = vld [vmem:[#allocation36_spill] sm:$0xff]  ;;  %v3497_v12 = vsel %vm309_vm10, %v15570_v51, %v15581_v20 }
 0x558   : > { %8714 = vmatpush3.msra.mxu1 %v3887_v3  ;;  %4624 = vrot.lane.b32.xlu1 %v4619_v38, %s15154_s10  ;;  %v12150_v18 = vpop.permute.xlu0 %4273  ;;  %v3553_v38 = vsel %vm369_vm8, %v11725_v6, %v15568_v60  ;;  %v15571_v3 = vld [vmem:[#allocation46_spill] sm:$0xff]  ;;  %v3576_v6 = vsel %vm571_vm1, %v3510_v21, %v3524_v7  ;;  %v15577_v21 = vld [vmem:[#allocation13_spill] sm:$0xff]  ;;  %v15578_v7 = vld [vmem:[#allocation20_spill] sm:$0xff]  ;;  %v3386_v37 = vsel %vm15161_vm14, %v15579_v26, %v15576_v50  ;;  %s15667_s10 = smov 37  }
 0x559   : > { %15558 = vst [vmem:[#allocation32_spill] sm:$0xff] %v12150_v18  ;;  %3927 = vmatprep.subr.mxu0 %v3880_v49  ;;  %8715 = vmatprep.subr.mxu1 %v15252_v62  ;;  %v12163_v30 = vpop.permute.xlu1 %4283  ;;  %v3509_v49 = vsel %vm324_vm11, %v15571_v3, %v11699_v54  ;;  %v15575_v54 = vld [vmem:[#allocation34_spill] sm:$0xff]  ;;  %v3480_v46 = vsel %vm292_vm0, %v15578_v7, %v15577_v21 }
 0x55a   : > { %15559 = vst [vmem:[#allocation28_spill] sm:$0xff] %v12163_v30  ;;  %3928 = vmatpush1.msra.mxu0 %v3879_v63  ;;  %8716 = vmatpush3.msra.mxu1 %v3884_v48  ;;  %v15572_v48 = vld [vmem:[#allocation5_spill] sm:$0xff]  ;;  %v15573_v63 = vld [vmem:[#allocation50_spill] sm:$0xff]  ;;  %v3575_v23 = vsel %vm571_vm1, %v3509_v49, %v3523_v1  ;;  %v3573_v1 = vsel %vm571_vm1, %v3480_v46, %v3496_v8 }
 0x55b   : > { %3929 = vmatprep.subr.mxu0 %v3877_v10  ;;  %8717 = vmatprep.subr.mxu1 %v15252_v62  ;;  %v3525_v39 = vsel %vm339_vm15, %v11709_v15, %v15572_v48  ;;  %v3539_v11 = vsel %vm354_vm12, %v15560_v36, %v15573_v63  ;;  %v3569_v9 = vsel %vm571_vm1, %v3386_v37, %v3428_v47  ;;  %v15590_v63 = vld [vmem:[#allocation25_spill] sm:$0xff]  ;;  %v15592_v7 = vld [vmem:[#allocation10_spill] sm:$0xff] }
 0x55c   : > { %4670 = vrot.lane.b32.xlu0 %v12154_v59, %s15563_s11  ;;  %3930 = vmatpush1.msra.mxu0 %v3876_v43  ;;  %v12199_v45 = vpop.permute.xlu0 %4285  ;;  %v3387_v43 = vsel %vm15161_vm14, %v15576_v50, %v15575_v54  ;;  %v3580_v15 = vsel %vm571_vm1, %v3539_v11, %v3553_v38  ;;  %v12314_v26 = vcombine.high %v12109_v32, %v12109_v32 }
 0x55d   : > { %15564 = vst [vmem:[#allocation19_spill] sm:$0xff] %v12199_v45  ;;  %8718 = vmatpush3.msra.mxu1 %v3881_v42  ;;  %4672 = vrot.lane.b32.xlu1 %v12167_v41, %s15563_s11  ;;  %v12210_v0 = vpop.permute.xlu1 %4287  ;;  %v15580_v42 = vld [vmem:[#allocation11_spill] sm:$0xff]  ;;  %v3570_v51 = vsel %vm571_vm1, %v3387_v43, %v3429_v53  ;;  %v15589_v53 = vld [vmem:[#allocation33_spill] sm:$0xff]  ;;  %v15636_v45 = vld [vmem:[#allocation52_spill] sm:$0xff] }
 0x55e   : > { %15567 = vst [vmem:[#allocation17_spill] sm:$0xff] %v12210_v0  ;;  %3931 = vmatprep.subr.mxu0 %v3579_v16  ;;  %8719 = vmatprep.subr.mxu1 %v15252_v62  ;;  %v3511_v58 = vsel %vm324_vm11, %v11701_v55, %v15580_v42  ;;  %v15582_v16 = vld [vmem:[#allocation44_spill] sm:$0xff]  ;;  %v15584_v55 = vld [vmem:[#allocation9_spill] sm:$0xff]  ;;  %v3358_v11 = vsel %vm369_vm8, %v15590_v63, %v15589_v53  ;;  %v15594_v42 = vld [vmem:[#allocation22_spill] sm:$0xff] }
 0x55f   : > { %3932 = vmatpush1.msra.mxu0 %v3578_v25  ;;  %8720 = vmatpush3.msra.mxu1 %v3878_v33  ;;  %v3572_v60 = vsel %vm571_vm1, %v15582_v16, %v3495_v2  ;;  %v3577_v38 = vsel %vm571_vm1, %v3511_v58, %v3525_v39  ;;  %v3372_v33 = vsel %vm384_vm13, %v15584_v55, %v15583_v57  ;;  %v15585_v25 = vld [vmem:[#allocation31_spill] sm:$0xff]  ;;  %v15597_v16 = vld [vmem:[#allocation14_spill] sm:$0xff] }
 0x560   : > { %3933 = vmatprep.subr.mxu0 %v3576_v6  ;;  %8721 = vmatprep.subr.mxu1 %v15252_v62  ;;  %v12235_v10 = vpop.permute.xlu0 %4289  ;;  %v3373_v8 = vsel %vm384_vm13, %v15583_v57, %v15585_v25  ;;  %v15586_v2 = vld [vmem:[#allocation23_spill] sm:$0xff]  ;;  %v3566_v43 = vsel %vm571_vm1, %v3358_v11, %v3372_v33  ;;  %v3374_v46 = vsel %vm384_vm13, %v15585_v25, %v15592_v7  ;;  %v15602_v25 = vld [vmem:[#allocation42_spill] sm:$0xff]  ;;  %v15605_v11 = vld [vmem:[#allocation48_spill] sm:$0xff] }
 0x561   : > { %15574 = vst [vmem:[#allocation49_spill] sm:$0xff] %v12235_v10  ;;  %4674 = vrot.lane.b32.xlu0 %v12101_v22, %s15563_s11  ;;  %3934 = vmatpush1.msra.mxu0 %v3575_v23  ;;  %v12246_v36 = vpop.permute.xlu1 %4297  ;;  %v3388_v49 = vsel %vm15161_vm14, %v15575_v54, %v15586_v2  ;;  %v15587_v6 = vld [vmem:[#allocation15_spill] sm:$0xff]  ;;  %v3317_v58 = vsel %vm324_vm11, %v11490_v13, %v15594_v42  ;;  %v8930_v7 = vld [vmem:[%s15053_s1] sm:$0xff] }
 0x562   : > { %8722 = vmatpush3.msra.mxu1 %v3580_v15  ;;  %4676 = vrot.lane.b32.xlu1 %v12109_v32, %s15563_s11  ;;  %v3481_v48 = vsel %vm292_vm0, %v15577_v21, %v15587_v6  ;;  %v15591_v23 = vld [vmem:[#allocation47_spill] sm:$0xff]  ;;  %v12304_v21 = vcombine.high %v12101_v22, %v12101_v22  ;;  %v3571_v15 = vsel %vm571_vm1, %v3388_v49, %v12075_v35  ;;  %v15604_v49 = vld [vmem:[#allocation24_spill] sm:$0xff] }
 0x563   : > { %3935 = vmatprep.subr.mxu0 %v3573_v1  ;;  %8723 = vmatprep.subr.mxu1 %v15252_v62  ;;  %v3359_v54 = vsel %vm369_vm8, %v15589_v53, %v15591_v23  ;;  %v3574_v50 = vsel %vm571_vm1, %v3481_v48, %v3497_v12  ;;  %v15595_v1 = vld [vmem:[#allocation41_spill] sm:$0xff]  ;;  %v3564_v35 = vsel %vm571_vm1, %v12130_v19, %v12144_v28  ;;  %v15599_v57 = vld [vmem:[#allocation39_spill] sm:$0xff]  ;;  %v15600_v28 = vld [vmem:[#allocation30_spill] sm:$0xff] }
 0x564   : > { %3936 = vmatpush1.msra.mxu0 %v3572_v60  ;;  %8724 = vmatpush3.msra.mxu1 %v3577_v38  ;;  %v12274_v3 = vpop.permute.xlu0 %4299  ;;  %v3567_v47 = vsel %vm571_vm1, %v3359_v54, %v3373_v8  ;;  %v3330_v20 = vsel %vm339_vm15, %v15595_v1, %v11572_v44  ;;  %v3346_v60 = vsel %vm354_vm12, %v11620_v4, %v15597_v16  ;;  %v15598_v38 = vld [vmem:[#allocation45_spill] sm:$0xff]  ;;  %v15601_v55 = vld [vmem:[#allocation27_spill] sm:$0xff] }
 0x565   : > { %3937 = vmatprep.subr.mxu0 %v3570_v51  ;;  %8725 = vmatprep.subr.mxu1 %v15252_v62  ;;  %v12287_v39 = vpop.permute.xlu1 %4301  ;;  %v3360_v13 = vsel %vm369_vm8, %v15591_v23, %v15598_v38  ;;  %v3563_v44 = vsel %vm571_vm1, %v3330_v20, %v12135_v27  ;;  %v3287_v19 = vsel %vm292_vm0, %v11311_v17, %v15599_v57  ;;  %v15603_v51 = vld [vmem:[#allocation21_spill] sm:$0xff]  ;;  %v15606_v54 = vld [vmem:[#allocation35_spill] sm:$0xff] }
 0x566   : > { %15588 = vst [vmem:[#allocation18_spill] sm:$0xff] %v12287_v39  ;;  %4687 = vrot.lane.b32.xlu0 %v12101_v22, %s15482_s17  ;;  %3938 = vmatpush1.msra.mxu0 %v3569_v9  ;;  %v3303_v33 = vsel %vm309_vm10, %v15601_v55, %v15600_v28  ;;  %v3568_v4 = vsel %vm571_vm1, %v3360_v13, %v3374_v46 }
 0x567   : > { %8726 = vmatpush3.msra.mxu1 %v3574_v50  ;;  %4689 = vrot.lane.b32.xlu1 %v12109_v32, %s15482_s17  ;;  %v3302_v8 = vsel %vm309_vm10, %v15602_v25, %v15601_v55  ;;  %v3332_v27 = vsel %vm339_vm15, %v11581_v29, %v15603_v51  ;;  %v3561_v17 = vsel %vm571_vm1, %v3303_v33, %v3317_v58 }
 0x568   : > { %3939 = vmatprep.subr.mxu0 %v3567_v47  ;;  %8727 = vmatprep.subr.mxu1 %v15252_v62  ;;  %v12316_v37 = vpop.permute.xlu0 %4303  ;;  %v3318_v6 = vsel %vm324_vm11, %v15594_v42, %v15604_v49  ;;  %v3560_v48 = vsel %vm571_vm1, %v3302_v8, %v12121_v61  ;;  %v3565_v29 = vsel %vm571_vm1, %v3332_v27, %v3346_v60 }
 0x569   : > { %15593 = vst [vmem:[#allocation12_spill] sm:$0xff] %v12316_v37  ;;  %3940 = vmatpush1.msra.mxu0 %v3566_v43  ;;  %8728 = vmatpush3.msra.mxu1 %v3571_v15  ;;  %v12327_v12 = vpop.permute.xlu1 %4311  ;;  %v3558_v53 = vsel %vm571_vm1, %v12082_v34, %v3287_v19  ;;  %v3236_v63 = vcombine.high %v12085_v24, %v12085_v24 }
 0x56a   : > { %15596 = vst [vmem:[#allocation6_spill] sm:$0xff] %v12327_v12  ;;  %3941 = vmatprep.subr.mxu0 %v3564_v35  ;;  %8729 = vmatprep.subr.mxu1 %v15252_v62  ;;  %v3288_v23 = vsel %vm292_vm0, %v15599_v57, %v15605_v11  ;;  %v3304_v61 = vsel %vm309_vm10, %v15600_v28, %v15606_v54  ;;  %v15639_v12 = vld [vmem:[#allocation40_spill] sm:$0xff] }
 0x56b   : > { %4691 = vrot.lane.b32.xlu0 %v12304_v21, %s15482_s17  ;;  %3942 = vmatpush1.msra.mxu0 %v3563_v44  ;;  %v3557_v50 = vsel %vm571_vm1, %v12085_v24, %v12116_v31  ;;  %v3562_v34 = vsel %vm571_vm1, %v3304_v61, %v3318_v6  ;;  %v3559_v24 = vsel %vm571_vm1, %v3236_v63, %v3288_v23 }
 0x56c   : > { %8730 = vmatpush3.msra.mxu1 %v3568_v4  ;;  %4693 = vrot.lane.b32.xlu1 %v12314_v26, %s15482_s17  ;;  %v12356_v2 = vpop.permute.xlu0 %4313 }
 0x56d   : > { %3943 = vmatprep.subr.mxu0 %v3561_v17  ;;  %8731 = vmatprep.subr.mxu1 %v15252_v62  ;;  %v12365_v9 = vpop.permute.xlu1 %4315 }
 0x56e   : > { %3944 = vmatpush1.msra.mxu0 %v3560_v48  ;;  %8732 = vmatpush3.msra.mxu1 %v3565_v29 }
 0x56f   : > { %3945 = vmatprep.subr.mxu0 %v3558_v53  ;;  %8733 = vmatprep.subr.mxu1 %v15252_v62 }
 0x570   : > { %4702 = vrot.lane.b32.xlu0 %v12154_v59, %s9008_s19  ;;  %3946 = vmatpush1.msra.mxu0 %v3557_v50  ;;  %v12384_v47 = vpop.permute.xlu0 %4317 }
 0x571   : > { %15607 = vst [vmem:[#allocation8_spill] sm:$0xff] %v12384_v47  ;;  %8734 = vmatpush3.msra.mxu1 %v3562_v34  ;;  %4704 = vrot.lane.b32.xlu1 %v12167_v41, %s9008_s19  ;;  %v12388_v43 = vpop.permute.xlu1 %4325 }
 0x572   : > { %8333 = vmatmul.mubr.msk.f32.vlgmr.msra.gmra.mxu0 %vm354_vm12, %v8930_v7  ;;  %8735 = vmatprep.subr.mxu1 %v15252_v62 }
 0x573   : > { %8736 = vmatpush3.msra.mxu1 %v3559_v24  ;;  %4968 = vmatprep.mubr.f32.mxu0 %v15252_v62 }
 0x574   : > { %8738 = vmatmul.mubr.msk.f32.vlgmr.msra.gmra.mxu1 %vm354_vm12, %v8930_v7  ;;  %4706 = vrot.lane.b32.xlu0 %v12101_v22, %s9008_s19  ;;  %v12400_v31 = vpop.permute.xlu0 %4327 }
 0x575   : > { %4708 = vrot.lane.b32.xlu1 %v12109_v32, %s9008_s19  ;;  %v12404_v46 = vpop.permute.xlu1 %4329  ;;  %8740 = vmatprep.subr.mxu1 %v15252_v62 }
 0x576   : > { %8768 = vmatprep.mubr.msk.f32.mxu1 %vm15608_vm4, %v15252_v62 }
 0x578   : > { %4717 = vrot.lane.b32.xlu0 %v12101_v22, %s9009_s20  ;;  %v12411_v15 = vpop.permute.xlu0 %4331 }
 0x579   : > { %15609 = vst [vmem:[#allocation16_spill] sm:$0xff] %v12411_v15  ;;  %4719 = vrot.lane.b32.xlu1 %v12109_v32, %s9009_s20  ;;  %v12415_v42 = vpop.permute.xlu1 %4339 }
 0x57a   : > { %15610 = vst [vmem:[#allocation46_spill] sm:$0xff] %v12415_v42 }
 0x57c   : > { %4721 = vrot.lane.b32.xlu0 %v12304_v21, %s9009_s20  ;;  %v12419_v58 = vpop.permute.xlu0 %4341 }
 0x57d   : > { %15611 = vst [vmem:[#allocation5_spill] sm:$0xff] %v12419_v58  ;;  %4723 = vrot.lane.b32.xlu1 %v12314_v26, %s9009_s20  ;;  %v12423_v1 = vpop.permute.xlu1 %4343 }
 0x57e   : > { %15612 = vst [vmem:[#allocation50_spill] sm:$0xff] %v12423_v1 }
 0x580   : > { %4732 = vrot.lane.b32.xlu0 %v12154_v59, %s9010_s24  ;;  %v12427_v20 = vpop.permute.xlu0 %4345 }
 0x581   : > { %15613 = vst [vmem:[#allocation34_spill] sm:$0xff] %v12427_v20  ;;  %4734 = vrot.lane.b32.xlu1 %v12167_v41, %s9010_s24  ;;  %v12431_v35 = vpop.permute.xlu1 %4353 }
 0x582   : > { %15614 = vst [vmem:[#allocation36_spill] sm:$0xff] %v12431_v35  ;;  %v8355_v35 = vld [vmem:[%s9092_s28 + $0xc5] ss:$8 sm:$0x7] }
 0x584   : > { %4736 = vrot.lane.b32.xlu0 %v12101_v22, %s9010_s24  ;;  %v12435_v16 = vpop.permute.xlu0 %4355 }
 0x585   : > { %15615 = vst [vmem:[#allocation13_spill] sm:$0xff] %v12435_v16  ;;  %4738 = vrot.lane.b32.xlu1 %v12109_v32, %s9010_s24  ;;  %v8397_v16 = vld [vmem:[%s9092_s28 + $0x7] ss:$8 sm:$0x7] }
 0x586   : > { %v12439_v60 = vpop.permute.xlu1 %4357 }
 0x587   : > { %15616 = vst [vmem:[#allocation20_spill] sm:$0xff] %v12439_v60  ;;  %v8354_v60 = vld [vmem:[%s9092_s28 + $0x85] ss:$8 sm:$0x7] }
 0x588   : > { %4747 = vrot.lane.b32.xlu0 %v12101_v22, %s9011_s25  ;;  %v12443_v38 = vpop.permute.xlu0 %4359 }
 0x589   : > { %15617 = vst [vmem:[#allocation29_spill] sm:$0xff] %v12443_v38  ;;  %4749 = vrot.lane.b32.xlu1 %v12109_v32, %s9011_s25 }
 0x58a   : > { %v12447_v13 = vpop.permute.xlu1 %4367 }
 0x58b   : > { %15618 = vst [vmem:[#allocation11_spill] sm:$0xff] %v12447_v13 }
 0x58c   : > { %4751 = vrot.lane.b32.xlu0 %v12304_v21, %s9011_s25  ;;  %v12451_v44 = vpop.permute.xlu0 %4369 }
 0x58d   : > { %15619 = vst [vmem:[#allocation7_spill] sm:$0xff] %v12451_v44  ;;  %4753 = vrot.lane.b32.xlu1 %v12314_v26, %s9011_s25  ;;  %v4386_v44 = vcombine.low %v8354_v60, %v8355_v35 }
 0x58e   : > { %v12455_v57 = vpop.permute.xlu1 %4371 }
 0x58f   : > { %15620 = vst [vmem:[#allocation44_spill] sm:$0xff] %v12455_v57  ;;  %v8344_v57 = vld [vmem:[%s9092_s28 + $0x4] ss:$8 sm:$0x7]  ;;  %v4400_v35 = vrot.slane %v4386_v44, %v9094_v5 }
 0x590   : > { %4766 = vrot.lane.b32.xlu0 %v12101_v22, %s8998_s30  ;;  %v12459_v19 = vpop.permute.xlu0 %4373 }
 0x591   : > { %15621 = vst [vmem:[#allocation26_spill] sm:$0xff] %v12459_v19  ;;  %4768 = vrot.lane.b32.xlu1 %v12109_v32, %s8998_s30 }
 0x592   : > { %v4461_v28 = vpop.permute.xlu1 %4460 }
 0x594   : > { %4770 = vrot.lane.b32.xlu0 %v12304_v21, %s8998_s30  ;;  %v12465_v55 = vpop.permute.xlu0 %4462 }
 0x595   : > { %15622 = vst [vmem:[#allocation9_spill] sm:$0xff] %v12465_v55  ;;  %4772 = vrot.lane.b32.xlu1 %v12314_v26, %s8998_s30  ;;  %v12523_v14 = vsel %vm292_vm0, %v4461_v28, %v12465_v55 }
 0x596   : > { %v12469_v33 = vpop.permute.xlu1 %4464  ;;  %15637 = vst [vmem:[#allocation27_spill] sm:$0xff] %v12523_v14 }
 0x597   : > { %15623 = vst [vmem:[#allocation31_spill] sm:$0xff] %v12469_v33 }
 0x598   : > { %v12471_v4 = vpop.permute.xlu0 %4466 }
 0x599   : > { %15624 = vst [vmem:[#allocation23_spill] sm:$0xff] %v12471_v4 }
 0x59a   : > { %v12473_v25 = vpop.permute.xlu1 %4476 }
 0x59c   : > { %v12475_v8 = vpop.permute.xlu0 %4478 }
 0x59e   : > { %v12477_v51 = vpop.permute.xlu1 %4480 }
 0x59f   : > { %15625 = vst [vmem:[#allocation15_spill] sm:$0xff] %v12477_v51  ;;  %v8346_v51 = vld [vmem:[%s9092_s28 + $0x84] ss:$8 sm:$0x7] }
 0x5a0   : > { %v12479_v27 = vpop.permute.xlu0 %4482 }
 0x5a1   : > { %15626 = vst [vmem:[#allocation33_spill] sm:$0xff] %v12479_v27  ;;  %v8399_v27 = vld [vmem:[%s9092_s28 + $0x87] ss:$8 sm:$0x7] }
 0x5a2   : > { %v12481_v17 = vpop.permute.xlu1 %4490 }
 0x5a3   : > { %15627 = vst [vmem:[#allocation25_spill] sm:$0xff] %v12481_v17 }
 0x5a4   : > { %v12483_v21 = vpop.permute.xlu0 %4492 }
 0x5a6   : > { %v12485_v49 = vpop.permute.xlu1 %4494 }
 0x5a8   : > { %v12487_v6 = vpop.permute.xlu0 %4496 }
 0x5a9   : > { %15628 = vst [vmem:[#allocation47_spill] sm:$0xff] %v12487_v6  ;;  %v8400_v6 = vld [vmem:[%s9092_s28 + $0xc7] ss:$8 sm:$0x7] }
 0x5aa   : > { %v12489_v26 = vpop.permute.xlu1 %4504  ;;  %v5577_v17 = vcombine.low %v8399_v27, %v8400_v6 }
 0x5ab   : > { %15629 = vst [vmem:[#allocation10_spill] sm:$0xff] %v12489_v26 }
 0x5ac   : > { %v12491_v48 = vpop.permute.xlu0 %4506 }
 0x5ae   : > { %v12493_v29 = vpop.permute.xlu1 %4508 }
 0x5b0   : > { %v12495_v53 = vpop.permute.xlu0 %4510 }
 0x5b1   : > { %15630 = vst [vmem:[#allocation22_spill] sm:$0xff] %v12495_v53 }
 0x5b2   : > { %v12497_v63 = vpop.permute.xlu1 %4518 }
 0x5b3   : > { %15631 = vst [vmem:[#allocation41_spill] sm:$0xff] %v12497_v63  ;;  %v8402_v63 = vld [vmem:[%s9092_s28 + $0x47] ss:$8 sm:$0xf] }
 0x5b4   : > { %v12499_v11 = vpop.permute.xlu0 %4520 }
 0x5b5   : > { %15632 = vst [vmem:[#allocation14_spill] sm:$0xff] %v12499_v11  ;;  %v8404_v11 = vld [vmem:[%s9092_s28 + $0xc7] ss:$8 sm:$0xf] }
 0x5b6   : > { %v12501_v23 = vpop.permute.xlu1 %4522 }
 0x5b7   : > { %15633 = vst [vmem:[#allocation45_spill] sm:$0xff] %v12501_v23 }
 0x5b8   : > { %v12503_v54 = vpop.permute.xlu0 %4524 }
 0x5b9   : > { %15634 = vst [vmem:[#allocation39_spill] sm:$0xff] %v12503_v54  ;;  %v8345_v54 = vld [vmem:[%s9092_s28 + $0x44] ss:$8 sm:$0x7] }
 0x5ba   : > { %v12505_v61 = vpop.permute.xlu1 %4532  ;;  %v4193_v60 = vcombine.low %v8344_v57, %v8345_v54 }
 0x5bc   : > { %v12507_v50 = vpop.permute.xlu0 %4534 }
 0x5be   : > { %v12509_v34 = vpop.permute.xlu1 %4536 }
 0x5c0   : > { %v12511_v7 = vpop.permute.xlu0 %4538 }
 0x5c1   : > { %15635 = vst [vmem:[#allocation30_spill] sm:$0xff] %v12511_v7  ;;  %v8401_v7 = vld [vmem:[%s9092_s28 + $0x7] ss:$8 sm:$0xf] }
 0x5c2   : > { %v4575_v24 = vpop.permute.xlu1 %4574  ;;  %v5625_v6 = vcombine.low %v8401_v7, %v8402_v63 }
 0x5c4   : > { %v4577_v10 = vpop.permute.xlu0 %4576 }
 0x5c5   : > { %v4578_v18 = vsel %vm292_vm0, %v4575_v24, %v4577_v10  ;;  %v4579_v37 = vsel %vm292_vm0, %v4577_v10, %v4461_v28  ;;  %v15638_v24 = vld [vmem:[#allocation51_spill] sm:$0xff] }
 0x5c6   : > { %v4621_v47 = vpop.permute.xlu1 %4620  ;;  %v4778_v30 = vsel %vm571_vm1, %v11943_v52, %v4579_v37  ;;  %v4777_v0 = vsel %vm571_vm1, %v15636_v45, %v4578_v18  ;;  %v4780_v10 = vsel %vm571_vm1, %v15638_v24, %v12465_v55  ;;  %v4779_v52 = vsel %vm571_vm1, %v15639_v12, %v12523_v14  ;;  %v8398_v14 = vld [vmem:[%s9092_s28 + $0x47] ss:$8 sm:$0x7] }
 0x5c7   : > { %4819 = vrot.lane.b32.xlu1 %v4778_v30, %s9003_s8  ;;  %4817 = vrot.lane.b32.xlu0 %v4777_v0, %s9003_s8  ;;  %v5576_v53 = vcombine.low %v8397_v16, %v8398_v14  ;;  %v5591_v16 = vrot.slane %v5577_v17, %v9094_v5 }
 0x5c9   : > { %v4623_v20 = vpop.permute.xlu0 %4622  ;;  %v5584_v14 = vrot.slane %v5576_v53, %v9094_v5  ;;  %v5633_v53 = vrot.slane %v5625_v6, %v9094_v5 }
 0x5ca   : > { %v4625_v15 = vpop.permute.xlu1 %4624  ;;  %v4626_v0 = vsel %vm15640_vm2, %v4621_v47, %v4623_v20  ;;  %vm15645_vm2 = vcmask 285696  }
 0x5cb   : > { %4823 = vrot.lane.b32.xlu1 %v4780_v10, %s9003_s8  ;;  %4821 = vrot.lane.b32.xlu0 %v4779_v52, %s9003_s8  ;;  %v4627_v12 = vsel %vm15642_vm9, %v4623_v20, %v4625_v15  ;;  %vm15647_vm9 = vmmov %vm15645_vm2  ;;  %v5592_v57 = vcombine.low %v5584_v14, %v5591_v16 }
 0x5ce   : > { %v4671_v18 = vpop.permute.xlu0 %4670 }
 0x5cf   : > { %v4673_v30 = vpop.permute.xlu1 %4672  ;;  %v4781_v45 = vsel %vm571_vm1, %v4621_v47, %v4671_v18 }
 0x5d0   : > { %v4678_v37 = vsel %vm15641_vm6, %v4671_v18, %v4673_v30  ;;  %4825 = vrot.lane.b32.xlu0 %v4781_v45, %s9003_s8  ;;  %vm15646_vm6 = vcmask 154624  }
 0x5d1   : > { %v4782_v28 = vsel %vm571_vm1, %v4626_v0, %v4678_v37  ;;  %vm15650_vm14 = vmmov %vm15646_vm6 }
 0x5d2   : > { %4827 = vrot.lane.b32.xlu1 %v4782_v28, %s9003_s8 }
 0x5d3   : > { %v4675_v24 = vpop.permute.xlu0 %4674 }
 0x5d4   : > { %v4679_v10 = vsel %vm15643_vm7, %v4673_v30, %v4675_v24  ;;  %v4677_v52 = vpop.permute.xlu1 %4676  ;;  %vm15648_vm7 = vmmov %vm15646_vm6 }
 0x5d5   : > { %v4680_v39 = vsel %vm15644_vm3, %v4675_v24, %v4677_v52  ;;  %v4783_v38 = vsel %vm571_vm1, %v4627_v12, %v4679_v10  ;;  %vm15649_vm3 = vmmov %vm15645_vm2 }
 0x5d6   : > { %4829 = vrot.lane.b32.xlu0 %v4783_v38, %s9003_s8  ;;  %v4784_v47 = vsel %vm571_vm1, %v4625_v15, %v4680_v39 }
 0x5d7   : > { %4831 = vrot.lane.b32.xlu1 %v4784_v47, %s9003_s8 }
 0x5d8   : > { %v4688_v18 = vpop.permute.xlu0 %4687 }
 0x5d9   : > { %v4690_v45 = vpop.permute.xlu1 %4689 }
 0x5da   : > { %v4695_v30 = vsel %vm15645_vm2, %v4688_v18, %v4690_v45  ;;  %vm15652_vm2 = vcmask 138240  }
 0x5dd   : > { %v4692_v0 = vpop.permute.xlu0 %4691 }
 0x5de   : > { %v4694_v37 = vpop.permute.xlu1 %4693  ;;  %v4696_v15 = vsel %vm15647_vm9, %v4690_v45, %v4692_v0  ;;  %vm15654_vm9 = vmmov %vm15652_vm2 }
 0x5df   : > { %v4697_v52 = vsel %vm15649_vm3, %v4692_v0, %v4694_v37  ;;  %vm15656_vm3 = vmmov %vm15652_vm2 }
 0x5e2   : > { %v4703_v28 = vpop.permute.xlu0 %4702 }
 0x5e3   : > { %v4705_v1 = vpop.permute.xlu1 %4704  ;;  %v4785_v20 = vsel %vm571_vm1, %v4688_v18, %v4703_v28 }
 0x5e4   : > { %v4710_v24 = vsel %vm15646_vm6, %v4703_v28, %v4705_v1  ;;  %4833 = vrot.lane.b32.xlu0 %v4785_v20, %s9003_s8 }
 0x5e5   : > { %v4786_v38 = vsel %vm571_vm1, %v4695_v30, %v4710_v24 }
 0x5e6   : > { %4835 = vrot.lane.b32.xlu1 %v4786_v38, %s9003_s8  ;;  %v4707_v39 = vpop.permute.xlu0 %4706 }
 0x5e7   : > { %v4711_v12 = vsel %vm15648_vm7, %v4705_v1, %v4707_v39  ;;  %v4709_v10 = vpop.permute.xlu1 %4708 }
 0x5e8   : > { %v4712_v47 = vsel %vm15650_vm14, %v4707_v39, %v4709_v10  ;;  %v4787_v18 = vsel %vm571_vm1, %v4696_v15, %v4711_v12  ;;  %vm15651_vm14 = vcmask 146432   ;;  %v8385_v12 = vld [vmem:[%s9092_s28 + $0x5] ss:$8 sm:$0xf] }
 0x5e9   : > { %4837 = vrot.lane.b32.xlu0 %v4787_v18, %s9003_s8  ;;  %v4788_v28 = vsel %vm571_vm1, %v4697_v52, %v4712_v47  ;;  %v8386_v10 = vld [vmem:[%s9092_s28 + $0x45] ss:$8 sm:$0xf]  ;;  %vm15653_vm6 = vmmov %vm15651_vm14 }
 0x5ea   : > { %4839 = vrot.lane.b32.xlu1 %v4788_v28, %s9003_s8  ;;  %v4718_v20 = vpop.permute.xlu0 %4717  ;;  %v8387_v47 = vld [vmem:[%s9092_s28 + $0x85] ss:$8 sm:$0xf]  ;;  %vm15655_vm7 = vmmov %vm15653_vm6 }
 0x5eb   : > { %v4720_v45 = vpop.permute.xlu1 %4719  ;;  %v8388_v18 = vld [vmem:[%s9092_s28 + $0xc5] ss:$8 sm:$0xf] }
 0x5ec   : > { %v4725_v38 = vsel %vm15651_vm14, %v4718_v20, %v4720_v45  ;;  %vm15657_vm14 = vcmask 7168  }
 0x5ee   : > { %v4722_v1 = vpop.permute.xlu0 %4721 }
 0x5ef   : > { %v4724_v30 = vpop.permute.xlu1 %4723  ;;  %v4726_v28 = vsel %vm15653_vm6, %v4720_v45, %v4722_v1 }
 0x5f2   : > { %v4733_v24 = vpop.permute.xlu0 %4732 }
 0x5f3   : > { %v4735_v0 = vpop.permute.xlu1 %4734  ;;  %v4789_v37 = vsel %vm571_vm1, %v4718_v20, %v4733_v24  ;;  %v4727_v20 = vsel %vm15655_vm7, %v4722_v1, %v4724_v30 }
 0x5f4   : > { %v4740_v39 = vsel %vm15652_vm2, %v4733_v24, %v4735_v0  ;;  %4841 = vrot.lane.b32.xlu0 %v4789_v37, %s9003_s8  ;;  %vm15658_vm2 = vmmov %vm15657_vm14 }
 0x5f5   : > { %v4790_v15 = vsel %vm571_vm1, %v4725_v38, %v4740_v39  ;;  %v5222_v39 = vcombine.low %v8385_v12, %v8386_v10  ;;  %vm15659_vm6 = vmmov %vm15658_vm2 }
 0x5f6   : > { %4843 = vrot.lane.b32.xlu1 %v4790_v15, %s9003_s8  ;;  %v4737_v52 = vpop.permute.xlu0 %4736  ;;  %v5223_v15 = vcombine.low %v8387_v47, %v8388_v18 }
 0x5f7   : > { %v4741_v42 = vsel %vm15654_vm9, %v4735_v0, %v4737_v52  ;;  %v4739_v58 = vpop.permute.xlu1 %4738  ;;  %vm15686_vm9 = vcmask 736256  }
 0x5f8   : > { %v4742_v24 = vsel %vm15656_vm3, %v4737_v52, %v4739_v58  ;;  %v4791_v37 = vsel %vm571_vm1, %v4726_v28, %v4741_v42  ;;  %v5230_v58 = vrot.slane %v5222_v39, %v9094_v5  ;;  %v5237_v1 = vrot.slane %v5223_v15, %v9094_v5  ;;  %vm15690_vm7 = vmmov %vm15686_vm9 }
 0x5f9   : > { %4845 = vrot.lane.b32.xlu0 %v4791_v37, %s9003_s8  ;;  %v4792_v38 = vsel %vm571_vm1, %v4727_v20, %v4742_v24  ;;  %vm15698_vm3 = vmmov %vm15690_vm7 }
 0x5fa   : > { %4847 = vrot.lane.b32.xlu1 %v4792_v38, %s9003_s8  ;;  %v4748_v4 = vpop.permute.xlu0 %4747  ;;  %v5239_v20 = vcombine.high %v5230_v58, %v5237_v1 }
 0x5fb   : > { %v4750_v19 = vpop.permute.xlu1 %4749  ;;  %v4793_v45 = vsel %vm571_vm1, %v4748_v4, %v12154_v59 }
 0x5fc   : > { %v4755_v0 = vsel %vm15657_vm14, %v4748_v4, %v4750_v19  ;;  %v5238_v4 = vcombine.low %v5230_v58, %v5237_v1  ;;  %v12604_v38 = vrot.slane %v5239_v20, %v9094_v5  ;;  %v15660_v58 = vld [vmem:[#allocation38_spill] sm:$0xff]  ;;  %vm15746_vm14 = vcmask 302080  }
 0x5fd   : > { %4849 = vrot.lane.b32.xlu0 %v4793_v45, %s9003_s8  ;;  %v4794_v42 = vsel %vm571_vm1, %v4755_v0, %v12167_v41 }
 0x5fe   : > { %4851 = vrot.lane.b32.xlu1 %v4794_v42, %s9003_s8  ;;  %v4752_v30 = vpop.permute.xlu0 %4751  ;;  %v5255_v15 = vcombine.low %v12604_v38, %v12604_v38  ;;  %v12628_v0 = vcombine.high %v12604_v38, %v12604_v38 }
 0x5ff   : > { %v4756_v12 = vsel %vm15658_vm2, %v4750_v19, %v4752_v30  ;;  %v4754_v10 = vpop.permute.xlu1 %4753  ;;  %v12598_v19 = vrot.slane %v5238_v4, %v9094_v5  ;;  %vm15747_vm2 = vcmask 293888  }
 0x600   : > { %v4757_v52 = vsel %vm15659_vm6, %v4752_v30, %v4754_v10  ;;  %v4795_v59 = vsel %vm571_vm1, %v4756_v12, %v12101_v22  ;;  %vm15748_vm6 = vmmov %vm15746_vm14 }
 0x601   : > { %4853 = vrot.lane.b32.xlu0 %v4795_v59, %s9003_s8  ;;  %v4796_v41 = vsel %vm571_vm1, %v4757_v52, %v12109_v32  ;;  %v5254_v39 = vcombine.low %v12598_v19, %v12598_v19  ;;  %v12622_v45 = vcombine.high %v12598_v19, %v12598_v19 }
 0x602   : > { %4855 = vrot.lane.b32.xlu1 %v4796_v41, %s9003_s8  ;;  %v4767_v47 = vpop.permute.xlu0 %4766 }
 0x603   : > { %v4769_v18 = vpop.permute.xlu1 %4768 }
 0x604   : > { %v4774_v28 = vsel %vm292_vm0, %v4767_v47, %v4769_v18 }
 0x605   : > { %4857 = vrot.lane.b32.xlu0 %v4774_v28, %s9003_s8  ;;  %v8394_v28 = vld [vmem:[%s9092_s28 + $0x46] ss:$8 sm:$0xf] }
 0x606   : > { %v4771_v24 = vpop.permute.xlu0 %4770 }
 0x607   : > { %v4773_v22 = vpop.permute.xlu1 %4772  ;;  %v4775_v37 = vsel %vm292_vm0, %v4769_v18, %v4771_v24  ;;  %v8393_v18 = vld [vmem:[%s9092_s28 + $0x6] ss:$8 sm:$0xf] }
 0x608   : > { %4859 = vrot.lane.b32.xlu1 %v4775_v37, %s9003_s8  ;;  %v4776_v32 = vsel %vm292_vm0, %v4771_v24, %v4773_v22  ;;  %v8395_v37 = vld [vmem:[%s9092_s28 + $0x86] ss:$8 sm:$0xf] }
 0x609   : > { %4861 = vrot.lane.b32.xlu0 %v4776_v32, %s9003_s8  ;;  %v8396_v32 = vld [vmem:[%s9092_s28 + $0xc6] ss:$8 sm:$0xf] }
 0x60c   : > { %4863 = vrot.lane.b32.xlu1 %v4773_v22, %s9003_s8 }
 0x60d   : > { %5256 = vrot.lane.b32.xlu0 %v5254_v39, %s8998_s30 }
 0x610   : > { %5258 = vrot.lane.b32.xlu1 %v5255_v15, %s8998_s30 }
 0x611   : > { %5260 = vrot.lane.b32.xlu0 %v12598_v19, %s8998_s30 }
 0x614   : > { %5262 = vrot.lane.b32.xlu1 %v12604_v38, %s8998_s30 }
 0x615   : > { %5272 = vrot.lane.b32.xlu0 %v12598_v19, %s15202_s29 }
 0x618   : > { %5274 = vrot.lane.b32.xlu1 %v12604_v38, %s15202_s29 }
 0x619   : > { %5276 = vrot.lane.b32.xlu0 %v12622_v45, %s15202_s29 }
 0x61c   : > { %5278 = vrot.lane.b32.xlu1 %v12628_v0, %s15202_s29 }
 0x61d   : > { %5286 = vrot.lane.b32.xlu0 %v5254_v39, %s8999_s4 }
 0x620   : > { %5288 = vrot.lane.b32.xlu1 %v5255_v15, %s8999_s4 }
 0x621   : > { %5290 = vrot.lane.b32.xlu0 %v12598_v19, %s8999_s4 }
 0x624   : > { %5292 = vrot.lane.b32.xlu1 %v12604_v38, %s8999_s4 }
 0x625   : > { %5300 = vrot.lane.b32.xlu0 %v12598_v19, %s9000_s5 }
 0x628   : > { %5302 = vrot.lane.b32.xlu1 %v12604_v38, %s9000_s5 }
 0x629   : > { %5304 = vrot.lane.b32.xlu0 %v12622_v45, %s9000_s5 }
 0x62c   : > { %5306 = vrot.lane.b32.xlu1 %v12628_v0, %s9000_s5 }
 0x62d   : > { %5314 = vrot.lane.b32.xlu0 %v5254_v39, %s9001_s6 }
 0x630   : > { %5316 = vrot.lane.b32.xlu1 %v5255_v15, %s9001_s6 }
 0x631   : > { %5318 = vrot.lane.b32.xlu0 %v12598_v19, %s9001_s6 }
 0x632   : > { %v3981_v42 = vpop.f32.mrf.mxu0 }
 0x633   : > { %v3982_v1 = vadd.f32 %v3981_v42, %v15660_v58 }
 0x634   : > { %v3983_v30 = vpop.f32.mrf.mxu0  ;;  %v4052_v12 = vpop.f32.mrf.mxu1  ;;  %5320 = vrot.lane.b32.xlu1 %v12604_v38, %s9001_s6 }
 0x635   : > { %v3984_v10 = vadd.f32 %v3983_v30, %v15660_v58  ;;  %v4053_v52 = vadd.f32 %v4052_v12, %v15660_v58  ;;  %5328 = vrot.lane.b32.xlu0 %v12598_v19, %s9002_s7  ;;  %v4056_v41 = vmax.f32 %v3982_v1, 0.0 }
 0x636   : > { %v8739_v59 = vpop.f32.mrf.mxu1 }
 0x637   : > { %v4057_v4 = vmax.f32 %v3984_v10, 0.0  ;;  %v4058_v47 = vmax.f32 %v4053_v52, 0.0  ;;  %v5415_v10 = vcombine.low %v8393_v18, %v8394_v28  ;;  %v5416_v52 = vcombine.low %v8395_v37, %v8396_v32 }
 0x638   : > { %5330 = vrot.lane.b32.xlu1 %v12604_v38, %s9002_s7 }
 0x639   : > { %v4062_v20 = vcombine.low %v4056_v41, %v4057_v4  ;;  %v4063_v24 = vcombine.high %v4056_v41, %v4057_v4  ;;  %v4064_v22 = vcombine.high %v4058_v47, %v4058_v47  ;;  %5332 = vrot.lane.b32.xlu0 %v12622_v45, %s9002_s7  ;;  %v4085_v1 = vrot.slane %v4058_v47, %v9094_v5 }
 0x63a   : > { %v5423_v28 = vrot.slane %v5415_v10, %v9094_v5 }
 0x63b   : > { %v4071_v42 = vrot.slane %v4062_v20, %v9094_v5  ;;  %v4078_v30 = vrot.slane %v4063_v24, %v9094_v5  ;;  %v4092_v12 = vrot.slane %v4064_v22, %v9094_v5  ;;  %v5430_v22 = vrot.slane %v5416_v52, %v9094_v5 }
 0x63c   : > { %5334 = vrot.lane.b32.xlu1 %v12628_v0, %s9002_s7 }
 0x63d   : > { %v4093_v59 = vcombine.low %v4071_v42, %v4085_v1  ;;  %v4094_v41 = vcombine.high %v4071_v42, %v4085_v1  ;;  %v4095_v4 = vcombine.low %v4078_v30, %v4092_v12  ;;  %v4096_v58 = vcombine.high %v4078_v30, %v4092_v12  ;;  %5342 = vrot.lane.b32.xlu0 %v5254_v39, %s9003_s8  ;;  %v12713_v1 = vpop.permute.xlu1 %4819 }
 0x63e   : > { %v5432_v12 = vcombine.high %v5423_v28, %v5430_v22 }
 0x63f   : > { %v4103_v20 = vrot.slane %v4093_v59, %v9094_v5  ;;  %v4110_v47 = vrot.slane %v4095_v4, %v9094_v5  ;;  %v4117_v24 = vrot.slane %v4094_v41, %v9094_v5  ;;  %v4124_v18 = vrot.slane %v4096_v58, %v9094_v5  ;;  %v12711_v58 = vpop.permute.xlu0 %4817 }
 0x640   : > { %5344 = vrot.lane.b32.xlu1 %v5255_v15, %s9003_s8  ;;  %v5431_v15 = vcombine.low %v5423_v28, %v5430_v22 }
 0x641   : > { %v4125_v37 = vcombine.high %v4103_v20, %v4103_v20  ;;  %v4126_v39 = vcombine.high %v4110_v47, %v4110_v47  ;;  %v4127_v32 = vcombine.high %v4117_v24, %v4117_v24  ;;  %v4128_v42 = vcombine.high %v4124_v18, %v4124_v18  ;;  %8336 = vst.msk [vmem:[%s10311_s26 + $0x3] ss:$8 sm:$0x7] %vm10299_vm5, %v4103_v20  ;;  %v12735_v59 = vpop.permute.xlu1 %4823 }
 0x642   : > { %8337 = vst.msk [vmem:[%s10311_s26 + $0x1b] ss:$8 sm:$0x7] %vm10299_vm5, %v4117_v24  ;;  %8340 = vst.msk [vmem:[%s10311_s26 + $0x63] ss:$8 sm:$0x7] %vm10299_vm5, %v4110_v47  ;;  %5346 = vrot.lane.b32.xlu0 %v12598_v19, %s9003_s8  ;;  %v12720_v10 = vrot.slane %v5431_v15, %v9094_v5 }
 0x643   : > { %8341 = vst.msk [vmem:[%s10311_s26 + $0x7b] ss:$8 sm:$0x7] %vm10299_vm5, %v4124_v18  ;;  %8338 = vst.msk [vmem:[%s10311_s26 + $0x33] ss:$8 sm:$0x7] %vm10299_vm5, %v4125_v37  ;;  %v12722_v52 = vpop.permute.xlu0 %4821 }
 0x644   : > { %8339 = vst.msk [vmem:[%s10311_s26 + $0x4b] ss:$8 sm:$0x7] %vm10299_vm5, %v4127_v32  ;;  %8342 = vst.msk [vmem:[%s10311_s26 + $0x93] ss:$8 sm:$0x7] %vm10299_vm5, %v4126_v39  ;;  %5348 = vrot.lane.b32.xlu1 %v12604_v38, %s9003_s8 }
 0x645   : > { %8343 = vst.msk [vmem:[%s10311_s26 + $0xab] ss:$8 sm:$0x7] %vm10299_vm5, %v4128_v42  ;;  %15662 = vst [vmem:[#allocation42_spill] sm:$0xff] %v12720_v10  ;;  %v12751_v4 = vpop.permute.xlu1 %4827 }
 0x646   : > { %5356 = vrot.lane.b32.xlu0 %v12598_v19, %s15178_s9  ;;  %v12727_v19 = vrot.slane %v5432_v12, %v9094_v5  ;;  %15664 = vst [vmem:[#allocation24_spill] sm:$0xff] %v12735_v59  ;;  %v8352_v15 = vld [vmem:[%s9092_s28 + $0x5] ss:$8 sm:$0x7] }
 0x647   : > { %v12749_v41 = vpop.permute.xlu0 %4825  ;;  %v8353_v12 = vld [vmem:[%s9092_s28 + $0x45] ss:$8 sm:$0x7]  ;;  %v8347_v59 = vld [vmem:[%s9092_s28 + $0xc4] ss:$8 sm:$0x7] }
 0x648   : > { %5358 = vrot.lane.b32.xlu1 %v12604_v38, %s15178_s9  ;;  %v12733_v38 = vcombine.high %v12720_v10, %v12720_v10  ;;  %v12757_v20 = vcombine.low %v12727_v19, %v12727_v19  ;;  %v4385_v33 = vcombine.low %v8352_v15, %v8353_v12  ;;  %v4194_v12 = vcombine.low %v8346_v51, %v8347_v59 }
 0x649   : > { %v12767_v24 = vpop.permute.xlu1 %4831 }
 0x64a   : > { %5360 = vrot.lane.b32.xlu0 %v12622_v45, %s15178_s9  ;;  %15663 = vst [vmem:[#allocation21_spill] sm:$0xff] %v12733_v38  ;;  %v12741_v45 = vcombine.high %v12727_v19, %v12727_v19  ;;  %15666 = vst [vmem:[#allocation35_spill] sm:$0xff] %v12767_v24  ;;  %v8403_v24 = vld [vmem:[%s9092_s28 + $0x87] ss:$8 sm:$0xf]  ;;  %v4393_v15 = vrot.slane %v4385_v33, %v9094_v5  ;;  %v4201_v33 = vrot.slane %v4193_v60, %v9094_v5 }
 0x64b   : > { %v12761_v47 = vpop.permute.xlu0 %4829  ;;  %v4208_v44 = vrot.slane %v4194_v12, %v9094_v5 }
 0x64c   : > { %5362 = vrot.lane.b32.xlu1 %v12628_v0, %s15178_s9  ;;  %15665 = vst [vmem:[#allocation48_spill] sm:$0xff] %v12741_v45  ;;  %v12747_v0 = vcombine.low %v12720_v10, %v12720_v10  ;;  %s15768_s9 = smov 90  }
 0x64d   : > { %v4210_v59 = vcombine.high %v4201_v33, %v4208_v44 }
 0x64e   : > { %5449 = vrot.lane.b32.xlu0 %v12720_v10, %s8998_s30 }
 0x650   : > { %5451 = vrot.lane.b32.xlu1 %v12727_v19, %s8998_s30 }
 0x652   : > { %5453 = vrot.lane.b32.xlu0 %v12733_v38, %s8998_s30 }
 0x654   : > { %5455 = vrot.lane.b32.xlu1 %v12741_v45, %s8998_s30 }
 0x656   : > { %5465 = vrot.lane.b32.xlu0 %v12747_v0, %s15202_s29  ;;  %v12769_v18 = vpop.permute.xlu0 %4833 }
 0x658   : > { %5467 = vrot.lane.b32.xlu1 %v12757_v20, %s15202_s29  ;;  %v12775_v28 = vpop.permute.xlu1 %4835 }
 0x65a   : > { %5469 = vrot.lane.b32.xlu0 %v12720_v10, %s15202_s29 }
 0x65b   : > { %v12781_v22 = vpop.permute.xlu0 %4837 }
 0x65c   : > { %5471 = vrot.lane.b32.xlu1 %v12727_v19, %s15202_s29  ;;  %v12783_v37 = vpop.permute.xlu1 %4839 }
 0x65e   : > { %5479 = vrot.lane.b32.xlu0 %v12720_v10, %s8999_s4 }
 0x660   : > { %5481 = vrot.lane.b32.xlu1 %v12727_v19, %s8999_s4 }
 0x662   : > { %5483 = vrot.lane.b32.xlu0 %v12733_v38, %s8999_s4 }
 0x664   : > { %5485 = vrot.lane.b32.xlu1 %v12741_v45, %s8999_s4 }
 0x666   : > { %5493 = vrot.lane.b32.xlu0 %v12747_v0, %s9000_s5  ;;  %v12789_v39 = vpop.permute.xlu0 %4841 }
 0x668   : > { %v12791_v32 = vpop.permute.xlu1 %4843  ;;  %5495 = vrot.lane.b32.xlu1 %v12757_v20, %s9000_s5 }
 0x66a   : > { %5497 = vrot.lane.b32.xlu0 %v12720_v10, %s9000_s5 }
 0x66b   : > { %v12797_v42 = vpop.permute.xlu0 %4845 }
 0x66c   : > { %v12801_v30 = vpop.permute.xlu1 %4847  ;;  %5499 = vrot.lane.b32.xlu1 %v12727_v19, %s9000_s5 }
 0x66e   : > { %5507 = vrot.lane.b32.xlu0 %v12720_v10, %s9001_s6 }
 0x66f   : > { %v4850_v13 = vpop.permute.xlu0 %4849 }
 0x670   : > { %v4852_v55 = vpop.permute.xlu1 %4851  ;;  %5509 = vrot.lane.b32.xlu1 %v12727_v19, %s9001_s6 }
 0x672   : > { %5511 = vrot.lane.b32.xlu0 %v12733_v38, %s9001_s6  ;;  %v5626_v38 = vcombine.low %v8403_v24, %v8404_v11  ;;  %v4401_v11 = vcombine.low %v4393_v15, %v4400_v35  ;;  %v4209_v24 = vcombine.low %v4201_v33, %v4208_v44 }
 0x673   : > { %v4854_v26 = vpop.permute.xlu0 %4853 }
 0x674   : > { %5513 = vrot.lane.b32.xlu1 %v12741_v45, %s9001_s6  ;;  %v4856_v27 = vpop.permute.xlu1 %4855  ;;  %v4402_v45 = vcombine.high %v4393_v15, %v4400_v35  ;;  %v5640_v17 = vrot.slane %v5626_v38, %v9094_v5  ;;  %v5600_v38 = vrot.slane %v5592_v57, %v9094_v5  ;;  %v5593_v15 = vcombine.high %v5584_v14, %v5591_v16 }
 0x675   : > { %v4878_v12 = vsel %vm384_vm13, %v4852_v55, %v4854_v26  ;;  %v12866_v16 = vrot.slane %v4210_v59, %v9094_v5  ;;  %v12869_v44 = vrot.slane %v4209_v24, %v9094_v5  ;;  %v4879_v57 = vsel %vm384_vm13, %v4854_v26, %v4856_v27 }
 0x676   : > { %5521 = vrot.lane.b32.xlu0 %v12747_v0, %s9002_s7  ;;  %v12845_v7 = vrot.slane %v4402_v45, %v9094_v5  ;;  %v5641_v6 = vcombine.low %v5633_v53, %v5640_v17  ;;  %v5642_v33 = vcombine.high %v5633_v53, %v5640_v17  ;;  %v4874_v53 = vsel %vm384_vm13, %v12789_v39, %v12791_v32 }
 0x677   : > { %v4858_v23 = vpop.permute.xlu0 %4857  ;;  %v4872_v26 = vsel %vm384_vm13, %v12775_v28, %v12781_v22  ;;  %v12900_v39 = vsel %vm292_vm0, %v12071_v40, %v12095_v56  ;;  %v12914_v59 = vsel %vm339_vm15, %v12356_v2, %v12365_v9  ;;  %v12919_v40 = vsel %vm354_vm12, %v12388_v43, %v12400_v31 }
 0x678   : > { %5523 = vrot.lane.b32.xlu1 %v12757_v20, %s9002_s7  ;;  %v4418_v14 = vcombine.low %v12845_v7, %v12845_v7  ;;  %v12885_v17 = vrot.slane %v5641_v6, %v9094_v5  ;;  %v12893_v27 = vrot.slane %v5642_v33, %v9094_v5  ;;  %v4869_v43 = vsel %vm384_vm13, %v12751_v4, %v12761_v47 }
 0x67a   : > { %5525 = vrot.lane.b32.xlu0 %v12720_v10, %s9002_s7  ;;  %v4860_v51 = vpop.permute.xlu1 %4859 }
 0x67b   : > { %v4862_v63 = vpop.permute.xlu0 %4861  ;;  %v4880_v60 = vsel %vm384_vm13, %v4858_v23, %v4860_v51  ;;  %v4877_v23 = vsel %vm384_vm13, %v4850_v13, %v4852_v55  ;;  %v4875_v13 = vsel %vm384_vm13, %v12791_v32, %v12797_v42  ;;  %v5607_v55 = vrot.slane %v5593_v15, %v9094_v5 }
 0x67c   : > { %5527 = vrot.lane.b32.xlu1 %v12727_v19, %s9002_s7  ;;  %v4881_v54 = vsel %vm384_vm13, %v4860_v51, %v4862_v63  ;;  %v12905_v32 = vsel %vm324_vm11, %v12246_v36, %v12274_v3  ;;  %v4876_v36 = vsel %vm384_vm13, %v12797_v42, %v12801_v30  ;;  %v12938_v30 = vcombine.low %v12885_v17, %v12885_v17 }
 0x67d   : > { %8368 = vmatprep.subr.msk.mxu0 %vm571_vm1, %v4881_v54  ;;  %v4871_v54 = vsel %vm384_vm13, %v12769_v18, %v12775_v28  ;;  %v12928_v18 = vsel %vm354_vm12, %v12400_v31, %v12404_v46  ;;  %v4873_v42 = vsel %vm384_vm13, %v12781_v22, %v12783_v37  ;;  %v4868_v31 = vsel %vm384_vm13, %v12749_v41, %v12751_v4 }
 0x67e   : > { %5563 = vrot.lane.b32.xlu0 %v12747_v0, %s8998_s30  ;;  %v4864_v35 = vpop.permute.xlu1 %4863  ;;  %8369 = vmatpush1.msk.msra.mxu0 %vm571_vm1, %v4880_v60  ;;  %v12859_v0 = vrot.slane %v4401_v11, %v9094_v5  ;;  %v12951_v60 = vcombine.low %v12893_v27, %v12893_v27  ;;  %v4541_v22 = vsel %vm369_vm8, %v12507_v50, %v12509_v34 }
 0x67f   : > { %v4882_v45 = vsel %vm384_vm13, %v4862_v63, %v4864_v35  ;;  %v12855_v10 = vpop.permute.xlu0 %5256  ;;  %4910 = vmatprep.subr.mxu0 %v4878_v12  ;;  %v4866_v41 = vsel %vm384_vm13, %v12713_v1, %v12722_v52  ;;  %v4499_v4 = vsel %vm324_vm11, %v12483_v21, %v12485_v49  ;;  %v4540_v37 = vsel %vm369_vm8, %v12505_v61, %v12507_v50  ;;  %v15670_v35 = vld [vmem:[#allocation45_spill] sm:$0xff]  ;;  %v15671_v12 = vld [vmem:[#allocation14_spill] sm:$0xff] }
 0x680   : > { %5565 = vrot.lane.b32.xlu1 %v12757_v20, %s8998_s30  ;;  %4911 = vmatpush1.msra.mxu0 %v4877_v23  ;;  %v5608_v20 = vcombine.high %v5600_v38, %v5600_v38  ;;  %v4417_v11 = vcombine.low %v12859_v0, %v12859_v0  ;;  %v4513_v15 = vsel %vm339_vm15, %v12491_v48, %v12493_v29  ;;  %v15674_v50 = vld [vmem:[#allocation10_spill] sm:$0xff] }
 0x681   : > { %8741 = vmatpush3.msk.msra.mxu1 %vm571_vm1, %v4882_v45  ;;  %4912 = vmatprep.subr.mxu0 %v4875_v13  ;;  %v4527_v6 = vsel %vm354_vm12, %v15671_v12, %v15670_v35  ;;  %v15672_v45 = vld [vmem:[#allocation35_spill] sm:$0xff] }
 0x682   : > { %5609 = vrot.lane.b32.xlu0 %v5600_v38, %s15667_s10  ;;  %8742 = vmatprep.subr.mxu1 %v15252_v62  ;;  %v12879_v51 = vpop.permute.xlu1 %5258  ;;  %v4484_v38 = vsel %vm309_vm10, %v12473_v25, %v12475_v8  ;;  %v4865_v25 = vsel %vm384_vm13, %v12711_v58, %v12713_v1  ;;  %v4870_v23 = vsel %vm384_vm13, %v12761_v47, %v15672_v45  ;;  %v15675_v1 = vld [vmem:[#allocation41_spill] sm:$0xff] }
 0x683   : > { %4913 = vmatpush1.msra.mxu0 %v4874_v53  ;;  %8743 = vmatpush3.msra.mxu1 %v4879_v57  ;;  %v12887_v63 = vpop.permute.xlu0 %5260  ;;  %v4512_v58 = vsel %vm339_vm15, %v15674_v50, %v12491_v48  ;;  %v4526_v33 = vsel %vm354_vm12, %v15675_v1, %v15671_v12  ;;  %v4568_v47 = vsel %vm571_vm1, %v4527_v6, %v4541_v22  ;;  %v15678_v57 = vld [vmem:[#allocation24_spill] sm:$0xff]  ;;  %v15682_v22 = vld [vmem:[#allocation39_spill] sm:$0xff]  ;;  %v15692_v1 = vld [vmem:[#allocation33_spill] sm:$0xff] }
 0x684   : > { %4914 = vmatprep.subr.mxu0 %v4872_v26  ;;  %8744 = vmatprep.subr.mxu1 %v15252_v62  ;;  %v4567_v48 = vsel %vm571_vm1, %v4526_v33, %v4540_v37  ;;  %v4867_v53 = vsel %vm384_vm13, %v12722_v52, %v15678_v57  ;;  %v15679_v26 = vld [vmem:[#allocation15_spill] sm:$0xff]  ;;  %v4528_v52 = vsel %vm354_vm12, %v15670_v35, %v15682_v22  ;;  %v15702_v22 = vld [vmem:[#allocation46_spill] sm:$0xff] }
 0x685   : > { %5611 = vrot.lane.b32.xlu1 %v5607_v55, %s15667_s10  ;;  %4915 = vmatpush1.msra.mxu0 %v4871_v54  ;;  %v15677_v55 = vld [vmem:[#allocation30_spill] sm:$0xff]  ;;  %v4485_v54 = vsel %vm309_vm10, %v12475_v8, %v15679_v26  ;;  %v15685_v37 = vld [vmem:[#allocation7_spill] sm:$0xff]  ;;  %v4486_v33 = vsel %vm309_vm10, %v15679_v26, %v15692_v1 }
 0x686   : > { %8745 = vmatpush3.msra.mxu1 %v4876_v36  ;;  %5613 = vrot.lane.b32.xlu0 %v5608_v20, %s15667_s10  ;;  %v12934_v28 = vpop.permute.xlu1 %5262  ;;  %v4542_v20 = vsel %vm369_vm8, %v12509_v34, %v15677_v55  ;;  %v15680_v36 = vld [vmem:[#allocation25_spill] sm:$0xff]  ;;  %v4565_v34 = vsel %vm571_vm1, %v4499_v4, %v4513_v15  ;;  %v15687_v4 = vld [vmem:[#allocation31_spill] sm:$0xff] }
 0x687   : > { %15668 = vst [vmem:[#allocation52_spill] sm:$0xff] %v12934_v28  ;;  %4916 = vmatprep.subr.mxu0 %v4869_v43  ;;  %8746 = vmatprep.subr.mxu1 %v15252_v62  ;;  %v12947_v24 = vpop.permute.xlu0 %5272  ;;  %v4498_v43 = vsel %vm324_vm11, %v15680_v36, %v12483_v21  ;;  %v15684_v21 = vld [vmem:[#allocation44_spill] sm:$0xff]  ;;  %v15688_v15 = vld [vmem:[#allocation9_spill] sm:$0xff]  ;;  %v15689_v6 = vld [vmem:[#allocation11_spill] sm:$0xff] }
 0x688   : > { %15669 = vst [vmem:[#allocation51_spill] sm:$0xff] %v12947_v24  ;;  %4917 = vmatpush1.msra.mxu0 %v4868_v31  ;;  %8747 = vmatpush3.msra.mxu1 %v4873_v42  ;;  %v15681_v42 = vld [vmem:[#allocation22_spill] sm:$0xff]  ;;  %v4564_v8 = vsel %vm571_vm1, %v4498_v43, %v4512_v58  ;;  %v4469_v12 = vsel %vm292_vm0, %v15688_v15, %v15687_v4  ;;  %v15704_v15 = vld [vmem:[#allocation29_spill] sm:$0xff] }
 0x689   : > { %4918 = vmatprep.subr.mxu0 %v4866_v41  ;;  %8748 = vmatprep.subr.mxu1 %v15252_v62  ;;  %v4514_v31 = vsel %vm339_vm15, %v12493_v29, %v15681_v42  ;;  %v4569_v29 = vsel %vm571_vm1, %v4528_v52, %v4542_v20  ;;  %v4375_v45 = vsel %vm15690_vm7, %v15689_v6, %v15685_v37  ;;  %v15742_v24 = vld [vmem:[#allocation42_spill] sm:$0xff]  ;;  %vm15750_vm7 = vmmov %vm15747_vm2 }
 0x68a   : > { %5659 = vrot.lane.b32.xlu1 %v12938_v30, %s15563_s11  ;;  %4919 = vmatpush1.msra.mxu0 %v4865_v25  ;;  %v12983_v61 = vpop.permute.xlu1 %5274  ;;  %v4376_v25 = vsel %vm15686_vm9, %v15685_v37, %v15684_v21  ;;  %v4562_v58 = vsel %vm571_vm1, %v4469_v12, %v4485_v54  ;;  %v4558_v7 = vsel %vm571_vm1, %v4375_v45, %v4417_v11  ;;  %vm15749_vm9 = vmmov %vm15747_vm2 }
 0x68b   : > { %15673 = vst [vmem:[#allocation40_spill] sm:$0xff] %v12983_v61  ;;  %8749 = vmatpush3.msra.mxu1 %v4870_v23  ;;  %5661 = vrot.lane.b32.xlu0 %v12951_v60, %s15563_s11  ;;  %v12994_v13 = vpop.permute.xlu0 %5276  ;;  %v15691_v23 = vld [vmem:[#allocation47_spill] sm:$0xff]  ;;  %v4559_v26 = vsel %vm571_vm1, %v4376_v25, %v4418_v14  ;;  %v15701_v14 = vld [vmem:[#allocation5_spill] sm:$0xff]  ;;  %v13098_v6 = vcombine.high %v12893_v27, %v12893_v27 }
 0x68c   : > { %15676 = vst [vmem:[#allocation45_spill] sm:$0xff] %v12994_v13  ;;  %4920 = vmatprep.subr.mxu0 %v4568_v47  ;;  %8750 = vmatprep.subr.mxu1 %v15252_v62  ;;  %v4500_v50 = vsel %vm324_vm11, %v12485_v49, %v15691_v23  ;;  %v15693_v47 = vld [vmem:[#allocation27_spill] sm:$0xff]  ;;  %v15695_v49 = vld [vmem:[#allocation36_spill] sm:$0xff]  ;;  %v4347_v52 = vsel %vm369_vm8, %v15702_v22, %v15701_v14  ;;  %v15706_v23 = vld [vmem:[#allocation18_spill] sm:$0xff] }
 0x68d   : > { %4921 = vmatpush1.msra.mxu0 %v4567_v48  ;;  %8751 = vmatpush3.msra.mxu1 %v4867_v53  ;;  %v4561_v55 = vsel %vm571_vm1, %v15693_v47, %v4484_v38  ;;  %v4566_v20 = vsel %vm571_vm1, %v4500_v50, %v4514_v31  ;;  %v15694_v48 = vld [vmem:[#allocation13_spill] sm:$0xff]  ;;  %v15696_v53 = vld [vmem:[#allocation20_spill] sm:$0xff]  ;;  %v15697_v38 = vld [vmem:[#allocation26_spill] sm:$0xff]  ;;  %v4306_v50 = vsel %vm324_vm11, %v12274_v3, %v15706_v23 }
 0x68e   : > { %4922 = vmatprep.subr.mxu0 %v4565_v34  ;;  %8752 = vmatprep.subr.mxu1 %v15252_v62  ;;  %v13019_v41 = vpop.permute.xlu1 %5278  ;;  %v4361_v57 = vsel %vm384_vm13, %v15695_v49, %v15694_v48  ;;  %v4362_v54 = vsel %vm384_vm13, %v15694_v48, %v15696_v53  ;;  %v4377_v43 = vsel %vm15698_vm3, %v15684_v21, %v15697_v38  ;;  %v15699_v34 = vld [vmem:[#allocation23_spill] sm:$0xff]  ;;  %v15709_v47 = vld [vmem:[#allocation16_spill] sm:$0xff]  ;;  %v15711_v48 = vld [vmem:[#allocation37_spill] sm:$0xff]  ;;  %vm15751_vm3 = vcmask 285696  }
 0x68f   : > { %15683 = vst [vmem:[#allocation14_spill] sm:$0xff] %v13019_v41  ;;  %5663 = vrot.lane.b32.xlu1 %v12885_v17, %s15563_s11  ;;  %4923 = vmatpush1.msra.mxu0 %v4564_v8  ;;  %v13030_v35 = vpop.permute.xlu0 %5286  ;;  %v4470_v42 = vsel %vm292_vm0, %v15687_v4, %v15699_v34  ;;  %v15703_v8 = vld [vmem:[#allocation50_spill] sm:$0xff]  ;;  %v4555_v25 = vsel %vm571_vm1, %v4347_v52, %v4361_v57  ;;  %v15713_v49 = vld [vmem:[#allocation19_spill] sm:$0xff]  ;;  %v15717_v52 = vld [vmem:[#allocation32_spill] sm:$0xff] }
 0x690   : > { %8753 = vmatpush3.msra.mxu1 %v4569_v29  ;;  %5665 = vrot.lane.b32.xlu0 %v12893_v27, %s15563_s11  ;;  %v4348_v21 = vsel %vm369_vm8, %v15701_v14, %v15703_v8  ;;  %v4563_v37 = vsel %vm571_vm1, %v4470_v42, %v4486_v33  ;;  %v13088_v4 = vcombine.high %v12885_v17, %v12885_v17 }
 0x691   : > { %4924 = vmatprep.subr.mxu0 %v4562_v58  ;;  %8754 = vmatprep.subr.mxu1 %v15252_v62  ;;  %v4556_v11 = vsel %vm571_vm1, %v4348_v21, %v4362_v54  ;;  %v4363_v12 = vsel %vm384_vm13, %v15696_v53, %v15704_v15  ;;  %v4560_v29 = vsel %vm571_vm1, %v4377_v43, %v12859_v0  ;;  %v15707_v58 = vld [vmem:[#allocation6_spill] sm:$0xff]  ;;  %v15714_v53 = vld [vmem:[#allocation28_spill] sm:$0xff]  ;;  %v15718_v21 = vld [vmem:[#allocation49_spill] sm:$0xff] }
 0x692   : > { %4925 = vmatpush1.msra.mxu0 %v4561_v55  ;;  %8755 = vmatpush3.msra.mxu1 %v4566_v20  ;;  %v13058_v36 = vpop.permute.xlu1 %5288  ;;  %v4319_v1 = vsel %vm339_vm15, %v15707_v58, %v12356_v2  ;;  %v4553_v0 = vsel %vm571_vm1, %v12914_v59, %v12928_v18  ;;  %v4335_v55 = vsel %vm354_vm12, %v12404_v46, %v15709_v47  ;;  %v15710_v20 = vld [vmem:[#allocation34_spill] sm:$0xff]  ;;  %v15712_v18 = vld [vmem:[#allocation17_spill] sm:$0xff]  ;;  %v15716_v43 = vld [vmem:[#allocation12_spill] sm:$0xff] }
 0x693   : > { %4926 = vmatprep.subr.mxu0 %v4559_v26  ;;  %8756 = vmatprep.subr.mxu1 %v15252_v62  ;;  %v13071_v31 = vpop.permute.xlu0 %5290  ;;  %v4349_v3 = vsel %vm369_vm8, %v15703_v8, %v15710_v20  ;;  %v4552_v2 = vsel %vm571_vm1, %v4319_v1, %v12919_v40  ;;  %v4276_v59 = vsel %vm292_vm0, %v12095_v56, %v15711_v48  ;;  %v15715_v26 = vld [vmem:[#allocation8_spill] sm:$0xff]  ;;  %v8931_v15 = vld [vmem:[%s15053_s1] sm:$0xff] }
 0x694   : > { %15700 = vst [vmem:[#allocation35_spill] sm:$0xff] %v13071_v31  ;;  %5676 = vrot.lane.b32.xlu1 %v12885_v17, %s15482_s17  ;;  %4927 = vmatpush1.msra.mxu0 %v4558_v7  ;;  %v4292_v57 = vsel %vm309_vm10, %v15713_v49, %v15712_v18  ;;  %v4557_v46 = vsel %vm571_vm1, %v4349_v3, %v4363_v12  ;;  %v15745_v31 = vld [vmem:[#allocation21_spill] sm:$0xff] }
 0x695   : > { %8757 = vmatpush3.msra.mxu1 %v4563_v37  ;;  %5678 = vrot.lane.b32.xlu0 %v12893_v27, %s15482_s17  ;;  %v4291_v54 = vsel %vm309_vm10, %v15714_v53, %v15713_v49  ;;  %v4321_v40 = vsel %vm339_vm15, %v12365_v9, %v15715_v26  ;;  %v4550_v56 = vsel %vm571_vm1, %v4292_v57, %v4306_v50 }
 0x696   : > { %4928 = vmatprep.subr.mxu0 %v4556_v11  ;;  %8758 = vmatprep.subr.mxu1 %v15252_v62  ;;  %v13100_v45 = vpop.permute.xlu1 %5292  ;;  %v4307_v34 = vsel %vm324_vm11, %v15706_v23, %v15716_v43  ;;  %v4549_v42 = vsel %vm571_vm1, %v4291_v54, %v12905_v32  ;;  %v4554_v9 = vsel %vm571_vm1, %v4321_v40, %v4335_v55 }
 0x697   : > { %15705 = vst [vmem:[#allocation10_spill] sm:$0xff] %v13100_v45  ;;  %4929 = vmatpush1.msra.mxu0 %v4555_v25  ;;  %8759 = vmatpush3.msra.mxu1 %v4560_v29  ;;  %v13111_v33 = vpop.permute.xlu0 %5300  ;;  %v4547_v14 = vsel %vm571_vm1, %v12866_v16, %v4276_v59  ;;  %v4225_v22 = vcombine.high %v12869_v44, %v12869_v44 }
 0x698   : > { %15708 = vst [vmem:[#allocation41_spill] sm:$0xff] %v13111_v33  ;;  %4930 = vmatprep.subr.mxu0 %v4553_v0  ;;  %8760 = vmatprep.subr.mxu1 %v15252_v62  ;;  %v4277_v8 = vsel %vm292_vm0, %v15711_v48, %v15717_v52  ;;  %v4293_v32 = vsel %vm309_vm10, %v15712_v18, %v15718_v21 }
 0x699   : > { %5680 = vrot.lane.b32.xlu1 %v13088_v4, %s15482_s17  ;;  %4931 = vmatpush1.msra.mxu0 %v4552_v2  ;;  %v4546_v37 = vsel %vm571_vm1, %v12869_v44, %v12900_v39  ;;  %v4551_v16 = vsel %vm571_vm1, %v4293_v32, %v4307_v34  ;;  %v4548_v44 = vsel %vm571_vm1, %v4225_v22, %v4277_v8 }
 0x69a   : > { %8761 = vmatpush3.msra.mxu1 %v4557_v46  ;;  %5682 = vrot.lane.b32.xlu0 %v13098_v6, %s15482_s17  ;;  %v13140_v38 = vpop.permute.xlu1 %5302 }
 0x69b   : > { %4932 = vmatprep.subr.mxu0 %v4550_v56  ;;  %8762 = vmatprep.subr.mxu1 %v15252_v62  ;;  %v13149_v7 = vpop.permute.xlu0 %5304 }
 0x69c   : > { %4933 = vmatpush1.msra.mxu0 %v4549_v42  ;;  %8763 = vmatpush3.msra.mxu1 %v4554_v9 }
 0x69d   : > { %4934 = vmatprep.subr.mxu0 %v4547_v14  ;;  %8764 = vmatprep.subr.mxu1 %v15252_v62 }
 0x69e   : > { %5691 = vrot.lane.b32.xlu1 %v12938_v30, %s9008_s19  ;;  %4935 = vmatpush1.msra.mxu0 %v4546_v37  ;;  %v13168_v11 = vpop.permute.xlu1 %5306 }
 0x69f   : > { %15719 = vst [vmem:[#allocation30_spill] sm:$0xff] %v13168_v11  ;;  %8765 = vmatpush3.msra.mxu1 %v4551_v16  ;;  %5693 = vrot.lane.b32.xlu0 %v12951_v60, %s9008_s19  ;;  %v13172_v25 = vpop.permute.xlu0 %5314 }
 0x6a0   : > { %8370 = vmatmul.mubr.msk.f32.vlgmr.msra.gmra.mxu0 %vm354_vm12, %v8931_v15  ;;  %8766 = vmatprep.subr.mxu1 %v15252_v62 }
 0x6a1   : > { %8767 = vmatpush3.msra.mxu1 %v4548_v44  ;;  %5957 = vmatprep.mubr.f32.mxu0 %v15252_v62 }
 0x6a2   : > { %8769 = vmatmul.mubr.msk.f32.vlgmr.msra.gmra.mxu1 %vm354_vm12, %v8931_v15  ;;  %5695 = vrot.lane.b32.xlu1 %v12885_v17, %s9008_s19  ;;  %v13184_v39 = vpop.permute.xlu1 %5316 }
 0x6a3   : > { %5697 = vrot.lane.b32.xlu0 %v12893_v27, %s9008_s19  ;;  %v13188_v12 = vpop.permute.xlu0 %5318  ;;  %8771 = vmatprep.subr.mxu1 %v15252_v62 }
 0x6a4   : > { %8799 = vmatprep.mubr.msk.f32.mxu1 %vm15608_vm4, %v15252_v62 }
 0x6a6   : > { %5706 = vrot.lane.b32.xlu1 %v12885_v17, %s9009_s20  ;;  %v13195_v29 = vpop.permute.xlu1 %5320 }
 0x6a7   : > { %15720 = vst [vmem:[#allocation24_spill] sm:$0xff] %v13195_v29  ;;  %5708 = vrot.lane.b32.xlu0 %v12893_v27, %s9009_s20  ;;  %v13199_v23 = vpop.permute.xlu0 %5328 }
 0x6a8   : > { %15721 = vst [vmem:[#allocation15_spill] sm:$0xff] %v13199_v23 }
 0x6aa   : > { %5710 = vrot.lane.b32.xlu1 %v13088_v4, %s9009_s20  ;;  %v13203_v50 = vpop.permute.xlu1 %5330 }
 0x6ab   : > { %15722 = vst [vmem:[#allocation25_spill] sm:$0xff] %v13203_v50  ;;  %5712 = vrot.lane.b32.xlu0 %v13098_v6, %s9009_s20  ;;  %v13207_v58 = vpop.permute.xlu0 %5332 }
 0x6ac   : > { %15723 = vst [vmem:[#allocation22_spill] sm:$0xff] %v13207_v58 }
 0x6ae   : > { %5721 = vrot.lane.b32.xlu1 %v12938_v30, %s9010_s24  ;;  %v13211_v1 = vpop.permute.xlu1 %5334 }
 0x6af   : > { %15724 = vst [vmem:[#allocation39_spill] sm:$0xff] %v13211_v1  ;;  %5723 = vrot.lane.b32.xlu0 %v12951_v60, %s9010_s24  ;;  %v13215_v0 = vpop.permute.xlu0 %5342 }
 0x6b2   : > { %5725 = vrot.lane.b32.xlu1 %v12885_v17, %s9010_s24  ;;  %v13219_v47 = vpop.permute.xlu1 %5344 }
 0x6b3   : > { %5727 = vrot.lane.b32.xlu0 %v12893_v27, %s9010_s24 }
 0x6b4   : > { %v13223_v55 = vpop.permute.xlu0 %5346 }
 0x6b5   : > { %15725 = vst [vmem:[#allocation44_spill] sm:$0xff] %v13223_v55 }
 0x6b6   : > { %5736 = vrot.lane.b32.xlu1 %v12885_v17, %s9011_s25  ;;  %v13227_v20 = vpop.permute.xlu1 %5348 }
 0x6b7   : > { %15726 = vst [vmem:[#allocation7_spill] sm:$0xff] %v13227_v20  ;;  %5738 = vrot.lane.b32.xlu0 %v12893_v27, %s9011_s25 }
 0x6b8   : > { %v13231_v3 = vpop.permute.xlu0 %5356 }
 0x6ba   : > { %5740 = vrot.lane.b32.xlu1 %v13088_v4, %s9011_s25  ;;  %v13235_v2 = vpop.permute.xlu1 %5358 }
 0x6bb   : > { %5742 = vrot.lane.b32.xlu0 %v13098_v6, %s9011_s25 }
 0x6bc   : > { %v13239_v48 = vpop.permute.xlu0 %5360 }
 0x6be   : > { %5755 = vrot.lane.b32.xlu1 %v12885_v17, %s8998_s30  ;;  %v13243_v59 = vpop.permute.xlu1 %5362 }
 0x6bf   : > { %15727 = vst [vmem:[#allocation31_spill] sm:$0xff] %v13243_v59  ;;  %5757 = vrot.lane.b32.xlu0 %v12893_v27, %s8998_s30 }
 0x6c0   : > { %v5450_v18 = vpop.permute.xlu0 %5449 }
 0x6c2   : > { %5759 = vrot.lane.b32.xlu1 %v13088_v4, %s8998_s30  ;;  %v13249_v49 = vpop.permute.xlu1 %5451 }
 0x6c3   : > { %15728 = vst [vmem:[#allocation9_spill] sm:$0xff] %v13249_v49  ;;  %5761 = vrot.lane.b32.xlu0 %v13098_v6, %s8998_s30  ;;  %v13307_v1 = vsel %vm292_vm0, %v5450_v18, %v13249_v49 }
 0x6c4   : > { %v13253_v57 = vpop.permute.xlu0 %5453  ;;  %15743 = vst [vmem:[#allocation18_spill] sm:$0xff] %v13307_v1 }
 0x6c5   : > { %15729 = vst [vmem:[#allocation11_spill] sm:$0xff] %v13253_v57 }
 0x6c6   : > { %v13255_v46 = vpop.permute.xlu1 %5455 }
 0x6c7   : > { %15730 = vst [vmem:[#allocation47_spill] sm:$0xff] %v13255_v46 }
 0x6c8   : > { %v13257_v53 = vpop.permute.xlu0 %5465 }
 0x6ca   : > { %v13259_v54 = vpop.permute.xlu1 %5467 }
 0x6cc   : > { %v13261_v26 = vpop.permute.xlu0 %5469 }
 0x6cd   : > { %15731 = vst [vmem:[#allocation33_spill] sm:$0xff] %v13261_v26 }
 0x6ce   : > { %v13263_v40 = vpop.permute.xlu1 %5471 }
 0x6cf   : > { %15732 = vst [vmem:[#allocation27_spill] sm:$0xff] %v13263_v40 }
 0x6d0   : > { %v13265_v56 = vpop.permute.xlu0 %5479 }
 0x6d2   : > { %v13267_v4 = vpop.permute.xlu1 %5481 }
 0x6d4   : > { %v13269_v43 = vpop.permute.xlu0 %5483 }
 0x6d5   : > { %15733 = vst [vmem:[#allocation13_spill] sm:$0xff] %v13269_v43 }
 0x6d6   : > { %v13271_v34 = vpop.permute.xlu1 %5485 }
 0x6d7   : > { %15734 = vst [vmem:[#allocation36_spill] sm:$0xff] %v13271_v34 }
 0x6d8   : > { %v13273_v6 = vpop.permute.xlu0 %5493 }
 0x6da   : > { %v13275_v42 = vpop.permute.xlu1 %5495 }
 0x6dc   : > { %v13277_v9 = vpop.permute.xlu0 %5497 }
 0x6de   : > { %v13279_v14 = vpop.permute.xlu1 %5499 }
 0x6df   : > { %15735 = vst [vmem:[#allocation20_spill] sm:$0xff] %v13279_v14  ;;  %v8392_v14 = vld [vmem:[%s9092_s28 + $0xc6] ss:$8 sm:$0x7] }
 0x6e0   : > { %v13281_v22 = vpop.permute.xlu0 %5507 }
 0x6e1   : > { %15736 = vst [vmem:[#allocation26_spill] sm:$0xff] %v13281_v22  ;;  %v8384_v22 = vld [vmem:[%s9092_s28 + $0xc5] ss:$8 sm:$0x7] }
 0x6e2   : > { %v13283_v52 = vpop.permute.xlu1 %5509 }
 0x6e3   : > { %15737 = vst [vmem:[#allocation23_spill] sm:$0xff] %v13283_v52 }
 0x6e4   : > { %v13285_v8 = vpop.permute.xlu0 %5511 }
 0x6e5   : > { %15738 = vst [vmem:[#allocation5_spill] sm:$0xff] %v13285_v8  ;;  %v8383_v8 = vld [vmem:[%s9092_s28 + $0x85] ss:$8 sm:$0x7] }
 0x6e6   : > { %v13287_v21 = vpop.permute.xlu1 %5513 }
 0x6e7   : > { %15739 = vst [vmem:[#allocation46_spill] sm:$0xff] %v13287_v21  ;;  %v8391_v21 = vld [vmem:[%s9092_s28 + $0x86] ss:$8 sm:$0x7] }
 0x6e8   : > { %v13289_v32 = vpop.permute.xlu0 %5521 }
 0x6ea   : > { %v13291_v37 = vpop.permute.xlu1 %5523 }
 0x6ec   : > { %v13293_v16 = vpop.permute.xlu0 %5525 }
 0x6ed   : > { %15740 = vst [vmem:[#allocation50_spill] sm:$0xff] %v13293_v16 }
 0x6ee   : > { %v13295_v15 = vpop.permute.xlu1 %5527 }
 0x6ef   : > { %15741 = vst [vmem:[#allocation29_spill] sm:$0xff] %v13295_v15  ;;  %v8382_v15 = vld [vmem:[%s9092_s28 + $0x45] ss:$8 sm:$0x7] }
 0x6f0   : > { %v5564_v44 = vpop.permute.xlu0 %5563 }
 0x6f2   : > { %v5566_v41 = vpop.permute.xlu1 %5565 }
 0x6f3   : > { %v5567_v28 = vsel %vm292_vm0, %v5564_v44, %v5566_v41  ;;  %v5568_v45 = vsel %vm292_vm0, %v5566_v41, %v5450_v18  ;;  %v15744_v44 = vld [vmem:[#allocation48_spill] sm:$0xff] }
 0x6f4   : > { %v5610_v11 = vpop.permute.xlu0 %5609  ;;  %v5767_v13 = vsel %vm571_vm1, %v12727_v19, %v5568_v45  ;;  %v5766_v61 = vsel %vm571_vm1, %v15742_v24, %v5567_v28  ;;  %v5769_v41 = vsel %vm571_vm1, %v15744_v44, %v13249_v49  ;;  %v5768_v19 = vsel %vm571_vm1, %v15745_v31, %v13307_v1  ;;  %v8389_v1 = vld [vmem:[%s9092_s28 + $0x6] ss:$8 sm:$0x7] }
 0x6f5   : > { %5808 = vrot.lane.b32.xlu0 %v5767_v13, %s9003_s8  ;;  %5806 = vrot.lane.b32.xlu1 %v5766_v61, %s9003_s8  ;;  %v8390_v49 = vld [vmem:[%s9092_s28 + $0x46] ss:$8 sm:$0x7] }
 0x6f7   : > { %v5612_v29 = vpop.permute.xlu1 %5611 }
 0x6f8   : > { %v5614_v33 = vpop.permute.xlu0 %5613  ;;  %v5615_v13 = vsel %vm15746_vm14, %v5610_v11, %v5612_v29  ;;  %vm15752_vm14 = vcmask 154624  }
 0x6f9   : > { %5812 = vrot.lane.b32.xlu0 %v5769_v41, %s9003_s8  ;;  %5810 = vrot.lane.b32.xlu1 %v5768_v19, %s9003_s8  ;;  %v5616_v31 = vsel %vm15748_vm6, %v5612_v29, %v5614_v33  ;;  %vm15754_vm6 = vmmov %vm15752_vm14 }
 0x6fc   : > { %v5660_v28 = vpop.permute.xlu1 %5659 }
 0x6fd   : > { %v5662_v24 = vpop.permute.xlu0 %5661  ;;  %v5770_v61 = vsel %vm571_vm1, %v5610_v11, %v5660_v28 }
 0x6fe   : > { %v5667_v45 = vsel %vm15747_vm2, %v5660_v28, %v5662_v24  ;;  %5814 = vrot.lane.b32.xlu1 %v5770_v61, %s9003_s8  ;;  %vm15753_vm2 = vmmov %vm15751_vm3 }
 0x6ff   : > { %v5771_v18 = vsel %vm571_vm1, %v5615_v13, %v5667_v45 }
 0x700   : > { %5816 = vrot.lane.b32.xlu0 %v5771_v18, %s9003_s8 }
 0x701   : > { %v5664_v44 = vpop.permute.xlu1 %5663 }
 0x702   : > { %v5668_v41 = vsel %vm15749_vm9, %v5662_v24, %v5664_v44  ;;  %v5666_v19 = vpop.permute.xlu0 %5665  ;;  %vm15755_vm9 = vmmov %vm15753_vm2 }
 0x703   : > { %v5669_v20 = vsel %vm15750_vm7, %v5664_v44, %v5666_v19  ;;  %v5772_v58 = vsel %vm571_vm1, %v5616_v31, %v5668_v41  ;;  %vm15756_vm7 = vmmov %vm15754_vm6 }
 0x704   : > { %5818 = vrot.lane.b32.xlu1 %v5772_v58, %s9003_s8  ;;  %v5773_v11 = vsel %vm571_vm1, %v5614_v33, %v5669_v20 }
 0x705   : > { %5820 = vrot.lane.b32.xlu0 %v5773_v11, %s9003_s8 }
 0x706   : > { %v5677_v28 = vpop.permute.xlu1 %5676 }
 0x707   : > { %v5679_v61 = vpop.permute.xlu0 %5678 }
 0x708   : > { %v5684_v24 = vsel %vm15751_vm3, %v5677_v28, %v5679_v61  ;;  %vm15757_vm3 = vcmask 146432  }
 0x70b   : > { %v5681_v13 = vpop.permute.xlu1 %5680 }
 0x70c   : > { %v5683_v45 = vpop.permute.xlu0 %5682  ;;  %v5685_v33 = vsel %vm15753_vm2, %v5679_v61, %v5681_v13  ;;  %vm15759_vm2 = vmmov %vm15757_vm3 }
 0x70d   : > { %v5686_v19 = vsel %vm15755_vm9, %v5681_v13, %v5683_v45  ;;  %vm15761_vm9 = vmmov %vm15759_vm2 }
 0x710   : > { %v5692_v18 = vpop.permute.xlu1 %5691 }
 0x711   : > { %v5694_v23 = vpop.permute.xlu0 %5693  ;;  %v5774_v29 = vsel %vm571_vm1, %v5677_v28, %v5692_v18 }
 0x712   : > { %v5699_v44 = vsel %vm15752_vm14, %v5692_v18, %v5694_v23  ;;  %5822 = vrot.lane.b32.xlu1 %v5774_v29, %s9003_s8  ;;  %vm15758_vm14 = vcmask 138240  }
 0x713   : > { %v5775_v58 = vsel %vm571_vm1, %v5684_v24, %v5699_v44 }
 0x714   : > { %v5696_v31 = vpop.permute.xlu1 %5695  ;;  %5824 = vrot.lane.b32.xlu0 %v5775_v58, %s9003_s8 }
 0x715   : > { %v5700_v20 = vsel %vm15754_vm6, %v5694_v23, %v5696_v31  ;;  %v5698_v41 = vpop.permute.xlu0 %5697  ;;  %vm15760_vm6 = vmmov %vm15758_vm14 }
 0x716   : > { %v5701_v11 = vsel %vm15756_vm7, %v5696_v31, %v5698_v41  ;;  %v5776_v28 = vsel %vm571_vm1, %v5685_v33, %v5700_v20  ;;  %v8422_v20 = vld [vmem:[%s9092_s28 + $0x6] ss:$8 sm:$0xf]  ;;  %vm15762_vm7 = vmmov %vm15760_vm6 }
 0x717   : > { %5826 = vrot.lane.b32.xlu1 %v5776_v28, %s9003_s8  ;;  %v5777_v18 = vsel %vm571_vm1, %v5686_v19, %v5701_v11  ;;  %v8423_v41 = vld [vmem:[%s9092_s28 + $0x46] ss:$8 sm:$0xf] }
 0x718   : > { %v5707_v29 = vpop.permute.xlu1 %5706  ;;  %5828 = vrot.lane.b32.xlu0 %v5777_v18, %s9003_s8  ;;  %v8424_v11 = vld [vmem:[%s9092_s28 + $0x86] ss:$8 sm:$0xf] }
 0x719   : > { %v5709_v61 = vpop.permute.xlu0 %5708  ;;  %v8425_v28 = vld [vmem:[%s9092_s28 + $0xc6] ss:$8 sm:$0xf] }
 0x71a   : > { %v5714_v58 = vsel %vm15757_vm3, %v5707_v29, %v5709_v61  ;;  %v6212_v59 = vcombine.low %v8424_v11, %v8425_v28  ;;  %vm15763_vm3 = vcmask 7168  }
 0x71c   : > { %v5711_v23 = vpop.permute.xlu1 %5710 }
 0x71d   : > { %v5713_v24 = vpop.permute.xlu0 %5712  ;;  %v5715_v18 = vsel %vm15759_vm2, %v5709_v61, %v5711_v23  ;;  %vm15765_vm2 = vmmov %vm15763_vm3 }
 0x720   : > { %v5722_v44 = vpop.permute.xlu1 %5721 }
 0x721   : > { %v5724_v13 = vpop.permute.xlu0 %5723  ;;  %v5778_v45 = vsel %vm571_vm1, %v5707_v29, %v5722_v44  ;;  %v5716_v29 = vsel %vm15761_vm9, %v5711_v23, %v5713_v24  ;;  %v6226_v23 = vrot.slane %v6212_v59, %v9094_v5 }
 0x722   : > { %v5729_v31 = vsel %vm15758_vm14, %v5722_v44, %v5724_v13  ;;  %5830 = vrot.lane.b32.xlu1 %v5778_v45, %s9003_s8  ;;  %vm15764_vm14 = vmmov %vm15763_vm3 }
 0x723   : > { %v5779_v33 = vsel %vm571_vm1, %v5714_v58, %v5729_v31  ;;  %v6211_v31 = vcombine.low %v8422_v20, %v8423_v41 }
 0x724   : > { %v5726_v19 = vpop.permute.xlu1 %5725  ;;  %5832 = vrot.lane.b32.xlu0 %v5779_v33, %s9003_s8 }
 0x725   : > { %v5730_v50 = vsel %vm15760_vm6, %v5724_v13, %v5726_v19  ;;  %v5728_v46 = vpop.permute.xlu0 %5727  ;;  %vm15776_vm6 = vcmask 736256  }
 0x726   : > { %v5731_v44 = vsel %vm15762_vm7, %v5726_v19, %v5728_v46  ;;  %v5780_v45 = vsel %vm571_vm1, %v5715_v18, %v5730_v50  ;;  %v6219_v46 = vrot.slane %v6211_v31, %v9094_v5  ;;  %vm15778_vm9 = vmmov %vm15776_vm6 }
 0x727   : > { %5834 = vrot.lane.b32.xlu1 %v5780_v45, %s9003_s8  ;;  %v5781_v58 = vsel %vm571_vm1, %v5716_v29, %v5731_v44  ;;  %vm15807_vm7 = vmmov %vm15776_vm6 }
 0x728   : > { %v5737_v33 = vpop.permute.xlu1 %5736  ;;  %5836 = vrot.lane.b32.xlu0 %v5781_v58, %s9003_s8  ;;  %v6227_v11 = vcombine.low %v6219_v46, %v6226_v23  ;;  %v6228_v29 = vcombine.high %v6219_v46, %v6226_v23  ;;  %v15766_v46 = vld [vmem:[#allocation38_spill] sm:$0xff] }
 0x729   : > { %v5739_v55 = vpop.permute.xlu0 %5738  ;;  %v5782_v61 = vsel %vm571_vm1, %v5737_v33, %v12938_v30 }
 0x72a   : > { %v5744_v13 = vsel %vm15763_vm3, %v5737_v33, %v5739_v55  ;;  %v13388_v58 = vrot.slane %v6228_v29, %v9094_v5  ;;  %vm15832_vm3 = vmmov %vm15765_vm2 }
 0x72b   : > { %5838 = vrot.lane.b32.xlu1 %v5782_v61, %s9003_s8  ;;  %v5783_v50 = vsel %vm571_vm1, %v5744_v13, %v12951_v60 }
 0x72c   : > { %v5741_v24 = vpop.permute.xlu1 %5740  ;;  %5840 = vrot.lane.b32.xlu0 %v5783_v50, %s9003_s8  ;;  %v13396_v33 = vcombine.low %v13388_v58, %v13388_v58  ;;  %v13415_v13 = vcombine.high %v13388_v58, %v13388_v58 }
 0x72d   : > { %v5745_v20 = vsel %vm15764_vm14, %v5739_v55, %v5741_v24  ;;  %v5743_v41 = vpop.permute.xlu0 %5742  ;;  %v13382_v55 = vrot.slane %v6227_v11, %v9094_v5  ;;  %vm15833_vm14 = vmmov %vm15765_vm2 }
 0x72e   : > { %v5746_v19 = vsel %vm15765_vm2, %v5741_v24, %v5743_v41  ;;  %v5784_v30 = vsel %vm571_vm1, %v5745_v20, %v12885_v17  ;;  %vm15834_vm2 = vcmask 138240  }
 0x72f   : > { %5842 = vrot.lane.b32.xlu1 %v5784_v30, %s9003_s8  ;;  %v5785_v60 = vsel %vm571_vm1, %v5746_v19, %v12893_v27  ;;  %v6243_v31 = vcombine.low %v13382_v55, %v13382_v55  ;;  %v13409_v61 = vcombine.high %v13382_v55, %v13382_v55 }
 0x730   : > { %v5756_v28 = vpop.permute.xlu1 %5755  ;;  %5844 = vrot.lane.b32.xlu0 %v5785_v60, %s9003_s8 }
 0x731   : > { %v5758_v59 = vpop.permute.xlu0 %5757 }
 0x732   : > { %v5763_v18 = vsel %vm292_vm0, %v5756_v28, %v5758_v59 }
 0x733   : > { %5846 = vrot.lane.b32.xlu1 %v5763_v18, %s9003_s8  ;;  %v8431_v18 = vld [vmem:[%s9092_s28 + $0x47] ss:$8 sm:$0xf] }
 0x734   : > { %v5760_v44 = vpop.permute.xlu1 %5759 }
 0x735   : > { %v5762_v17 = vpop.permute.xlu0 %5761  ;;  %v5764_v45 = vsel %vm292_vm0, %v5758_v59, %v5760_v44  ;;  %v8430_v59 = vld [vmem:[%s9092_s28 + $0x7] ss:$8 sm:$0xf] }
 0x736   : > { %5848 = vrot.lane.b32.xlu0 %v5764_v45, %s9003_s8  ;;  %v5765_v27 = vsel %vm292_vm0, %v5760_v44, %v5762_v17  ;;  %v8432_v45 = vld [vmem:[%s9092_s28 + $0x87] ss:$8 sm:$0xf] }
 0x737   : > { %5850 = vrot.lane.b32.xlu1 %v5765_v27, %s9003_s8  ;;  %v8433_v27 = vld [vmem:[%s9092_s28 + $0xc7] ss:$8 sm:$0xf] }
 0x73a   : > { %5852 = vrot.lane.b32.xlu0 %v5762_v17, %s9003_s8 }
 0x73b   : > { %6245 = vrot.lane.b32.xlu1 %v6243_v31, %s8998_s30 }
 0x73e   : > { %6247 = vrot.lane.b32.xlu0 %v13396_v33, %s8998_s30 }
 0x73f   : > { %6249 = vrot.lane.b32.xlu1 %v13382_v55, %s8998_s30 }
 0x742   : > { %6251 = vrot.lane.b32.xlu0 %v13388_v58, %s8998_s30 }
 0x743   : > { %6261 = vrot.lane.b32.xlu1 %v13382_v55, %s15202_s29 }
 0x746   : > { %6263 = vrot.lane.b32.xlu0 %v13388_v58, %s15202_s29 }
 0x747   : > { %6265 = vrot.lane.b32.xlu1 %v13409_v61, %s15202_s29 }
 0x74a   : > { %6267 = vrot.lane.b32.xlu0 %v13415_v13, %s15202_s29  ;;  %s15851_s29 = smov 126  }
 0x74b   : > { %6275 = vrot.lane.b32.xlu1 %v6243_v31, %s8999_s4 }
 0x74e   : > { %6277 = vrot.lane.b32.xlu0 %v13396_v33, %s8999_s4 }
 0x74f   : > { %6279 = vrot.lane.b32.xlu1 %v13382_v55, %s8999_s4 }
 0x752   : > { %6281 = vrot.lane.b32.xlu0 %v13388_v58, %s8999_s4 }
 0x753   : > { %6289 = vrot.lane.b32.xlu1 %v13382_v55, %s9000_s5 }
 0x756   : > { %6291 = vrot.lane.b32.xlu0 %v13388_v58, %s9000_s5 }
 0x757   : > { %6293 = vrot.lane.b32.xlu1 %v13409_v61, %s9000_s5 }
 0x75a   : > { %6295 = vrot.lane.b32.xlu0 %v13415_v13, %s9000_s5 }
 0x75b   : > { %6303 = vrot.lane.b32.xlu1 %v6243_v31, %s9001_s6 }
 0x75e   : > { %6305 = vrot.lane.b32.xlu0 %v13396_v33, %s9001_s6 }
 0x75f   : > { %6307 = vrot.lane.b32.xlu1 %v13382_v55, %s9001_s6 }
 0x760   : > { %v4970_v50 = vpop.f32.mrf.mxu0 }
 0x761   : > { %v4971_v23 = vadd.f32 %v4970_v50, %v15766_v46 }
 0x762   : > { %v4972_v24 = vpop.f32.mrf.mxu0  ;;  %v5041_v20 = vpop.f32.mrf.mxu1  ;;  %6309 = vrot.lane.b32.xlu0 %v13388_v58, %s9001_s6 }
 0x763   : > { %v4973_v41 = vadd.f32 %v4972_v24, %v15766_v46  ;;  %v5042_v19 = vadd.f32 %v5041_v20, %v15766_v46  ;;  %6317 = vrot.lane.b32.xlu1 %v13382_v55, %s9002_s7  ;;  %v5045_v60 = vmax.f32 %v4971_v23, 0.0 }
 0x764   : > { %v8770_v30 = vpop.f32.mrf.mxu1 }
 0x765   : > { %v5046_v11 = vmax.f32 %v4973_v41, 0.0  ;;  %v5047_v28 = vmax.f32 %v5042_v19, 0.0  ;;  %v6404_v41 = vcombine.low %v8430_v59, %v8431_v18  ;;  %v6405_v19 = vcombine.low %v8432_v45, %v8433_v27  ;;  %v8438_v30 = vld [vmem:[%s9092_s28 + $0x20] ss:$8 sm:$0xf] }
 0x766   : > { %6319 = vrot.lane.b32.xlu0 %v13388_v58, %s9002_s7 }
 0x767   : > { %v5051_v29 = vcombine.low %v5045_v60, %v5046_v11  ;;  %v5052_v44 = vcombine.high %v5045_v60, %v5046_v11  ;;  %v5053_v17 = vcombine.high %v5047_v28, %v5047_v28  ;;  %6321 = vrot.lane.b32.xlu1 %v13409_v61, %s9002_s7  ;;  %v5074_v24 = vrot.slane %v5047_v28, %v9094_v5  ;;  %v8439_v60 = vld [vmem:[%s9092_s28 + $0x60] ss:$8 sm:$0xf] }
 0x768   : > { %v6419_v45 = vrot.slane %v6405_v19, %v9094_v5  ;;  %v6614_v27 = vcombine.low %v8438_v30, %v8439_v60  ;;  %v13507_v19 = vpop.permute.xlu1 %5806  ;;  %v13509_v30 = vpop.permute.xlu0 %5808 }
 0x769   : > { %v5060_v50 = vrot.slane %v5051_v29, %v9094_v5  ;;  %v5067_v23 = vrot.slane %v5052_v44, %v9094_v5  ;;  %v5081_v20 = vrot.slane %v5053_v17, %v9094_v5  ;;  %v8440_v29 = vld [vmem:[%s9092_s28 + $0xa0] ss:$8 sm:$0xf]  ;;  %15769 = vst [vmem:[#allocation6_spill] sm:$0xff] %v13507_v19  ;;  %15770 = vst [vmem:[#allocation16_spill] sm:$0xff] %v13509_v30 }
 0x76a   : > { %6323 = vrot.lane.b32.xlu0 %v13415_v13, %s9002_s7  ;;  %v8441_v44 = vld [vmem:[%s9092_s28 + $0xe0] ss:$8 sm:$0xf]  ;;  %v5375_v19 = vcombine.low %v8391_v21, %v8392_v14 }
 0x76b   : > { %v5082_v11 = vcombine.low %v5060_v50, %v5074_v24  ;;  %v5083_v46 = vcombine.high %v5060_v50, %v5074_v24  ;;  %v5084_v40 = vcombine.low %v5067_v23, %v5081_v20  ;;  %v5085_v34 = vcombine.high %v5067_v23, %v5081_v20  ;;  %6331 = vrot.lane.b32.xlu1 %v6243_v31, %s9003_s8 }
 0x76c   : > { %v6412_v31 = vrot.slane %v6404_v41, %v9094_v5  ;;  %v6615_v50 = vcombine.low %v8440_v29, %v8441_v44 }
 0x76d   : > { %v5092_v28 = vrot.slane %v5082_v11, %v9094_v5  ;;  %v5099_v17 = vrot.slane %v5084_v40, %v9094_v5  ;;  %v5106_v59 = vrot.slane %v5083_v46, %v9094_v5  ;;  %v5113_v18 = vrot.slane %v5085_v34, %v9094_v5  ;;  %v8437_v46 = vld [vmem:[%s9092_s28 + $0xe0] ss:$8 sm:$0x7] }
 0x76e   : > { %6333 = vrot.lane.b32.xlu0 %v13396_v33, %s9003_s8  ;;  %v6622_v34 = vrot.slane %v6614_v27, %v9094_v5  ;;  %v6629_v33 = vrot.slane %v6615_v50, %v9094_v5  ;;  %v6420_v41 = vcombine.low %v6412_v31, %v6419_v45  ;;  %v6421_v60 = vcombine.high %v6412_v31, %v6419_v45 }
 0x76f   : > { %v5114_v23 = vcombine.high %v5092_v28, %v5092_v28  ;;  %v5115_v24 = vcombine.high %v5099_v17, %v5099_v17  ;;  %v5116_v40 = vcombine.high %v5106_v59, %v5106_v59  ;;  %v5117_v20 = vcombine.high %v5113_v18, %v5113_v18  ;;  %8373 = vst.msk [vmem:[%s10311_s26 + $0x4] ss:$8 sm:$0x7] %vm10299_vm5, %v5092_v28  ;;  %v13518_v28 = vpop.permute.xlu1 %5810 }
 0x770   : > { %8374 = vst.msk [vmem:[%s10311_s26 + $0x1c] ss:$8 sm:$0x7] %vm10299_vm5, %v5106_v59  ;;  %8377 = vst.msk [vmem:[%s10311_s26 + $0x64] ss:$8 sm:$0x7] %vm10299_vm5, %v5099_v17  ;;  %6335 = vrot.lane.b32.xlu1 %v13382_v55, %s9003_s8  ;;  %v6630_v11 = vcombine.low %v6622_v34, %v6629_v33  ;;  %v13516_v29 = vrot.slane %v6420_v41, %v9094_v5  ;;  %v6631_v44 = vcombine.high %v6622_v34, %v6629_v33 }
 0x771   : > { %8378 = vst.msk [vmem:[%s10311_s26 + $0x7c] ss:$8 sm:$0x7] %vm10299_vm5, %v5113_v18  ;;  %8375 = vst.msk [vmem:[%s10311_s26 + $0x34] ss:$8 sm:$0x7] %vm10299_vm5, %v5114_v23 }
 0x772   : > { %8376 = vst.msk [vmem:[%s10311_s26 + $0x4c] ss:$8 sm:$0x7] %vm10299_vm5, %v5116_v40  ;;  %8379 = vst.msk [vmem:[%s10311_s26 + $0x94] ss:$8 sm:$0x7] %vm10299_vm5, %v5115_v24  ;;  %6337 = vrot.lane.b32.xlu0 %v13388_v58, %s9003_s8  ;;  %v13526_v17 = vrot.slane %v6630_v11, %v9094_v5 }
 0x773   : > { %8380 = vst.msk [vmem:[%s10311_s26 + $0xac] ss:$8 sm:$0x7] %vm10299_vm5, %v5117_v20  ;;  %15771 = vst [vmem:[#allocation34_spill] sm:$0xff] %v13516_v29  ;;  %v13545_v18 = vpop.permute.xlu1 %5814 }
 0x774   : > { %6345 = vrot.lane.b32.xlu1 %v13382_v55, %s15768_s9  ;;  %15772 = vst [vmem:[#allocation37_spill] sm:$0xff] %v13518_v28  ;;  %v13523_v55 = vrot.slane %v6421_v60, %v9094_v5  ;;  %v13573_v24 = vcombine.low %v13526_v17, %v13526_v17  ;;  %v8434_v60 = vld [vmem:[%s9092_s28 + $0x20] ss:$8 sm:$0x7] }
 0x775   : > { %v8435_v11 = vld [vmem:[%s9092_s28 + $0x60] ss:$8 sm:$0x7] }
 0x776   : > { %6347 = vrot.lane.b32.xlu0 %v13388_v58, %s15768_s9  ;;  %15773 = vst [vmem:[#allocation17_spill] sm:$0xff] %v13523_v55  ;;  %v13531_v58 = vrot.slane %v6631_v44, %v9094_v5  ;;  %v8436_v44 = vld [vmem:[%s9092_s28 + $0xa0] ss:$8 sm:$0x7]  ;;  %v6565_v26 = vcombine.low %v8434_v60, %v8435_v11  ;;  %v5183_v60 = vcombine.low %v8383_v8, %v8384_v22 }
 0x777   : > { %v13552_v45 = vpop.permute.xlu1 %5818 }
 0x778   : > { %6349 = vrot.lane.b32.xlu1 %v13409_v61, %s15768_s9  ;;  %v13533_v61 = vpop.permute.xlu0 %5812  ;;  %v13543_v59 = vcombine.high %v13531_v58, %v13531_v58  ;;  %v13582_v34 = vcombine.low %v13531_v58, %v13531_v58  ;;  %v6573_v30 = vrot.slane %v6565_v26, %v9094_v5  ;;  %v5197_v26 = vrot.slane %v5183_v60, %v9094_v5 }
 0x779   : > { %15774 = vst [vmem:[#allocation19_spill] sm:$0xff] %v13533_v61  ;;  %v8381_v61 = vld [vmem:[%s9092_s28 + $0x5] ss:$8 sm:$0x7] }
 0x77a   : > { %6351 = vrot.lane.b32.xlu0 %v13415_v13, %s15768_s9  ;;  %v6663_v13 = vcombine.high %v13526_v17, %v13526_v17  ;;  %v5182_v16 = vcombine.low %v8381_v61, %v8382_v15 }
 0x77c   : > { %6438 = vrot.lane.b32.xlu1 %v13516_v29, %s8998_s30  ;;  %v13547_v31 = vpop.permute.xlu0 %5816  ;;  %v5190_v21 = vrot.slane %v5182_v16, %v9094_v5 }
 0x77e   : > { %6440 = vrot.lane.b32.xlu0 %v13523_v55, %s8998_s30  ;;  %v6566_v55 = vcombine.low %v8436_v44, %v8437_v46 }
 0x780   : > { %6746 = vrot.lane.b32.xlu1 %v13531_v58, %s8998_s30  ;;  %v13558_v27 = vpop.permute.xlu0 %5820  ;;  %v6580_v28 = vrot.slane %v6566_v55, %v9094_v5 }
 0x781   : > { %15775 = vst [vmem:[#allocation28_spill] sm:$0xff] %v13558_v27  ;;  %v5374_v27 = vcombine.low %v8389_v1, %v8390_v49  ;;  %v5389_v1 = vrot.slane %v5375_v19, %v9094_v5 }
 0x782   : > { %6748 = vrot.lane.b32.xlu0 %v6663_v13, %s8998_s30  ;;  %v6581_v49 = vcombine.low %v6573_v30, %v6580_v28  ;;  %v6582_v8 = vcombine.high %v6573_v30, %v6580_v28 }
 0x783   : > { %v5382_v11 = vrot.slane %v5374_v27, %v9094_v5  ;;  %v5198_v27 = vcombine.low %v5190_v21, %v5197_v26 }
 0x784   : > { %6750 = vrot.lane.b32.xlu1 %v13543_v59, %s8998_s30  ;;  %v13560_v50 = vpop.permute.xlu1 %5822  ;;  %v6589_v19 = vrot.slane %v6581_v49, %v9094_v5  ;;  %v6596_v28 = vrot.slane %v6582_v8, %v9094_v5 }
 0x785   : > { %v5391_v15 = vcombine.high %v5382_v11, %v5389_v1  ;;  %v5390_v22 = vcombine.low %v5382_v11, %v5389_v1 }
 0x786   : > { %6725 = vrot.lane.b32.xlu0 %v13526_v17, %s9011_s25  ;;  %v13565_v23 = vpop.permute.xlu0 %5824  ;;  %v6597_v1 = vcombine.high %v6589_v19, %v6589_v19 }
 0x787   : > { %v13633_v16 = vrot.slane %v5391_v15, %v9094_v5  ;;  %v13636_v60 = vrot.slane %v5390_v22, %v9094_v5  ;;  %v13651_v15 = vrot.slane %v5198_v27, %v9094_v5  ;;  %v13669_v27 = vsel %vm292_vm0, %v12879_v51, %v12887_v63 }
 0x788   : > { %6727 = vrot.lane.b32.xlu1 %v13531_v58, %s9011_s25 }
 0x789   : > { %v13575_v40 = vpop.permute.xlu1 %5826 }
 0x78a   : > { %6729 = vrot.lane.b32.xlu0 %v6663_v13, %s9011_s25  ;;  %v13577_v20 = vpop.permute.xlu0 %5828 }
 0x78c   : > { %6744 = vrot.lane.b32.xlu1 %v13526_v17, %s8998_s30 }
 0x78e   : > { %6695 = vrot.lane.b32.xlu0 %v13526_v17, %s9009_s20 }
 0x790   : > { %6697 = vrot.lane.b32.xlu1 %v13531_v58, %s9009_s20 }
 0x792   : > { %6699 = vrot.lane.b32.xlu0 %v6663_v13, %s9009_s20 }
 0x794   : > { %6710 = vrot.lane.b32.xlu1 %v13573_v24, %s9010_s24  ;;  %v13586_v33 = vpop.permute.xlu1 %5830 }
 0x796   : > { %6712 = vrot.lane.b32.xlu0 %v13582_v34, %s9010_s24  ;;  %v13590_v41 = vpop.permute.xlu0 %5832 }
 0x798   : > { %6714 = vrot.lane.b32.xlu1 %v13526_v17, %s9010_s24 }
 0x799   : > { %v13598_v29 = vpop.permute.xlu1 %5834 }
 0x79a   : > { %6731 = vrot.lane.b32.xlu0 %v13543_v59, %s9011_s25  ;;  %v13604_v57 = vpop.permute.xlu0 %5836 }
 0x79c   : > { %6665 = vrot.lane.b32.xlu1 %v13526_v17, %s15482_s17 }
 0x79d   : > { %v5839_v43 = vpop.permute.xlu1 %5838 }
 0x79e   : > { %6667 = vrot.lane.b32.xlu0 %v13531_v58, %s15482_s17  ;;  %v5841_v52 = vpop.permute.xlu0 %5840 }
 0x7a0   : > { %6669 = vrot.lane.b32.xlu1 %v6663_v13, %s15482_s17  ;;  %v5199_v13 = vcombine.high %v5190_v21, %v5197_v26 }
 0x7a1   : > { %v5843_v46 = vpop.permute.xlu1 %5842 }
 0x7a2   : > { %6680 = vrot.lane.b32.xlu0 %v13573_v24, %s9008_s19  ;;  %v5845_v14 = vpop.permute.xlu0 %5844  ;;  %v5867_v21 = vsel %vm384_vm13, %v5841_v52, %v5843_v46  ;;  %v13648_v26 = vrot.slane %v5199_v13, %v9094_v5  ;;  %v13664_v13 = vsel %vm292_vm0, %v12855_v10, %v12879_v51  ;;  %v13680_v10 = vsel %vm339_vm15, %v13140_v38, %v13149_v7 }
 0x7a3   : > { %v5864_v51 = vsel %vm384_vm13, %v13590_v41, %v13598_v29 }
 0x7a4   : > { %6682 = vrot.lane.b32.xlu1 %v13582_v34, %s9008_s19 }
 0x7a5   : > { %v5847_v55 = vpop.permute.xlu1 %5846 }
 0x7a6   : > { %6684 = vrot.lane.b32.xlu0 %v13526_v17, %s9008_s19 }
 0x7a8   : > { %6701 = vrot.lane.b32.xlu1 %v13543_v59, %s9009_s20  ;;  %v5849_v61 = vpop.permute.xlu0 %5848 }
 0x7a9   : > { %v5851_v44 = vpop.permute.xlu1 %5850  ;;  %v5869_v11 = vsel %vm384_vm13, %v5847_v55, %v5849_v61  ;;  %v5866_v55 = vsel %vm384_vm13, %v5839_v43, %v5841_v52  ;;  %v13674_v43 = vsel %vm324_vm11, %v13030_v35, %v13058_v36  ;;  %v13685_v52 = vsel %vm354_vm12, %v13172_v25, %v13184_v39 }
 0x7aa   : > { %6716 = vrot.lane.b32.xlu0 %v13531_v58, %s9010_s24  ;;  %v5870_v30 = vsel %vm384_vm13, %v5849_v61, %v5851_v44  ;;  %v5406_v61 = vcombine.low %v13636_v60, %v13636_v60  ;;  %v13695_v35 = vsel %vm354_vm12, %v13184_v39, %v13188_v12  ;;  %v13714_v39 = vsel %vm15776_vm6, %v13231_v3, %v13235_v2  ;;  %vm15835_vm6 = vmmov %vm15834_vm2 }
 0x7ab   : > { %8405 = vmatprep.subr.msk.mxu0 %vm571_vm1, %v5870_v30  ;;  %v5863_v30 = vsel %vm384_vm13, %v13586_v33, %v13590_v41  ;;  %v5861_v33 = vsel %vm384_vm13, %v13565_v23, %v13575_v40  ;;  %v8477_v41 = vld [vmem:[%s9092_s28 + $0xa1] ss:$8 sm:$0xf]  ;;  %v13731_v3 = vsel %vm309_vm10, %v13257_v53, %v13259_v54  ;;  %v5865_v53 = vsel %vm384_vm13, %v13598_v29, %v13604_v57 }
 0x7ac   : > { %6598 = vrot.lane.b32.xlu1 %v6589_v19, %s15667_s10  ;;  %v5853_v49 = vpop.permute.xlu0 %5852  ;;  %8406 = vmatpush1.msk.msra.mxu0 %vm571_vm1, %v5869_v11  ;;  %v5407_v19 = vcombine.low %v13633_v16, %v13633_v16  ;;  %v8476_v11 = vld [vmem:[%s9092_s28 + $0x61] ss:$8 sm:$0xf]  ;;  %v5502_v57 = vsel %vm339_vm15, %v13275_v42, %v13277_v9  ;;  %v5862_v29 = vsel %vm384_vm13, %v13575_v40, %v13577_v20 }
 0x7ad   : > { %v5871_v22 = vsel %vm384_vm13, %v5851_v44, %v5853_v49  ;;  %v13654_v8 = vpop.permute.xlu1 %6245  ;;  %5899 = vmatprep.subr.mxu0 %v5867_v21  ;;  %v5868_v44 = vsel %vm384_vm13, %v5843_v46, %v5845_v14  ;;  %v8478_v14 = vld [vmem:[%s9092_s28 + $0xe1] ss:$8 sm:$0xf]  ;;  %v5860_v49 = vsel %vm384_vm13, %v13560_v50, %v13565_v23  ;;  %v5487_v21 = vsel %vm324_vm11, %v13265_v56, %v13267_v4 }
 0x7ae   : > { %6600 = vrot.lane.b32.xlu0 %v6596_v28, %s15667_s10  ;;  %5900 = vmatpush1.msra.mxu0 %v5866_v55  ;;  %v8475_v28 = vld [vmem:[%s9092_s28 + $0x21] ss:$8 sm:$0xf]  ;;  %v5858_v56 = vsel %vm384_vm13, %v13547_v31, %v13552_v45  ;;  %v5547_v16 = vsel %vm571_vm1, %v13714_v39, %v5406_v61 }
 0x7af   : > { %8772 = vmatpush3.msk.msra.mxu1 %vm571_vm1, %v5871_v22  ;;  %5901 = vmatprep.subr.mxu0 %v5864_v51  ;;  %v7603_v23 = vcombine.low %v8475_v28, %v8476_v11  ;;  %v5857_v22 = vsel %vm384_vm13, %v13545_v18, %v13547_v31  ;;  %v5529_v51 = vsel %vm369_vm8, %v13289_v32, %v13291_v37  ;;  %v15782_v40 = vld [vmem:[#allocation37_spill] sm:$0xff]  ;;  %v15783_v20 = vld [vmem:[#allocation16_spill] sm:$0xff]  ;;  %v15784_v28 = vld [vmem:[#allocation23_spill] sm:$0xff] }
 0x7b0   : > { %6602 = vrot.lane.b32.xlu1 %v6597_v1, %s15667_s10  ;;  %8773 = vmatprep.subr.mxu1 %v15252_v62  ;;  %v13699_v25 = vpop.permute.xlu0 %6247  ;;  %v13709_v1 = vsel %vm384_vm13, %v13215_v0, %v13219_v47  ;;  %v13726_v0 = vsel %vm15778_vm9, %v13235_v2, %v13239_v48  ;;  %v5501_v2 = vsel %vm339_vm15, %v13273_v6, %v13275_v42  ;;  %v15785_v11 = vld [vmem:[#allocation26_spill] sm:$0xff]  ;;  %v15786_v31 = vld [vmem:[#allocation5_spill] sm:$0xff]  ;;  %vm15836_vm9 = vcmask 146432  }
 0x7b1   : > { %5902 = vmatpush1.msra.mxu0 %v5863_v30  ;;  %8774 = vmatpush3.msra.mxu1 %v5868_v44  ;;  %v13716_v46 = vpop.permute.xlu1 %6249  ;;  %v7604_v6 = vcombine.low %v8477_v41, %v8478_v14  ;;  %v15781_v44 = vld [vmem:[#allocation50_spill] sm:$0xff]  ;;  %v5855_v30 = vsel %vm384_vm13, %v15783_v20, %v15782_v40  ;;  %v5515_v18 = vsel %vm354_vm12, %v15785_v11, %v15784_v28  ;;  %v15788_v41 = vld [vmem:[#allocation28_spill] sm:$0xff]  ;;  %v15793_v11 = vld [vmem:[#allocation19_spill] sm:$0xff] }
 0x7b2   : > { %15777 = vst [vmem:[#allocation8_spill] sm:$0xff] %v13716_v46  ;;  %5903 = vmatprep.subr.mxu0 %v5861_v33  ;;  %8775 = vmatprep.subr.mxu1 %v15252_v62  ;;  %v5530_v42 = vsel %vm369_vm8, %v13291_v37, %v15781_v44  ;;  %v5516_v33 = vsel %vm354_vm12, %v15784_v28, %v15786_v31  ;;  %v15787_v32 = vld [vmem:[#allocation6_spill] sm:$0xff]  ;;  %v15792_v28 = vld [vmem:[#allocation29_spill] sm:$0xff] }
 0x7b3   : > { %6648 = vrot.lane.b32.xlu0 %v13573_v24, %s15563_s11  ;;  %5904 = vmatpush1.msra.mxu0 %v5860_v49  ;;  %v5854_v37 = vsel %vm384_vm13, %v15787_v32, %v15783_v20  ;;  %v5859_v14 = vsel %vm384_vm13, %v13552_v45, %v15788_v41  ;;  %v5557_v45 = vsel %vm571_vm1, %v5516_v33, %v5530_v42  ;;  %v15795_v42 = vld [vmem:[#allocation33_spill] sm:$0xff]  ;;  %v15796_v33 = vld [vmem:[#allocation20_spill] sm:$0xff]  ;;  %v15797_v32 = vld [vmem:[#allocation46_spill] sm:$0xff] }
 0x7b4   : > { %8776 = vmatpush3.msra.mxu1 %v5865_v53  ;;  %6650 = vrot.lane.b32.xlu1 %v13582_v34, %s15563_s11  ;;  %v13753_v50 = vpop.permute.xlu0 %6251  ;;  %v7611_v53 = vrot.slane %v7603_v23, %v9094_v5  ;;  %v5556_v20 = vsel %vm571_vm1, %v5515_v18, %v5529_v51  ;;  %v5531_v23 = vsel %vm369_vm8, %v15781_v44, %v15792_v28 }
 0x7b5   : > { %15779 = vst [vmem:[#allocation12_spill] sm:$0xff] %v13753_v50  ;;  %5905 = vmatprep.subr.mxu0 %v5858_v56  ;;  %8777 = vmatprep.subr.mxu1 %v15252_v62  ;;  %v13765_v55 = vpop.permute.xlu1 %6261  ;;  %v7618_v56 = vrot.slane %v7604_v6, %v9094_v5  ;;  %v5856_v6 = vsel %vm384_vm13, %v15782_v40, %v15793_v11  ;;  %v15803_v11 = vld [vmem:[#allocation34_spill] sm:$0xff] }
 0x7b6   : > { %15780 = vst [vmem:[#allocation32_spill] sm:$0xff] %v13765_v55  ;;  %5906 = vmatpush1.msra.mxu0 %v5857_v22  ;;  %8778 = vmatpush3.msra.mxu1 %v5862_v29  ;;  %v15790_v29 = vld [vmem:[#allocation13_spill] sm:$0xff]  ;;  %v5474_v51 = vsel %vm309_vm10, %v13259_v54, %v15795_v42  ;;  %v5553_v44 = vsel %vm571_vm1, %v5487_v21, %v5501_v2  ;;  %v15801_v21 = vld [vmem:[#allocation18_spill] sm:$0xff] }
 0x7b7   : > { %5907 = vmatprep.subr.mxu0 %v5855_v30  ;;  %8779 = vmatprep.subr.mxu1 %v15252_v62  ;;  %v5488_v22 = vsel %vm324_vm11, %v13267_v4, %v15790_v29  ;;  %v15794_v4 = vld [vmem:[#allocation17_spill] sm:$0xff]  ;;  %v5503_v40 = vsel %vm339_vm15, %v13277_v9, %v15796_v33  ;;  %v7619_v54 = vcombine.low %v7611_v53, %v7618_v56 }
 0x7b8   : > { %6652 = vrot.lane.b32.xlu0 %v13526_v17, %s15563_s11  ;;  %5908 = vmatpush1.msra.mxu0 %v5854_v37  ;;  %v13791_v49 = vpop.permute.xlu0 %6263  ;;  %v5554_v18 = vsel %vm571_vm1, %v5488_v22, %v5502_v57  ;;  %v5517_v37 = vsel %vm354_vm12, %v15786_v31, %v15797_v32  ;;  %v5550_v2 = vsel %vm571_vm1, %v15801_v21, %v13731_v3  ;;  %v15802_v22 = vld [vmem:[#allocation36_spill] sm:$0xff] }
 0x7b9   : > { %15789 = vst [vmem:[#allocation49_spill] sm:$0xff] %v13791_v49  ;;  %8780 = vmatpush3.msra.mxu1 %v5859_v14  ;;  %6671 = vrot.lane.b32.xlu1 %v13543_v59, %s15482_s17  ;;  %v13802_v30 = vpop.permute.xlu1 %6265  ;;  %v13813_v59 = vcombine.low %v15794_v4, %v15794_v4  ;;  %v15799_v14 = vld [vmem:[#allocation11_spill] sm:$0xff]  ;;  %v5558_v9 = vsel %vm571_vm1, %v5517_v37, %v5531_v23 }
 0x7ba   : > { %15791 = vst [vmem:[#allocation42_spill] sm:$0xff] %v13802_v30  ;;  %5909 = vmatprep.subr.mxu0 %v5557_v45  ;;  %8781 = vmatprep.subr.mxu1 %v15252_v62  ;;  %v15800_v45 = vld [vmem:[#allocation9_spill] sm:$0xff]  ;;  %v15804_v23 = vld [vmem:[#allocation27_spill] sm:$0xff] }
 0x7bb   : > { %5910 = vmatpush1.msra.mxu0 %v5556_v20  ;;  %8782 = vmatpush3.msra.mxu1 %v5856_v6  ;;  %v5458_v57 = vsel %vm292_vm0, %v15800_v45, %v15799_v14  ;;  %v5489_v20 = vsel %vm324_vm11, %v15790_v29, %v15802_v22  ;;  %v13848_v6 = vcombine.low %v15803_v11, %v15803_v11  ;;  %v15806_v37 = vld [vmem:[#allocation31_spill] sm:$0xff] }
 0x7bc   : > { %5911 = vmatprep.subr.mxu0 %v5554_v18  ;;  %8783 = vmatprep.subr.mxu1 %v15252_v62  ;;  %v13827_v41 = vpop.permute.xlu0 %6267  ;;  %v5551_v28 = vsel %vm571_vm1, %v5458_v57, %v5474_v51  ;;  %v5475_v3 = vsel %vm309_vm10, %v15795_v42, %v15804_v23  ;;  %v5555_v18 = vsel %vm571_vm1, %v5489_v20, %v5503_v40  ;;  %v15810_v40 = vld [vmem:[#allocation15_spill] sm:$0xff]  ;;  %v15815_v23 = vld [vmem:[#allocation41_spill] sm:$0xff] }
 0x7bd   : > { %15798 = vst [vmem:[#allocation48_spill] sm:$0xff] %v13827_v41  ;;  %6686 = vrot.lane.b32.xlu0 %v13531_v58, %s9008_s19  ;;  %5912 = vmatpush1.msra.mxu0 %v5553_v44  ;;  %v13838_v31 = vpop.permute.xlu1 %6275  ;;  %v7620_v29 = vcombine.high %v7611_v53, %v7618_v56  ;;  %v15805_v44 = vld [vmem:[#allocation44_spill] sm:$0xff]  ;;  %v5548_v51 = vsel %vm571_vm1, %v13726_v0, %v5407_v19  ;;  %v15808_v56 = vld [vmem:[#allocation47_spill] sm:$0xff]  ;;  %v15809_v0 = vld [vmem:[#allocation25_spill] sm:$0xff] }
 0x7be   : > { %8784 = vmatpush3.msra.mxu1 %v5558_v9  ;;  %6554 = vrot.lane.b32.xlu1 %v13813_v59, %s8998_s30  ;;  %v5351_v33 = vsel %vm384_vm13, %v13219_v47, %v15805_v44  ;;  %v13866_v42 = vrot.slane %v7619_v54, %v9094_v5  ;;  %v5366_v53 = vsel %vm15807_vm7, %v13239_v48, %v15806_v37  ;;  %v15811_v48 = vld [vmem:[#allocation22_spill] sm:$0xff]  ;;  %v15812_v9 = vld [vmem:[#allocation7_spill] sm:$0xff]  ;;  %vm15837_vm7 = vmmov %vm15836_vm9 }
 0x7bf   : > { %5913 = vmatprep.subr.mxu0 %v5551_v28  ;;  %8785 = vmatprep.subr.mxu1 %v15252_v62  ;;  %v5459_v47 = vsel %vm292_vm0, %v15799_v14, %v15808_v56  ;;  %v5336_v54 = vsel %vm369_vm8, %v15810_v40, %v15809_v0  ;;  %v5337_v45 = vsel %vm369_vm8, %v15809_v0, %v15811_v48  ;;  %v15820_v37 = vld [vmem:[#allocation51_spill] sm:$0xff]  ;;  %v15822_v56 = vld [vmem:[#allocation30_spill] sm:$0xff] }
 0x7c0   : > { %5914 = vmatpush1.msra.mxu0 %v5550_v2  ;;  %8786 = vmatpush3.msra.mxu1 %v5555_v18  ;;  %v13863_v32 = vpop.permute.xlu0 %6277  ;;  %v5552_v14 = vsel %vm571_vm1, %v5459_v47, %v5475_v3  ;;  %v5545_v61 = vsel %vm571_vm1, %v5337_v45, %v5351_v33  ;;  %v5544_v39 = vsel %vm571_vm1, %v5336_v54, %v13709_v1  ;;  %v15814_v1 = vld [vmem:[#allocation35_spill] sm:$0xff]  ;;  %v15824_v40 = vld [vmem:[#allocation10_spill] sm:$0xff] }
 0x7c1   : > { %5915 = vmatprep.subr.mxu0 %v5548_v51  ;;  %8787 = vmatprep.subr.mxu1 %v15252_v62  ;;  %v13880_v19 = vpop.permute.xlu1 %6279  ;;  %v13897_v57 = vrot.slane %v7620_v29, %v9094_v5  ;;  %v5352_v21 = vsel %vm384_vm13, %v15805_v44, %v15812_v9  ;;  %v5549_v2 = vsel %vm571_vm1, %v5366_v53, %v13636_v60  ;;  %v15817_v29 = vld [vmem:[#allocation24_spill] sm:$0xff]  ;;  %v15818_v33 = vld [vmem:[#allocation39_spill] sm:$0xff] }
 0x7c2   : > { %6552 = vrot.lane.b32.xlu0 %v13848_v6, %s8998_s30  ;;  %5916 = vmatpush1.msra.mxu0 %v5547_v16  ;;  %v13907_v22 = vcombine.high %v13866_v42, %v13866_v42  ;;  %v5295_v28 = vsel %vm324_vm11, %v13058_v36, %v15814_v1  ;;  %v5308_v3 = vsel %vm339_vm15, %v15815_v23, %v13140_v38  ;;  %v15819_v51 = vld [vmem:[#allocation40_spill] sm:$0xff] }
 0x7c3   : > { %8788 = vmatpush3.msra.mxu1 %v5552_v14  ;;  %6654 = vrot.lane.b32.xlu1 %v13531_v58, %s15563_s11  ;;  %v5542_v60 = vsel %vm571_vm1, %v13680_v10, %v13695_v35  ;;  %v5324_v44 = vsel %vm354_vm12, %v13188_v12, %v15817_v29  ;;  %v5338_v36 = vsel %vm369_vm8, %v15811_v48, %v15818_v33  ;;  %v15821_v35 = vld [vmem:[#allocation45_spill] sm:$0xff] }
 0x7c4   : > { %5917 = vmatprep.subr.mxu0 %v5545_v61  ;;  %8789 = vmatprep.subr.mxu1 %v15252_v62  ;;  %v13909_v20 = vpop.permute.xlu0 %6281  ;;  %v5541_v38 = vsel %vm571_vm1, %v5308_v3, %v13685_v52  ;;  %v5280_v10 = vsel %vm309_vm10, %v15820_v37, %v15819_v51  ;;  %v5281_v53 = vsel %vm309_vm10, %v15819_v51, %v15821_v35  ;;  %v8471_v37 = vld [vmem:[%s9092_s28 + $0x21] ss:$8 sm:$0x7] }
 0x7c5   : > { %15813 = vst [vmem:[#allocation21_spill] sm:$0xff] %v13909_v20  ;;  %5918 = vmatpush1.msra.mxu0 %v5544_v39  ;;  %8790 = vmatpush3.msra.mxu1 %v5549_v2  ;;  %v13920_v18 = vpop.permute.xlu1 %6289  ;;  %v5546_v12 = vsel %vm571_vm1, %v5338_v36, %v5352_v21  ;;  %v5310_v47 = vsel %vm339_vm15, %v13149_v7, %v15822_v56  ;;  %v15825_v39 = vld [vmem:[#allocation52_spill] sm:$0xff]  ;;  %v15826_v21 = vld [vmem:[#allocation14_spill] sm:$0xff] }
 0x7c6   : > { %15816 = vst [vmem:[#allocation50_spill] sm:$0xff] %v13920_v18  ;;  %5919 = vmatprep.subr.mxu0 %v5542_v60  ;;  %8791 = vmatprep.subr.mxu1 %v15252_v62  ;;  %v5539_v52 = vsel %vm571_vm1, %v5281_v53, %v5295_v28  ;;  %v13948_v16 = vcombine.high %v13897_v57, %v13897_v57  ;;  %v8473_v53 = vld [vmem:[%s9092_s28 + $0xa1] ss:$8 sm:$0x7] }
 0x7c7   : > { %7735 = vrot.lane.b32.xlu0 %v13897_v57, %s8998_s30  ;;  %5920 = vmatpush1.msra.mxu0 %v5541_v38  ;;  %v5296_v54 = vsel %vm324_vm11, %v15814_v1, %v15824_v40  ;;  %v5538_v7 = vsel %vm571_vm1, %v5280_v10, %v13674_v43  ;;  %v5543_v48 = vsel %vm571_vm1, %v5310_v47, %v5324_v44  ;;  %v8932_v1 = vld [vmem:[%s15053_s1] sm:$0xff] }
 0x7c8   : > { %8792 = vmatpush3.msra.mxu1 %v5546_v12  ;;  %7737 = vrot.lane.b32.xlu1 %v13907_v22, %s8998_s30  ;;  %v13950_v0 = vpop.permute.xlu0 %6291  ;;  %v5536_v14 = vsel %vm571_vm1, %v13648_v26, %v13669_v27  ;;  %v5214_v61 = vcombine.high %v13651_v15, %v13651_v15  ;;  %v5266_v9 = vsel %vm292_vm0, %v12887_v63, %v15825_v39  ;;  %v8472_v10 = vld [vmem:[%s9092_s28 + $0x61] ss:$8 sm:$0x7] }
 0x7c9   : > { %15823 = vst [vmem:[#allocation37_spill] sm:$0xff] %v13950_v0  ;;  %5921 = vmatprep.subr.mxu0 %v5539_v52  ;;  %8793 = vmatprep.subr.mxu1 %v15252_v62  ;;  %v13959_v45 = vpop.permute.xlu1 %6293  ;;  %v5282_v43 = vsel %vm309_vm10, %v15821_v35, %v15826_v21  ;;  %v5535_v2 = vsel %vm571_vm1, %v13651_v15, %v13664_v13  ;;  %v8474_v12 = vld [vmem:[%s9092_s28 + $0xe1] ss:$8 sm:$0x7] }
 0x7ca   : > { %5922 = vmatpush1.msra.mxu0 %v5538_v7  ;;  %8794 = vmatpush3.msra.mxu1 %v5543_v48  ;;  %v5540_v26 = vsel %vm571_vm1, %v5282_v43, %v5296_v54  ;;  %v5537_v15 = vsel %vm571_vm1, %v5214_v61, %v5266_v9  ;;  %v14016_v60 = vcombine.low %v13866_v42, %v13866_v42 }
 0x7cb   : > { %5923 = vmatprep.subr.mxu0 %v5536_v14  ;;  %8795 = vmatprep.subr.mxu1 %v15252_v62  ;;  %v14024_v44 = vcombine.low %v13897_v57, %v13897_v57  ;;  %v7554_v47 = vcombine.low %v8471_v37, %v8472_v10  ;;  %v7555_v52 = vcombine.low %v8473_v53, %v8474_v12  ;;  %v8469_v37 = vld [vmem:[%s9092_s28 + $0xa0] ss:$8 sm:$0xf] }
 0x7cc   : > { %7739 = vrot.lane.b32.xlu0 %v13948_v16, %s8998_s30  ;;  %5924 = vmatpush1.msra.mxu0 %v5535_v2  ;;  %v13979_v27 = vpop.permute.xlu0 %6295  ;;  %v8467_v2 = vld [vmem:[%s9092_s28 + $0x20] ss:$8 sm:$0xf] }
 0x7cd   : > { %15827 = vst [vmem:[#allocation16_spill] sm:$0xff] %v13979_v27  ;;  %8796 = vmatpush3.msra.mxu1 %v5540_v26  ;;  %7714 = vrot.lane.b32.xlu1 %v13866_v42, %s9011_s25  ;;  %v13983_v63 = vpop.permute.xlu1 %6303  ;;  %v7562_v7 = vrot.slane %v7554_v47, %v9094_v5  ;;  %v7569_v48 = vrot.slane %v7555_v52, %v9094_v5  ;;  %v8468_v26 = vld [vmem:[%s9092_s28 + $0x60] ss:$8 sm:$0xf] }
 0x7ce   : > { %8407 = vmatmul.mubr.msk.f32.vlgmr.msra.gmra.mxu0 %vm354_vm12, %v8932_v1  ;;  %8797 = vmatprep.subr.mxu1 %v15252_v62  ;;  %v8470_v10 = vld [vmem:[%s9092_s28 + $0xe0] ss:$8 sm:$0xf]  ;;  %v7393_v47 = vcombine.low %v8467_v2, %v8468_v26 }
 0x7cf   : > { %8798 = vmatpush3.msra.mxu1 %v5537_v15  ;;  %6946 = vmatprep.mubr.f32.mxu0 %v15252_v62  ;;  %v7571_v9 = vcombine.high %v7562_v7, %v7569_v48  ;;  %v7394_v52 = vcombine.low %v8469_v37, %v8470_v10 }
 0x7d0   : > { %8800 = vmatmul.mubr.msk.f32.vlgmr.msra.gmra.mxu1 %vm354_vm12, %v8932_v1  ;;  %7716 = vrot.lane.b32.xlu0 %v13897_v57, %s9011_s25  ;;  %v13995_v13 = vpop.permute.xlu0 %6305 }
 0x7d1   : > { %7718 = vrot.lane.b32.xlu1 %v13907_v22, %s9011_s25  ;;  %v13999_v28 = vpop.permute.xlu1 %6307  ;;  %8802 = vmatprep.subr.mxu1 %v15252_v62  ;;  %v7585_v1 = vrot.slane %v7571_v9, %v9094_v5  ;;  %v7408_v41 = vrot.slane %v7394_v52, %v9094_v5 }
 0x7d2   : > { %8830 = vmatprep.mubr.msk.f32.mxu1 %vm15608_vm4, %v15252_v62 }
 0x7d4   : > { %7733 = vrot.lane.b32.xlu0 %v13866_v42, %s8998_s30  ;;  %v14006_v23 = vpop.permute.xlu0 %6309 }
 0x7d5   : > { %15828 = vst [vmem:[#allocation23_spill] sm:$0xff] %v14006_v23  ;;  %7684 = vrot.lane.b32.xlu1 %v13866_v42, %s9009_s20  ;;  %v14010_v3 = vpop.permute.xlu1 %6317 }
 0x7d8   : > { %7686 = vrot.lane.b32.xlu0 %v13897_v57, %s9009_s20  ;;  %v14018_v29 = vpop.permute.xlu0 %6319 }
 0x7d9   : > { %7688 = vrot.lane.b32.xlu1 %v13907_v22, %s9009_s20  ;;  %v14026_v33 = vpop.permute.xlu1 %6321 }
 0x7dc   : > { %7699 = vrot.lane.b32.xlu0 %v14016_v60, %s9010_s24  ;;  %v14030_v36 = vpop.permute.xlu0 %6323 }
 0x7dd   : > { %15829 = vst [vmem:[#allocation26_spill] sm:$0xff] %v14030_v36  ;;  %7701 = vrot.lane.b32.xlu1 %v14024_v44, %s9010_s24  ;;  %v14034_v38 = vpop.permute.xlu1 %6331 }
 0x7e0   : > { %7703 = vrot.lane.b32.xlu0 %v13866_v42, %s9010_s24  ;;  %v14038_v51 = vpop.permute.xlu0 %6333 }
 0x7e1   : > { %7720 = vrot.lane.b32.xlu1 %v13948_v16, %s9011_s25 }
 0x7e2   : > { %v14044_v35 = vpop.permute.xlu1 %6335 }
 0x7e4   : > { %7654 = vrot.lane.b32.xlu0 %v13866_v42, %s15482_s17  ;;  %v14050_v56 = vpop.permute.xlu0 %6337 }
 0x7e5   : > { %15830 = vst [vmem:[#allocation5_spill] sm:$0xff] %v14050_v56  ;;  %7656 = vrot.lane.b32.xlu1 %v13897_v57, %s15482_s17 }
 0x7e6   : > { %v14054_v40 = vpop.permute.xlu1 %6345 }
 0x7e8   : > { %7658 = vrot.lane.b32.xlu0 %v13907_v22, %s15482_s17  ;;  %v14058_v54 = vpop.permute.xlu0 %6347  ;;  %v7570_v22 = vcombine.low %v7562_v7, %v7569_v48 }
 0x7e9   : > { %7669 = vrot.lane.b32.xlu1 %v14016_v60, %s9008_s19 }
 0x7ea   : > { %v14064_v14 = vpop.permute.xlu1 %6349  ;;  %v7578_v21 = vrot.slane %v7570_v22, %v9094_v5  ;;  %v7401_v22 = vrot.slane %v7393_v47, %v9094_v5 }
 0x7ec   : > { %7671 = vrot.lane.b32.xlu0 %v14024_v44, %s9008_s19  ;;  %v14068_v61 = vpop.permute.xlu0 %6351  ;;  %v7586_v53 = vcombine.high %v7578_v21, %v7578_v21  ;;  %v7409_v2 = vcombine.low %v7401_v22, %v7408_v41  ;;  %v7410_v26 = vcombine.high %v7401_v22, %v7408_v41 }
 0x7ed   : > { %15831 = vst [vmem:[#allocation6_spill] sm:$0xff] %v14068_v61  ;;  %7673 = vrot.lane.b32.xlu1 %v13866_v42, %s9008_s19 }
 0x7ee   : > { %v14072_v39 = vpop.permute.xlu1 %6438  ;;  %v14100_v37 = vrot.slane %v7409_v2, %v9094_v5  ;;  %v14103_v10 = vrot.slane %v7410_v26, %v9094_v5 }
 0x7f0   : > { %7690 = vrot.lane.b32.xlu0 %v13948_v16, %s9009_s20  ;;  %v14077_v43 = vpop.permute.xlu0 %6440  ;;  %v14111_v41 = vcombine.low %v14103_v10, %v14103_v10 }
 0x7f1   : > { %7705 = vrot.lane.b32.xlu1 %v13897_v57, %s9010_s24  ;;  %s9015_s24 = smov [#allocation2]  }
 0x7f2   : > { %v6747_v15 = vpop.permute.xlu1 %6746  ;;  %s8938_s25 = sshll.u32 %s9015_s24, 4  ;;  %s8939_s25 = int_to_ptr.vmem [resolvable:$false] %s8938_s25 }
 0x7f4   : > { %7587 = vrot.lane.b32.xlu0 %v7578_v21, %s15667_s10  ;;  %v6749_v12 = vpop.permute.xlu0 %6748 }
 0x7f5   : > { %7589 = vrot.lane.b32.xlu1 %v7585_v1, %s15667_s10  ;;  %v6753_v50 = vsel %vm292_vm0, %v6747_v15, %v6749_v12 }
 0x7f6   : > { %v6751_v7 = vpop.permute.xlu1 %6750 }
 0x7f7   : > { %v6754_v36 = vsel %vm292_vm0, %v6749_v12, %v6751_v7 }
 0x7f8   : > { %7591 = vrot.lane.b32.xlu0 %v7586_v53, %s15667_s10  ;;  %v6726_v48 = vpop.permute.xlu0 %6725 }
 0x7f9   : > { %7637 = vrot.lane.b32.xlu1 %v14016_v60, %s15563_s11 }
 0x7fa   : > { %v6728_v9 = vpop.permute.xlu1 %6727 }
 0x7fb   : > { %v6733_v23 = vsel %vm15832_vm3, %v6726_v48, %v6728_v9 }
 0x7fc   : > { %7639 = vrot.lane.b32.xlu0 %v14024_v44, %s15563_s11  ;;  %v6730_v21 = vpop.permute.xlu0 %6729  ;;  %v6772_v30 = vsel %vm571_vm1, %v6733_v23, %v13582_v34 }
 0x7fd   : > { %7641 = vrot.lane.b32.xlu1 %v13866_v42, %s15563_s11  ;;  %v6734_v55 = vsel %vm15833_vm14, %v6728_v9, %v6730_v21  ;;  %vm15838_vm14 = vcmask 154624  }
 0x7fe   : > { %v6745_v1 = vpop.permute.xlu1 %6744 }
 0x7ff   : > { %v6752_v56 = vsel %vm292_vm0, %v6745_v1, %v6747_v15 }
 0x800   : > { %7660 = vrot.lane.b32.xlu0 %v13948_v16, %s15482_s17  ;;  %v6696_v53 = vpop.permute.xlu0 %6695  ;;  %v14117_v16 = vcombine.low %v14100_v37, %v14100_v37  ;;  %s8940_s17 = scalar_lea.vmem %s8939_s25, 6144 }
 0x801   : > { %7675 = vrot.lane.b32.xlu1 %v13897_v57, %s9008_s19 }
 0x802   : > { %v6698_v47 = vpop.permute.xlu1 %6697 }
 0x804   : > { %7427 = vrot.lane.b32.xlu0 %v14100_v37, %s8998_s30  ;;  %v6700_v52 = vpop.permute.xlu0 %6699 }
 0x805   : > { %7429 = vrot.lane.b32.xlu1 %v14103_v10, %s8998_s30 }
 0x806   : > { %v6711_v22 = vpop.permute.xlu1 %6710 }
 0x808   : > { %7543 = vrot.lane.b32.xlu0 %v14111_v41, %s8998_s30  ;;  %v6713_v2 = vpop.permute.xlu0 %6712 }
 0x809   : > { %7541 = vrot.lane.b32.xlu1 %v14117_v16, %s8998_s30  ;;  %v6718_v9 = vsel %vm15834_vm2, %v6711_v22, %v6713_v2  ;;  %vm15839_vm2 = vmmov %vm15838_vm14 }
 0x80a   : > { %v6715_v26 = vpop.permute.xlu1 %6714 }
 0x80b   : > { %v6719_v1 = vsel %vm15835_vm6, %v6713_v2, %v6715_v26  ;;  %v6767_v2 = vsel %vm571_vm1, %v6696_v53, %v6711_v22  ;;  %vm15840_vm6 = vcmask 285696  }
 0x80c   : > { %7643 = vrot.lane.b32.xlu0 %v13897_v57, %s15563_s11  ;;  %v6732_v27 = vpop.permute.xlu0 %6731 }
 0x80d   : > { %6837 = vrot.lane.b32.xlu1 %v6753_v50, %s9003_s8  ;;  %v6773_v50 = vsel %vm571_vm1, %v6734_v55, %v13526_v17  ;;  %v6704_v17 = vsel %vm15837_vm7, %v6698_v47, %v6700_v52  ;;  %vm15842_vm7 = vcmask 138240  }
 0x80e   : > { %v6666_v20 = vpop.permute.xlu1 %6665 }
 0x810   : > { %6839 = vrot.lane.b32.xlu0 %v6754_v36, %s9003_s8  ;;  %v6668_v61 = vpop.permute.xlu0 %6667  ;;  %v6771_v36 = vsel %vm571_vm1, %v6726_v48, %v13573_v24  ;;  %v6769_v24 = vsel %vm571_vm1, %v6704_v17, %v6719_v1  ;;  %v6735_v48 = vsel %vm15832_vm3, %v6730_v21, %v6732_v27  ;;  %vm15843_vm3 = vcmask 146432  }
 0x811   : > { %6835 = vrot.lane.b32.xlu1 %v6752_v56, %s9003_s8  ;;  %v6673_v27 = vsel %vm15840_vm6, %v6666_v20, %v6668_v61 }
 0x812   : > { %v6670_v49 = vpop.permute.xlu1 %6669 }
 0x814   : > { %6829 = vrot.lane.b32.xlu0 %v6772_v30, %s9003_s8  ;;  %v6681_v12 = vpop.permute.xlu0 %6680  ;;  %v6703_v30 = vsel %vm15836_vm9, %v6696_v53, %v6698_v47  ;;  %v6774_v47 = vsel %vm571_vm1, %v6735_v48, %v13531_v58  ;;  %vm15841_vm9 = vmmov %vm15840_vm6 }
 0x815   : > { %6831 = vrot.lane.b32.xlu1 %v6773_v50, %s9003_s8  ;;  %v6768_v55 = vsel %vm571_vm1, %v6703_v30, %v6718_v9  ;;  %v6674_v21 = vsel %vm15841_vm9, %v6668_v61, %v6670_v49 }
 0x816   : > { %v6683_v15 = vpop.permute.xlu1 %6682 }
 0x818   : > { %6827 = vrot.lane.b32.xlu0 %v6771_v36, %s9003_s8  ;;  %v6685_v56 = vpop.permute.xlu0 %6684 }
 0x819   : > { %6841 = vrot.lane.b32.xlu1 %v6751_v7, %s9003_s8  ;;  %v6688_v7 = vsel %vm15838_vm14, %v6681_v12, %v6683_v15  ;;  %v6689_v9 = vsel %vm15839_vm2, %v6683_v15, %v6685_v56  ;;  %vm15844_vm14 = vcmask 293888   ;;  %vm15845_vm2 = vcmask 302080  }
 0x81a   : > { %v6702_v34 = vpop.permute.xlu1 %6701  ;;  %v6764_v30 = vsel %vm571_vm1, %v6673_v27, %v6688_v7  ;;  %v6765_v53 = vsel %vm571_vm1, %v6674_v21, %v6689_v9  ;;  %vm15846_vm6 = vmmov %vm15845_vm2 }
 0x81b   : > { %v6705_v15 = vsel %vm15843_vm3, %v6700_v52, %v6702_v34  ;;  %vm15847_vm9 = vmmov %vm15844_vm14  ;;  %vm15849_vm3 = vcmask 154624  }
 0x81c   : > { %6821 = vrot.lane.b32.xlu0 %v6768_v55, %s9003_s8  ;;  %v6717_v23 = vpop.permute.xlu0 %6716  ;;  %v6763_v55 = vsel %vm571_vm1, %v6666_v20, %v6681_v12 }
 0x81d   : > { %6823 = vrot.lane.b32.xlu1 %v6769_v24, %s9003_s8  ;;  %v6720_v22 = vsel %vm15842_vm7, %v6715_v26, %v6717_v23  ;;  %vm15848_vm7 = vcmask 285696  }
 0x81e   : > { %v6599_v50 = vpop.permute.xlu1 %6598  ;;  %v6770_v48 = vsel %vm571_vm1, %v6705_v15, %v6720_v22 }
 0x820   : > { %6819 = vrot.lane.b32.xlu0 %v6767_v2, %s9003_s8  ;;  %v6601_v36 = vpop.permute.xlu0 %6600 }
 0x821   : > { %6833 = vrot.lane.b32.xlu1 %v6774_v47, %s9003_s8  ;;  %v6604_v61 = vsel %vm15845_vm2, %v6599_v50, %v6601_v36  ;;  %vm15852_vm2 = vcmask 7168  }
 0x822   : > { %v6603_v1 = vpop.permute.xlu1 %6602 }
 0x823   : > { %v6605_v2 = vsel %vm15846_vm6, %v6601_v36, %v6603_v1  ;;  %vm15853_vm6 = vmmov %vm15852_vm2 }
 0x824   : > { %6813 = vrot.lane.b32.xlu0 %v6764_v30, %s9003_s8  ;;  %v6436_v30 = vcombine.high %v15803_v11, %v15803_v11 }
 0x825   : > { %6815 = vrot.lane.b32.xlu1 %v6765_v53, %s9003_s8  ;;  %v6649_v58 = vpop.permute.xlu0 %6648 }
 0x826   : > { %v6651_v17 = vpop.permute.xlu1 %6650  ;;  %v6759_v12 = vsel %vm571_vm1, %v6599_v50, %v6649_v58 }
 0x827   : > { %v6656_v24 = vsel %vm15844_vm14, %v6649_v58, %v6651_v17  ;;  %vm15850_vm14 = vmmov %vm15847_vm9 }
 0x828   : > { %6811 = vrot.lane.b32.xlu0 %v6763_v55, %s9003_s8  ;;  %v6760_v26 = vsel %vm571_vm1, %v6604_v61, %v6656_v24 }
 0x829   : > { %6825 = vrot.lane.b32.xlu1 %v6770_v48, %s9003_s8 }
 0x82a   : > { %v6653_v23 = vpop.permute.xlu0 %6652 }
 0x82b   : > { %v6657_v7 = vsel %vm15847_vm9, %v6651_v17, %v6653_v23  ;;  %v6672_v52 = vpop.permute.xlu1 %6671  ;;  %vm15854_vm9 = vcmask 138240  }
 0x82c   : > { %6805 = vrot.lane.b32.xlu0 %v6760_v26, %s9003_s8  ;;  %v6761_v20 = vsel %vm571_vm1, %v6605_v2, %v6657_v7  ;;  %v6675_v47 = vsel %vm15848_vm7, %v6670_v49, %v6672_v52  ;;  %v14194_v49 = vsel %vm292_vm0, %v14072_v39, %v14077_v43  ;;  %vm15855_vm7 = vcmask 146432  }
 0x82d   : > { %6807 = vrot.lane.b32.xlu1 %v6761_v20, %s9003_s8  ;;  %v6757_v22 = vsel %vm571_vm1, %v6436_v30, %v14194_v49  ;;  %v6437_v20 = vcombine.high %v15794_v4, %v15794_v4 }
 0x82f   : > { %v6687_v34 = vpop.permute.xlu0 %6686 }
 0x830   : > { %6803 = vrot.lane.b32.xlu0 %v6759_v12, %s9003_s8  ;;  %v6690_v9 = vsel %vm15849_vm3, %v6685_v56, %v6687_v34  ;;  %v6555_v27 = vpop.permute.xlu1 %6554  ;;  %vm15856_vm3 = vmmov %vm15854_vm9 }
 0x831   : > { %v6557_v36 = vsel %vm292_vm0, %v6555_v27, %v14072_v39  ;;  %v6766_v21 = vsel %vm571_vm1, %v6675_v47, %v6690_v9  ;;  %v6758_v47 = vsel %vm571_vm1, %v6437_v20, %v14077_v43 }
 0x832   : > { %6817 = vrot.lane.b32.xlu1 %v6766_v21, %s9003_s8  ;;  %v6756_v50 = vsel %vm571_vm1, %v15794_v4, %v6557_v36 }
 0x834   : > { %6797 = vrot.lane.b32.xlu0 %v6756_v50, %s9003_s8  ;;  %v6553_v56 = vpop.permute.xlu0 %6552 }
 0x835   : > { %v6655_v53 = vpop.permute.xlu1 %6654  ;;  %v6556_v15 = vsel %vm292_vm0, %v6553_v56, %v6555_v27 }
 0x836   : > { %6799 = vrot.lane.b32.xlu1 %v6757_v22, %s9003_s8  ;;  %v6658_v39 = vsel %vm15850_vm14, %v6653_v23, %v6655_v53  ;;  %v6755_v61 = vsel %vm571_vm1, %v15803_v11, %v6556_v15  ;;  %vm15857_vm14 = vmmov %vm15855_vm7 }
 0x837   : > { %v6762_v48 = vsel %vm571_vm1, %v6603_v1, %v6658_v39 }
 0x838   : > { %6498 = vrot.lane.b32.xlu0 %v15794_v4, %s9001_s6 }
 0x839   : > { %v7736_v58 = vpop.permute.xlu0 %7735 }
 0x83a   : > { %v7738_v17 = vpop.permute.xlu1 %7737  ;;  %6500 = vrot.lane.b32.xlu1 %v6436_v30, %s9001_s6 }
 0x83c   : > { %6512 = vrot.lane.b32.xlu0 %v13813_v59, %s9002_s7 }
 0x83e   : > { %v14207_v55 = vpop.permute.xlu0 %7739  ;;  %6514 = vrot.lane.b32.xlu1 %v15803_v11, %s9002_s7 }
 0x83f   : > { %v14211_v24 = vpop.permute.xlu1 %7714 }
 0x840   : > { %6795 = vrot.lane.b32.xlu0 %v6755_v61, %s9003_s8 }
 0x842   : > { %v7717_v26 = vpop.permute.xlu0 %7716  ;;  %6809 = vrot.lane.b32.xlu1 %v6762_v48, %s9003_s8  ;;  %v7743_v48 = vsel %vm292_vm0, %v7738_v17, %v14207_v55 }
 0x843   : > { %v14218_v2 = vpop.permute.xlu1 %7718 }
 0x844   : > { %6496 = vrot.lane.b32.xlu0 %v15803_v11, %s9001_s6 }
 0x846   : > { %v7734_v23 = vpop.permute.xlu0 %7733  ;;  %6510 = vrot.lane.b32.xlu1 %v13848_v6, %s9002_s7 }
 0x847   : > { %v14224_v7 = vpop.permute.xlu1 %7684 }
 0x848   : > { %6470 = vrot.lane.b32.xlu0 %v15794_v4, %s8999_s4 }
 0x84a   : > { %v7687_v52 = vpop.permute.xlu0 %7686  ;;  %6472 = vrot.lane.b32.xlu1 %v6436_v30, %s8999_s4 }
 0x84b   : > { %v14229_v1 = vpop.permute.xlu1 %7688 }
 0x84c   : > { %6484 = vrot.lane.b32.xlu0 %v13813_v59, %s9000_s5 }
 0x84e   : > { %v14235_v12 = vpop.permute.xlu0 %7699  ;;  %6486 = vrot.lane.b32.xlu1 %v15803_v11, %s9000_s5 }
 0x84f   : > { %v7702_v34 = vpop.permute.xlu1 %7701 }
 0x850   : > { %6801 = vrot.lane.b32.xlu0 %v6758_v47, %s9003_s8  ;;  %v7722_v47 = vsel %vm15852_vm2, %v14211_v24, %v7717_v26 }
 0x852   : > { %v14242_v9 = vpop.permute.xlu0 %7703  ;;  %6468 = vrot.lane.b32.xlu1 %v15803_v11, %s8999_s4 }
 0x853   : > { %v7721_v27 = vpop.permute.xlu1 %7720 }
 0x854   : > { %6482 = vrot.lane.b32.xlu0 %v13848_v6, %s9000_s5 }
 0x856   : > { %v14248_v36 = vpop.permute.xlu0 %7654  ;;  %6502 = vrot.lane.b32.xlu1 %v6437_v20, %s9001_s6 }
 0x857   : > { %v14251_v21 = vpop.permute.xlu1 %7656 }
 0x858   : > { %6516 = vrot.lane.b32.xlu0 %v15794_v4, %s9002_s7 }
 0x85a   : > { %v14255_v50 = vpop.permute.xlu0 %7658  ;;  %6442 = vrot.lane.b32.xlu1 %v6436_v30, %s8998_s30 }
 0x85b   : > { %v14258_v56 = vpop.permute.xlu1 %7669 }
 0x85c   : > { %6456 = vrot.lane.b32.xlu0 %v13813_v59, %s15851_s29 }
 0x85e   : > { %v7672_v53 = vpop.permute.xlu0 %7671  ;;  %6458 = vrot.lane.b32.xlu1 %v15803_v11, %s15851_s29  ;;  %v7742_v11 = vsel %vm292_vm0, %v7736_v58, %v7738_v17 }
 0x85f   : > { %v14264_v22 = vpop.permute.xlu1 %7673 }
 0x860   : > { %6454 = vrot.lane.b32.xlu0 %v13848_v6, %s15851_s29 }
 0x862   : > { %v7691_v15 = vpop.permute.xlu0 %7690  ;;  %6474 = vrot.lane.b32.xlu1 %v6437_v20, %s8999_s4 }
 0x863   : > { %v7706_v39 = vpop.permute.xlu1 %7705 }
 0x864   : > { %6488 = vrot.lane.b32.xlu0 %v15794_v4, %s9000_s5 }
 0x866   : > { %v14271_v30 = vpop.permute.xlu0 %7587  ;;  %6444 = vrot.lane.b32.xlu1 %v6437_v20, %s8998_s30  ;;  %v7741_v20 = vsel %vm292_vm0, %v7734_v23, %v7736_v58  ;;  %v7707_v23 = vsel %vm15854_vm9, %v14235_v12, %v7702_v34  ;;  %vm15859_vm9 = vcmask 285696  }
 0x867   : > { %v14274_v59 = vpop.permute.xlu1 %7589 }
 0x868   : > { %6460 = vrot.lane.b32.xlu0 %v15794_v4, %s15851_s29  ;;  %v7723_v4 = vsel %vm15853_vm6, %v7717_v26, %v14218_v2  ;;  %v7760_v26 = vsel %vm571_vm1, %v14211_v24, %v14016_v60  ;;  %v7693_v24 = vsel %vm15857_vm14, %v7687_v52, %v14229_v1  ;;  %vm15858_vm6 = vcmask 154624  }
 0x869   : > { %v7762_v17 = vsel %vm571_vm1, %v7723_v4, %v13866_v42  ;;  %v7724_v4 = vsel %vm15852_vm2, %v14218_v2, %v7721_v27  ;;  %v7662_v2 = vsel %vm15859_vm9, %v14248_v36, %v14251_v21  ;;  %vm15862_vm2 = vcmask 138240  }
 0x86a   : > { %v14279_v61 = vpop.permute.xlu0 %7591  ;;  %7826 = vrot.lane.b32.xlu1 %v7742_v11, %s9003_s8  ;;  %v7761_v11 = vsel %vm571_vm1, %v7722_v47, %v14024_v44  ;;  %v7692_v44 = vsel %vm15855_vm7, %v14224_v7, %v7687_v52  ;;  %v7677_v52 = vsel %vm15858_vm6, %v14258_v56, %v7672_v53  ;;  %vm15860_vm7 = vmmov %vm15858_vm6  ;;  %vm15863_vm6 = vcmask 293888  }
 0x86b   : > { %v14282_v6 = vpop.permute.xlu1 %7637  ;;  %v7757_v60 = vsel %vm571_vm1, %v7692_v44, %v7707_v23  ;;  %v7678_v27 = vsel %vm15860_vm7, %v7672_v53, %v14264_v22  ;;  %v7694_v44 = vsel %vm15857_vm14, %v14229_v1, %v7691_v15  ;;  %v7709_v53 = vsel %vm15862_vm2, %v14242_v9, %v7706_v39  ;;  %vm15865_vm7 = vmmov %vm15863_vm6 }
 0x86c   : > { %7828 = vrot.lane.b32.xlu0 %v7743_v48, %s9003_s8  ;;  %v7708_v48 = vsel %vm15856_vm3, %v7702_v34, %v14242_v9  ;;  %vm15861_vm3 = vmmov %vm15859_vm9  ;;  %v7759_v1 = vsel %vm571_vm1, %v7694_v44, %v7709_v53  ;;  %vm15864_vm9 = vcmask 302080   ;;  %vm15867_vm14 = vcmask 285696  }
 0x86d   : > { %v7663_v23 = vsel %vm15861_vm3, %v14251_v21, %v14255_v50  ;;  %v7752_v21 = vsel %vm571_vm1, %v14248_v36, %v14258_v56  ;;  %v7593_v9 = vsel %vm15864_vm9, %v14271_v30, %v14274_v59  ;;  %vm15866_vm3 = vmmov %vm15864_vm9  ;;  %vm15868_vm2 = vcmask 154624  }
 0x86e   : > { %v7640_v46 = vpop.permute.xlu0 %7639  ;;  %7824 = vrot.lane.b32.xlu1 %v7741_v20, %s9003_s8  ;;  %v7758_v20 = vsel %vm571_vm1, %v7693_v24, %v7708_v48  ;;  %vm15871_vm9 = vcmask 736256  }
 0x86f   : > { %v14293_v18 = vpop.permute.xlu1 %7641 }
 0x870   : > { %7818 = vrot.lane.b32.xlu0 %v7761_v11, %s9003_s8  ;;  %v7646_v36 = vsel %vm15865_vm7, %v7640_v46, %v14293_v18  ;;  %vm15872_vm7 = vmmov %vm15871_vm9 }
 0x872   : > { %v7661_v0 = vpop.permute.xlu0 %7660  ;;  %7820 = vrot.lane.b32.xlu1 %v7762_v17, %s9003_s8  ;;  %v7763_v17 = vsel %vm571_vm1, %v7724_v4, %v13897_v57  ;;  %v7754_v57 = vsel %vm571_vm1, %v7663_v23, %v7678_v27 }
 0x873   : > { %v7676_v58 = vpop.permute.xlu1 %7675 }
 0x874   : > { %7816 = vrot.lane.b32.xlu0 %v7760_v26, %s9003_s8 }
 0x876   : > { %v14311_v42 = vpop.permute.xlu0 %7427  ;;  %7830 = vrot.lane.b32.xlu1 %v14207_v55, %s9003_s8  ;;  %v7756_v55 = vsel %vm571_vm1, %v14224_v7, %v14235_v12  ;;  %v7753_v12 = vsel %vm571_vm1, %v7662_v2, %v7677_v52  ;;  %v7679_v2 = vsel %vm15868_vm2, %v14264_v22, %v7676_v58 }
 0x877   : > { %v14315_v47 = vpop.permute.xlu1 %7429 }
 0x878   : > { %7810 = vrot.lane.b32.xlu0 %v7757_v60, %s9003_s8 }
 0x87a   : > { %v14324_v34 = vpop.permute.xlu0 %7543  ;;  %7812 = vrot.lane.b32.xlu1 %v7758_v20, %s9003_s8  ;;  %v7645_v20 = vsel %vm15863_vm6, %v14282_v6, %v7640_v46  ;;  %v7664_v46 = vsel %vm15867_vm14, %v14255_v50, %v7661_v0  ;;  %v14398_v50 = vcombine.high %v14100_v37, %v14100_v37 }
 0x87b   : > { %v14327_v11 = vpop.permute.xlu1 %7541  ;;  %v7749_v39 = vsel %vm571_vm1, %v7593_v9, %v7645_v20  ;;  %v7546_v23 = vsel %vm292_vm0, %v14324_v34, %v14311_v42  ;;  %v7755_v0 = vsel %vm571_vm1, %v7664_v46, %v7679_v2 }
 0x87c   : > { %7808 = vrot.lane.b32.xlu0 %v7756_v55, %s9003_s8  ;;  %v7594_v55 = vsel %vm15866_vm3, %v14274_v59, %v14279_v61  ;;  %v7748_v59 = vsel %vm571_vm1, %v14271_v30, %v14282_v6  ;;  %v14405_v30 = vsel %vm292_vm0, %v14311_v42, %v14315_v47  ;;  %v15869_v6 = vld [vmem:[#allocation38_spill] sm:$0xff]  ;;  %vm15880_vm3 = vmmov %vm15872_vm7 }
 0x87d   : > { %v7746_v42 = vsel %vm571_vm1, %v14398_v50, %v14405_v30  ;;  %vm15889_vm14 = vmmov %vm15880_vm3 }
 0x87e   : > { %v14342_v26 = vpop.permute.xlu0 %7643  ;;  %7822 = vrot.lane.b32.xlu1 %v7763_v17, %s9003_s8  ;;  %v7750_v17 = vsel %vm571_vm1, %v7594_v55, %v7646_v36  ;;  %vm15890_vm2 = vmmov %vm15880_vm3 }
 0x87f   : > { %v6838_v7 = vpop.permute.xlu1 %6837 }
 0x880   : > { %7802 = vrot.lane.b32.xlu0 %v7753_v12, %s9003_s8 }
 0x882   : > { %v6840_v48 = vpop.permute.xlu0 %6839  ;;  %7804 = vrot.lane.b32.xlu1 %v7754_v57, %s9003_s8 }
 0x883   : > { %v6836_v60 = vpop.permute.xlu1 %6835  ;;  %v6859_v24 = vsel %vm384_vm13, %v6838_v7, %v6840_v48 }
 0x884   : > { %v6858_v4 = vsel %vm384_vm13, %v6836_v60, %v6838_v7  ;;  %8442 = vmatprep.subr.msk.mxu0 %vm571_vm1, %v6859_v24  ;;  %7800 = vrot.lane.b32.xlu0 %v7752_v21, %s9003_s8 }
 0x885   : > { %8443 = vmatpush1.msk.msra.mxu0 %vm571_vm1, %v6858_v4 }
 0x886   : > { %v6830_v56 = vpop.permute.xlu0 %6829  ;;  %7814 = vrot.lane.b32.xlu1 %v7759_v1, %s9003_s8 }
 0x887   : > { %v6832_v15 = vpop.permute.xlu1 %6831 }
 0x888   : > { %v6856_v52 = vsel %vm384_vm13, %v6830_v56, %v6832_v15  ;;  %7794 = vrot.lane.b32.xlu0 %v7749_v39, %s9003_s8 }
 0x889   : > { %6888 = vmatprep.subr.mxu0 %v6856_v52 }
 0x88a   : > { %v6828_v27 = vpop.permute.xlu0 %6827  ;;  %7796 = vrot.lane.b32.xlu1 %v7750_v17, %s9003_s8 }
 0x88b   : > { %v6855_v7 = vsel %vm384_vm13, %v6828_v27, %v6830_v56  ;;  %v6842_v12 = vpop.permute.xlu1 %6841 }
 0x88c   : > { %v6860_v57 = vsel %vm384_vm13, %v6840_v48, %v6842_v12  ;;  %6889 = vmatpush1.msra.mxu0 %v6855_v7  ;;  %7792 = vrot.lane.b32.xlu0 %v7748_v59, %s9003_s8  ;;  %v7745_v48 = vsel %vm571_vm1, %v14103_v10, %v7546_v23  ;;  %v7545_v7 = vsel %vm292_vm0, %v14327_v11, %v14324_v34 }
 0x88d   : > { %8803 = vmatpush3.msk.msra.mxu1 %vm571_vm1, %v6860_v57 }
 0x88e   : > { %v5959_v22 = vpop.f32.mrf.mxu0  ;;  %v6822_v58 = vpop.permute.xlu0 %6821  ;;  %7806 = vrot.lane.b32.xlu1 %v7755_v0, %s9003_s8  ;;  %8804 = vmatprep.subr.mxu1 %v15252_v62 }
 0x88f   : > { %v5960_v44 = vadd.f32 %v5959_v22, %v15869_v6  ;;  %v6824_v53 = vpop.permute.xlu1 %6823  ;;  %v7647_v22 = vsel %vm15863_vm6, %v14293_v18, %v14342_v26 }
 0x890   : > { %v5961_v60 = vpop.f32.mrf.mxu0  ;;  %v6030_v24 = vpop.f32.mrf.mxu1  ;;  %v6853_v21 = vsel %vm384_vm13, %v6822_v58, %v6824_v53  ;;  %7786 = vrot.lane.b32.xlu0 %v7745_v48, %s9003_s8 }
 0x891   : > { %v5962_v20 = vadd.f32 %v5961_v60, %v15869_v6  ;;  %v6031_v4 = vadd.f32 %v6030_v24, %v15869_v6  ;;  %6890 = vmatprep.subr.mxu0 %v6853_v21  ;;  %v6034_v36 = vmax.f32 %v5960_v44, 0.0  ;;  %v7744_v24 = vsel %vm571_vm1, %v14100_v37, %v7545_v7 }
 0x892   : > { %v6820_v1 = vpop.permute.xlu0 %6819  ;;  %7788 = vrot.lane.b32.xlu1 %v7746_v42, %s9003_s8  ;;  %v8801_v9 = vpop.f32.mrf.mxu1 }
 0x893   : > { %v6035_v56 = vmax.f32 %v5962_v20, 0.0  ;;  %v6036_v39 = vmax.f32 %v6031_v4, 0.0  ;;  %v6852_v55 = vsel %vm384_vm13, %v6820_v1, %v6822_v58  ;;  %v6834_v52 = vpop.permute.xlu1 %6833  ;;  %v7751_v9 = vsel %vm571_vm1, %v14279_v61, %v7647_v22 }
 0x894   : > { %v6857_v17 = vsel %vm384_vm13, %v6832_v15, %v6834_v52  ;;  %6891 = vmatpush1.msra.mxu0 %v6852_v55  ;;  %7487 = vrot.lane.b32.xlu0 %v14103_v10, %s9001_s6 }
 0x895   : > { %v6040_v46 = vcombine.low %v6034_v36, %v6035_v56  ;;  %v6041_v2 = vcombine.high %v6034_v36, %v6035_v56  ;;  %v6042_v27 = vcombine.high %v6036_v39, %v6036_v39  ;;  %8805 = vmatpush3.msra.mxu1 %v6857_v17  ;;  %v6063_v23 = vrot.slane %v6036_v39, %v9094_v5 }
 0x896   : > { %v6814_v12 = vpop.permute.xlu0 %6813  ;;  %7489 = vrot.lane.b32.xlu1 %v14398_v50, %s9001_s6  ;;  %8806 = vmatprep.subr.mxu1 %v15252_v62 }
 0x897   : > { %v6049_v15 = vrot.slane %v6040_v46, %v9094_v5  ;;  %v6056_v59 = vrot.slane %v6041_v2, %v9094_v5  ;;  %v6070_v57 = vrot.slane %v6042_v27, %v9094_v5  ;;  %v6816_v0 = vpop.permute.xlu1 %6815 }
 0x898   : > { %v6850_v34 = vsel %vm384_vm13, %v6814_v12, %v6816_v0  ;;  %7501 = vrot.lane.b32.xlu0 %v14111_v41, %s9002_s7 }
 0x899   : > { %v6071_v11 = vcombine.low %v6049_v15, %v6063_v23  ;;  %v6072_v58 = vcombine.high %v6049_v15, %v6063_v23  ;;  %v6073_v44 = vcombine.low %v6056_v59, %v6070_v57  ;;  %v6074_v48 = vcombine.high %v6056_v59, %v6070_v57  ;;  %6892 = vmatprep.subr.mxu0 %v6850_v34  ;;  %v8459_v34 = vld [vmem:[%s9092_s28 + $0x7] ss:$8 sm:$0xf] }
 0x89a   : > { %v6812_v60 = vpop.permute.xlu0 %6811  ;;  %7503 = vrot.lane.b32.xlu1 %v14100_v37, %s9002_s7  ;;  %v14490_v15 = vcombine.high %v14103_v10, %v14103_v10 }
 0x89b   : > { %v6081_v18 = vrot.slane %v6071_v11, %v9094_v5  ;;  %v6088_v26 = vrot.slane %v6073_v44, %v9094_v5  ;;  %v6095_v21 = vrot.slane %v6072_v58, %v9094_v5  ;;  %v6102_v20 = vrot.slane %v6074_v48, %v9094_v5  ;;  %v6826_v4 = vpop.permute.xlu1 %6825  ;;  %v8460_v11 = vld [vmem:[%s9092_s28 + $0x47] ss:$8 sm:$0xf] }
 0x89c   : > { %v6849_v42 = vsel %vm384_vm13, %v6812_v60, %v6814_v12  ;;  %v6854_v1 = vsel %vm384_vm13, %v6824_v53, %v6826_v4  ;;  %7784 = vrot.lane.b32.xlu0 %v7744_v24, %s9003_s8  ;;  %v8461_v58 = vld [vmem:[%s9092_s28 + $0x87] ss:$8 sm:$0xf]  ;;  %v7200_v24 = vcombine.low %v8459_v34, %v8460_v11 }
 0x89d   : > { %v6103_v36 = vcombine.high %v6081_v18, %v6081_v18  ;;  %v6104_v56 = vcombine.high %v6088_v26, %v6088_v26  ;;  %v6105_v39 = vcombine.high %v6095_v21, %v6095_v21  ;;  %v6106_v55 = vcombine.high %v6102_v20, %v6102_v20  ;;  %8410 = vst.msk [vmem:[%s10311_s26 + $0x5] ss:$8 sm:$0x7] %vm10299_vm5, %v6081_v18  ;;  %v8462_v44 = vld [vmem:[%s9092_s28 + $0xc7] ss:$8 sm:$0xf] }
 0x89e   : > { %8411 = vst.msk [vmem:[%s10311_s26 + $0x1d] ss:$8 sm:$0x7] %vm10299_vm5, %v6095_v21  ;;  %8414 = vst.msk [vmem:[%s10311_s26 + $0x65] ss:$8 sm:$0x7] %vm10299_vm5, %v6088_v26  ;;  %6893 = vmatpush1.msra.mxu0 %v6849_v42  ;;  %8807 = vmatpush3.msra.mxu1 %v6854_v1  ;;  %v6806_v61 = vpop.permute.xlu0 %6805  ;;  %v7201_v18 = vcombine.low %v8461_v58, %v8462_v44 }
 0x89f   : > { %8415 = vst.msk [vmem:[%s10311_s26 + $0x7d] ss:$8 sm:$0x7] %vm10299_vm5, %v6102_v20  ;;  %7798 = vrot.lane.b32.xlu1 %v7751_v9, %s9003_s8  ;;  %8412 = vst.msk [vmem:[%s10311_s26 + $0x35] ss:$8 sm:$0x7] %vm10299_vm5, %v6103_v36  ;;  %v6808_v53 = vpop.permute.xlu1 %6807  ;;  %8808 = vmatprep.subr.mxu1 %v15252_v62  ;;  %v7208_v9 = vrot.slane %v7200_v24, %v9094_v5 }
 0x8a0   : > { %8413 = vst.msk [vmem:[%s10311_s26 + $0x4d] ss:$8 sm:$0x7] %vm10299_vm5, %v6105_v39  ;;  %8416 = vst.msk [vmem:[%s10311_s26 + $0x95] ss:$8 sm:$0x7] %vm10299_vm5, %v6104_v56  ;;  %7485 = vrot.lane.b32.xlu0 %v14100_v37, %s9001_s6  ;;  %v6847_v17 = vsel %vm384_vm13, %v6806_v61, %v6808_v53  ;;  %v7215_v36 = vrot.slane %v7201_v18, %v9094_v5 }
 0x8a1   : > { %8417 = vst.msk [vmem:[%s10311_s26 + $0xad] ss:$8 sm:$0x7] %vm10299_vm5, %v6106_v55  ;;  %6894 = vmatprep.subr.mxu0 %v6847_v17  ;;  %v8418_v24 = vld [vmem:[%s9092_s28 + $0x6] ss:$8 sm:$0x7] }
 0x8a2   : > { %v6804_v46 = vpop.permute.xlu0 %6803  ;;  %v8419_v18 = vld [vmem:[%s9092_s28 + $0x46] ss:$8 sm:$0x7] }
 0x8a3   : > { %7499 = vrot.lane.b32.xlu1 %v14117_v16, %s9002_s7  ;;  %v6846_v2 = vsel %vm384_vm13, %v6804_v46, %v6806_v61  ;;  %v7216_v61 = vcombine.low %v7208_v9, %v7215_v36 }
 0x8a4   : > { %7459 = vrot.lane.b32.xlu0 %v14103_v10, %s8999_s4  ;;  %6895 = vmatpush1.msra.mxu0 %v6846_v2  ;;  %v6818_v27 = vpop.permute.xlu1 %6817  ;;  %v7217_v2 = vcombine.high %v7208_v9, %v7215_v36  ;;  %v6171_v9 = vcombine.low %v8418_v24, %v8419_v18 }
 0x8a5   : > { %v6851_v7 = vsel %vm384_vm13, %v6816_v0, %v6818_v27  ;;  %v7747_v0 = vsel %vm571_vm1, %v14490_v15, %v14315_v47  ;;  %v14545_v27 = vrot.slane %v7216_v61, %v9094_v5 }
 0x8a6   : > { %v6798_v12 = vpop.permute.xlu0 %6797  ;;  %8809 = vmatpush3.msra.mxu1 %v6851_v7  ;;  %v8426_v7 = vld [vmem:[%s9092_s28 + $0x7] ss:$8 sm:$0x7] }
 0x8a7   : > { %7461 = vrot.lane.b32.xlu1 %v14398_v50, %s8999_s4  ;;  %8810 = vmatprep.subr.mxu1 %v15252_v62  ;;  %v14562_v34 = vcombine.high %v14545_v27, %v14545_v27 }
 0x8a8   : > { %7473 = vrot.lane.b32.xlu0 %v14111_v41, %s9000_s5  ;;  %v14495_v59 = vpop.permute.xlu1 %6799 }
 0x8a9   : > { %v6844_v23 = vsel %vm384_vm13, %v6798_v12, %v14495_v59 }
 0x8aa   : > { %v6499_v57 = vpop.permute.xlu0 %6498  ;;  %6896 = vmatprep.subr.mxu0 %v6844_v23 }
 0x8ab   : > { %7475 = vrot.lane.b32.xlu1 %v14100_v37, %s9000_s5 }
 0x8ac   : > { %7790 = vrot.lane.b32.xlu0 %v7747_v0, %s9003_s8  ;;  %v14505_v22 = vpop.permute.xlu1 %6500 }
 0x8ad   : > { %v6505_v26 = vsel %vm354_vm12, %v6499_v57, %v14505_v22 }
 0x8ae   : > { %v6513_v48 = vpop.permute.xlu0 %6512 }
 0x8af   : > { %7457 = vrot.lane.b32.xlu1 %v14100_v37, %s8999_s4 }
 0x8b0   : > { %7471 = vrot.lane.b32.xlu0 %v14117_v16, %s9000_s5  ;;  %v14515_v60 = vpop.permute.xlu1 %6514 }
 0x8b1   : > { %v6519_v21 = vsel %vm369_vm8, %v6513_v48, %v14515_v60 }
 0x8b2   : > { %v6796_v20 = vpop.permute.xlu0 %6795  ;;  %v6546_v4 = vsel %vm571_vm1, %v6505_v26, %v6519_v21 }
 0x8b3   : > { %7491 = vrot.lane.b32.xlu1 %v14490_v15, %s9001_s6  ;;  %v6843_v42 = vsel %vm384_vm13, %v6796_v20, %v6798_v12  ;;  %v8427_v12 = vld [vmem:[%s9092_s28 + $0x47] ss:$8 sm:$0x7]  ;;  %v8420_v20 = vld [vmem:[%s9092_s28 + $0x86] ss:$8 sm:$0x7] }
 0x8b4   : > { %7505 = vrot.lane.b32.xlu0 %v14103_v10, %s9002_s7  ;;  %6897 = vmatpush1.msra.mxu0 %v6843_v42  ;;  %v6810_v1 = vpop.permute.xlu1 %6809  ;;  %v6363_v44 = vcombine.low %v8426_v7, %v8427_v12 }
 0x8b5   : > { %v6848_v56 = vsel %vm384_vm13, %v6808_v53, %v6810_v1  ;;  %6898 = vmatprep.subr.mxu0 %v6546_v4  ;;  %v8421_v4 = vld [vmem:[%s9092_s28 + $0xc6] ss:$8 sm:$0x7] }
 0x8b6   : > { %v6497_v39 = vpop.permute.xlu0 %6496  ;;  %8811 = vmatpush3.msra.mxu1 %v6848_v56  ;;  %v6371_v56 = vrot.slane %v6363_v44, %v9094_v5 }
 0x8b7   : > { %7431 = vrot.lane.b32.xlu1 %v14398_v50, %s8998_s30  ;;  %8812 = vmatprep.subr.mxu1 %v15252_v62  ;;  %v6504_v17 = vsel %vm354_vm12, %v6497_v39, %v6499_v57  ;;  %v8428_v57 = vld [vmem:[%s9092_s28 + $0x87] ss:$8 sm:$0x7] }
 0x8b8   : > { %7445 = vrot.lane.b32.xlu0 %v14111_v41, %s15851_s29  ;;  %v6511_v55 = vpop.permute.xlu1 %6510 }
 0x8b9   : > { %v6518_v53 = vsel %vm369_vm8, %v6511_v55, %v6513_v48  ;;  %v6172_v55 = vcombine.low %v8420_v20, %v8421_v4  ;;  %v6354_v20 = vsel %vm15871_vm9, %v14058_v54, %v14064_v14 }
 0x8ba   : > { %v6471_v46 = vpop.permute.xlu0 %6470  ;;  %v6545_v50 = vsel %vm571_vm1, %v6504_v17, %v6518_v53 }
 0x8bb   : > { %7447 = vrot.lane.b32.xlu1 %v14100_v37, %s15851_s29  ;;  %6899 = vmatpush1.msra.mxu0 %v6545_v50  ;;  %v14552_v37 = vrot.slane %v7217_v2, %v9094_v5  ;;  %v6179_v2 = vrot.slane %v6171_v9, %v9094_v5  ;;  %v6186_v7 = vrot.slane %v6172_v55, %v9094_v5 }
 0x8bc   : > { %7443 = vrot.lane.b32.xlu0 %v14117_v16, %s15851_s29  ;;  %v14542_v41 = vpop.permute.xlu1 %6472  ;;  %v8429_v16 = vld [vmem:[%s9092_s28 + $0xc7] ss:$8 sm:$0x7]  ;;  %v14634_v9 = vsel %vm292_vm0, %v13654_v8, %v13699_v25  ;;  %v6283_v55 = vsel %vm324_vm11, %v13838_v31, %v13863_v32  ;;  %v6339_v31 = vsel %vm384_vm13, %v14034_v38, %v14038_v51  ;;  %v6311_v38 = vsel %vm354_vm12, %v13983_v63, %v13995_v13 }
 0x8bd   : > { %v6477_v11 = vsel %vm324_vm11, %v6471_v46, %v14542_v41  ;;  %v6364_v48 = vcombine.low %v8428_v57, %v8429_v16  ;;  %v14602_v16 = vcombine.low %v14552_v37, %v14552_v37 }
 0x8be   : > { %v6485_v23 = vpop.permute.xlu0 %6484 }
 0x8bf   : > { %7463 = vrot.lane.b32.xlu1 %v14490_v15, %s8999_s4  ;;  %v6378_v39 = vrot.slane %v6364_v48, %v9094_v5 }
 0x8c0   : > { %7477 = vrot.lane.b32.xlu0 %v14103_v10, %s9000_s5  ;;  %v14558_v0 = vpop.permute.xlu1 %6486 }
 0x8c1   : > { %v6491_v58 = vsel %vm339_vm15, %v6485_v23, %v14558_v0  ;;  %v6380_v50 = vcombine.high %v6371_v56, %v6378_v39 }
 0x8c2   : > { %v6802_v26 = vpop.permute.xlu0 %6801  ;;  %v6543_v21 = vsel %vm571_vm1, %v6477_v11, %v6491_v58  ;;  %v6188_v58 = vcombine.high %v6179_v2, %v6186_v7 }
 0x8c3   : > { %7336 = vrot.lane.b32.xlu1 %v14552_v37, %s15768_s9  ;;  %v6845_v42 = vsel %vm384_vm13, %v14495_v59, %v6802_v26  ;;  %6900 = vmatprep.subr.mxu0 %v6543_v21  ;;  %v6394_v11 = vrot.slane %v6380_v50, %v9094_v5 }
 0x8c4   : > { %7338 = vrot.lane.b32.xlu0 %v14562_v34, %s15768_s9  ;;  %8813 = vmatpush3.msra.mxu1 %v6845_v42  ;;  %v6469_v1 = vpop.permute.xlu1 %6468  ;;  %v14617_v21 = vrot.slane %v6188_v58, %v9094_v5  ;;  %v15876_v58 = vld [vmem:[#allocation42_spill] sm:$0xff] }
 0x8c5   : > { %v6476_v36 = vsel %vm324_vm11, %v6469_v1, %v6471_v46  ;;  %8814 = vmatprep.subr.mxu1 %v15252_v62  ;;  %v6396_v26 = vcombine.low %v6394_v11, %v6394_v11  ;;  %v14627_v1 = vcombine.low %v14545_v27, %v14545_v27 }
 0x8c6   : > { %v6483_v61 = vpop.permute.xlu0 %6482 }
 0x8c7   : > { %7334 = vrot.lane.b32.xlu1 %v14545_v27, %s15768_s9  ;;  %v6490_v59 = vsel %vm339_vm15, %v6483_v61, %v6485_v23  ;;  %v6379_v23 = vcombine.low %v6371_v56, %v6378_v39  ;;  %v6340_v61 = vsel %vm384_vm13, %v14038_v51, %v14044_v35  ;;  %v6325_v51 = vsel %vm369_vm8, %v14010_v3, %v14018_v29  ;;  %v15874_v3 = vld [vmem:[#allocation50_spill] sm:$0xff] }
 0x8c8   : > { %7433 = vrot.lane.b32.xlu0 %v14490_v15, %s8998_s30  ;;  %v6503_v17 = vpop.permute.xlu1 %6502  ;;  %v6542_v53 = vsel %vm571_vm1, %v6476_v36, %v6490_v59  ;;  %v6353_v36 = vsel %vm15872_vm7, %v14054_v40, %v14058_v54  ;;  %v14655_v54 = vcombine.high %v14552_v37, %v14552_v37  ;;  %v6284_v59 = vsel %vm324_vm11, %v13863_v32, %v13880_v19 }
 0x8c9   : > { %v6506_v46 = vsel %vm354_vm12, %v14505_v22, %v6503_v17  ;;  %6901 = vmatpush1.msra.mxu0 %v6542_v53  ;;  %v6537_v53 = vsel %vm571_vm1, %v6354_v20, %v6396_v26  ;;  %v6533_v63 = vsel %vm571_vm1, %v6325_v51, %v6339_v31  ;;  %v15883_v31 = vld [vmem:[#allocation26_spill] sm:$0xff] }
 0x8ca   : > { %v6517_v12 = vpop.permute.xlu0 %6516 }
 0x8cb   : > { %7449 = vrot.lane.b32.xlu1 %v14103_v10, %s15851_s29  ;;  %v6520_v15 = vsel %vm369_vm8, %v14515_v60, %v6517_v12  ;;  %v14608_v10 = vrot.slane %v6379_v23, %v9094_v5  ;;  %v6187_v60 = vcombine.low %v6179_v2, %v6186_v7  ;;  %v15873_v7 = vld [vmem:[#allocation37_spill] sm:$0xff] }
 0x8cc   : > { %7308 = vrot.lane.b32.xlu0 %v14552_v37, %s9002_s7  ;;  %v6443_v57 = vpop.permute.xlu1 %6442  ;;  %v6547_v22 = vsel %vm571_vm1, %v6506_v46, %v6520_v15  ;;  %v6326_v46 = vsel %vm369_vm8, %v14018_v29, %v14026_v33  ;;  %v6298_v12 = vsel %vm339_vm15, %v15873_v7, %v13959_v45  ;;  %v6297_v29 = vsel %vm339_vm15, %v15874_v3, %v15873_v7 }
 0x8cd   : > { %8815 = vmatpush3.msra.mxu1 %v6547_v22  ;;  %v6447_v24 = vsel %vm292_vm0, %v14077_v43, %v6443_v57  ;;  %v6395_v43 = vcombine.low %v14608_v10, %v14608_v10  ;;  %v14641_v39 = vrot.slane %v6187_v60, %v9094_v5  ;;  %v6534_v2 = vsel %vm571_vm1, %v6326_v46, %v6340_v61  ;;  %v15875_v22 = vld [vmem:[#allocation8_spill] sm:$0xff]  ;;  %v15881_v61 = vld [vmem:[#allocation5_spill] sm:$0xff] }
 0x8ce   : > { %v6457_v44 = vpop.permute.xlu0 %6456  ;;  %8816 = vmatprep.subr.mxu1 %v15252_v62  ;;  %v6254_v11 = vsel %vm292_vm0, %v13699_v25, %v15875_v22  ;;  %v15885_v46 = vld [vmem:[#allocation16_spill] sm:$0xff] }
 0x8cf   : > { %7310 = vrot.lane.b32.xlu1 %v14562_v34, %s9002_s7  ;;  %v6536_v32 = vsel %vm571_vm1, %v6353_v36, %v6395_v43  ;;  %v6203_v51 = vcombine.high %v14641_v39, %v14641_v39 }
 0x8d0   : > { %7322 = vrot.lane.b32.xlu0 %v14602_v16, %s9003_s8  ;;  %v6459_v48 = vpop.permute.xlu1 %6458 }
 0x8d1   : > { %v6463_v18 = vsel %vm309_vm10, %v6457_v44, %v6459_v48 }
 0x8d2   : > { %v6455_v4 = vpop.permute.xlu0 %6454  ;;  %v6540_v42 = vsel %vm571_vm1, %v6447_v24, %v6463_v18  ;;  %v6530_v18 = vsel %vm571_vm1, %v6297_v29, %v6311_v38 }
 0x8d3   : > { %7324 = vrot.lane.b32.xlu1 %v14545_v27, %s9003_s8  ;;  %v6462_v56 = vsel %vm309_vm10, %v6455_v4, %v6457_v44  ;;  %6902 = vmatprep.subr.mxu0 %v6540_v42  ;;  %v15877_v44 = vld [vmem:[#allocation49_spill] sm:$0xff]  ;;  %v15879_v4 = vld [vmem:[#allocation6_spill] sm:$0xff] }
 0x8d4   : > { %7306 = vrot.lane.b32.xlu0 %v14545_v27, %s9002_s7  ;;  %v6475_v8 = vpop.permute.xlu1 %6474  ;;  %v6539_v40 = vsel %vm571_vm1, %v14194_v49, %v6462_v56  ;;  %v6312_v49 = vsel %vm354_vm12, %v13995_v13, %v13999_v28  ;;  %v6270_v60 = vsel %vm309_vm10, %v15877_v44, %v15876_v58  ;;  %v6355_v42 = vsel %vm15880_vm3, %v14064_v14, %v15879_v4 }
 0x8d5   : > { %v6478_v17 = vsel %vm324_vm11, %v14542_v41, %v6475_v8  ;;  %6903 = vmatpush1.msra.mxu0 %v6539_v40  ;;  %v6531_v15 = vsel %vm571_vm1, %v6298_v12, %v6312_v49  ;;  %v6528_v25 = vsel %vm571_vm1, %v6270_v60, %v6284_v59  ;;  %v6341_v8 = vsel %vm384_vm13, %v14044_v35, %v15881_v61  ;;  %v15882_v59 = vld [vmem:[#allocation23_spill] sm:$0xff] }
 0x8d6   : > { %v6489_v50 = vpop.permute.xlu0 %6488  ;;  %6904 = vmatprep.subr.mxu0 %v6537_v53  ;;  %v6524_v14 = vsel %vm571_vm1, %v14641_v39, %v14634_v9  ;;  %v6313_v35 = vsel %vm354_vm12, %v13999_v28, %v15882_v59  ;;  %v14743_v53 = vld [vmem:[%s15053_s1] sm:$0xff] }
 0x8d7   : > { %7320 = vrot.lane.b32.xlu1 %v14627_v1, %s9003_s8  ;;  %v6492_v41 = vsel %vm339_vm15, %v14558_v0, %v6489_v50  ;;  %6905 = vmatpush1.msra.mxu0 %v6536_v32  ;;  %v6299_v50 = vsel %vm339_vm15, %v13959_v45, %v15885_v46 }
 0x8d8   : > { %7340 = vrot.lane.b32.xlu0 %v14655_v54, %s15768_s9  ;;  %6906 = vmatprep.subr.mxu0 %v6534_v2  ;;  %v6445_v23 = vpop.permute.xlu1 %6444  ;;  %v6544_v13 = vsel %vm571_vm1, %v6478_v17, %v6492_v41  ;;  %v6327_v17 = vsel %vm369_vm8, %v14026_v33, %v15883_v31  ;;  %v15884_v33 = vld [vmem:[#allocation21_spill] sm:$0xff]  ;;  %v6532_v38 = vsel %vm571_vm1, %v6299_v50, %v6313_v35  ;;  %v15886_v41 = vld [vmem:[#allocation12_spill] sm:$0xff] }
 0x8d9   : > { %v6448_v0 = vsel %vm292_vm0, %v6443_v57, %v6445_v23  ;;  %6907 = vmatpush1.msra.mxu0 %v6533_v63  ;;  %8817 = vmatpush3.msra.mxu1 %v6544_v13  ;;  %v15878_v57 = vld [vmem:[#allocation32_spill] sm:$0xff]  ;;  %v6285_v49 = vsel %vm324_vm11, %v13880_v19, %v15884_v33  ;;  %v6255_v19 = vsel %vm292_vm0, %v15875_v22, %v15886_v41 }
 0x8da   : > { %v6461_v24 = vpop.permute.xlu0 %6460  ;;  %6908 = vmatprep.subr.mxu0 %v6531_v15  ;;  %v6269_v26 = vsel %vm309_vm10, %v15878_v57, %v15877_v44  ;;  %8818 = vmatprep.subr.mxu1 %v15252_v62  ;;  %v15887_v2 = vld [vmem:[#allocation48_spill] sm:$0xff]  ;;  %v6526_v13 = vsel %vm571_vm1, %v6203_v51, %v6255_v19 }
 0x8db   : > { %7280 = vrot.lane.b32.xlu1 %v14552_v37, %s9000_s5  ;;  %v6464_v20 = vsel %vm309_vm10, %v6459_v48, %v6461_v24  ;;  %6909 = vmatpush1.msra.mxu0 %v6530_v18  ;;  %v6527_v36 = vsel %vm571_vm1, %v6269_v26, %v6283_v55  ;;  %v6525_v48 = vsel %vm571_vm1, %v14617_v21, %v6254_v11 }
 0x8dc   : > { %7282 = vrot.lane.b32.xlu0 %v14562_v34, %s9000_s5  ;;  %6910 = vmatprep.subr.mxu0 %v6528_v25  ;;  %v7827_v43 = vpop.permute.xlu1 %7826  ;;  %v6541_v56 = vsel %vm571_vm1, %v6448_v0, %v6464_v20  ;;  %v6538_v21 = vsel %vm571_vm1, %v6355_v42, %v14608_v10  ;;  %v6535_v10 = vsel %vm571_vm1, %v6327_v17, %v6341_v8 }
 0x8dd   : > { %6911 = vmatpush1.msra.mxu0 %v6527_v36  ;;  %8819 = vmatpush3.msra.mxu1 %v6541_v56  ;;  %v6271_v45 = vsel %vm309_vm10, %v15876_v58, %v15887_v2 }
 0x8de   : > { %v7829_v40 = vpop.permute.xlu0 %7828  ;;  %6912 = vmatprep.subr.mxu0 %v6525_v48  ;;  %8820 = vmatprep.subr.mxu1 %v15252_v62  ;;  %v6529_v12 = vsel %vm571_vm1, %v6271_v45, %v6285_v49 }
 0x8df   : > { %v7848_v55 = vsel %vm384_vm13, %v7827_v43, %v7829_v40  ;;  %7294 = vrot.lane.b32.xlu1 %v14602_v16, %s9001_s6  ;;  %6913 = vmatpush1.msra.mxu0 %v6524_v14 }
 0x8e0   : > { %8821 = vmatpush3.msra.mxu1 %v6538_v21  ;;  %7296 = vrot.lane.b32.xlu0 %v14545_v27, %s9001_s6  ;;  %v7825_v9 = vpop.permute.xlu1 %7824 }
 0x8e1   : > { %8444 = vmatmul.mubr.msk.f32.vlgmr.msra.gmra.mxu0 %vm354_vm12, %v14743_v53  ;;  %8822 = vmatprep.subr.mxu1 %v15252_v62  ;;  %v7847_v28 = vsel %vm384_vm13, %v7825_v9, %v7827_v43 }
 0x8e2   : > { %8479 = vmatprep.subr.msk.mxu0 %vm571_vm1, %v7848_v55  ;;  %8823 = vmatpush3.msra.mxu1 %v6535_v10  ;;  %v7819_v32 = vpop.permute.xlu0 %7818 }
 0x8e3   : > { %8824 = vmatprep.subr.mxu1 %v15252_v62  ;;  %7278 = vrot.lane.b32.xlu1 %v14545_v27, %s9000_s5 }
 0x8e4   : > { %8825 = vmatpush3.msra.mxu1 %v6532_v38  ;;  %8480 = vmatpush1.msk.msra.mxu0 %vm571_vm1, %v7847_v28  ;;  %v7821_v7 = vpop.permute.xlu1 %7820 }
 0x8e5   : > { %7292 = vrot.lane.b32.xlu0 %v14627_v1, %s9001_s6  ;;  %8826 = vmatprep.subr.mxu1 %v15252_v62  ;;  %v7845_v39 = vsel %vm384_vm13, %v7819_v32, %v7821_v7 }
 0x8e6   : > { %8827 = vmatpush3.msra.mxu1 %v6529_v12  ;;  %v7817_v23 = vpop.permute.xlu0 %7816  ;;  %7877 = vmatprep.subr.mxu0 %v7845_v39  ;;  %v8463_v12 = vld [vmem:[%s9092_s28 + $0x20] ss:$8 sm:$0x7] }
 0x8e7   : > { %v7844_v63 = vsel %vm384_vm13, %v7817_v23, %v7819_v32  ;;  %8828 = vmatprep.subr.mxu1 %v15252_v62  ;;  %7312 = vrot.lane.b32.xlu1 %v14655_v54, %s9002_s7  ;;  %v8464_v39 = vld [vmem:[%s9092_s28 + $0x60] ss:$8 sm:$0x7] }
 0x8e8   : > { %8829 = vmatpush3.msra.mxu1 %v6526_v13  ;;  %7878 = vmatpush1.msra.mxu0 %v7844_v63  ;;  %v7831_v3 = vpop.permute.xlu1 %7830  ;;  %v8465_v63 = vld [vmem:[%s9092_s28 + $0xa0] ss:$8 sm:$0x7] }
 0x8e9   : > { %7326 = vrot.lane.b32.xlu0 %v14552_v37, %s9003_s8  ;;  %8831 = vmatmul.mubr.msk.f32.vlgmr.msra.gmra.mxu1 %vm354_vm12, %v14743_v53  ;;  %v7849_v29 = vsel %vm384_vm13, %v7829_v40, %v7831_v3  ;;  %v8466_v13 = vld [vmem:[%s9092_s28 + $0xe0] ss:$8 sm:$0x7] }
 0x8ea   : > { %v7811_v0 = vpop.permute.xlu0 %7810  ;;  %8833 = vmatprep.subr.mxu1 %v15252_v62  ;;  %7935 = vmatprep.mubr.f32.mxu0 %v15252_v62 }
 0x8eb   : > { %7252 = vrot.lane.b32.xlu1 %v14552_v37, %s15851_s29  ;;  %8834 = vmatpush3.msk.msra.mxu1 %vm571_vm1, %v7849_v29 }
 0x8ec   : > { %v7813_v15 = vpop.permute.xlu1 %7812  ;;  %8835 = vmatprep.subr.mxu1 %v15252_v62  ;;  %8861 = vmatprep.mubr.msk.f32.mxu1 %vm15608_vm4, %v15252_v62  ;;  %vm15888_vm4 = vmmov %vm15880_vm3 }
 0x8ed   : > { %7254 = vrot.lane.b32.xlu0 %v14562_v34, %s15851_s29  ;;  %v7842_v22 = vsel %vm384_vm13, %v7811_v0, %v7813_v15 }
 0x8ee   : > { %v7809_v11 = vpop.permute.xlu0 %7808  ;;  %7879 = vmatprep.subr.mxu0 %v7842_v22  ;;  %v7352_v22 = vcombine.low %v8463_v12, %v8464_v39 }
 0x8ef   : > { %v7841_v58 = vsel %vm384_vm13, %v7809_v11, %v7811_v0  ;;  %7266 = vrot.lane.b32.xlu1 %v14602_v16, %s8999_s4  ;;  %v7353_v11 = vcombine.low %v8465_v63, %v8466_v13 }
 0x8f0   : > { %7880 = vmatpush1.msra.mxu0 %v7841_v58  ;;  %v7823_v44 = vpop.permute.xlu1 %7822 }
 0x8f1   : > { %7268 = vrot.lane.b32.xlu0 %v14545_v27, %s8999_s4  ;;  %v7846_v60 = vsel %vm384_vm13, %v7821_v7, %v7823_v44 }
 0x8f2   : > { %v7803_v24 = vpop.permute.xlu0 %7802  ;;  %8836 = vmatpush3.msra.mxu1 %v7846_v60 }
 0x8f3   : > { %7250 = vrot.lane.b32.xlu1 %v14545_v27, %s15851_s29  ;;  %8837 = vmatprep.subr.mxu1 %v15252_v62 }
 0x8f4   : > { %v7805_v34 = vpop.permute.xlu1 %7804 }
 0x8f5   : > { %7264 = vrot.lane.b32.xlu0 %v14627_v1, %s8999_s4  ;;  %v7839_v18 = vsel %vm384_vm13, %v7803_v24, %v7805_v34 }
 0x8f6   : > { %v7801_v57 = vpop.permute.xlu0 %7800  ;;  %7881 = vmatprep.subr.mxu0 %v7839_v18  ;;  %v7360_v18 = vrot.slane %v7352_v22, %v9094_v5 }
 0x8f7   : > { %v7838_v26 = vsel %vm384_vm13, %v7801_v57, %v7803_v24  ;;  %7284 = vrot.lane.b32.xlu1 %v14655_v54, %s9000_s5  ;;  %v7367_v57 = vrot.slane %v7353_v11, %v9094_v5 }
 0x8f8   : > { %7882 = vmatpush1.msra.mxu0 %v7838_v26  ;;  %v7815_v20 = vpop.permute.xlu1 %7814 }
 0x8f9   : > { %7298 = vrot.lane.b32.xlu0 %v14552_v37, %s9001_s6  ;;  %v7843_v25 = vsel %vm384_vm13, %v7813_v15, %v7815_v20  ;;  %s15891_s6 = sand.u32 1, %s8986_s13  }
 0x8fa   : > { %v7795_v4 = vpop.permute.xlu0 %7794  ;;  %8838 = vmatpush3.msra.mxu1 %v7843_v25  ;;  %v7369_v25 = vcombine.high %v7360_v18, %v7367_v57  ;;  %s15012_s7 = scalar_lea.sflag [#allocation3], %s15891_s6 }
 0x8fb   : > { %7236 = vrot.lane.b32.xlu1 %v14602_v16, %s8998_s30  ;;  %8839 = vmatprep.subr.mxu1 %v15252_v62 }
 0x8fc   : > { %v7797_v42 = vpop.permute.xlu1 %7796 }
 0x8fd   : > { %7238 = vrot.lane.b32.xlu0 %v14545_v27, %s8998_s30  ;;  %v7836_v43 = vsel %vm384_vm13, %v7795_v4, %v7797_v42 }
 0x8fe   : > { %v7793_v36 = vpop.permute.xlu0 %7792  ;;  %7883 = vmatprep.subr.mxu0 %v7836_v43 }
 0x8ff   : > { %v7835_v56 = vsel %vm384_vm13, %v7793_v36, %v7795_v4  ;;  %7234 = vrot.lane.b32.xlu1 %v14627_v1, %s8998_s30 }
 0x900   : > { %7884 = vmatpush1.msra.mxu0 %v7835_v56  ;;  %v7807_v48 = vpop.permute.xlu1 %7806  ;;  %v7368_v56 = vcombine.low %v7360_v18, %v7367_v57 }
 0x901   : > { %7256 = vrot.lane.b32.xlu0 %v14655_v54, %s15851_s29  ;;  %v7840_v16 = vsel %vm384_vm13, %v7805_v34, %v7807_v48 }
 0x902   : > { %v7787_v61 = vpop.permute.xlu0 %7786  ;;  %8840 = vmatpush3.msra.mxu1 %v7840_v16 }
 0x903   : > { %7270 = vrot.lane.b32.xlu1 %v14552_v37, %s8999_s4  ;;  %8841 = vmatprep.subr.mxu1 %v15252_v62 }
 0x904   : > { %v7789_v27 = vpop.permute.xlu1 %7788 }
 0x905   : > { %7240 = vrot.lane.b32.xlu0 %v14552_v37, %s8998_s30  ;;  %v7833_v1 = vsel %vm384_vm13, %v7787_v61, %v7789_v27  ;;  %s8131_s30 = sshll.u32 %s10311_s26, 4  ;;  %s15002_s30 = int_to_ptr.vmem [resolvable:$true] %s8131_s30 }
 0x906   : > { %v7488_v8 = vpop.permute.xlu0 %7487  ;;  %7885 = vmatprep.subr.mxu0 %v7833_v1  ;;  %s8934_s8 = scalar_lea.vmem %s15002_s30, 3072  ;;  %p8941_p0 = scmp.lt.s32.totalorder %s15002_s30, %s8939_s25 }
 0x907   : > { %p8935_p11 = scmp.ne.s32.totalorder %s15002_s30, %s8934_s8  ;;  %p8942_p1 = scmp.lt.s32.totalorder %s8940_s17, %s8934_s8 }
 0x908   : > { %v7490_v40 = vpop.permute.xlu1 %7489 }
 0x909   : > { %v7494_v55 = vsel %vm354_vm12, %v7488_v8, %v7490_v40  ;;  %p8936_p12 = pnand %p8935_p11, %p9076_p5  ;;  %p8943_p2 = por %p8942_p1, %p8941_p0 }
 0x90a   : > { %v7502_v14 = vpop.permute.xlu0 %7501 }
 0x90b   : > { %p8937_p13 = pneg %p8936_p12 }
 0x90c   : > { %v7504_v54 = vpop.permute.xlu1 %7503 }
 0x90d   : > { %v7508_v21 = vsel %vm369_vm8, %v7502_v14, %v7504_v54  ;;  %p8944_p3 = pnand %p8943_p2, %p8937_p13 }
 0x90e   : > { %v7785_v59 = vpop.permute.xlu0 %7784  ;;  %v7535_v35 = vsel %vm571_vm1, %v7494_v55, %v7508_v21 }
 0x90f   : > { %v7832_v31 = vsel %vm384_vm13, %v7785_v59, %v7787_v61 }
 0x910   : > { %7886 = vmatpush1.msra.mxu0 %v7832_v31 }
 0x911   : > { %v7799_v17 = vpop.permute.xlu1 %7798  ;;  %7887 = vmatprep.subr.mxu0 %v7535_v35 }
 0x912   : > { %v7837_v37 = vsel %vm384_vm13, %v7797_v42, %v7799_v17  ;;  %v7486_v9 = vpop.permute.xlu0 %7485 }
 0x913   : > { %8842 = vmatpush3.msra.mxu1 %v7837_v37  ;;  %v7493_v10 = vsel %vm354_vm12, %v7486_v9, %v7488_v8 }
 0x914   : > { %8843 = vmatprep.subr.mxu1 %v15252_v62 }
 0x915   : > { %v7500_v28 = vpop.permute.xlu1 %7499 }
 0x916   : > { %v7507_v33 = vsel %vm369_vm8, %v7500_v28, %v7502_v14  ;;  %v7460_v49 = vpop.permute.xlu0 %7459 }
 0x917   : > { %v7534_v46 = vsel %vm571_vm1, %v7493_v10, %v7507_v33 }
 0x918   : > { %7888 = vmatpush1.msra.mxu0 %v7534_v46 }
 0x919   : > { %v7462_v50 = vpop.permute.xlu1 %7461 }
 0x91a   : > { %v7474_v32 = vpop.permute.xlu0 %7473  ;;  %v7466_v51 = vsel %vm324_vm11, %v7460_v49, %v7462_v50 }
 0x91d   : > { %v7476_v38 = vpop.permute.xlu1 %7475 }
 0x91e   : > { %v7480_v41 = vsel %vm339_vm15, %v7474_v32, %v7476_v38  ;;  %v7791_v19 = vpop.permute.xlu0 %7790 }
 0x91f   : > { %v7532_v2 = vsel %vm571_vm1, %v7466_v51, %v7480_v41  ;;  %v7834_v45 = vsel %vm384_vm13, %v7789_v27, %v7791_v19  ;;  %v7383_v27 = vrot.slane %v7369_v25, %v9094_v5 }
 0x920   : > { %7889 = vmatprep.subr.mxu0 %v7532_v2  ;;  %8844 = vmatpush3.msra.mxu1 %v7834_v45 }
 0x921   : > { %v7458_v7 = vpop.permute.xlu1 %7457  ;;  %8845 = vmatprep.subr.mxu1 %v15252_v62  ;;  %v7385_v55 = vcombine.low %v7383_v27, %v7383_v27 }
 0x922   : > { %v7465_v23 = vsel %vm324_vm11, %v7458_v7, %v7460_v49  ;;  %v7472_v3 = vpop.permute.xlu0 %7471 }
 0x923   : > { %v7479_v29 = vsel %vm339_vm15, %v7472_v3, %v7474_v32 }
 0x924   : > { %v7531_v15 = vsel %vm571_vm1, %v7465_v23, %v7479_v29 }
 0x925   : > { %v7492_v0 = vpop.permute.xlu1 %7491  ;;  %7890 = vmatpush1.msra.mxu0 %v7531_v15 }
 0x926   : > { %v7495_v58 = vsel %vm354_vm12, %v7490_v40, %v7492_v0  ;;  %v7506_v44 = vpop.permute.xlu0 %7505 }
 0x927   : > { %v7509_v60 = vsel %vm369_vm8, %v7504_v54, %v7506_v44 }
 0x928   : > { %v7536_v34 = vsel %vm571_vm1, %v7495_v58, %v7509_v60 }
 0x929   : > { %v7432_v24 = vpop.permute.xlu1 %7431  ;;  %8846 = vmatpush3.msra.mxu1 %v7536_v34 }
 0x92a   : > { %v7446_v26 = vpop.permute.xlu0 %7445  ;;  %8847 = vmatprep.subr.mxu1 %v15252_v62  ;;  %v7436_v4 = vsel %vm292_vm0, %v14315_v47, %v7432_v24  ;;  %v7376_v47 = vrot.slane %v7368_v56, %v9094_v5  ;;  %v8457_v56 = vld [vmem:[%s9092_s28 + $0x87] ss:$8 sm:$0x7] }
 0x92c   : > { %v7384_v59 = vcombine.low %v7376_v47, %v7376_v47 }
 0x92d   : > { %v7448_v20 = vpop.permute.xlu1 %7447 }
 0x92e   : > { %v7452_v42 = vsel %vm309_vm10, %v7446_v26, %v7448_v20  ;;  %v7444_v43 = vpop.permute.xlu0 %7443 }
 0x92f   : > { %v7529_v36 = vsel %vm571_vm1, %v7436_v4, %v7452_v42  ;;  %v7451_v48 = vsel %vm309_vm10, %v7444_v43, %v7446_v26  ;;  %v8455_v43 = vld [vmem:[%s9092_s28 + $0x7] ss:$8 sm:$0x7] }
 0x930   : > { %7891 = vmatprep.subr.mxu0 %v7529_v36  ;;  %v7528_v61 = vsel %vm571_vm1, %v14405_v30, %v7451_v48  ;;  %v8456_v36 = vld [vmem:[%s9092_s28 + $0x47] ss:$8 sm:$0x7] }
 0x931   : > { %v7464_v16 = vpop.permute.xlu1 %7463  ;;  %7892 = vmatpush1.msra.mxu0 %v7528_v61  ;;  %v8458_v48 = vld [vmem:[%s9092_s28 + $0xc7] ss:$8 sm:$0x7]  ;;  %v7160_v27 = vcombine.low %v8455_v43, %v8456_v36  ;;  %s8865_s28 = smul.u32 3072, %s9059_s16 }
 0x932   : > { %v7467_v1 = vsel %vm324_vm11, %v7462_v50, %v7464_v16  ;;  %v7478_v8 = vpop.permute.xlu0 %7477 }
 0x933   : > { %v7481_v40 = vsel %vm339_vm15, %v7476_v38, %v7478_v8  ;;  %s14988_s5 = scalar_lea.hbm %s15055_s3, %s8865_s28 }
 0x934   : > { %v7533_v54 = vsel %vm571_vm1, %v7467_v1, %v7481_v40  ;;  %v7161_v1 = vcombine.low %v8457_v56, %v8458_v48 }
 0x935   : > { %v7337_v14 = vpop.permute.xlu1 %7336  ;;  %8848 = vmatpush3.msra.mxu1 %v7533_v54 }
 0x936   : > { %v7339_v21 = vpop.permute.xlu0 %7338  ;;  %8849 = vmatprep.subr.mxu1 %v15252_v62 }
 0x937   : > { %v7343_v30 = vsel %vm15888_vm4, %v7337_v14, %v7339_v21 }
 0x938   : > { %v7526_v31 = vsel %vm571_vm1, %v7343_v30, %v7385_v55  ;;  %v7168_v55 = vrot.slane %v7160_v27, %v9094_v5 }
 0x939   : > { %v7335_v35 = vpop.permute.xlu1 %7334  ;;  %7893 = vmatprep.subr.mxu0 %v7526_v31 }
 0x93a   : > { %v7342_v17 = vsel %vm15889_vm14, %v7335_v35, %v7337_v14  ;;  %v7434_v37 = vpop.permute.xlu0 %7433 }
 0x93b   : > { %v7525_v9 = vsel %vm571_vm1, %v7342_v17, %v7384_v59  ;;  %v7437_v10 = vsel %vm292_vm0, %v7432_v24, %v7434_v37 }
 0x93c   : > { %7894 = vmatpush1.msra.mxu0 %v7525_v9 }
 0x93d   : > { %v7450_v28 = vpop.permute.xlu1 %7449 }
 0x93e   : > { %v7453_v33 = vsel %vm309_vm10, %v7448_v20, %v7450_v28  ;;  %v7309_v49 = vpop.permute.xlu0 %7308 }
 0x93f   : > { %v7530_v46 = vsel %vm571_vm1, %v7437_v10, %v7453_v33 }
 0x940   : > { %8850 = vmatpush3.msra.mxu1 %v7530_v46 }
 0x941   : > { %v7311_v50 = vpop.permute.xlu1 %7310  ;;  %8851 = vmatprep.subr.mxu1 %v15252_v62 }
 0x942   : > { %v7323_v32 = vpop.permute.xlu0 %7322  ;;  %v7315_v51 = vsel %vm369_vm8, %v7309_v49, %v7311_v50 }
 0x945   : > { %v7325_v38 = vpop.permute.xlu1 %7324 }
 0x946   : > { %v7329_v41 = vsel %vm384_vm13, %v7323_v32, %v7325_v38  ;;  %v7307_v19 = vpop.permute.xlu0 %7306 }
 0x947   : > { %v7523_v2 = vsel %vm571_vm1, %v7315_v51, %v7329_v41  ;;  %v7314_v7 = vsel %vm369_vm8, %v7307_v19, %v7309_v49 }
 0x948   : > { %7895 = vmatprep.subr.mxu0 %v7523_v2 }
 0x949   : > { %v7321_v45 = vpop.permute.xlu1 %7320 }
 0x94a   : > { %v7328_v12 = vsel %vm384_vm13, %v7321_v45, %v7323_v32  ;;  %v7341_v39 = vpop.permute.xlu0 %7340 }
 0x94b   : > { %v7522_v23 = vsel %vm571_vm1, %v7314_v7, %v7328_v12  ;;  %v7344_v63 = vsel %vm15890_vm2, %v7339_v21, %v7341_v39  ;;  %v7175_v21 = vrot.slane %v7161_v1, %v9094_v5 }
 0x94c   : > { %7896 = vmatpush1.msra.mxu0 %v7522_v23  ;;  %v7527_v3 = vsel %vm571_vm1, %v7344_v63, %v7376_v47 }
 0x94d   : > { %v7281_v13 = vpop.permute.xlu1 %7280  ;;  %8852 = vmatpush3.msra.mxu1 %v7527_v3  ;;  %v7177_v37 = vcombine.high %v7168_v55, %v7175_v21  ;;  %v7176_v10 = vcombine.low %v7168_v55, %v7175_v21 }
 0x94e   : > { %v7283_v29 = vpop.permute.xlu0 %7282  ;;  %8853 = vmatprep.subr.mxu1 %v15252_v62 }
 0x94f   : > { %v7287_v22 = vsel %vm339_vm15, %v7281_v13, %v7283_v29 }
 0x951   : > { %v7295_v0 = vpop.permute.xlu1 %7294 }
 0x952   : > { %v7297_v15 = vpop.permute.xlu0 %7296 }
 0x953   : > { %v7301_v11 = vsel %vm354_vm12, %v7295_v0, %v7297_v15 }
 0x954   : > { %v7520_v58 = vsel %vm571_vm1, %v7287_v22, %v7301_v11 }
 0x955   : > { %v7279_v44 = vpop.permute.xlu1 %7278  ;;  %7897 = vmatprep.subr.mxu0 %v7520_v58 }
 0x956   : > { %v7286_v60 = vsel %vm339_vm15, %v7279_v44, %v7281_v13 }
 0x957   : > { %v7293_v24 = vpop.permute.xlu0 %7292 }
 0x958   : > { %v7300_v34 = vsel %vm354_vm12, %v7293_v24, %v7295_v0 }
 0x959   : > { %v7313_v18 = vpop.permute.xlu1 %7312  ;;  %v7519_v57 = vsel %vm571_vm1, %v7286_v60, %v7300_v34 }
 0x95a   : > { %v7316_v26 = vsel %vm369_vm8, %v7311_v50, %v7313_v18  ;;  %7898 = vmatpush1.msra.mxu0 %v7519_v57  ;;  %v7191_v50 = vrot.slane %v7177_v37, %v9094_v5 }
 0x95b   : > { %v7327_v20 = vpop.permute.xlu0 %7326 }
 0x95c   : > { %v7330_v25 = vsel %vm384_vm13, %v7325_v38, %v7327_v20  ;;  %v7184_v38 = vrot.slane %v7176_v10, %v9094_v5 }
 0x95d   : > { %v7253_v4 = vpop.permute.xlu1 %7252  ;;  %v7524_v42 = vsel %vm571_vm1, %v7316_v26, %v7330_v25 }
 0x95e   : > { %8854 = vmatpush3.msra.mxu1 %v7524_v42  ;;  %v7192_v39 = vcombine.high %v7184_v38, %v7184_v38 }
 0x95f   : > { %v7255_v16 = vpop.permute.xlu0 %7254  ;;  %8855 = vmatprep.subr.mxu1 %v15252_v62 }
 0x960   : > { %v7259_v47 = vsel %vm309_vm10, %v7253_v4, %v7255_v16 }
 0x961   : > { %v7267_v61 = vpop.permute.xlu1 %7266 }
 0x963   : > { %v7269_v8 = vpop.permute.xlu0 %7268 }
 0x964   : > { %v7273_v40 = vsel %vm324_vm11, %v7267_v61, %v7269_v8 }
 0x965   : > { %v7251_v14 = vpop.permute.xlu1 %7250  ;;  %v7517_v54 = vsel %vm571_vm1, %v7259_v47, %v7273_v40 }
 0x966   : > { %v7258_v59 = vsel %vm309_vm10, %v7251_v14, %v7253_v4  ;;  %7899 = vmatprep.subr.mxu0 %v7517_v54 }
 0x967   : > { %v7265_v30 = vpop.permute.xlu0 %7264 }
 0x968   : > { %v7272_v35 = vsel %vm324_vm11, %v7265_v30, %v7267_v61 }
 0x969   : > { %v7285_v31 = vpop.permute.xlu1 %7284  ;;  %v7516_v17 = vsel %vm571_vm1, %v7258_v59, %v7272_v35 }
 0x96a   : > { %v7288_v9 = vsel %vm339_vm15, %v7283_v29, %v7285_v31  ;;  %7900 = vmatpush1.msra.mxu0 %v7516_v17 }
 0x96b   : > { %v7299_v28 = vpop.permute.xlu0 %7298 }
 0x96c   : > { %v7302_v33 = vsel %vm354_vm12, %v7297_v15, %v7299_v28 }
 0x96d   : > { %v7237_v49 = vpop.permute.xlu1 %7236  ;;  %v7521_v46 = vsel %vm571_vm1, %v7288_v9, %v7302_v33 }
 0x96e   : > { %8856 = vmatpush3.msra.mxu1 %v7521_v46 }
 0x96f   : > { %v7239_v32 = vpop.permute.xlu0 %7238  ;;  %8857 = vmatprep.subr.mxu1 %v15252_v62 }
 0x970   : > { %v7243_v51 = vsel %vm292_vm0, %v7237_v49, %v7239_v32 }
 0x971   : > { %v7235_v41 = vpop.permute.xlu1 %7234  ;;  %v7514_v19 = vsel %vm571_vm1, %v7191_v50, %v7243_v51 }
 0x972   : > { %v7242_v2 = vsel %vm292_vm0, %v7235_v41, %v7237_v49  ;;  %7901 = vmatprep.subr.mxu0 %v7514_v19 }
 0x973   : > { %v7257_v45 = vpop.permute.xlu0 %7256  ;;  %v7513_v7 = vsel %vm571_vm1, %v7184_v38, %v7242_v2 }
 0x974   : > { %7902 = vmatpush1.msra.mxu0 %v7513_v7  ;;  %v7260_v23 = vsel %vm309_vm10, %v7255_v16, %v7257_v45 }
 0x975   : > { %v7271_v12 = vpop.permute.xlu1 %7270  ;;  %8481 = vmatmul.mubr.msk.f32.vlgmr.msra.gmra.mxu0 %vm354_vm12, %v14743_v53 }
 0x976   : > { %v7274_v63 = vsel %vm324_vm11, %v7269_v8, %v7271_v12 }
 0x977   : > { %v7241_v13 = vpop.permute.xlu0 %7240  ;;  %v7518_v3 = vsel %vm571_vm1, %v7260_v23, %v7274_v63 }
 0x978   : > { %v7244_v29 = vsel %vm292_vm0, %v7239_v32, %v7241_v13  ;;  %8858 = vmatpush3.msra.mxu1 %v7518_v3 }
 0x979   : > { %8859 = vmatprep.subr.mxu1 %v15252_v62  ;;  %v7515_v0 = vsel %vm571_vm1, %v7192_v39, %v7244_v29 }
 0x97a   : > { %8860 = vmatpush3.msra.mxu1 %v7515_v0 }
 0x97b   : > { %8862 = vmatmul.mubr.msk.f32.vlgmr.msra.gmra.mxu1 %vm354_vm12, %v14743_v53 }
 0x9a1   : > { %v6948_v15 = vpop.f32.mrf.mxu0 }
 0x9a2   : > { %v6949_v11 = vadd.f32 %v6948_v15, %v15869_v6 }
 0x9a3   : > { %v6950_v22 = vpop.f32.mrf.mxu0 }
 0x9a4   : > { %v6951_v58 = vadd.f32 %v6950_v22, %v15869_v6  ;;  %v7023_v60 = vmax.f32 %v6949_v11, 0.0 }
 0x9a6   : > { %v7024_v44 = vmax.f32 %v6951_v58, 0.0 }
 0x9a8   : > { %v7029_v34 = vcombine.low %v7023_v60, %v7024_v44  ;;  %v7030_v62 = vcombine.high %v7023_v60, %v7024_v44 }
 0x9a9   : > { %v7019_v24 = vpop.f32.mrf.mxu1 }
 0x9aa   : > { %v7020_v18 = vadd.f32 %v7019_v24, %v15869_v6  ;;  %v7038_v20 = vrot.slane %v7029_v34, %v9094_v5  ;;  %v7045_v4 = vrot.slane %v7030_v62, %v9094_v5 }
 0x9ab   : > { %v8832_v57 = vpop.f32.mrf.mxu1 }
 0x9ac   : > { %v7025_v26 = vmax.f32 %v7020_v18, 0.0 }
 0x9ae   : > { %v7031_v53 = vcombine.high %v7025_v26, %v7025_v26  ;;  %v7052_v25 = vrot.slane %v7025_v26, %v9094_v5 }
 0x9b0   : > { %v7059_v42 = vrot.slane %v7031_v53, %v9094_v5  ;;  %v7060_v43 = vcombine.low %v7038_v20, %v7052_v25  ;;  %v7061_v36 = vcombine.high %v7038_v20, %v7052_v25 }
 0x9b2   : > { %v7062_v56 = vcombine.low %v7045_v4, %v7059_v42  ;;  %v7063_v48 = vcombine.high %v7045_v4, %v7059_v42  ;;  %v7070_v16 = vrot.slane %v7060_v43, %v9094_v5  ;;  %v7084_v61 = vrot.slane %v7061_v36, %v9094_v5 }
 0x9b4   : > { %v7077_v27 = vrot.slane %v7062_v56, %v9094_v5  ;;  %v7091_v1 = vrot.slane %v7063_v48, %v9094_v5  ;;  %v7092_v8 = vcombine.high %v7070_v16, %v7070_v16  ;;  %v7094_v47 = vcombine.high %v7084_v61, %v7084_v61  ;;  %8447 = vst.msk [vmem:[%s10311_s26 + $0x6] ss:$8 sm:$0x7] %vm10299_vm5, %v7070_v16 }
 0x9b5   : > { %8448 = vst.msk [vmem:[%s10311_s26 + $0x1e] ss:$8 sm:$0x7] %vm10299_vm5, %v7084_v61 }
 0x9b6   : > { %v7093_v40 = vcombine.high %v7077_v27, %v7077_v27  ;;  %v7095_v14 = vcombine.high %v7091_v1, %v7091_v1  ;;  %8449 = vst.msk [vmem:[%s10311_s26 + $0x36] ss:$8 sm:$0x7] %vm10299_vm5, %v7092_v8  ;;  %8450 = vst.msk [vmem:[%s10311_s26 + $0x4e] ss:$8 sm:$0x7] %vm10299_vm5, %v7094_v47 }
 0x9b7   : > { %8451 = vst.msk [vmem:[%s10311_s26 + $0x66] ss:$8 sm:$0x7] %vm10299_vm5, %v7077_v27  ;;  %8452 = vst.msk [vmem:[%s10311_s26 + $0x7e] ss:$8 sm:$0x7] %vm10299_vm5, %v7091_v1 }
 0x9b8   : > { %8453 = vst.msk [vmem:[%s10311_s26 + $0x96] ss:$8 sm:$0x7] %vm10299_vm5, %v7093_v40  ;;  %8454 = vst.msk [vmem:[%s10311_s26 + $0xae] ss:$8 sm:$0x7] %vm10299_vm5, %v7095_v14 }
 0xa35   : > { %v7937_v54 = vpop.f32.mrf.mxu0 }
 0xa36   : > { %v7938_v55 = vadd.f32 %v7937_v54, %v15869_v6 }
 0xa37   : > { %v7939_v21 = vpop.f32.mrf.mxu0 }
 0xa38   : > { %v7940_v59 = vadd.f32 %v7939_v21, %v15869_v6  ;;  %v8012_v30 = vmax.f32 %v7938_v55, 0.0 }
 0xa3a   : > { %v8013_v35 = vmax.f32 %v7940_v59, 0.0 }
 0xa3b   : > { %v8008_v31 = vpop.f32.mrf.mxu1 }
 0xa3c   : > { %v8018_v17 = vcombine.low %v8012_v30, %v8013_v35  ;;  %v8009_v37 = vadd.f32 %v8008_v31, %v15869_v6  ;;  %v8019_v28 = vcombine.high %v8012_v30, %v8013_v35 }
 0xa3d   : > { %v8863_v9 = vpop.f32.mrf.mxu1 }
 0xa3e   : > { %v8014_v10 = vmax.f32 %v8009_v37, 0.0  ;;  %v8027_v33 = vrot.slane %v8018_v17, %v9094_v5  ;;  %v8034_v50 = vrot.slane %v8019_v28, %v9094_v5 }
 0xa40   : > { %v8020_v49 = vcombine.high %v8014_v10, %v8014_v10  ;;  %v8041_v46 = vrot.slane %v8014_v10, %v9094_v5 }
 0xa42   : > { %v8048_v32 = vrot.slane %v8020_v49, %v9094_v5  ;;  %v8049_v38 = vcombine.low %v8027_v33, %v8041_v46  ;;  %v8050_v51 = vcombine.high %v8027_v33, %v8041_v46 }
 0xa44   : > { %v8051_v6 = vcombine.low %v8034_v50, %v8048_v32  ;;  %v8052_v41 = vcombine.high %v8034_v50, %v8048_v32  ;;  %v8059_v19 = vrot.slane %v8049_v38, %v9094_v5  ;;  %v8073_v2 = vrot.slane %v8050_v51, %v9094_v5 }
 0xa46   : > { %v8066_v45 = vrot.slane %v8051_v6, %v9094_v5  ;;  %v8080_v7 = vrot.slane %v8052_v41, %v9094_v5  ;;  %v8081_v12 = vcombine.high %v8059_v19, %v8059_v19  ;;  %v8083_v39 = vcombine.high %v8073_v2, %v8073_v2  ;;  %8484 = vst.msk [vmem:[%s10311_s26 + $0x7] ss:$8 sm:$0x7] %vm10299_vm5, %v8059_v19 }
 0xa47   : > { %8485 = vst.msk [vmem:[%s10311_s26 + $0x1f] ss:$8 sm:$0x7] %vm10299_vm5, %v8073_v2 }
 0xa48   : > { %v8082_v23 = vcombine.high %v8066_v45, %v8066_v45  ;;  %v8084_v63 = vcombine.high %v8080_v7, %v8080_v7  ;;  %8486 = vst.msk [vmem:[%s10311_s26 + $0x37] ss:$8 sm:$0x7] %vm10299_vm5, %v8081_v12  ;;  %8487 = vst.msk [vmem:[%s10311_s26 + $0x4f] ss:$8 sm:$0x7] %vm10299_vm5, %v8083_v39 }
 0xa49   : > { %8488 = vst.msk [vmem:[%s10311_s26 + $0x67] ss:$8 sm:$0x7] %vm10299_vm5, %v8066_v45  ;;  %8489 = vst.msk [vmem:[%s10311_s26 + $0x7f] ss:$8 sm:$0x7] %vm10299_vm5, %v8080_v7 }
 0xa4a   : > { %8490 = vst.msk [vmem:[%s10311_s26 + $0x97] ss:$8 sm:$0x7] %vm10299_vm5, %v8082_v23  ;;  %8491 = vst.msk [vmem:[%s10311_s26 + $0xaf] ss:$8 sm:$0x7] %vm10299_vm5, %v8084_v63 }
 0xa4b   : > { %8947 = shalt.err (!%p8944_p3)
}
 0xa4c   : > { %s8948_s26 = scalar_lea.hbm %s14988_s5, 3072  ;;  %s8952_s9 = scalar_lea.hbm %s15055_s3, 6144 }
 0xa4d   : > { %p8949_p4 = scmp.ne.s32.totalorder %s14988_s5, %s8948_s26  ;;  %p8953_p9 = scmp.lt.s32.totalorder %s14988_s5, %s15055_s3 }
 0xa4e   : > { %p8954_p10 = scmp.lt.s32.totalorder %s8952_s9, %s8948_s26 }
 0xa4f   : > { %p8950_p7 = pnand %p8949_p4, %p9076_p5 }
 0xa50   : > { %p8955_p11 = por %p8954_p10, %p8953_p9 }
 0xa51   : > { %p8951_p8 = pneg %p8950_p7 }
 0xa53   : > { %p8956_p12 = pnand %p8955_p11, %p8951_p8 }
 0xa55   : > { %8959 = shalt.err (!%p8956_p12)
}
 0xa56   : > { %s9016_s19 = smov 384   ;;  %s9017_s20 = smov 24  }
 0xa57   : > { %8866 = dma.vmem_to_hbm [thread:$0]  (%p9076_p5), %s15002_s30, 3072, %s14988_s5, %s15012_s7, %s9016_s19, %s9016_s19, %s9017_s20  }
 0xa58 PF: > { %p8872_p13 = scmp.ge.s32.totalorder %s8994_s15, 2  ;;  %s8146_s28 = sand.u32 1, %s8982_s12  }
 0xa59   : > { %s8147_s16 = scalar_lea.sflag [#allocation3], %s8146_s28 }
 0xa5a   : > { %p8869_p0 = pnand %p8872_p13, %p9080_p6 }
 0xa5c   : > { %p8870_p1 = pneg %p8869_p0 }
 0xa5e   : > { %8977 = dma.done.wait (%p8870_p1), %s8147_s16, 3072  }
 0xa5f   : > { %8979 = vsyncadd (%p8870_p1), %s8147_s16, 4294964224  ;;  %p13_p2 = scmp.ge.s32.totalorder %s9063_s18, 4   ;;  %s15892_s12 = smov %s8986_s13 }
 0xa60   : > { %s15893_s13 = smov %s8990_s14  ;;  %s15894_s14 = smov %s9074_s21 }
 0xa61   : > { %s15895_s15 = smov %s9063_s18  ;;  %15 = sbr.rel (!%p13_p2) target bundleno = 3 (0x3), region = 169 }
 0xa66   :  { %8152 = vsyncpa [#allocation3], 1 }
 0xa67   :  { %8154 = vsyncpa [#allocation3 + $0x1], 1 }

</bundles_post_ra>
